<compile_context>
chip_gen: v6e
topology: v6e:2x2x1
jax: 0.10.0
libtpu: 0.0.40
codegen_flags: <defaults>
</compile_context>

<pallas_src>
import math
import numpy as np
import jax
import jax.numpy as jnp
from jax import lax
from jax.experimental import pallas as pl
from jax.experimental.pallas import tpu as pltpu


TILE_N = 8  # images per grid step; multiple of 8 keeps every sublane dim tile-aligned


# ------------------------------ fused kernel --------------------------------

def _make_kernel(S, C, tile_n):
    ds = S // 16
    chans = (C, 16, 32, 64, 128)
    sizes = (S, S // 2, S // 4, S // 8)          # input spatial size of each block
    # padded index 2*o + k  ->  (half-index start, parity)   for k in {0,1,2}
    offs = ((0, 0), (0, 1), (1, 0))

    def kernel(x_ref, w1_ref, a1_ref, w2_ref, a2_ref, w3_ref, a3_ref, w4_ref, a4_ref,
               wl_ref, bl_ref, out_ref, p1, p2, p3, p4):
        B = tile_n

        def conv_block(pad_ref, w_ref, aff_ref, act, H, W, cin, cout):
            # act: (H, W, B, cin) f32  ->  (H//2, W//2, B, cout) f32
            Ho, Wo = H // 2, W // 2
            # Zero the padded scratch every step (grid axis is 'parallel': no
            # cross-iteration state allowed), then write the interior.
            pad_ref[...] = jnp.zeros_like(pad_ref)
            pad_ref[1:H + 1, 1:W + 1, :, :] = act.astype(pad_ref.dtype)
            ap = pad_ref[...]                                       # (H+2, W+2, B, cin)
            # Split the H axis (a leading, non-tiled dim) into (half, parity): free.
            ap_h = ap.reshape((H + 2) // 2, 2, W + 2, B, cin)
            acc = jnp.zeros((Ho * Wo * B, cout), jnp.float32)
            for kh in range(3):
                rh0, ph = offs[kh]
                rows = ap_h[rh0:rh0 + Ho, ph]                       # (Ho, W+2, B, cin)
                rows_w = rows.reshape(Ho, (W + 2) // 2, 2, B, cin)  # split W: free
                for kw in range(3):
                    rw0, pw = offs[kw]
                    t = rows_w[:, rw0:rw0 + Wo, pw]                 # (Ho, Wo, B, cin)
                    lhs = t.reshape(Ho * Wo * B, cin).astype(jnp.bfloat16)
                    acc = acc + jnp.dot(lhs, w_ref[kh, kw],         # bf16 x bf16 -> f32
                                        preferred_element_type=jnp.float32)
            aff = aff_ref[...]                                      # (3, cout): bias/scale/shift
            y = acc + aff[0:1, :]                                   # conv bias (before LeakyReLU)
            y = jnp.where(y >= 0.0, y, 0.2 * y)                     # LeakyReLU(0.2)
            # TODO(synk): Dropout2d(0.25) is identity at inference; a training-mode
            # per-channel mask would need pltpu.prng_* and is intentionally omitted.
            y = y * aff[1:2, :] + aff[2:3, :]                       # BN eval affine (or 1/0)
            return y.reshape(Ho, Wo, B, cout)

        x0 = x_ref[...]                                             # (S, S, B, C)
        h1 = conv_block(p1, w1_ref, a1_ref, x0, sizes[0], sizes[0], chans[0], chans[1])
        h2 = conv_block(p2, w2_ref, a2_ref, h1, sizes[1], sizes[1], chans[1], chans[2])
        h3 = conv_block(p3, w3_ref, a3_ref, h2, sizes[2], sizes[2], chans[2], chans[3])
        h4 = conv_block(p4, w4_ref, a4_ref, h3, sizes[3], sizes[3], chans[3], chans[4])

        # Final Linear(128*ds*ds -> 1) as VPU multiply + reduce (no 1-lane MXU matmul).
        # Rows of y4 are ordered (h, w, b); wl_ref rows are pre-permuted to (h, w) order.
        y4 = h4.reshape(ds * ds * B, chans[4])                      # (ds*ds*B, 128) f32
        wl = wl_ref[...]                                            # (ds*ds, 128) f32
        accv = jnp.zeros((B, chans[4]), jnp.float32)
        for p in range(ds * ds):
            accv = accv + y4[p * B:(p + 1) * B, :] * wl[p:p + 1, :]
        v = jnp.sum(accv, axis=1, keepdims=True) + bl_ref[...]      # (B, 1)
        out_ref[...] = v.astype(out_ref.dtype)

    return kernel


# ------------------------------ host wrapper --------------------------------

def discriminator_forward(img_nchw, kparams, *, tile_n=TILE_N):
    N, C, S, S2 = img_nchw.shape
    assert S == S2 and S % 16 == 0 and tile_n % 8 == 0
    ds = S // 16
    n_pad = ((N + tile_n - 1) // tile_n) * tile_n

    # Layout plumbing (one cheap XLA transpose): NCHW -> (H, W, N, C) so channels are
    # the lane dim and the batch tile is the sublane dim inside the kernel.
    x = jnp.transpose(img_nchw, (2, 3, 0, 1))
    if n_pad != N:
        x = jnp.pad(x, ((0, 0), (0, 0), (0, n_pad - N), (0, 0)))

    (w1, a1), (w2, a2), (w3, a3), (w4, a4) = kparams["blocks"]
    wl, bl = kparams["linear"]

    def const_spec(arr):
        nd = arr.ndim
        return pl.BlockSpec(arr.shape, lambda i, _n=nd: (0,) * _n)

    in_specs = [pl.BlockSpec((S, S, tile_n, C), lambda i: (0, 0, i, 0))]
    operands = [x]
    for w, a in ((w1, a1), (w2, a2), (w3, a3), (w4, a4)):
        in_specs += [const_spec(w), const_spec(a)]
        operands += [w, a]
    in_specs += [const_spec(wl), const_spec(bl)]
    operands += [wl, bl]

    # VMEM-resident zero-padded activations (kept in f32; cast to bf16 at the MXU input).
    scratch_shapes = [
        pltpu.VMEM((S + 2, S + 2, tile_n, C), jnp.float32),
        pltpu.VMEM((S // 2 + 2, S // 2 + 2, tile_n, 16), jnp.float32),
        pltpu.VMEM((S // 4 + 2, S // 4 + 2, tile_n, 32), jnp.float32),
        pltpu.VMEM((S // 8 + 2, S // 8 + 2, tile_n, 64), jnp.float32),
    ]

    chans = (C, 16, 32, 64, 128)
    flops = 0
    h = S
    for i in range(4):
        h //= 2
        flops += 2 * n_pad * h * h * 9 * chans[i] * chans[i + 1]
    flops += 2 * n_pad * 128 * ds * ds
    bytes_accessed = int(x.size * x.dtype.itemsize + n_pad * 4 +
                         sum(o.size * o.dtype.itemsize for o in operands[1:]))

    out = pl.pallas_call(
        _make_kernel(S, C, tile_n),
        out_shape=jax.ShapeDtypeStruct((n_pad, 1), jnp.float32),
        grid=(n_pad // tile_n,),
        in_specs=in_specs,
        out_specs=pl.BlockSpec((tile_n, 1), lambda i: (i, 0)),
        scratch_shapes=scratch_shapes,
        compiler_params=pltpu.CompilerParams(
            dimension_semantics=("parallel",),           # 2x on v7x (2 TC); no-op on v5e/v6e
            vmem_limit_bytes=48 * 1024 * 1024),          # fits v7x's 64 MiB physical VMEM
        cost_estimate=pl.CostEstimate(flops=flops, transcendentals=0,
                                      bytes_accessed=bytes_accessed),
    )(*operands)
    return out[:N]


# --------------------------- params & preparation ---------------------------

def init_params(key, channels, img_size):
    chans = [channels, 16, 32, 64, 128]
    blocks = []
    for i in range(4):
        cin, cout = chans[i], chans[i + 1]
        key, kw, kb = jax.random.split(key, 3)
        fan_in = cin * 9
        w = jax.random.normal(kw, (cout, cin, 3, 3), jnp.float32) / math.sqrt(fan_in)
        b = jax.random.normal(kb, (cout,), jnp.float32) * 0.01
        if i == 0:  # first block has bn=False
            scale = jnp.ones((cout,), jnp.float32)
            shift = jnp.zeros((cout,), jnp.float32)
        else:
            eps = 0.8  # nn.BatchNorm2d(cout, 0.8) -> eps = 0.8, default running stats
            gamma = jnp.ones((cout,), jnp.float32)
            beta = jnp.zeros((cout,), jnp.float32)
            rmean = jnp.zeros((cout,), jnp.float32)
            rvar = jnp.ones((cout,), jnp.float32)
            scale = gamma / jnp.sqrt(rvar + eps)
            shift = beta - rmean * scale
        blocks.append((w, b, scale, shift))
    ds = img_size // 16
    fin = 128 * ds * ds
    key, kw, kb = jax.random.split(key, 3)
    wl = jax.random.normal(kw, (1, fin), jnp.float32) / math.sqrt(fin)
    bl = jax.random.normal(kb, (1,), jnp.float32) * 0.01
    return {"blocks": blocks, "linear": (wl, bl)}


def prepare_kernel_params(params, img_size):
    """One-time weight prep: pre-transpose conv weights to (3,3,Cin,Cout) bf16,
    pack (bias, scale, shift) into one (3, Cout) f32 array, and permute the Linear
    weight columns from the NCHW-flatten (c,h,w) order to the kernel's (h,w,c) order."""
    ds = img_size // 16
    blocks = []
    for (w, b, scale, shift) in params["blocks"]:
        w_taps = jnp.transpose(w, (2, 3, 1, 0)).astype(jnp.bfloat16)      # (3,3,Cin,Cout)
        aff = jnp.stack([b, scale, shift], axis=0).astype(jnp.float32)    # (3,Cout)
        blocks.append((w_taps, aff))
    wl, bl = params["linear"]
    wl_hwc = jnp.transpose(wl.reshape(128, ds, ds), (1, 2, 0)).reshape(ds * ds, 128)
    return {"blocks": blocks,
            "linear": (wl_hwc.astype(jnp.float32), bl.reshape(1, 1).astype(jnp.float32))}


# ----------------------------- pure-JAX reference ---------------------------

def reference_forward(img_nchw, params):
    """Mirrors the kernel numerics: bf16 conv inputs, f32 accumulation, f32 epilogue."""
    x = img_nchw
    for (w, b, scale, shift) in params["blocks"]:
        y = lax.conv_general_dilated(
            x.astype(jnp.bfloat16), w.astype(jnp.bfloat16),
            window_strides=(2, 2), padding=((1, 1), (1, 1)),
            dimension_numbers=("NCHW", "OIHW", "NCHW"),
            preferred_element_type=jnp.float32)
        y = y + b.reshape(1, -1, 1, 1)
        y = jnp.where(y >= 0.0, y, 0.2 * y)
        y = y * scale.reshape(1, -1, 1, 1) + shift.reshape(1, -1, 1, 1)
        x = y
    feat = x.reshape(x.shape[0], -1)
    wl, bl = params["linear"]
    return feat @ wl.T + bl


# ----------------------------------- main ------------------------------------

if __name__ == "__main__":
    N, C, S = 2, 4, 16  # batch=2, opt.channels=4, opt.img_size=16 (ds_size = 1)
    key = jax.random.PRNGKey(0)
    k_img, k_param = jax.random.split(key)
    img = jax.random.normal(k_img, (N, C, S, S), jnp.float32)

    params = init_params(k_param, C, S)
    kparams = prepare_kernel_params(params, S)

    fwd = jax.jit(discriminator_forward)
    validity = fwd(img, kparams)
    jax.block_until_ready(validity)
    assert validity.shape == (N, 1)

    ref = reference_forward(img, params)
    np.testing.assert_allclose(np.asarray(validity), np.asarray(ref), atol=2e-3, rtol=2e-3)

    print("KERNEL_OK")
</pallas_src>

<mosaic_0001>
module attributes {stable_mosaic.version = 11 : i64} {
  func.func @kernel(%arg0: i32, %arg1: memref<16x16x8x4xf32, #tpu.memory_space<vmem>>, %arg2: memref<3x3x4x16xbf16, #tpu.memory_space<vmem>>, %arg3: memref<3x16xf32, #tpu.memory_space<vmem>>, %arg4: memref<3x3x16x32xbf16, #tpu.memory_space<vmem>>, %arg5: memref<3x32xf32, #tpu.memory_space<vmem>>, %arg6: memref<3x3x32x64xbf16, #tpu.memory_space<vmem>>, %arg7: memref<3x64xf32, #tpu.memory_space<vmem>>, %arg8: memref<3x3x64x128xbf16, #tpu.memory_space<vmem>>, %arg9: memref<3x128xf32, #tpu.memory_space<vmem>>, %arg10: memref<1x128xf32, #tpu.memory_space<vmem>>, %arg11: memref<1x1xf32, #tpu.memory_space<vmem>>, %arg12: memref<8x1xf32, #tpu.memory_space<vmem>>, %arg13: memref<18x18x8x4xf32, #tpu.memory_space<vmem>>, %arg14: memref<10x10x8x16xf32, #tpu.memory_space<vmem>>, %arg15: memref<6x6x8x32xf32, #tpu.memory_space<vmem>>, %arg16: memref<4x4x8x64xf32, #tpu.memory_space<vmem>>) attributes {dimension_semantics = [#tpu.dimension_semantics<parallel>], iteration_bounds = array<i64: 1>, scalar_prefetch = 0 : i64, scratch_operands = 4 : i64, tpu.core_type = #tpu.core_type<tc>, window_params = [{transform_indices = @transform_0, window_bounds = array<i64: 16, 16, 8, 4>}, {pipeline_mode = #tpu.pipeline_mode<synchronous>, transform_indices = @transform_1, window_bounds = array<i64: 3, 3, 4, 16>}, {pipeline_mode = #tpu.pipeline_mode<synchronous>, transform_indices = @transform_2, window_bounds = array<i64: 3, 16>}, {pipeline_mode = #tpu.pipeline_mode<synchronous>, transform_indices = @transform_3, window_bounds = array<i64: 3, 3, 16, 32>}, {pipeline_mode = #tpu.pipeline_mode<synchronous>, transform_indices = @transform_4, window_bounds = array<i64: 3, 32>}, {pipeline_mode = #tpu.pipeline_mode<synchronous>, transform_indices = @transform_5, window_bounds = array<i64: 3, 3, 32, 64>}, {pipeline_mode = #tpu.pipeline_mode<synchronous>, transform_indices = @transform_6, window_bounds = array<i64: 3, 64>}, {pipeline_mode = #tpu.pipeline_mode<synchronous>, transform_indices = @transform_7, window_bounds = array<i64: 3, 3, 64, 128>}, {pipeline_mode = #tpu.pipeline_mode<synchronous>, transform_indices = @transform_8, window_bounds = array<i64: 3, 128>}, {pipeline_mode = #tpu.pipeline_mode<synchronous>, transform_indices = @transform_9, window_bounds = array<i64: 1, 128>}, {pipeline_mode = #tpu.pipeline_mode<synchronous>, transform_indices = @transform_10, window_bounds = array<i64: 1, 1>}, {transform_indices = @transform_11, window_bounds = array<i64: 8, 1>}]} {
    %c0 = arith.constant 0 : index
    %c0_0 = arith.constant 0 : index
    %c0_1 = arith.constant 0 : index
    %c0_2 = arith.constant 0 : index
    %0 = vector.load %arg1[%c0, %c0_0, %c0_1, %c0_2] : memref<16x16x8x4xf32, #tpu.memory_space<vmem>>, vector<16x16x8x4xf32>
    %cst = arith.constant 0.000000e+00 : f32
    %1 = vector.broadcast %cst : f32 to vector<18x18x8x4xf32>
    %c0_3 = arith.constant 0 : index
    %c0_4 = arith.constant 0 : index
    %c0_5 = arith.constant 0 : index
    %c0_6 = arith.constant 0 : index
    %2 = vector.load %arg13[%c0_3, %c0_4, %c0_5, %c0_6] : memref<18x18x8x4xf32, #tpu.memory_space<vmem>>, vector<18x18x8x4xf32>
    tpu.vector_store %arg13[%c0_3, %c0_4, %c0_5, %c0_6], %1 {strides = array<i32>} : memref<18x18x8x4xf32, #tpu.memory_space<vmem>>, vector<18x18x8x4xf32>,
    %c1 = arith.constant 1 : index
    %c1_7 = arith.constant 1 : index
    %c0_8 = arith.constant 0 : index
    %c0_9 = arith.constant 0 : index
    %3 = vector.load %arg13[%c1, %c1_7, %c0_8, %c0_9] : memref<18x18x8x4xf32, #tpu.memory_space<vmem>>, vector<16x16x8x4xf32>
    tpu.vector_store %arg13[%c1, %c1_7, %c0_8, %c0_9], %0 {strides = array<i32>} : memref<18x18x8x4xf32, #tpu.memory_space<vmem>>, vector<16x16x8x4xf32>,
    %c0_10 = arith.constant 0 : index
    %c0_11 = arith.constant 0 : index
    %c0_12 = arith.constant 0 : index
    %c0_13 = arith.constant 0 : index
    %4 = vector.load %arg13[%c0_10, %c0_11, %c0_12, %c0_13] : memref<18x18x8x4xf32, #tpu.memory_space<vmem>>, vector<18x18x8x4xf32>
    %5 = vector.shape_cast %4 : vector<18x18x8x4xf32> to vector<9x2x18x8x4xf32>
    %cst_14 = arith.constant 0.000000e+00 : f32
    %6 = vector.broadcast %cst_14 : f32 to vector<512x16xf32>
    %7 = vector.extract_strided_slice %5 {offsets = [0, 0, 0, 0, 0], sizes = [8, 1, 18, 8, 4], strides = [1, 1, 1, 1, 1]} : vector<9x2x18x8x4xf32> to vector<8x1x18x8x4xf32>
    %8 = vector.shape_cast %7 : vector<8x1x18x8x4xf32> to vector<8x18x8x4xf32>
    %9 = vector.shape_cast %8 : vector<8x18x8x4xf32> to vector<8x9x2x8x4xf32>
    %10 = vector.extract_strided_slice %9 {offsets = [0, 0, 0, 0, 0], sizes = [8, 8, 1, 8, 4], strides = [1, 1, 1, 1, 1]} : vector<8x9x2x8x4xf32> to vector<8x8x1x8x4xf32>
    %11 = vector.shape_cast %10 : vector<8x8x1x8x4xf32> to vector<8x8x8x4xf32>
    %12 = vector.shape_cast %11 : vector<8x8x8x4xf32> to vector<512x4xf32>
    %13 = arith.truncf %12 : vector<512x4xf32> to vector<512x4xbf16>
    %c0_15 = arith.constant 0 : index
    %c0_16 = arith.constant 0 : index
    %c0_17 = arith.constant 0 : index
    %c0_18 = arith.constant 0 : index
    %14 = vector.load %arg2[%c0_15, %c0_16, %c0_17, %c0_18] : memref<3x3x4x16xbf16, #tpu.memory_space<vmem>>, vector<1x1x4x16xbf16>
    %15 = vector.shape_cast %14 : vector<1x1x4x16xbf16> to vector<4x16xbf16>
    %cst_19 = arith.constant dense<0.000000e+00> : vector<512x16xf32>
    %16 = tpu.matmul %13, %15, %cst_19 {dimension_numbers = #tpu.dot_dimension_numbers<[1], [0], [0], [1], [0, 0, 1, 1], [], []>} : vector<512x4xbf16>, vector<4x16xbf16>, vector<512x16xf32> -> vector<512x16xf32>
    %17 = arith.addf %6, %16 : vector<512x16xf32>
    %18 = vector.extract_strided_slice %9 {offsets = [0, 0, 1, 0, 0], sizes = [8, 8, 1, 8, 4], strides = [1, 1, 1, 1, 1]} : vector<8x9x2x8x4xf32> to vector<8x8x1x8x4xf32>
    %19 = vector.shape_cast %18 : vector<8x8x1x8x4xf32> to vector<8x8x8x4xf32>
    %20 = vector.shape_cast %19 : vector<8x8x8x4xf32> to vector<512x4xf32>
    %21 = arith.truncf %20 : vector<512x4xf32> to vector<512x4xbf16>
    %c0_20 = arith.constant 0 : index
    %c1_21 = arith.constant 1 : index
    %c0_22 = arith.constant 0 : index
    %c0_23 = arith.constant 0 : index
    %22 = vector.load %arg2[%c0_20, %c1_21, %c0_22, %c0_23] : memref<3x3x4x16xbf16, #tpu.memory_space<vmem>>, vector<1x1x4x16xbf16>
    %23 = vector.shape_cast %22 : vector<1x1x4x16xbf16> to vector<4x16xbf16>
    %cst_24 = arith.constant dense<0.000000e+00> : vector<512x16xf32>
    %24 = tpu.matmul %21, %23, %cst_24 {dimension_numbers = #tpu.dot_dimension_numbers<[1], [0], [0], [1], [0, 0, 1, 1], [], []>} : vector<512x4xbf16>, vector<4x16xbf16>, vector<512x16xf32> -> vector<512x16xf32>
    %25 = arith.addf %17, %24 : vector<512x16xf32>
    %26 = vector.extract_strided_slice %9 {offsets = [0, 1, 0, 0, 0], sizes = [8, 8, 1, 8, 4], strides = [1, 1, 1, 1, 1]} : vector<8x9x2x8x4xf32> to vector<8x8x1x8x4xf32>
    %27 = vector.shape_cast %26 : vector<8x8x1x8x4xf32> to vector<8x8x8x4xf32>
    %28 = vector.shape_cast %27 : vector<8x8x8x4xf32> to vector<512x4xf32>
    %29 = arith.truncf %28 : vector<512x4xf32> to vector<512x4xbf16>
    %c0_25 = arith.constant 0 : index
    %c2 = arith.constant 2 : index
    %c0_26 = arith.constant 0 : index
    %c0_27 = arith.constant 0 : index
    %30 = vector.load %arg2[%c0_25, %c2, %c0_26, %c0_27] : memref<3x3x4x16xbf16, #tpu.memory_space<vmem>>, vector<1x1x4x16xbf16>
    %31 = vector.shape_cast %30 : vector<1x1x4x16xbf16> to vector<4x16xbf16>
    %cst_28 = arith.constant dense<0.000000e+00> : vector<512x16xf32>
    %32 = tpu.matmul %29, %31, %cst_28 {dimension_numbers = #tpu.dot_dimension_numbers<[1], [0], [0], [1], [0, 0, 1, 1], [], []>} : vector<512x4xbf16>, vector<4x16xbf16>, vector<512x16xf32> -> vector<512x16xf32>
    %33 = arith.addf %25, %32 : vector<512x16xf32>
    %34 = vector.extract_strided_slice %5 {offsets = [0, 1, 0, 0, 0], sizes = [8, 1, 18, 8, 4], strides = [1, 1, 1, 1, 1]} : vector<9x2x18x8x4xf32> to vector<8x1x18x8x4xf32>
    %35 = vector.shape_cast %34 : vector<8x1x18x8x4xf32> to vector<8x18x8x4xf32>
    %36 = vector.shape_cast %35 : vector<8x18x8x4xf32> to vector<8x9x2x8x4xf32>
    %37 = vector.extract_strided_slice %36 {offsets = [0, 0, 0, 0, 0], sizes = [8, 8, 1, 8, 4], strides = [1, 1, 1, 1, 1]} : vector<8x9x2x8x4xf32> to vector<8x8x1x8x4xf32>
    %38 = vector.shape_cast %37 : vector<8x8x1x8x4xf32> to vector<8x8x8x4xf32>
    %39 = vector.shape_cast %38 : vector<8x8x8x4xf32> to vector<512x4xf32>
    %40 = arith.truncf %39 : vector<512x4xf32> to vector<512x4xbf16>
    %c1_29 = arith.constant 1 : index
    %c0_30 = arith.constant 0 : index
    %c0_31 = arith.constant 0 : index
    %c0_32 = arith.constant 0 : index
    %41 = vector.load %arg2[%c1_29, %c0_30, %c0_31, %c0_32] : memref<3x3x4x16xbf16, #tpu.memory_space<vmem>>, vector<1x1x4x16xbf16>
    %42 = vector.shape_cast %41 : vector<1x1x4x16xbf16> to vector<4x16xbf16>
    %cst_33 = arith.constant dense<0.000000e+00> : vector<512x16xf32>
    %43 = tpu.matmul %40, %42, %cst_33 {dimension_numbers = #tpu.dot_dimension_numbers<[1], [0], [0], [1], [0, 0, 1, 1], [], []>} : vector<512x4xbf16>, vector<4x16xbf16>, vector<512x16xf32> -> vector<512x16xf32>
    %44 = arith.addf %33, %43 : vector<512x16xf32>
    %45 = vector.extract_strided_slice %36 {offsets = [0, 0, 1, 0, 0], sizes = [8, 8, 1, 8, 4], strides = [1, 1, 1, 1, 1]} : vector<8x9x2x8x4xf32> to vector<8x8x1x8x4xf32>
    %46 = vector.shape_cast %45 : vector<8x8x1x8x4xf32> to vector<8x8x8x4xf32>
    %47 = vector.shape_cast %46 : vector<8x8x8x4xf32> to vector<512x4xf32>
    %48 = arith.truncf %47 : vector<512x4xf32> to vector<512x4xbf16>
    %c1_34 = arith.constant 1 : index
    %c1_35 = arith.constant 1 : index
    %c0_36 = arith.constant 0 : index
    %c0_37 = arith.constant 0 : index
    %49 = vector.load %arg2[%c1_34, %c1_35, %c0_36, %c0_37] : memref<3x3x4x16xbf16, #tpu.memory_space<vmem>>, vector<1x1x4x16xbf16>
    %50 = vector.shape_cast %49 : vector<1x1x4x16xbf16> to vector<4x16xbf16>
    %cst_38 = arith.constant dense<0.000000e+00> : vector<512x16xf32>
    %51 = tpu.matmul %48, %50, %cst_38 {dimension_numbers = #tpu.dot_dimension_numbers<[1], [0], [0], [1], [0, 0, 1, 1], [], []>} : vector<512x4xbf16>, vector<4x16xbf16>, vector<512x16xf32> -> vector<512x16xf32>
    %52 = arith.addf %44, %51 : vector<512x16xf32>
    %53 = vector.extract_strided_slice %36 {offsets = [0, 1, 0, 0, 0], sizes = [8, 8, 1, 8, 4], strides = [1, 1, 1, 1, 1]} : vector<8x9x2x8x4xf32> to vector<8x8x1x8x4xf32>
    %54 = vector.shape_cast %53 : vector<8x8x1x8x4xf32> to vector<8x8x8x4xf32>
    %55 = vector.shape_cast %54 : vector<8x8x8x4xf32> to vector<512x4xf32>
    %56 = arith.truncf %55 : vector<512x4xf32> to vector<512x4xbf16>
    %c1_39 = arith.constant 1 : index
    %c2_40 = arith.constant 2 : index
    %c0_41 = arith.constant 0 : index
    %c0_42 = arith.constant 0 : index
    %57 = vector.load %arg2[%c1_39, %c2_40, %c0_41, %c0_42] : memref<3x3x4x16xbf16, #tpu.memory_space<vmem>>, vector<1x1x4x16xbf16>
    %58 = vector.shape_cast %57 : vector<1x1x4x16xbf16> to vector<4x16xbf16>
    %cst_43 = arith.constant dense<0.000000e+00> : vector<512x16xf32>
    %59 = tpu.matmul %56, %58, %cst_43 {dimension_numbers = #tpu.dot_dimension_numbers<[1], [0], [0], [1], [0, 0, 1, 1], [], []>} : vector<512x4xbf16>, vector<4x16xbf16>, vector<512x16xf32> -> vector<512x16xf32>
    %60 = arith.addf %52, %59 : vector<512x16xf32>
    %61 = vector.extract_strided_slice %5 {offsets = [1, 0, 0, 0, 0], sizes = [8, 1, 18, 8, 4], strides = [1, 1, 1, 1, 1]} : vector<9x2x18x8x4xf32> to vector<8x1x18x8x4xf32>
    %62 = vector.shape_cast %61 : vector<8x1x18x8x4xf32> to vector<8x18x8x4xf32>
    %63 = vector.shape_cast %62 : vector<8x18x8x4xf32> to vector<8x9x2x8x4xf32>
    %64 = vector.extract_strided_slice %63 {offsets = [0, 0, 0, 0, 0], sizes = [8, 8, 1, 8, 4], strides = [1, 1, 1, 1, 1]} : vector<8x9x2x8x4xf32> to vector<8x8x1x8x4xf32>
    %65 = vector.shape_cast %64 : vector<8x8x1x8x4xf32> to vector<8x8x8x4xf32>
    %66 = vector.shape_cast %65 : vector<8x8x8x4xf32> to vector<512x4xf32>
    %67 = arith.truncf %66 : vector<512x4xf32> to vector<512x4xbf16>
    %c2_44 = arith.constant 2 : index
    %c0_45 = arith.constant 0 : index
    %c0_46 = arith.constant 0 : index
    %c0_47 = arith.constant 0 : index
    %68 = vector.load %arg2[%c2_44, %c0_45, %c0_46, %c0_47] : memref<3x3x4x16xbf16, #tpu.memory_space<vmem>>, vector<1x1x4x16xbf16>
    %69 = vector.shape_cast %68 : vector<1x1x4x16xbf16> to vector<4x16xbf16>
    %cst_48 = arith.constant dense<0.000000e+00> : vector<512x16xf32>
    %70 = tpu.matmul %67, %69, %cst_48 {dimension_numbers = #tpu.dot_dimension_numbers<[1], [0], [0], [1], [0, 0, 1, 1], [], []>} : vector<512x4xbf16>, vector<4x16xbf16>, vector<512x16xf32> -> vector<512x16xf32>
    %71 = arith.addf %60, %70 : vector<512x16xf32>
    %72 = vector.extract_strided_slice %63 {offsets = [0, 0, 1, 0, 0], sizes = [8, 8, 1, 8, 4], strides = [1, 1, 1, 1, 1]} : vector<8x9x2x8x4xf32> to vector<8x8x1x8x4xf32>
    %73 = vector.shape_cast %72 : vector<8x8x1x8x4xf32> to vector<8x8x8x4xf32>
    %74 = vector.shape_cast %73 : vector<8x8x8x4xf32> to vector<512x4xf32>
    %75 = arith.truncf %74 : vector<512x4xf32> to vector<512x4xbf16>
    %c2_49 = arith.constant 2 : index
    %c1_50 = arith.constant 1 : index
    %c0_51 = arith.constant 0 : index
    %c0_52 = arith.constant 0 : index
    %76 = vector.load %arg2[%c2_49, %c1_50, %c0_51, %c0_52] : memref<3x3x4x16xbf16, #tpu.memory_space<vmem>>, vector<1x1x4x16xbf16>
    %77 = vector.shape_cast %76 : vector<1x1x4x16xbf16> to vector<4x16xbf16>
    %cst_53 = arith.constant dense<0.000000e+00> : vector<512x16xf32>
    %78 = tpu.matmul %75, %77, %cst_53 {dimension_numbers = #tpu.dot_dimension_numbers<[1], [0], [0], [1], [0, 0, 1, 1], [], []>} : vector<512x4xbf16>, vector<4x16xbf16>, vector<512x16xf32> -> vector<512x16xf32>
    %79 = arith.addf %71, %78 : vector<512x16xf32>
    %80 = vector.extract_strided_slice %63 {offsets = [0, 1, 0, 0, 0], sizes = [8, 8, 1, 8, 4], strides = [1, 1, 1, 1, 1]} : vector<8x9x2x8x4xf32> to vector<8x8x1x8x4xf32>
    %81 = vector.shape_cast %80 : vector<8x8x1x8x4xf32> to vector<8x8x8x4xf32>
    %82 = vector.shape_cast %81 : vector<8x8x8x4xf32> to vector<512x4xf32>
    %83 = arith.truncf %82 : vector<512x4xf32> to vector<512x4xbf16>
    %c2_54 = arith.constant 2 : index
    %c2_55 = arith.constant 2 : index
    %c0_56 = arith.constant 0 : index
    %c0_57 = arith.constant 0 : index
    %84 = vector.load %arg2[%c2_54, %c2_55, %c0_56, %c0_57] : memref<3x3x4x16xbf16, #tpu.memory_space<vmem>>, vector<1x1x4x16xbf16>
    %85 = vector.shape_cast %84 : vector<1x1x4x16xbf16> to vector<4x16xbf16>
    %cst_58 = arith.constant dense<0.000000e+00> : vector<512x16xf32>
    %86 = tpu.matmul %83, %85, %cst_58 {dimension_numbers = #tpu.dot_dimension_numbers<[1], [0], [0], [1], [0, 0, 1, 1], [], []>} : vector<512x4xbf16>, vector<4x16xbf16>, vector<512x16xf32> -> vector<512x16xf32>
    %87 = arith.addf %79, %86 : vector<512x16xf32>
    %c0_59 = arith.constant 0 : index
    %c0_60 = arith.constant 0 : index
    %88 = vector.load %arg3[%c0_59, %c0_60] : memref<3x16xf32, #tpu.memory_space<vmem>>, vector<3x16xf32>
    %89 = vector.extract_strided_slice %88 {offsets = [0, 0], sizes = [1, 16], strides = [1, 1]} : vector<3x16xf32> to vector<1x16xf32>
    %90 = vector.broadcast %89 : vector<1x16xf32> to vector<512x16xf32>
    %91 = arith.addf %87, %90 : vector<512x16xf32>
    %cst_61 = arith.constant 0.000000e+00 : f32
    %92 = vector.broadcast %cst_61 : f32 to vector<512x16xf32>
    %93 = arith.cmpf oge, %91, %92 : vector<512x16xf32>
    %cst_62 = arith.constant 2.000000e-01 : f32
    %94 = vector.broadcast %cst_62 : f32 to vector<512x16xf32>
    %95 = arith.mulf %94, %91 : vector<512x16xf32>
    %96 = arith.select %93, %91, %95 : vector<512x16xi1>, vector<512x16xf32>
    %97 = vector.extract_strided_slice %88 {offsets = [1, 0], sizes = [1, 16], strides = [1, 1]} : vector<3x16xf32> to vector<1x16xf32>
    %98 = vector.broadcast %97 : vector<1x16xf32> to vector<512x16xf32>
    %99 = arith.mulf %96, %98 : vector<512x16xf32>
    %100 = vector.extract_strided_slice %88 {offsets = [2, 0], sizes = [1, 16], strides = [1, 1]} : vector<3x16xf32> to vector<1x16xf32>
    %101 = vector.broadcast %100 : vector<1x16xf32> to vector<512x16xf32>
    %102 = arith.addf %99, %101 : vector<512x16xf32>
    %103 = vector.shape_cast %102 : vector<512x16xf32> to vector<8x8x8x16xf32>
    %cst_63 = arith.constant 0.000000e+00 : f32
    %104 = vector.broadcast %cst_63 : f32 to vector<10x10x8x16xf32>
    %c0_64 = arith.constant 0 : index
    %c0_65 = arith.constant 0 : index
    %c0_66 = arith.constant 0 : index
    %c0_67 = arith.constant 0 : index
    %105 = vector.load %arg14[%c0_64, %c0_65, %c0_66, %c0_67] : memref<10x10x8x16xf32, #tpu.memory_space<vmem>>, vector<10x10x8x16xf32>
    tpu.vector_store %arg14[%c0_64, %c0_65, %c0_66, %c0_67], %104 {strides = array<i32>} : memref<10x10x8x16xf32, #tpu.memory_space<vmem>>, vector<10x10x8x16xf32>,
    %c1_68 = arith.constant 1 : index
    %c1_69 = arith.constant 1 : index
    %c0_70 = arith.constant 0 : index
    %c0_71 = arith.constant 0 : index
    %106 = vector.load %arg14[%c1_68, %c1_69, %c0_70, %c0_71] : memref<10x10x8x16xf32, #tpu.memory_space<vmem>>, vector<8x8x8x16xf32>
    tpu.vector_store %arg14[%c1_68, %c1_69, %c0_70, %c0_71], %103 {strides = array<i32>} : memref<10x10x8x16xf32, #tpu.memory_space<vmem>>, vector<8x8x8x16xf32>,
    %c0_72 = arith.constant 0 : index
    %c0_73 = arith.constant 0 : index
    %c0_74 = arith.constant 0 : index
    %c0_75 = arith.constant 0 : index
    %107 = vector.load %arg14[%c0_72, %c0_73, %c0_74, %c0_75] : memref<10x10x8x16xf32, #tpu.memory_space<vmem>>, vector<10x10x8x16xf32>
    %108 = vector.shape_cast %107 : vector<10x10x8x16xf32> to vector<5x2x10x8x16xf32>
    %cst_76 = arith.constant 0.000000e+00 : f32
    %109 = vector.broadcast %cst_76 : f32 to vector<128x32xf32>
    %110 = vector.extract_strided_slice %108 {offsets = [0, 0, 0, 0, 0], sizes = [4, 1, 10, 8, 16], strides = [1, 1, 1, 1, 1]} : vector<5x2x10x8x16xf32> to vector<4x1x10x8x16xf32>
    %111 = vector.shape_cast %110 : vector<4x1x10x8x16xf32> to vector<4x10x8x16xf32>
    %112 = vector.shape_cast %111 : vector<4x10x8x16xf32> to vector<4x5x2x8x16xf32>
    %113 = vector.extract_strided_slice %112 {offsets = [0, 0, 0, 0, 0], sizes = [4, 4, 1, 8, 16], strides = [1, 1, 1, 1, 1]} : vector<4x5x2x8x16xf32> to vector<4x4x1x8x16xf32>
    %114 = vector.shape_cast %113 : vector<4x4x1x8x16xf32> to vector<4x4x8x16xf32>
    %115 = vector.shape_cast %114 : vector<4x4x8x16xf32> to vector<128x16xf32>
    %116 = arith.truncf %115 : vector<128x16xf32> to vector<128x16xbf16>
    %c0_77 = arith.constant 0 : index
    %c0_78 = arith.constant 0 : index
    %c0_79 = arith.constant 0 : index
    %c0_80 = arith.constant 0 : index
    %117 = vector.load %arg4[%c0_77, %c0_78, %c0_79, %c0_80] : memref<3x3x16x32xbf16, #tpu.memory_space<vmem>>, vector<1x1x16x32xbf16>
    %118 = vector.shape_cast %117 : vector<1x1x16x32xbf16> to vector<16x32xbf16>
    %cst_81 = arith.constant dense<0.000000e+00> : vector<128x32xf32>
    %119 = tpu.matmul %116, %118, %cst_81 {dimension_numbers = #tpu.dot_dimension_numbers<[1], [0], [0], [1], [0, 0, 1, 1], [], []>} : vector<128x16xbf16>, vector<16x32xbf16>, vector<128x32xf32> -> vector<128x32xf32>
    %120 = arith.addf %109, %119 : vector<128x32xf32>
    %121 = vector.extract_strided_slice %112 {offsets = [0, 0, 1, 0, 0], sizes = [4, 4, 1, 8, 16], strides = [1, 1, 1, 1, 1]} : vector<4x5x2x8x16xf32> to vector<4x4x1x8x16xf32>
    %122 = vector.shape_cast %121 : vector<4x4x1x8x16xf32> to vector<4x4x8x16xf32>
    %123 = vector.shape_cast %122 : vector<4x4x8x16xf32> to vector<128x16xf32>
    %124 = arith.truncf %123 : vector<128x16xf32> to vector<128x16xbf16>
    %c0_82 = arith.constant 0 : index
    %c1_83 = arith.constant 1 : index
    %c0_84 = arith.constant 0 : index
    %c0_85 = arith.constant 0 : index
    %125 = vector.load %arg4[%c0_82, %c1_83, %c0_84, %c0_85] : memref<3x3x16x32xbf16, #tpu.memory_space<vmem>>, vector<1x1x16x32xbf16>
    %126 = vector.shape_cast %125 : vector<1x1x16x32xbf16> to vector<16x32xbf16>
    %cst_86 = arith.constant dense<0.000000e+00> : vector<128x32xf32>
    %127 = tpu.matmul %124, %126, %cst_86 {dimension_numbers = #tpu.dot_dimension_numbers<[1], [0], [0], [1], [0, 0, 1, 1], [], []>} : vector<128x16xbf16>, vector<16x32xbf16>, vector<128x32xf32> -> vector<128x32xf32>
    %128 = arith.addf %120, %127 : vector<128x32xf32>
    %129 = vector.extract_strided_slice %112 {offsets = [0, 1, 0, 0, 0], sizes = [4, 4, 1, 8, 16], strides = [1, 1, 1, 1, 1]} : vector<4x5x2x8x16xf32> to vector<4x4x1x8x16xf32>
    %130 = vector.shape_cast %129 : vector<4x4x1x8x16xf32> to vector<4x4x8x16xf32>
    %131 = vector.shape_cast %130 : vector<4x4x8x16xf32> to vector<128x16xf32>
    %132 = arith.truncf %131 : vector<128x16xf32> to vector<128x16xbf16>
    %c0_87 = arith.constant 0 : index
    %c2_88 = arith.constant 2 : index
    %c0_89 = arith.constant 0 : index
    %c0_90 = arith.constant 0 : index
    %133 = vector.load %arg4[%c0_87, %c2_88, %c0_89, %c0_90] : memref<3x3x16x32xbf16, #tpu.memory_space<vmem>>, vector<1x1x16x32xbf16>
    %134 = vector.shape_cast %133 : vector<1x1x16x32xbf16> to vector<16x32xbf16>
    %cst_91 = arith.constant dense<0.000000e+00> : vector<128x32xf32>
    %135 = tpu.matmul %132, %134, %cst_91 {dimension_numbers = #tpu.dot_dimension_numbers<[1], [0], [0], [1], [0, 0, 1, 1], [], []>} : vector<128x16xbf16>, vector<16x32xbf16>, vector<128x32xf32> -> vector<128x32xf32>
    %136 = arith.addf %128, %135 : vector<128x32xf32>
    %137 = vector.extract_strided_slice %108 {offsets = [0, 1, 0, 0, 0], sizes = [4, 1, 10, 8, 16], strides = [1, 1, 1, 1, 1]} : vector<5x2x10x8x16xf32> to vector<4x1x10x8x16xf32>
    %138 = vector.shape_cast %137 : vector<4x1x10x8x16xf32> to vector<4x10x8x16xf32>
    %139 = vector.shape_cast %138 : vector<4x10x8x16xf32> to vector<4x5x2x8x16xf32>
    %140 = vector.extract_strided_slice %139 {offsets = [0, 0, 0, 0, 0], sizes = [4, 4, 1, 8, 16], strides = [1, 1, 1, 1, 1]} : vector<4x5x2x8x16xf32> to vector<4x4x1x8x16xf32>
    %141 = vector.shape_cast %140 : vector<4x4x1x8x16xf32> to vector<4x4x8x16xf32>
    %142 = vector.shape_cast %141 : vector<4x4x8x16xf32> to vector<128x16xf32>
    %143 = arith.truncf %142 : vector<128x16xf32> to vector<128x16xbf16>
    %c1_92 = arith.constant 1 : index
    %c0_93 = arith.constant 0 : index
    %c0_94 = arith.constant 0 : index
    %c0_95 = arith.constant 0 : index
    %144 = vector.load %arg4[%c1_92, %c0_93, %c0_94, %c0_95] : memref<3x3x16x32xbf16, #tpu.memory_space<vmem>>, vector<1x1x16x32xbf16>
    %145 = vector.shape_cast %144 : vector<1x1x16x32xbf16> to vector<16x32xbf16>
    %cst_96 = arith.constant dense<0.000000e+00> : vector<128x32xf32>
    %146 = tpu.matmul %143, %145, %cst_96 {dimension_numbers = #tpu.dot_dimension_numbers<[1], [0], [0], [1], [0, 0, 1, 1], [], []>} : vector<128x16xbf16>, vector<16x32xbf16>, vector<128x32xf32> -> vector<128x32xf32>
    %147 = arith.addf %136, %146 : vector<128x32xf32>
    %148 = vector.extract_strided_slice %139 {offsets = [0, 0, 1, 0, 0], sizes = [4, 4, 1, 8, 16], strides = [1, 1, 1, 1, 1]} : vector<4x5x2x8x16xf32> to vector<4x4x1x8x16xf32>
    %149 = vector.shape_cast %148 : vector<4x4x1x8x16xf32> to vector<4x4x8x16xf32>
    %150 = vector.shape_cast %149 : vector<4x4x8x16xf32> to vector<128x16xf32>
    %151 = arith.truncf %150 : vector<128x16xf32> to vector<128x16xbf16>
    %c1_97 = arith.constant 1 : index
    %c1_98 = arith.constant 1 : index
    %c0_99 = arith.constant 0 : index
    %c0_100 = arith.constant 0 : index
    %152 = vector.load %arg4[%c1_97, %c1_98, %c0_99, %c0_100] : memref<3x3x16x32xbf16, #tpu.memory_space<vmem>>, vector<1x1x16x32xbf16>
    %153 = vector.shape_cast %152 : vector<1x1x16x32xbf16> to vector<16x32xbf16>
    %cst_101 = arith.constant dense<0.000000e+00> : vector<128x32xf32>
    %154 = tpu.matmul %151, %153, %cst_101 {dimension_numbers = #tpu.dot_dimension_numbers<[1], [0], [0], [1], [0, 0, 1, 1], [], []>} : vector<128x16xbf16>, vector<16x32xbf16>, vector<128x32xf32> -> vector<128x32xf32>
    %155 = arith.addf %147, %154 : vector<128x32xf32>
    %156 = vector.extract_strided_slice %139 {offsets = [0, 1, 0, 0, 0], sizes = [4, 4, 1, 8, 16], strides = [1, 1, 1, 1, 1]} : vector<4x5x2x8x16xf32> to vector<4x4x1x8x16xf32>
    %157 = vector.shape_cast %156 : vector<4x4x1x8x16xf32> to vector<4x4x8x16xf32>
    %158 = vector.shape_cast %157 : vector<4x4x8x16xf32> to vector<128x16xf32>
    %159 = arith.truncf %158 : vector<128x16xf32> to vector<128x16xbf16>
    %c1_102 = arith.constant 1 : index
    %c2_103 = arith.constant 2 : index
    %c0_104 = arith.constant 0 : index
    %c0_105 = arith.constant 0 : index
    %160 = vector.load %arg4[%c1_102, %c2_103, %c0_104, %c0_105] : memref<3x3x16x32xbf16, #tpu.memory_space<vmem>>, vector<1x1x16x32xbf16>
    %161 = vector.shape_cast %160 : vector<1x1x16x32xbf16> to vector<16x32xbf16>
    %cst_106 = arith.constant dense<0.000000e+00> : vector<128x32xf32>
    %162 = tpu.matmul %159, %161, %cst_106 {dimension_numbers = #tpu.dot_dimension_numbers<[1], [0], [0], [1], [0, 0, 1, 1], [], []>} : vector<128x16xbf16>, vector<16x32xbf16>, vector<128x32xf32> -> vector<128x32xf32>
    %163 = arith.addf %155, %162 : vector<128x32xf32>
    %164 = vector.extract_strided_slice %108 {offsets = [1, 0, 0, 0, 0], sizes = [4, 1, 10, 8, 16], strides = [1, 1, 1, 1, 1]} : vector<5x2x10x8x16xf32> to vector<4x1x10x8x16xf32>
    %165 = vector.shape_cast %164 : vector<4x1x10x8x16xf32> to vector<4x10x8x16xf32>
    %166 = vector.shape_cast %165 : vector<4x10x8x16xf32> to vector<4x5x2x8x16xf32>
    %167 = vector.extract_strided_slice %166 {offsets = [0, 0, 0, 0, 0], sizes = [4, 4, 1, 8, 16], strides = [1, 1, 1, 1, 1]} : vector<4x5x2x8x16xf32> to vector<4x4x1x8x16xf32>
    %168 = vector.shape_cast %167 : vector<4x4x1x8x16xf32> to vector<4x4x8x16xf32>
    %169 = vector.shape_cast %168 : vector<4x4x8x16xf32> to vector<128x16xf32>
    %170 = arith.truncf %169 : vector<128x16xf32> to vector<128x16xbf16>
    %c2_107 = arith.constant 2 : index
    %c0_108 = arith.constant 0 : index
    %c0_109 = arith.constant 0 : index
    %c0_110 = arith.constant 0 : index
    %171 = vector.load %arg4[%c2_107, %c0_108, %c0_109, %c0_110] : memref<3x3x16x32xbf16, #tpu.memory_space<vmem>>, vector<1x1x16x32xbf16>
    %172 = vector.shape_cast %171 : vector<1x1x16x32xbf16> to vector<16x32xbf16>
    %cst_111 = arith.constant dense<0.000000e+00> : vector<128x32xf32>
    %173 = tpu.matmul %170, %172, %cst_111 {dimension_numbers = #tpu.dot_dimension_numbers<[1], [0], [0], [1], [0, 0, 1, 1], [], []>} : vector<128x16xbf16>, vector<16x32xbf16>, vector<128x32xf32> -> vector<128x32xf32>
    %174 = arith.addf %163, %173 : vector<128x32xf32>
    %175 = vector.extract_strided_slice %166 {offsets = [0, 0, 1, 0, 0], sizes = [4, 4, 1, 8, 16], strides = [1, 1, 1, 1, 1]} : vector<4x5x2x8x16xf32> to vector<4x4x1x8x16xf32>
    %176 = vector.shape_cast %175 : vector<4x4x1x8x16xf32> to vector<4x4x8x16xf32>
    %177 = vector.shape_cast %176 : vector<4x4x8x16xf32> to vector<128x16xf32>
    %178 = arith.truncf %177 : vector<128x16xf32> to vector<128x16xbf16>
    %c2_112 = arith.constant 2 : index
    %c1_113 = arith.constant 1 : index
    %c0_114 = arith.constant 0 : index
    %c0_115 = arith.constant 0 : index
    %179 = vector.load %arg4[%c2_112, %c1_113, %c0_114, %c0_115] : memref<3x3x16x32xbf16, #tpu.memory_space<vmem>>, vector<1x1x16x32xbf16>
    %180 = vector.shape_cast %179 : vector<1x1x16x32xbf16> to vector<16x32xbf16>
    %cst_116 = arith.constant dense<0.000000e+00> : vector<128x32xf32>
    %181 = tpu.matmul %178, %180, %cst_116 {dimension_numbers = #tpu.dot_dimension_numbers<[1], [0], [0], [1], [0, 0, 1, 1], [], []>} : vector<128x16xbf16>, vector<16x32xbf16>, vector<128x32xf32> -> vector<128x32xf32>
    %182 = arith.addf %174, %181 : vector<128x32xf32>
    %183 = vector.extract_strided_slice %166 {offsets = [0, 1, 0, 0, 0], sizes = [4, 4, 1, 8, 16], strides = [1, 1, 1, 1, 1]} : vector<4x5x2x8x16xf32> to vector<4x4x1x8x16xf32>
    %184 = vector.shape_cast %183 : vector<4x4x1x8x16xf32> to vector<4x4x8x16xf32>
    %185 = vector.shape_cast %184 : vector<4x4x8x16xf32> to vector<128x16xf32>
    %186 = arith.truncf %185 : vector<128x16xf32> to vector<128x16xbf16>
    %c2_117 = arith.constant 2 : index
    %c2_118 = arith.constant 2 : index
    %c0_119 = arith.constant 0 : index
    %c0_120 = arith.constant 0 : index
    %187 = vector.load %arg4[%c2_117, %c2_118, %c0_119, %c0_120] : memref<3x3x16x32xbf16, #tpu.memory_space<vmem>>, vector<1x1x16x32xbf16>
    %188 = vector.shape_cast %187 : vector<1x1x16x32xbf16> to vector<16x32xbf16>
    %cst_121 = arith.constant dense<0.000000e+00> : vector<128x32xf32>
    %189 = tpu.matmul %186, %188, %cst_121 {dimension_numbers = #tpu.dot_dimension_numbers<[1], [0], [0], [1], [0, 0, 1, 1], [], []>} : vector<128x16xbf16>, vector<16x32xbf16>, vector<128x32xf32> -> vector<128x32xf32>
    %190 = arith.addf %182, %189 : vector<128x32xf32>
    %c0_122 = arith.constant 0 : index
    %c0_123 = arith.constant 0 : index
    %191 = vector.load %arg5[%c0_122, %c0_123] : memref<3x32xf32, #tpu.memory_space<vmem>>, vector<3x32xf32>
    %192 = vector.extract_strided_slice %191 {offsets = [0, 0], sizes = [1, 32], strides = [1, 1]} : vector<3x32xf32> to vector<1x32xf32>
    %193 = vector.broadcast %192 : vector<1x32xf32> to vector<128x32xf32>
    %194 = arith.addf %190, %193 : vector<128x32xf32>
    %cst_124 = arith.constant 0.000000e+00 : f32
    %195 = vector.broadcast %cst_124 : f32 to vector<128x32xf32>
    %196 = arith.cmpf oge, %194, %195 : vector<128x32xf32>
    %cst_125 = arith.constant 2.000000e-01 : f32
    %197 = vector.broadcast %cst_125 : f32 to vector<128x32xf32>
    %198 = arith.mulf %197, %194 : vector<128x32xf32>
    %199 = arith.select %196, %194, %198 : vector<128x32xi1>, vector<128x32xf32>
    %200 = vector.extract_strided_slice %191 {offsets = [1, 0], sizes = [1, 32], strides = [1, 1]} : vector<3x32xf32> to vector<1x32xf32>
    %201 = vector.broadcast %200 : vector<1x32xf32> to vector<128x32xf32>
    %202 = arith.mulf %199, %201 : vector<128x32xf32>
    %203 = vector.extract_strided_slice %191 {offsets = [2, 0], sizes = [1, 32], strides = [1, 1]} : vector<3x32xf32> to vector<1x32xf32>
    %204 = vector.broadcast %203 : vector<1x32xf32> to vector<128x32xf32>
    %205 = arith.addf %202, %204 : vector<128x32xf32>
    %206 = vector.shape_cast %205 : vector<128x32xf32> to vector<4x4x8x32xf32>
    %cst_126 = arith.constant 0.000000e+00 : f32
    %207 = vector.broadcast %cst_126 : f32 to vector<6x6x8x32xf32>
    %c0_127 = arith.constant 0 : index
    %c0_128 = arith.constant 0 : index
    %c0_129 = arith.constant 0 : index
    %c0_130 = arith.constant 0 : index
    %208 = vector.load %arg15[%c0_127, %c0_128, %c0_129, %c0_130] : memref<6x6x8x32xf32, #tpu.memory_space<vmem>>, vector<6x6x8x32xf32>
    tpu.vector_store %arg15[%c0_127, %c0_128, %c0_129, %c0_130], %207 {strides = array<i32>} : memref<6x6x8x32xf32, #tpu.memory_space<vmem>>, vector<6x6x8x32xf32>,
    %c1_131 = arith.constant 1 : index
    %c1_132 = arith.constant 1 : index
    %c0_133 = arith.constant 0 : index
    %c0_134 = arith.constant 0 : index
    %209 = vector.load %arg15[%c1_131, %c1_132, %c0_133, %c0_134] : memref<6x6x8x32xf32, #tpu.memory_space<vmem>>, vector<4x4x8x32xf32>
    tpu.vector_store %arg15[%c1_131, %c1_132, %c0_133, %c0_134], %206 {strides = array<i32>} : memref<6x6x8x32xf32, #tpu.memory_space<vmem>>, vector<4x4x8x32xf32>,
    %c0_135 = arith.constant 0 : index
    %c0_136 = arith.constant 0 : index
    %c0_137 = arith.constant 0 : index
    %c0_138 = arith.constant 0 : index
    %210 = vector.load %arg15[%c0_135, %c0_136, %c0_137, %c0_138] : memref<6x6x8x32xf32, #tpu.memory_space<vmem>>, vector<6x6x8x32xf32>
    %211 = vector.shape_cast %210 : vector<6x6x8x32xf32> to vector<3x2x6x8x32xf32>
    %cst_139 = arith.constant 0.000000e+00 : f32
    %212 = vector.broadcast %cst_139 : f32 to vector<32x64xf32>
    %213 = vector.extract_strided_slice %211 {offsets = [0, 0, 0, 0, 0], sizes = [2, 1, 6, 8, 32], strides = [1, 1, 1, 1, 1]} : vector<3x2x6x8x32xf32> to vector<2x1x6x8x32xf32>
    %214 = vector.shape_cast %213 : vector<2x1x6x8x32xf32> to vector<2x6x8x32xf32>
    %215 = vector.shape_cast %214 : vector<2x6x8x32xf32> to vector<2x3x2x8x32xf32>
    %216 = vector.extract_strided_slice %215 {offsets = [0, 0, 0, 0, 0], sizes = [2, 2, 1, 8, 32], strides = [1, 1, 1, 1, 1]} : vector<2x3x2x8x32xf32> to vector<2x2x1x8x32xf32>
    %217 = vector.shape_cast %216 : vector<2x2x1x8x32xf32> to vector<2x2x8x32xf32>
    %218 = vector.shape_cast %217 : vector<2x2x8x32xf32> to vector<32x32xf32>
    %219 = arith.truncf %218 : vector<32x32xf32> to vector<32x32xbf16>
    %c0_140 = arith.constant 0 : index
    %c0_141 = arith.constant 0 : index
    %c0_142 = arith.constant 0 : index
    %c0_143 = arith.constant 0 : index
    %220 = vector.load %arg6[%c0_140, %c0_141, %c0_142, %c0_143] : memref<3x3x32x64xbf16, #tpu.memory_space<vmem>>, vector<1x1x32x64xbf16>
    %221 = vector.shape_cast %220 : vector<1x1x32x64xbf16> to vector<32x64xbf16>
    %cst_144 = arith.constant dense<0.000000e+00> : vector<32x64xf32>
    %222 = tpu.matmul %219, %221, %cst_144 {dimension_numbers = #tpu.dot_dimension_numbers<[1], [0], [0], [1], [0, 0, 1, 1], [], []>} : vector<32x32xbf16>, vector<32x64xbf16>, vector<32x64xf32> -> vector<32x64xf32>
    %223 = arith.addf %212, %222 : vector<32x64xf32>
    %224 = vector.extract_strided_slice %215 {offsets = [0, 0, 1, 0, 0], sizes = [2, 2, 1, 8, 32], strides = [1, 1, 1, 1, 1]} : vector<2x3x2x8x32xf32> to vector<2x2x1x8x32xf32>
    %225 = vector.shape_cast %224 : vector<2x2x1x8x32xf32> to vector<2x2x8x32xf32>
    %226 = vector.shape_cast %225 : vector<2x2x8x32xf32> to vector<32x32xf32>
    %227 = arith.truncf %226 : vector<32x32xf32> to vector<32x32xbf16>
    %c0_145 = arith.constant 0 : index
    %c1_146 = arith.constant 1 : index
    %c0_147 = arith.constant 0 : index
    %c0_148 = arith.constant 0 : index
    %228 = vector.load %arg6[%c0_145, %c1_146, %c0_147, %c0_148] : memref<3x3x32x64xbf16, #tpu.memory_space<vmem>>, vector<1x1x32x64xbf16>
    %229 = vector.shape_cast %228 : vector<1x1x32x64xbf16> to vector<32x64xbf16>
    %cst_149 = arith.constant dense<0.000000e+00> : vector<32x64xf32>
    %230 = tpu.matmul %227, %229, %cst_149 {dimension_numbers = #tpu.dot_dimension_numbers<[1], [0], [0], [1], [0, 0, 1, 1], [], []>} : vector<32x32xbf16>, vector<32x64xbf16>, vector<32x64xf32> -> vector<32x64xf32>
    %231 = arith.addf %223, %230 : vector<32x64xf32>
    %232 = vector.extract_strided_slice %215 {offsets = [0, 1, 0, 0, 0], sizes = [2, 2, 1, 8, 32], strides = [1, 1, 1, 1, 1]} : vector<2x3x2x8x32xf32> to vector<2x2x1x8x32xf32>
    %233 = vector.shape_cast %232 : vector<2x2x1x8x32xf32> to vector<2x2x8x32xf32>
    %234 = vector.shape_cast %233 : vector<2x2x8x32xf32> to vector<32x32xf32>
    %235 = arith.truncf %234 : vector<32x32xf32> to vector<32x32xbf16>
    %c0_150 = arith.constant 0 : index
    %c2_151 = arith.constant 2 : index
    %c0_152 = arith.constant 0 : index
    %c0_153 = arith.constant 0 : index
    %236 = vector.load %arg6[%c0_150, %c2_151, %c0_152, %c0_153] : memref<3x3x32x64xbf16, #tpu.memory_space<vmem>>, vector<1x1x32x64xbf16>
    %237 = vector.shape_cast %236 : vector<1x1x32x64xbf16> to vector<32x64xbf16>
    %cst_154 = arith.constant dense<0.000000e+00> : vector<32x64xf32>
    %238 = tpu.matmul %235, %237, %cst_154 {dimension_numbers = #tpu.dot_dimension_numbers<[1], [0], [0], [1], [0, 0, 1, 1], [], []>} : vector<32x32xbf16>, vector<32x64xbf16>, vector<32x64xf32> -> vector<32x64xf32>
    %239 = arith.addf %231, %238 : vector<32x64xf32>
    %240 = vector.extract_strided_slice %211 {offsets = [0, 1, 0, 0, 0], sizes = [2, 1, 6, 8, 32], strides = [1, 1, 1, 1, 1]} : vector<3x2x6x8x32xf32> to vector<2x1x6x8x32xf32>
    %241 = vector.shape_cast %240 : vector<2x1x6x8x32xf32> to vector<2x6x8x32xf32>
    %242 = vector.shape_cast %241 : vector<2x6x8x32xf32> to vector<2x3x2x8x32xf32>
    %243 = vector.extract_strided_slice %242 {offsets = [0, 0, 0, 0, 0], sizes = [2, 2, 1, 8, 32], strides = [1, 1, 1, 1, 1]} : vector<2x3x2x8x32xf32> to vector<2x2x1x8x32xf32>
    %244 = vector.shape_cast %243 : vector<2x2x1x8x32xf32> to vector<2x2x8x32xf32>
    %245 = vector.shape_cast %244 : vector<2x2x8x32xf32> to vector<32x32xf32>
    %246 = arith.truncf %245 : vector<32x32xf32> to vector<32x32xbf16>
    %c1_155 = arith.constant 1 : index
    %c0_156 = arith.constant 0 : index
    %c0_157 = arith.constant 0 : index
    %c0_158 = arith.constant 0 : index
    %247 = vector.load %arg6[%c1_155, %c0_156, %c0_157, %c0_158] : memref<3x3x32x64xbf16, #tpu.memory_space<vmem>>, vector<1x1x32x64xbf16>
    %248 = vector.shape_cast %247 : vector<1x1x32x64xbf16> to vector<32x64xbf16>
    %cst_159 = arith.constant dense<0.000000e+00> : vector<32x64xf32>
    %249 = tpu.matmul %246, %248, %cst_159 {dimension_numbers = #tpu.dot_dimension_numbers<[1], [0], [0], [1], [0, 0, 1, 1], [], []>} : vector<32x32xbf16>, vector<32x64xbf16>, vector<32x64xf32> -> vector<32x64xf32>
    %250 = arith.addf %239, %249 : vector<32x64xf32>
    %251 = vector.extract_strided_slice %242 {offsets = [0, 0, 1, 0, 0], sizes = [2, 2, 1, 8, 32], strides = [1, 1, 1, 1, 1]} : vector<2x3x2x8x32xf32> to vector<2x2x1x8x32xf32>
    %252 = vector.shape_cast %251 : vector<2x2x1x8x32xf32> to vector<2x2x8x32xf32>
    %253 = vector.shape_cast %252 : vector<2x2x8x32xf32> to vector<32x32xf32>
    %254 = arith.truncf %253 : vector<32x32xf32> to vector<32x32xbf16>
    %c1_160 = arith.constant 1 : index
    %c1_161 = arith.constant 1 : index
    %c0_162 = arith.constant 0 : index
    %c0_163 = arith.constant 0 : index
    %255 = vector.load %arg6[%c1_160, %c1_161, %c0_162, %c0_163] : memref<3x3x32x64xbf16, #tpu.memory_space<vmem>>, vector<1x1x32x64xbf16>
    %256 = vector.shape_cast %255 : vector<1x1x32x64xbf16> to vector<32x64xbf16>
    %cst_164 = arith.constant dense<0.000000e+00> : vector<32x64xf32>
    %257 = tpu.matmul %254, %256, %cst_164 {dimension_numbers = #tpu.dot_dimension_numbers<[1], [0], [0], [1], [0, 0, 1, 1], [], []>} : vector<32x32xbf16>, vector<32x64xbf16>, vector<32x64xf32> -> vector<32x64xf32>
    %258 = arith.addf %250, %257 : vector<32x64xf32>
    %259 = vector.extract_strided_slice %242 {offsets = [0, 1, 0, 0, 0], sizes = [2, 2, 1, 8, 32], strides = [1, 1, 1, 1, 1]} : vector<2x3x2x8x32xf32> to vector<2x2x1x8x32xf32>
    %260 = vector.shape_cast %259 : vector<2x2x1x8x32xf32> to vector<2x2x8x32xf32>
    %261 = vector.shape_cast %260 : vector<2x2x8x32xf32> to vector<32x32xf32>
    %262 = arith.truncf %261 : vector<32x32xf32> to vector<32x32xbf16>
    %c1_165 = arith.constant 1 : index
    %c2_166 = arith.constant 2 : index
    %c0_167 = arith.constant 0 : index
    %c0_168 = arith.constant 0 : index
    %263 = vector.load %arg6[%c1_165, %c2_166, %c0_167, %c0_168] : memref<3x3x32x64xbf16, #tpu.memory_space<vmem>>, vector<1x1x32x64xbf16>
    %264 = vector.shape_cast %263 : vector<1x1x32x64xbf16> to vector<32x64xbf16>
    %cst_169 = arith.constant dense<0.000000e+00> : vector<32x64xf32>
    %265 = tpu.matmul %262, %264, %cst_169 {dimension_numbers = #tpu.dot_dimension_numbers<[1], [0], [0], [1], [0, 0, 1, 1], [], []>} : vector<32x32xbf16>, vector<32x64xbf16>, vector<32x64xf32> -> vector<32x64xf32>
    %266 = arith.addf %258, %265 : vector<32x64xf32>
    %267 = vector.extract_strided_slice %211 {offsets = [1, 0, 0, 0, 0], sizes = [2, 1, 6, 8, 32], strides = [1, 1, 1, 1, 1]} : vector<3x2x6x8x32xf32> to vector<2x1x6x8x32xf32>
    %268 = vector.shape_cast %267 : vector<2x1x6x8x32xf32> to vector<2x6x8x32xf32>
    %269 = vector.shape_cast %268 : vector<2x6x8x32xf32> to vector<2x3x2x8x32xf32>
    %270 = vector.extract_strided_slice %269 {offsets = [0, 0, 0, 0, 0], sizes = [2, 2, 1, 8, 32], strides = [1, 1, 1, 1, 1]} : vector<2x3x2x8x32xf32> to vector<2x2x1x8x32xf32>
    %271 = vector.shape_cast %270 : vector<2x2x1x8x32xf32> to vector<2x2x8x32xf32>
    %272 = vector.shape_cast %271 : vector<2x2x8x32xf32> to vector<32x32xf32>
    %273 = arith.truncf %272 : vector<32x32xf32> to vector<32x32xbf16>
    %c2_170 = arith.constant 2 : index
    %c0_171 = arith.constant 0 : index
    %c0_172 = arith.constant 0 : index
    %c0_173 = arith.constant 0 : index
    %274 = vector.load %arg6[%c2_170, %c0_171, %c0_172, %c0_173] : memref<3x3x32x64xbf16, #tpu.memory_space<vmem>>, vector<1x1x32x64xbf16>
    %275 = vector.shape_cast %274 : vector<1x1x32x64xbf16> to vector<32x64xbf16>
    %cst_174 = arith.constant dense<0.000000e+00> : vector<32x64xf32>
    %276 = tpu.matmul %273, %275, %cst_174 {dimension_numbers = #tpu.dot_dimension_numbers<[1], [0], [0], [1], [0, 0, 1, 1], [], []>} : vector<32x32xbf16>, vector<32x64xbf16>, vector<32x64xf32> -> vector<32x64xf32>
    %277 = arith.addf %266, %276 : vector<32x64xf32>
    %278 = vector.extract_strided_slice %269 {offsets = [0, 0, 1, 0, 0], sizes = [2, 2, 1, 8, 32], strides = [1, 1, 1, 1, 1]} : vector<2x3x2x8x32xf32> to vector<2x2x1x8x32xf32>
    %279 = vector.shape_cast %278 : vector<2x2x1x8x32xf32> to vector<2x2x8x32xf32>
    %280 = vector.shape_cast %279 : vector<2x2x8x32xf32> to vector<32x32xf32>
    %281 = arith.truncf %280 : vector<32x32xf32> to vector<32x32xbf16>
    %c2_175 = arith.constant 2 : index
    %c1_176 = arith.constant 1 : index
    %c0_177 = arith.constant 0 : index
    %c0_178 = arith.constant 0 : index
    %282 = vector.load %arg6[%c2_175, %c1_176, %c0_177, %c0_178] : memref<3x3x32x64xbf16, #tpu.memory_space<vmem>>, vector<1x1x32x64xbf16>
    %283 = vector.shape_cast %282 : vector<1x1x32x64xbf16> to vector<32x64xbf16>
    %cst_179 = arith.constant dense<0.000000e+00> : vector<32x64xf32>
    %284 = tpu.matmul %281, %283, %cst_179 {dimension_numbers = #tpu.dot_dimension_numbers<[1], [0], [0], [1], [0, 0, 1, 1], [], []>} : vector<32x32xbf16>, vector<32x64xbf16>, vector<32x64xf32> -> vector<32x64xf32>
    %285 = arith.addf %277, %284 : vector<32x64xf32>
    %286 = vector.extract_strided_slice %269 {offsets = [0, 1, 0, 0, 0], sizes = [2, 2, 1, 8, 32], strides = [1, 1, 1, 1, 1]} : vector<2x3x2x8x32xf32> to vector<2x2x1x8x32xf32>
    %287 = vector.shape_cast %286 : vector<2x2x1x8x32xf32> to vector<2x2x8x32xf32>
    %288 = vector.shape_cast %287 : vector<2x2x8x32xf32> to vector<32x32xf32>
    %289 = arith.truncf %288 : vector<32x32xf32> to vector<32x32xbf16>
    %c2_180 = arith.constant 2 : index
    %c2_181 = arith.constant 2 : index
    %c0_182 = arith.constant 0 : index
    %c0_183 = arith.constant 0 : index
    %290 = vector.load %arg6[%c2_180, %c2_181, %c0_182, %c0_183] : memref<3x3x32x64xbf16, #tpu.memory_space<vmem>>, vector<1x1x32x64xbf16>
    %291 = vector.shape_cast %290 : vector<1x1x32x64xbf16> to vector<32x64xbf16>
    %cst_184 = arith.constant dense<0.000000e+00> : vector<32x64xf32>
    %292 = tpu.matmul %289, %291, %cst_184 {dimension_numbers = #tpu.dot_dimension_numbers<[1], [0], [0], [1], [0, 0, 1, 1], [], []>} : vector<32x32xbf16>, vector<32x64xbf16>, vector<32x64xf32> -> vector<32x64xf32>
    %293 = arith.addf %285, %292 : vector<32x64xf32>
    %c0_185 = arith.constant 0 : index
    %c0_186 = arith.constant 0 : index
    %294 = vector.load %arg7[%c0_185, %c0_186] : memref<3x64xf32, #tpu.memory_space<vmem>>, vector<3x64xf32>
    %295 = vector.extract_strided_slice %294 {offsets = [0, 0], sizes = [1, 64], strides = [1, 1]} : vector<3x64xf32> to vector<1x64xf32>
    %296 = vector.broadcast %295 : vector<1x64xf32> to vector<32x64xf32>
    %297 = arith.addf %293, %296 : vector<32x64xf32>
    %cst_187 = arith.constant 0.000000e+00 : f32
    %298 = vector.broadcast %cst_187 : f32 to vector<32x64xf32>
    %299 = arith.cmpf oge, %297, %298 : vector<32x64xf32>
    %cst_188 = arith.constant 2.000000e-01 : f32
    %300 = vector.broadcast %cst_188 : f32 to vector<32x64xf32>
    %301 = arith.mulf %300, %297 : vector<32x64xf32>
    %302 = arith.select %299, %297, %301 : vector<32x64xi1>, vector<32x64xf32>
    %303 = vector.extract_strided_slice %294 {offsets = [1, 0], sizes = [1, 64], strides = [1, 1]} : vector<3x64xf32> to vector<1x64xf32>
    %304 = vector.broadcast %303 : vector<1x64xf32> to vector<32x64xf32>
    %305 = arith.mulf %302, %304 : vector<32x64xf32>
    %306 = vector.extract_strided_slice %294 {offsets = [2, 0], sizes = [1, 64], strides = [1, 1]} : vector<3x64xf32> to vector<1x64xf32>
    %307 = vector.broadcast %306 : vector<1x64xf32> to vector<32x64xf32>
    %308 = arith.addf %305, %307 : vector<32x64xf32>
    %309 = vector.shape_cast %308 : vector<32x64xf32> to vector<2x2x8x64xf32>
    %cst_189 = arith.constant 0.000000e+00 : f32
    %310 = vector.broadcast %cst_189 : f32 to vector<4x4x8x64xf32>
    %c0_190 = arith.constant 0 : index
    %c0_191 = arith.constant 0 : index
    %c0_192 = arith.constant 0 : index
    %c0_193 = arith.constant 0 : index
    %311 = vector.load %arg16[%c0_190, %c0_191, %c0_192, %c0_193] : memref<4x4x8x64xf32, #tpu.memory_space<vmem>>, vector<4x4x8x64xf32>
    tpu.vector_store %arg16[%c0_190, %c0_191, %c0_192, %c0_193], %310 {strides = array<i32>} : memref<4x4x8x64xf32, #tpu.memory_space<vmem>>, vector<4x4x8x64xf32>,
    %c1_194 = arith.constant 1 : index
    %c1_195 = arith.constant 1 : index
    %c0_196 = arith.constant 0 : index
    %c0_197 = arith.constant 0 : index
    %312 = vector.load %arg16[%c1_194, %c1_195, %c0_196, %c0_197] : memref<4x4x8x64xf32, #tpu.memory_space<vmem>>, vector<2x2x8x64xf32>
    tpu.vector_store %arg16[%c1_194, %c1_195, %c0_196, %c0_197], %309 {strides = array<i32>} : memref<4x4x8x64xf32, #tpu.memory_space<vmem>>, vector<2x2x8x64xf32>,
    %c0_198 = arith.constant 0 : index
    %c0_199 = arith.constant 0 : index
    %c0_200 = arith.constant 0 : index
    %c0_201 = arith.constant 0 : index
    %313 = vector.load %arg16[%c0_198, %c0_199, %c0_200, %c0_201] : memref<4x4x8x64xf32, #tpu.memory_space<vmem>>, vector<4x4x8x64xf32>
    %314 = vector.shape_cast %313 : vector<4x4x8x64xf32> to vector<2x2x4x8x64xf32>
    %cst_202 = arith.constant 0.000000e+00 : f32
    %315 = vector.broadcast %cst_202 : f32 to vector<8x128xf32>
    %316 = vector.extract_strided_slice %314 {offsets = [0, 0, 0, 0, 0], sizes = [1, 1, 4, 8, 64], strides = [1, 1, 1, 1, 1]} : vector<2x2x4x8x64xf32> to vector<1x1x4x8x64xf32>
    %317 = vector.shape_cast %316 : vector<1x1x4x8x64xf32> to vector<1x4x8x64xf32>
    %318 = vector.shape_cast %317 : vector<1x4x8x64xf32> to vector<1x2x2x8x64xf32>
    %319 = vector.extract_strided_slice %318 {offsets = [0, 0, 0, 0, 0], sizes = [1, 1, 1, 8, 64], strides = [1, 1, 1, 1, 1]} : vector<1x2x2x8x64xf32> to vector<1x1x1x8x64xf32>
    %320 = vector.shape_cast %319 : vector<1x1x1x8x64xf32> to vector<1x1x8x64xf32>
    %321 = vector.shape_cast %320 : vector<1x1x8x64xf32> to vector<8x64xf32>
    %322 = arith.truncf %321 : vector<8x64xf32> to vector<8x64xbf16>
    %c0_203 = arith.constant 0 : index
    %c0_204 = arith.constant 0 : index
    %c0_205 = arith.constant 0 : index
    %c0_206 = arith.constant 0 : index
    %323 = vector.load %arg8[%c0_203, %c0_204, %c0_205, %c0_206] : memref<3x3x64x128xbf16, #tpu.memory_space<vmem>>, vector<1x1x64x128xbf16>
    %324 = vector.shape_cast %323 : vector<1x1x64x128xbf16> to vector<64x128xbf16>
    %cst_207 = arith.constant dense<0.000000e+00> : vector<8x128xf32>
    %325 = tpu.matmul %322, %324, %cst_207 {dimension_numbers = #tpu.dot_dimension_numbers<[1], [0], [0], [1], [0, 0, 1, 1], [], []>} : vector<8x64xbf16>, vector<64x128xbf16>, vector<8x128xf32> -> vector<8x128xf32>
    %326 = arith.addf %315, %325 : vector<8x128xf32>
    %327 = vector.extract_strided_slice %318 {offsets = [0, 0, 1, 0, 0], sizes = [1, 1, 1, 8, 64], strides = [1, 1, 1, 1, 1]} : vector<1x2x2x8x64xf32> to vector<1x1x1x8x64xf32>
    %328 = vector.shape_cast %327 : vector<1x1x1x8x64xf32> to vector<1x1x8x64xf32>
    %329 = vector.shape_cast %328 : vector<1x1x8x64xf32> to vector<8x64xf32>
    %330 = arith.truncf %329 : vector<8x64xf32> to vector<8x64xbf16>
    %c0_208 = arith.constant 0 : index
    %c1_209 = arith.constant 1 : index
    %c0_210 = arith.constant 0 : index
    %c0_211 = arith.constant 0 : index
    %331 = vector.load %arg8[%c0_208, %c1_209, %c0_210, %c0_211] : memref<3x3x64x128xbf16, #tpu.memory_space<vmem>>, vector<1x1x64x128xbf16>
    %332 = vector.shape_cast %331 : vector<1x1x64x128xbf16> to vector<64x128xbf16>
    %cst_212 = arith.constant dense<0.000000e+00> : vector<8x128xf32>
    %333 = tpu.matmul %330, %332, %cst_212 {dimension_numbers = #tpu.dot_dimension_numbers<[1], [0], [0], [1], [0, 0, 1, 1], [], []>} : vector<8x64xbf16>, vector<64x128xbf16>, vector<8x128xf32> -> vector<8x128xf32>
    %334 = arith.addf %326, %333 : vector<8x128xf32>
    %335 = vector.extract_strided_slice %318 {offsets = [0, 1, 0, 0, 0], sizes = [1, 1, 1, 8, 64], strides = [1, 1, 1, 1, 1]} : vector<1x2x2x8x64xf32> to vector<1x1x1x8x64xf32>
    %336 = vector.shape_cast %335 : vector<1x1x1x8x64xf32> to vector<1x1x8x64xf32>
    %337 = vector.shape_cast %336 : vector<1x1x8x64xf32> to vector<8x64xf32>
    %338 = arith.truncf %337 : vector<8x64xf32> to vector<8x64xbf16>
    %c0_213 = arith.constant 0 : index
    %c2_214 = arith.constant 2 : index
    %c0_215 = arith.constant 0 : index
    %c0_216 = arith.constant 0 : index
    %339 = vector.load %arg8[%c0_213, %c2_214, %c0_215, %c0_216] : memref<3x3x64x128xbf16, #tpu.memory_space<vmem>>, vector<1x1x64x128xbf16>
    %340 = vector.shape_cast %339 : vector<1x1x64x128xbf16> to vector<64x128xbf16>
    %cst_217 = arith.constant dense<0.000000e+00> : vector<8x128xf32>
    %341 = tpu.matmul %338, %340, %cst_217 {dimension_numbers = #tpu.dot_dimension_numbers<[1], [0], [0], [1], [0, 0, 1, 1], [], []>} : vector<8x64xbf16>, vector<64x128xbf16>, vector<8x128xf32> -> vector<8x128xf32>
    %342 = arith.addf %334, %341 : vector<8x128xf32>
    %343 = vector.extract_strided_slice %314 {offsets = [0, 1, 0, 0, 0], sizes = [1, 1, 4, 8, 64], strides = [1, 1, 1, 1, 1]} : vector<2x2x4x8x64xf32> to vector<1x1x4x8x64xf32>
    %344 = vector.shape_cast %343 : vector<1x1x4x8x64xf32> to vector<1x4x8x64xf32>
    %345 = vector.shape_cast %344 : vector<1x4x8x64xf32> to vector<1x2x2x8x64xf32>
    %346 = vector.extract_strided_slice %345 {offsets = [0, 0, 0, 0, 0], sizes = [1, 1, 1, 8, 64], strides = [1, 1, 1, 1, 1]} : vector<1x2x2x8x64xf32> to vector<1x1x1x8x64xf32>
    %347 = vector.shape_cast %346 : vector<1x1x1x8x64xf32> to vector<1x1x8x64xf32>
    %348 = vector.shape_cast %347 : vector<1x1x8x64xf32> to vector<8x64xf32>
    %349 = arith.truncf %348 : vector<8x64xf32> to vector<8x64xbf16>
    %c1_218 = arith.constant 1 : index
    %c0_219 = arith.constant 0 : index
    %c0_220 = arith.constant 0 : index
    %c0_221 = arith.constant 0 : index
    %350 = vector.load %arg8[%c1_218, %c0_219, %c0_220, %c0_221] : memref<3x3x64x128xbf16, #tpu.memory_space<vmem>>, vector<1x1x64x128xbf16>
    %351 = vector.shape_cast %350 : vector<1x1x64x128xbf16> to vector<64x128xbf16>
    %cst_222 = arith.constant dense<0.000000e+00> : vector<8x128xf32>
    %352 = tpu.matmul %349, %351, %cst_222 {dimension_numbers = #tpu.dot_dimension_numbers<[1], [0], [0], [1], [0, 0, 1, 1], [], []>} : vector<8x64xbf16>, vector<64x128xbf16>, vector<8x128xf32> -> vector<8x128xf32>
    %353 = arith.addf %342, %352 : vector<8x128xf32>
    %354 = vector.extract_strided_slice %345 {offsets = [0, 0, 1, 0, 0], sizes = [1, 1, 1, 8, 64], strides = [1, 1, 1, 1, 1]} : vector<1x2x2x8x64xf32> to vector<1x1x1x8x64xf32>
    %355 = vector.shape_cast %354 : vector<1x1x1x8x64xf32> to vector<1x1x8x64xf32>
    %356 = vector.shape_cast %355 : vector<1x1x8x64xf32> to vector<8x64xf32>
    %357 = arith.truncf %356 : vector<8x64xf32> to vector<8x64xbf16>
    %c1_223 = arith.constant 1 : index
    %c1_224 = arith.constant 1 : index
    %c0_225 = arith.constant 0 : index
    %c0_226 = arith.constant 0 : index
    %358 = vector.load %arg8[%c1_223, %c1_224, %c0_225, %c0_226] : memref<3x3x64x128xbf16, #tpu.memory_space<vmem>>, vector<1x1x64x128xbf16>
    %359 = vector.shape_cast %358 : vector<1x1x64x128xbf16> to vector<64x128xbf16>
    %cst_227 = arith.constant dense<0.000000e+00> : vector<8x128xf32>
    %360 = tpu.matmul %357, %359, %cst_227 {dimension_numbers = #tpu.dot_dimension_numbers<[1], [0], [0], [1], [0, 0, 1, 1], [], []>} : vector<8x64xbf16>, vector<64x128xbf16>, vector<8x128xf32> -> vector<8x128xf32>
    %361 = arith.addf %353, %360 : vector<8x128xf32>
    %362 = vector.extract_strided_slice %345 {offsets = [0, 1, 0, 0, 0], sizes = [1, 1, 1, 8, 64], strides = [1, 1, 1, 1, 1]} : vector<1x2x2x8x64xf32> to vector<1x1x1x8x64xf32>
    %363 = vector.shape_cast %362 : vector<1x1x1x8x64xf32> to vector<1x1x8x64xf32>
    %364 = vector.shape_cast %363 : vector<1x1x8x64xf32> to vector<8x64xf32>
    %365 = arith.truncf %364 : vector<8x64xf32> to vector<8x64xbf16>
    %c1_228 = arith.constant 1 : index
    %c2_229 = arith.constant 2 : index
    %c0_230 = arith.constant 0 : index
    %c0_231 = arith.constant 0 : index
    %366 = vector.load %arg8[%c1_228, %c2_229, %c0_230, %c0_231] : memref<3x3x64x128xbf16, #tpu.memory_space<vmem>>, vector<1x1x64x128xbf16>
    %367 = vector.shape_cast %366 : vector<1x1x64x128xbf16> to vector<64x128xbf16>
    %cst_232 = arith.constant dense<0.000000e+00> : vector<8x128xf32>
    %368 = tpu.matmul %365, %367, %cst_232 {dimension_numbers = #tpu.dot_dimension_numbers<[1], [0], [0], [1], [0, 0, 1, 1], [], []>} : vector<8x64xbf16>, vector<64x128xbf16>, vector<8x128xf32> -> vector<8x128xf32>
    %369 = arith.addf %361, %368 : vector<8x128xf32>
    %370 = vector.extract_strided_slice %314 {offsets = [1, 0, 0, 0, 0], sizes = [1, 1, 4, 8, 64], strides = [1, 1, 1, 1, 1]} : vector<2x2x4x8x64xf32> to vector<1x1x4x8x64xf32>
    %371 = vector.shape_cast %370 : vector<1x1x4x8x64xf32> to vector<1x4x8x64xf32>
    %372 = vector.shape_cast %371 : vector<1x4x8x64xf32> to vector<1x2x2x8x64xf32>
    %373 = vector.extract_strided_slice %372 {offsets = [0, 0, 0, 0, 0], sizes = [1, 1, 1, 8, 64], strides = [1, 1, 1, 1, 1]} : vector<1x2x2x8x64xf32> to vector<1x1x1x8x64xf32>
    %374 = vector.shape_cast %373 : vector<1x1x1x8x64xf32> to vector<1x1x8x64xf32>
    %375 = vector.shape_cast %374 : vector<1x1x8x64xf32> to vector<8x64xf32>
    %376 = arith.truncf %375 : vector<8x64xf32> to vector<8x64xbf16>
    %c2_233 = arith.constant 2 : index
    %c0_234 = arith.constant 0 : index
    %c0_235 = arith.constant 0 : index
    %c0_236 = arith.constant 0 : index
    %377 = vector.load %arg8[%c2_233, %c0_234, %c0_235, %c0_236] : memref<3x3x64x128xbf16, #tpu.memory_space<vmem>>, vector<1x1x64x128xbf16>
    %378 = vector.shape_cast %377 : vector<1x1x64x128xbf16> to vector<64x128xbf16>
    %cst_237 = arith.constant dense<0.000000e+00> : vector<8x128xf32>
    %379 = tpu.matmul %376, %378, %cst_237 {dimension_numbers = #tpu.dot_dimension_numbers<[1], [0], [0], [1], [0, 0, 1, 1], [], []>} : vector<8x64xbf16>, vector<64x128xbf16>, vector<8x128xf32> -> vector<8x128xf32>
    %380 = arith.addf %369, %379 : vector<8x128xf32>
    %381 = vector.extract_strided_slice %372 {offsets = [0, 0, 1, 0, 0], sizes = [1, 1, 1, 8, 64], strides = [1, 1, 1, 1, 1]} : vector<1x2x2x8x64xf32> to vector<1x1x1x8x64xf32>
    %382 = vector.shape_cast %381 : vector<1x1x1x8x64xf32> to vector<1x1x8x64xf32>
    %383 = vector.shape_cast %382 : vector<1x1x8x64xf32> to vector<8x64xf32>
    %384 = arith.truncf %383 : vector<8x64xf32> to vector<8x64xbf16>
    %c2_238 = arith.constant 2 : index
    %c1_239 = arith.constant 1 : index
    %c0_240 = arith.constant 0 : index
    %c0_241 = arith.constant 0 : index
    %385 = vector.load %arg8[%c2_238, %c1_239, %c0_240, %c0_241] : memref<3x3x64x128xbf16, #tpu.memory_space<vmem>>, vector<1x1x64x128xbf16>
    %386 = vector.shape_cast %385 : vector<1x1x64x128xbf16> to vector<64x128xbf16>
    %cst_242 = arith.constant dense<0.000000e+00> : vector<8x128xf32>
    %387 = tpu.matmul %384, %386, %cst_242 {dimension_numbers = #tpu.dot_dimension_numbers<[1], [0], [0], [1], [0, 0, 1, 1], [], []>} : vector<8x64xbf16>, vector<64x128xbf16>, vector<8x128xf32> -> vector<8x128xf32>
    %388 = arith.addf %380, %387 : vector<8x128xf32>
    %389 = vector.extract_strided_slice %372 {offsets = [0, 1, 0, 0, 0], sizes = [1, 1, 1, 8, 64], strides = [1, 1, 1, 1, 1]} : vector<1x2x2x8x64xf32> to vector<1x1x1x8x64xf32>
    %390 = vector.shape_cast %389 : vector<1x1x1x8x64xf32> to vector<1x1x8x64xf32>
    %391 = vector.shape_cast %390 : vector<1x1x8x64xf32> to vector<8x64xf32>
    %392 = arith.truncf %391 : vector<8x64xf32> to vector<8x64xbf16>
    %c2_243 = arith.constant 2 : index
    %c2_244 = arith.constant 2 : index
    %c0_245 = arith.constant 0 : index
    %c0_246 = arith.constant 0 : index
    %393 = vector.load %arg8[%c2_243, %c2_244, %c0_245, %c0_246] : memref<3x3x64x128xbf16, #tpu.memory_space<vmem>>, vector<1x1x64x128xbf16>
    %394 = vector.shape_cast %393 : vector<1x1x64x128xbf16> to vector<64x128xbf16>
    %cst_247 = arith.constant dense<0.000000e+00> : vector<8x128xf32>
    %395 = tpu.matmul %392, %394, %cst_247 {dimension_numbers = #tpu.dot_dimension_numbers<[1], [0], [0], [1], [0, 0, 1, 1], [], []>} : vector<8x64xbf16>, vector<64x128xbf16>, vector<8x128xf32> -> vector<8x128xf32>
    %396 = arith.addf %388, %395 : vector<8x128xf32>
    %c0_248 = arith.constant 0 : index
    %c0_249 = arith.constant 0 : index
    %397 = vector.load %arg9[%c0_248, %c0_249] : memref<3x128xf32, #tpu.memory_space<vmem>>, vector<3x128xf32>
    %398 = vector.extract_strided_slice %397 {offsets = [0, 0], sizes = [1, 128], strides = [1, 1]} : vector<3x128xf32> to vector<1x128xf32>
    %399 = vector.broadcast %398 : vector<1x128xf32> to vector<8x128xf32>
    %400 = arith.addf %396, %399 : vector<8x128xf32>
    %cst_250 = arith.constant 0.000000e+00 : f32
    %401 = vector.broadcast %cst_250 : f32 to vector<8x128xf32>
    %402 = arith.cmpf oge, %400, %401 : vector<8x128xf32>
    %cst_251 = arith.constant 2.000000e-01 : f32
    %403 = vector.broadcast %cst_251 : f32 to vector<8x128xf32>
    %404 = arith.mulf %403, %400 : vector<8x128xf32>
    %405 = arith.select %402, %400, %404 : vector<8x128xi1>, vector<8x128xf32>
    %406 = vector.extract_strided_slice %397 {offsets = [1, 0], sizes = [1, 128], strides = [1, 1]} : vector<3x128xf32> to vector<1x128xf32>
    %407 = vector.broadcast %406 : vector<1x128xf32> to vector<8x128xf32>
    %408 = arith.mulf %405, %407 : vector<8x128xf32>
    %409 = vector.extract_strided_slice %397 {offsets = [2, 0], sizes = [1, 128], strides = [1, 1]} : vector<3x128xf32> to vector<1x128xf32>
    %410 = vector.broadcast %409 : vector<1x128xf32> to vector<8x128xf32>
    %411 = arith.addf %408, %410 : vector<8x128xf32>
    %412 = vector.shape_cast %411 : vector<8x128xf32> to vector<1x1x8x128xf32>
    %413 = vector.shape_cast %412 : vector<1x1x8x128xf32> to vector<8x128xf32>
    %c0_252 = arith.constant 0 : index
    %c0_253 = arith.constant 0 : index
    %414 = vector.load %arg10[%c0_252, %c0_253] : memref<1x128xf32, #tpu.memory_space<vmem>>, vector<1x128xf32>
    %cst_254 = arith.constant 0.000000e+00 : f32
    %415 = vector.broadcast %cst_254 : f32 to vector<8x128xf32>
    %416 = vector.broadcast %414 : vector<1x128xf32> to vector<8x128xf32>
    %417 = arith.mulf %413, %416 : vector<8x128xf32>
    %418 = arith.addf %415, %417 : vector<8x128xf32>
    %cst_255 = arith.constant dense<0.000000e+00> : vector<8xf32>
    %419 = vector.multi_reduction <add>, %418, %cst_255 [1] : vector<8x128xf32> to vector<8xf32>
    %420 = vector.shape_cast %419 : vector<8xf32> to vector<8x1xf32>
    %c0_256 = arith.constant 0 : index
    %c0_257 = arith.constant 0 : index
    %421 = vector.load %arg11[%c0_256, %c0_257] : memref<1x1xf32, #tpu.memory_space<vmem>>, vector<1x1xf32>
    %422 = vector.broadcast %421 : vector<1x1xf32> to vector<8x1xf32>
    %423 = arith.addf %420, %422 : vector<8x1xf32>
    %c0_258 = arith.constant 0 : index
    %c0_259 = arith.constant 0 : index
    %424 = vector.load %arg12[%c0_258, %c0_259] : memref<8x1xf32, #tpu.memory_space<vmem>>, vector<8x1xf32>
    tpu.vector_store %arg12[%c0_258, %c0_259], %423 {strides = array<i32>} : memref<8x1xf32, #tpu.memory_space<vmem>>, vector<8x1xf32>,
    return
  }
  func.func @transform_0(%arg0: i32) -> (i32, i32, i32, i32) {
    %c0_i32 = arith.constant 0 : i32
    %c0_i32_0 = arith.constant 0 : i32
    %c0_i32_1 = arith.constant 0 : i32
    %c0_i32_2 = arith.constant 0 : i32
    return %c0_i32, %c0_i32_0, %arg0, %c0_i32_1 : i32, i32, i32, i32
  }
  func.func @transform_1(%arg0: i32) -> (i32, i32, i32, i32) {
    %c0_i32 = arith.constant 0 : i32
    %c0_i32_0 = arith.constant 0 : i32
    %c0_i32_1 = arith.constant 0 : i32
    %c0_i32_2 = arith.constant 0 : i32
    %c0_i32_3 = arith.constant 0 : i32
    return %c0_i32, %c0_i32_0, %c0_i32_1, %c0_i32_2 : i32, i32, i32, i32
  }
  func.func @transform_2(%arg0: i32) -> (i32, i32) {
    %c0_i32 = arith.constant 0 : i32
    %c0_i32_0 = arith.constant 0 : i32
    %c0_i32_1 = arith.constant 0 : i32
    return %c0_i32, %c0_i32_0 : i32, i32
  }
  func.func @transform_3(%arg0: i32) -> (i32, i32, i32, i32) {
    %c0_i32 = arith.constant 0 : i32
    %c0_i32_0 = arith.constant 0 : i32
    %c0_i32_1 = arith.constant 0 : i32
    %c0_i32_2 = arith.constant 0 : i32
    %c0_i32_3 = arith.constant 0 : i32
    return %c0_i32, %c0_i32_0, %c0_i32_1, %c0_i32_2 : i32, i32, i32, i32
  }
  func.func @transform_4(%arg0: i32) -> (i32, i32) {
    %c0_i32 = arith.constant 0 : i32
    %c0_i32_0 = arith.constant 0 : i32
    %c0_i32_1 = arith.constant 0 : i32
    return %c0_i32, %c0_i32_0 : i32, i32
  }
  func.func @transform_5(%arg0: i32) -> (i32, i32, i32, i32) {
    %c0_i32 = arith.constant 0 : i32
    %c0_i32_0 = arith.constant 0 : i32
    %c0_i32_1 = arith.constant 0 : i32
    %c0_i32_2 = arith.constant 0 : i32
    %c0_i32_3 = arith.constant 0 : i32
    return %c0_i32, %c0_i32_0, %c0_i32_1, %c0_i32_2 : i32, i32, i32, i32
  }
  func.func @transform_6(%arg0: i32) -> (i32, i32) {
    %c0_i32 = arith.constant 0 : i32
    %c0_i32_0 = arith.constant 0 : i32
    %c0_i32_1 = arith.constant 0 : i32
    return %c0_i32, %c0_i32_0 : i32, i32
  }
  func.func @transform_7(%arg0: i32) -> (i32, i32, i32, i32) {
    %c0_i32 = arith.constant 0 : i32
    %c0_i32_0 = arith.constant 0 : i32
    %c0_i32_1 = arith.constant 0 : i32
    %c0_i32_2 = arith.constant 0 : i32
    %c0_i32_3 = arith.constant 0 : i32
    return %c0_i32, %c0_i32_0, %c0_i32_1, %c0_i32_2 : i32, i32, i32, i32
  }
  func.func @transform_8(%arg0: i32) -> (i32, i32) {
    %c0_i32 = arith.constant 0 : i32
    %c0_i32_0 = arith.constant 0 : i32
    %c0_i32_1 = arith.constant 0 : i32
    return %c0_i32, %c0_i32_0 : i32, i32
  }
  func.func @transform_9(%arg0: i32) -> (i32, i32) {
    %c0_i32 = arith.constant 0 : i32
    %c0_i32_0 = arith.constant 0 : i32
    %c0_i32_1 = arith.constant 0 : i32
    return %c0_i32, %c0_i32_0 : i32, i32
  }
  func.func @transform_10(%arg0: i32) -> (i32, i32) {
    %c0_i32 = arith.constant 0 : i32
    %c0_i32_0 = arith.constant 0 : i32
    %c0_i32_1 = arith.constant 0 : i32
    return %c0_i32, %c0_i32_0 : i32, i32
  }
  func.func @transform_11(%arg0: i32) -> (i32, i32) {
    %c0_i32 = arith.constant 0 : i32
    %c0_i32_0 = arith.constant 0 : i32
    return %arg0, %c0_i32 : i32, i32
  }
}

</mosaic_0001>

<bundles_post_ra>
// kernel: discriminator_forward.1
= control target key start
LH: loop header
LB: loop body
LE: loop exit
PB: predicated region body
PF: predicated region fallthrough
CT: control target
= control target key end

     0   :  { %vm1331_vm0 = vcmask 1041408   ;;  %vm297_vm1 = vcmask 31744   ;;  %v15942_v2 = vmov 0.0   ;;  %vm5475_vm2 = vcmask 130048   ;;  %s15930_s1 = inlined_call_operand.vmem [shape: bf16[3,3,4,16], index: 1, kind: input, shape index: {}]   ;;  %s15931_s0 = inlined_call_operand.vmem [shape: f32[16,16,8,4], index: 0, kind: input, shape index: {}]   ;;  %s15932_s3 = inlined_call_operand.vmem [shape: bf16[3,3,16,32], index: 3, kind: input, shape index: {}]   ;;  %s15933_s2 = inlined_call_operand.vmem [shape: f32[3,16], index: 2, kind: input, shape index: {}]   ;;  %s15934_s5 = inlined_call_operand.vmem [shape: bf16[3,3,32,64], index: 5, kind: input, shape index: {}]   ;;  %s15935_s4 = inlined_call_operand.vmem [shape: f32[3,32], index: 4, kind: input, shape index: {}]   ;;  %s15936_s7 = inlined_call_operand.vmem [shape: bf16[3,3,64,128], index: 7, kind: input, shape index: {}]   ;;  %s15937_s6 = inlined_call_operand.vmem [shape: f32[3,64], index: 6, kind: input, shape index: {}]   ;;  %s15938_s10 = inlined_call_operand.<no memory space> [shape: f32[1,1], index: 10, kind: input, shape index: {}]   ;;  %s15939_s8 = inlined_call_operand.vmem [shape: f32[3,128], index: 8, kind: input, shape index: {}]   ;;  %s15940_s9 = inlined_call_operand.vmem [shape: f32[1,128], index: 9, kind: input, shape index: {}]   ;;  %s15941_s11 = inlined_call_operand.vmem [shape: f32[8,1], index: 11, kind: output, shape index: {}]  }
   0x1   :  { %v10794_v0 = vld [vmem:[%s15930_s1 + $0x2] sm:$0x3]  ;;  %v10799_v1 = vld [vmem:[%s15930_s1] sm:$0x3]  ;;  %299 = vst.msk [vmem:[#allocation2 + $0x8] sm:$0xff] %vm297_vm1, %v15942_v2  ;;  %301 = vst.msk [vmem:[#allocation2 + $0x18] sm:$0xff] %vm297_vm1, %v15942_v2 }
   0x2   :  { %298 = vst.msk [vmem:[#allocation2] sm:$0xff] %vm297_vm1, %v15942_v2  ;;  %300 = vst.msk [vmem:[#allocation2 + $0x10] sm:$0xff] %vm297_vm1, %v15942_v2  ;;  %v8748_v3 = vld [vmem:[%s15930_s1 + $0x4] sm:$0x3]  ;;  %10650 = vmatprep.subr.msk.bf16.mxu0 %vm1331_vm0, %v10794_v0  ;;  %v1333_v4 = vsel %vm1331_vm0, %v10794_v0, 0  ;;  %10651 = vmatprep.subr.msk.bf16.mxu1 %vm1331_vm0, %v10799_v1  ;;  %v1721_v5 = vsel %vm1331_vm0, %v10799_v1, 0 }
   0x3   :  { %302 = vst.msk [vmem:[#allocation2 + $0x20] sm:$0xff] %vm297_vm1, %v15942_v2  ;;  %303 = vst.msk [vmem:[#allocation2 + $0x28] sm:$0xff] %vm297_vm1, %v15942_v2  ;;  %v57_v6 = vld [vmem:[%s15931_s0 + $0x80] sm:$0xff]  ;;  %v59_v7 = vld [vmem:[%s15931_s0 + $0x90] sm:$0xff]  ;;  %9715 = vmatpush3.bf16.msra.mxu0 %v1333_v4  ;;  %9781 = vmatpush3.bf16.msra.mxu1 %v1721_v5  ;;  %v2143_v39 = vsel %vm1331_vm0, %v8748_v3, 0 }
   0x4   :  { %304 = vst.msk [vmem:[#allocation2 + $0x30] sm:$0xff] %vm297_vm1, %v15942_v2  ;;  %305 = vst.msk [vmem:[#allocation2 + $0x38] sm:$0xff] %vm297_vm1, %v15942_v2  ;;  %v58_v8 = vld [vmem:[%s15931_s0 + $0x88] sm:$0xff]  ;;  %v61_v9 = vld [vmem:[%s15931_s0 + $0xa0] sm:$0xff]  ;;  %10652 = vmatprep.subr.msk.bf16.mxu0 %vm1331_vm0, %v8748_v3 }
   0x5   :  { %306 = vst.msk [vmem:[#allocation2 + $0x40] sm:$0xff] %vm297_vm1, %v15942_v2  ;;  %307 = vst.msk [vmem:[#allocation2 + $0x48] sm:$0xff] %vm297_vm1, %v15942_v2  ;;  %v63_v10 = vld [vmem:[%s15931_s0 + $0xb0] sm:$0xff]  ;;  %v60_v11 = vld [vmem:[%s15931_s0 + $0x98] sm:$0xff] }
   0x6   :  { %308 = vst.msk [vmem:[#allocation2 + $0x50] sm:$0xff] %vm297_vm1, %v15942_v2  ;;  %309 = vst.msk [vmem:[#allocation2 + $0x58] sm:$0xff] %vm297_vm1, %v15942_v2  ;;  %v62_v12 = vld [vmem:[%s15931_s0 + $0xa8] sm:$0xff]  ;;  %v65_v13 = vld [vmem:[%s15931_s0 + $0xc0] sm:$0xff] }
   0x7   :  { %310 = vst.msk [vmem:[#allocation2 + $0x60] sm:$0xff] %vm297_vm1, %v15942_v2  ;;  %311 = vst.msk [vmem:[#allocation2 + $0x68] sm:$0xff] %vm297_vm1, %v15942_v2  ;;  %v67_v14 = vld [vmem:[%s15931_s0 + $0xd0] sm:$0xff]  ;;  %v64_v15 = vld [vmem:[%s15931_s0 + $0xb8] sm:$0xff] }
   0x8   :  { %312 = vst.msk [vmem:[#allocation2 + $0x70] sm:$0xff] %vm297_vm1, %v15942_v2  ;;  %313 = vst.msk [vmem:[#allocation2 + $0x78] sm:$0xff] %vm297_vm1, %v15942_v2  ;;  %v66_v16 = vld [vmem:[%s15931_s0 + $0xc8] sm:$0xff]  ;;  %v69_v17 = vld [vmem:[%s15931_s0 + $0xe0] sm:$0xff] }
   0x9   :  { %314 = vst.msk [vmem:[#allocation2 + $0x80] sm:$0xff] %vm297_vm1, %v15942_v2  ;;  %316 = vst.msk [vmem:[#allocation2 + $0x90] sm:$0xff] %vm297_vm1, %v15942_v2  ;;  %v71_v18 = vld [vmem:[%s15931_s0 + $0xf0] sm:$0xff]  ;;  %v68_v19 = vld [vmem:[%s15931_s0 + $0xd8] sm:$0xff] }
   0xa   :  { %317 = vst.msk [vmem:[#allocation2 + $0x98] sm:$0xff] %vm297_vm1, %v15942_v2  ;;  %318 = vst.msk [vmem:[#allocation2 + $0xa0] sm:$0xff] %vm297_vm1, %v15942_v2  ;;  %v70_v20 = vld [vmem:[%s15931_s0 + $0xe8] sm:$0xff]  ;;  %v89_v21 = vld [vmem:[%s15931_s0 + $0x180] sm:$0xff] }
   0xb   :  { %319 = vst.msk [vmem:[#allocation2 + $0xa8] sm:$0xff] %vm297_vm1, %v15942_v2  ;;  %320 = vst.msk [vmem:[#allocation2 + $0xb0] sm:$0xff] %vm297_vm1, %v15942_v2  ;;  %v91_v22 = vld [vmem:[%s15931_s0 + $0x190] sm:$0xff]  ;;  %v90_v23 = vld [vmem:[%s15931_s0 + $0x188] sm:$0xff] }
   0xc   :  { %321 = vst.msk [vmem:[#allocation2 + $0xb8] sm:$0xff] %vm297_vm1, %v15942_v2  ;;  %322 = vst.msk [vmem:[#allocation2 + $0xc0] sm:$0xff] %vm297_vm1, %v15942_v2  ;;  %v880_v24 = vld [vmem:[#allocation2 + $0x8] sm:$0xff]  ;;  %v882_v25 = vld [vmem:[#allocation2 + $0x18] sm:$0xff] }
   0xd   :  { %323 = vst.msk [vmem:[#allocation2 + $0xc8] sm:$0xff] %vm297_vm1, %v15942_v2  ;;  %324 = vst.msk [vmem:[#allocation2 + $0xd0] sm:$0xff] %vm297_vm1, %v15942_v2  ;;  %v879_v26 = vld [vmem:[#allocation2] sm:$0xff]  ;;  %v1201_v27 = vpack.c.bf16 %v882_v25, %v880_v24  ;;  %v11463_v28 = vld [vmem:[#allocation2 + $0x10] sm:$0xff] }
   0xe   :  { %325 = vst.msk [vmem:[#allocation2 + $0xd8] sm:$0xff] %vm297_vm1, %v15942_v2  ;;  %326 = vst.msk [vmem:[#allocation2 + $0xe0] sm:$0xff] %vm297_vm1, %v15942_v2  ;;  %v11465_v29 = vld [vmem:[#allocation2 + $0x20] sm:$0xff]  ;;  %v11467_v30 = vld [vmem:[#allocation2 + $0x30] sm:$0xff]  ;;  %v1168_v32 = vpack.c.bf16 %v11463_v28, %v879_v26 }
   0xf   :  { %327 = vst.msk [vmem:[#allocation2 + $0xe8] sm:$0xff] %vm297_vm1, %v15942_v2  ;;  %328 = vst.msk [vmem:[#allocation2 + $0xf0] sm:$0xff] %vm297_vm1, %v15942_v2  ;;  %v11469_v31 = vld [vmem:[#allocation2 + $0x40] sm:$0xff]  ;;  %v1169_v33 = vpack.c.bf16 %v11467_v30, %v11465_v29  ;;  %v884_v35 = vld [vmem:[#allocation2 + $0x28] sm:$0xff]  ;;  %9716 = vmatprep.mubr.msk.bf16.mxu0 %vm297_vm1, %v1201_v27 }
  0x10   :  { %329 = vst.msk [vmem:[#allocation2 + $0xf8] sm:$0xff] %vm297_vm1, %v15942_v2  ;;  %330 = vst.msk [vmem:[#allocation2 + $0x100] sm:$0xff] %vm297_vm1, %v15942_v2  ;;  %v886_v36 = vld [vmem:[#allocation2 + $0x38] sm:$0xff]  ;;  %v888_v40 = vld [vmem:[#allocation2 + $0x48] sm:$0xff]  ;;  %9782 = vmatprep.mubr.msk.bf16.mxu1 %vm297_vm1, %v1168_v32 }
  0x11   :  { %331 = vst.msk [vmem:[#allocation2 + $0x108] sm:$0xff] %vm297_vm1, %v15942_v2  ;;  %332 = vst.msk [vmem:[#allocation2 + $0x110] sm:$0xff] %vm297_vm1, %v15942_v2  ;;  %v1202_v38 = vpack.c.bf16 %v886_v36, %v884_v35  ;;  %v890_v41 = vld [vmem:[#allocation2 + $0x58] sm:$0xff]  ;;  %v11480_v42 = vld [vmem:[#allocation2 + $0x50] sm:$0xff]  ;;  %9783 = vmatmul.mubr.msk.bf16.vlgmr.msra.gmra.mxu1 %vm297_vm1, %v1169_v33 }
  0x12   :  { %334 = vst.msk [vmem:[#allocation2 + $0x120] sm:$0xff] %vm297_vm1, %v15942_v2  ;;  %335 = vst.msk [vmem:[#allocation2 + $0x128] sm:$0xff] %vm297_vm1, %v15942_v2  ;;  %v1203_v43 = vpack.c.bf16 %v890_v41, %v888_v40  ;;  %v1170_v44 = vpack.c.bf16 %v11480_v42, %v11469_v31  ;;  %v892_v45 = vld [vmem:[#allocation2 + $0x68] sm:$0xff]  ;;  %v11487_v46 = vld [vmem:[#allocation2 + $0x60] sm:$0xff] }
  0x13   :  { %336 = vst.msk [vmem:[#allocation2 + $0x130] sm:$0xff] %vm297_vm1, %v15942_v2  ;;  %337 = vst.msk [vmem:[#allocation2 + $0x138] sm:$0xff] %vm297_vm1, %v15942_v2  ;;  %9717 = vmatmul.mubr.msk.bf16.vlgmr.msra.gmra.mxu0 %vm297_vm1, %v1202_v38  ;;  %v894_v47 = vld [vmem:[#allocation2 + $0x78] sm:$0xff]  ;;  %v893_v48 = vld [vmem:[#allocation2 + $0x70] sm:$0xff] }
  0x14   :  { %338 = vst.msk [vmem:[#allocation2 + $0x140] sm:$0xff] %vm297_vm1, %v15942_v2  ;;  %339 = vst.msk [vmem:[#allocation2 + $0x148] sm:$0xff] %vm297_vm1, %v15942_v2  ;;  %9847 = vmatpush3.bf16.msra.mxu0 %v2143_v39  ;;  %9720 = vmatprep.mubr.msk.bf16.mxu0 %vm297_vm1, %v1203_v43  ;;  %v1204_v54 = vpack.c.bf16 %v894_v47, %v892_v45  ;;  %v1171_v55 = vpack.c.bf16 %v893_v48, %v11487_v46  ;;  %v93_v63 = vld [vmem:[%s15931_s0 + $0x1a0] sm:$0xff]  ;;  %v95_v0 = vld [vmem:[%s15931_s0 + $0x1b0] sm:$0xff] }
  0x15   :  { %340 = vst.msk [vmem:[#allocation2 + $0x150] sm:$0xff] %vm297_vm1, %v15942_v2  ;;  %341 = vst.msk [vmem:[#allocation2 + $0x158] sm:$0xff] %vm297_vm1, %v15942_v2  ;;  %9786 = vmatprep.mubr.msk.bf16.mxu1 %vm297_vm1, %v1170_v44  ;;  %v92_v1 = vld [vmem:[%s15931_s0 + $0x198] sm:$0xff]  ;;  %v126_v27 = vld [vmem:[%s15931_s0 + $0x2a8] sm:$0xff] }
  0x16   :  { %342 = vst.msk [vmem:[#allocation2 + $0x160] sm:$0xff] %vm297_vm1, %v15942_v2  ;;  %343 = vst.msk [vmem:[#allocation2 + $0x168] sm:$0xff] %vm297_vm1, %v15942_v2  ;;  %v124_v26 = vld [vmem:[%s15931_s0 + $0x298] sm:$0xff]  ;;  %v129_v32 = vld [vmem:[%s15931_s0 + $0x2c0] sm:$0xff] }
  0x17   :  { %344 = vst.msk [vmem:[#allocation2 + $0x170] sm:$0xff] %vm297_vm1, %v15942_v2  ;;  %345 = vst.msk [vmem:[#allocation2 + $0x178] sm:$0xff] %vm297_vm1, %v15942_v2  ;;  %v131_v33 = vld [vmem:[%s15931_s0 + $0x2d0] sm:$0xff]  ;;  %v128_v35 = vld [vmem:[%s15931_s0 + $0x2b8] sm:$0xff] }
  0x18   :  { %346 = vst.msk [vmem:[#allocation2 + $0x180] sm:$0xff] %vm297_vm1, %v15942_v2  ;;  %347 = vst.msk [vmem:[#allocation2 + $0x188] sm:$0xff] %vm297_vm1, %v15942_v2  ;;  %v130_v36 = vld [vmem:[%s15931_s0 + $0x2c8] sm:$0xff] }
  0x19   :  { %348 = vst.msk [vmem:[#allocation2 + $0x190] sm:$0xff] %vm297_vm1, %v15942_v2  ;;  %349 = vst.msk [vmem:[#allocation2 + $0x198] sm:$0xff] %vm297_vm1, %v15942_v2  ;;  %v913_v52 = vld [vmem:[#allocation2 + $0x120] sm:$0xff]  ;;  %9787 = vmatmul.mubr.msk.bf16.gmra.mxu1 %vm297_vm1, %v1171_v55 }
  0x1a   :  { %350 = vst.msk [vmem:[#allocation2 + $0x1a0] sm:$0xff] %vm297_vm1, %v15942_v2  ;;  %352 = vst.msk [vmem:[#allocation2 + $0x1b0] sm:$0xff] %vm297_vm1, %v15942_v2 }
  0x1b   :  { %353 = vst.msk [vmem:[#allocation2 + $0x1b8] sm:$0xff] %vm297_vm1, %v15942_v2  ;;  %354 = vst.msk [vmem:[#allocation2 + $0x1c0] sm:$0xff] %vm297_vm1, %v15942_v2  ;;  %9721 = vmatmul.mubr.msk.bf16.gmra.mxu0 %vm297_vm1, %v1204_v54 }
  0x1c   :  { %355 = vst.msk [vmem:[#allocation2 + $0x1c8] sm:$0xff] %vm297_vm1, %v15942_v2  ;;  %356 = vst.msk [vmem:[#allocation2 + $0x1d0] sm:$0xff] %vm297_vm1, %v15942_v2 }
  0x1d   :  { %357 = vst.msk [vmem:[#allocation2 + $0x1d8] sm:$0xff] %vm297_vm1, %v15942_v2  ;;  %358 = vst.msk [vmem:[#allocation2 + $0x1e0] sm:$0xff] %vm297_vm1, %v15942_v2 }
  0x1e   :  { %359 = vst.msk [vmem:[#allocation2 + $0x1e8] sm:$0xff] %vm297_vm1, %v15942_v2  ;;  %360 = vst.msk [vmem:[#allocation2 + $0x1f0] sm:$0xff] %vm297_vm1, %v15942_v2 }
  0x1f   :  { %361 = vst.msk [vmem:[#allocation2 + $0x1f8] sm:$0xff] %vm297_vm1, %v15942_v2  ;;  %362 = vst.msk [vmem:[#allocation2 + $0x200] sm:$0xff] %vm297_vm1, %v15942_v2 }
  0x20   :  { %363 = vst.msk [vmem:[#allocation2 + $0x208] sm:$0xff] %vm297_vm1, %v15942_v2  ;;  %364 = vst.msk [vmem:[#allocation2 + $0x210] sm:$0xff] %vm297_vm1, %v15942_v2 }
  0x21   :  { %365 = vst.msk [vmem:[#allocation2 + $0x218] sm:$0xff] %vm297_vm1, %v15942_v2  ;;  %366 = vst.msk [vmem:[#allocation2 + $0x220] sm:$0xff] %vm297_vm1, %v15942_v2 }
  0x22   :  { %367 = vst.msk [vmem:[#allocation2 + $0x228] sm:$0xff] %vm297_vm1, %v15942_v2  ;;  %368 = vst.msk [vmem:[#allocation2 + $0x230] sm:$0xff] %vm297_vm1, %v15942_v2 }
  0x23   :  { %370 = vst.msk [vmem:[#allocation2 + $0x240] sm:$0xff] %vm297_vm1, %v15942_v2  ;;  %371 = vst.msk [vmem:[#allocation2 + $0x248] sm:$0xff] %vm297_vm1, %v15942_v2 }
  0x24   :  { %372 = vst.msk [vmem:[#allocation2 + $0x250] sm:$0xff] %vm297_vm1, %v15942_v2  ;;  %373 = vst.msk [vmem:[#allocation2 + $0x258] sm:$0xff] %vm297_vm1, %v15942_v2 }
  0x25   :  { %374 = vst.msk [vmem:[#allocation2 + $0x260] sm:$0xff] %vm297_vm1, %v15942_v2  ;;  %375 = vst.msk [vmem:[#allocation2 + $0x268] sm:$0xff] %vm297_vm1, %v15942_v2 }
  0x26   :  { %376 = vst.msk [vmem:[#allocation2 + $0x270] sm:$0xff] %vm297_vm1, %v15942_v2  ;;  %377 = vst.msk [vmem:[#allocation2 + $0x278] sm:$0xff] %vm297_vm1, %v15942_v2 }
  0x27   :  { %378 = vst.msk [vmem:[#allocation2 + $0x280] sm:$0xff] %vm297_vm1, %v15942_v2  ;;  %379 = vst.msk [vmem:[#allocation2 + $0x288] sm:$0xff] %vm297_vm1, %v15942_v2 }
  0x28   :  { %380 = vst.msk [vmem:[#allocation2 + $0x290] sm:$0xff] %vm297_vm1, %v15942_v2  ;;  %381 = vst.msk [vmem:[#allocation2 + $0x298] sm:$0xff] %vm297_vm1, %v15942_v2 }
  0x29   :  { %382 = vst.msk [vmem:[#allocation2 + $0x2a0] sm:$0xff] %vm297_vm1, %v15942_v2  ;;  %383 = vst.msk [vmem:[#allocation2 + $0x2a8] sm:$0xff] %vm297_vm1, %v15942_v2 }
  0x2a   :  { %384 = vst.msk [vmem:[#allocation2 + $0x2b0] sm:$0xff] %vm297_vm1, %v15942_v2  ;;  %385 = vst.msk [vmem:[#allocation2 + $0x2b8] sm:$0xff] %vm297_vm1, %v15942_v2  ;;  %v947_v47 = vld [vmem:[#allocation2 + $0x240] sm:$0xff] }
  0x2b   :  { %386 = vst.msk [vmem:[#allocation2 + $0x2c0] sm:$0xff] %vm297_vm1, %v15942_v2  ;;  %388 = vst.msk [vmem:[#allocation2 + $0x2d0] sm:$0xff] %vm297_vm1, %v15942_v2 }
  0x2c   :  { %389 = vst.msk [vmem:[#allocation2 + $0x2d8] sm:$0xff] %vm297_vm1, %v15942_v2  ;;  %390 = vst.msk [vmem:[#allocation2 + $0x2e0] sm:$0xff] %vm297_vm1, %v15942_v2 }
  0x2d   :  { %391 = vst.msk [vmem:[#allocation2 + $0x2e8] sm:$0xff] %vm297_vm1, %v15942_v2  ;;  %392 = vst.msk [vmem:[#allocation2 + $0x2f0] sm:$0xff] %vm297_vm1, %v15942_v2 }
  0x2e   :  { %393 = vst.msk [vmem:[#allocation2 + $0x2f8] sm:$0xff] %vm297_vm1, %v15942_v2  ;;  %394 = vst.msk [vmem:[#allocation2 + $0x300] sm:$0xff] %vm297_vm1, %v15942_v2 }
  0x2f   :  { %395 = vst.msk [vmem:[#allocation2 + $0x308] sm:$0xff] %vm297_vm1, %v15942_v2  ;;  %396 = vst.msk [vmem:[#allocation2 + $0x310] sm:$0xff] %vm297_vm1, %v15942_v2 }
  0x30   :  { %397 = vst.msk [vmem:[#allocation2 + $0x318] sm:$0xff] %vm297_vm1, %v15942_v2  ;;  %398 = vst.msk [vmem:[#allocation2 + $0x320] sm:$0xff] %vm297_vm1, %v15942_v2 }
  0x31   :  { %399 = vst.msk [vmem:[#allocation2 + $0x328] sm:$0xff] %vm297_vm1, %v15942_v2  ;;  %400 = vst.msk [vmem:[#allocation2 + $0x330] sm:$0xff] %vm297_vm1, %v15942_v2 }
  0x32   :  { %401 = vst.msk [vmem:[#allocation2 + $0x338] sm:$0xff] %vm297_vm1, %v15942_v2  ;;  %402 = vst.msk [vmem:[#allocation2 + $0x340] sm:$0xff] %vm297_vm1, %v15942_v2 }
  0x33   :  { %403 = vst.msk [vmem:[#allocation2 + $0x348] sm:$0xff] %vm297_vm1, %v15942_v2  ;;  %404 = vst.msk [vmem:[#allocation2 + $0x350] sm:$0xff] %vm297_vm1, %v15942_v2 }
  0x34   :  { %406 = vst.msk [vmem:[#allocation2 + $0x360] sm:$0xff] %vm297_vm1, %v15942_v2  ;;  %407 = vst.msk [vmem:[#allocation2 + $0x368] sm:$0xff] %vm297_vm1, %v15942_v2 }
  0x35   :  { %408 = vst.msk [vmem:[#allocation2 + $0x370] sm:$0xff] %vm297_vm1, %v15942_v2  ;;  %409 = vst.msk [vmem:[#allocation2 + $0x378] sm:$0xff] %vm297_vm1, %v15942_v2 }
  0x36   :  { %410 = vst.msk [vmem:[#allocation2 + $0x380] sm:$0xff] %vm297_vm1, %v15942_v2  ;;  %411 = vst.msk [vmem:[#allocation2 + $0x388] sm:$0xff] %vm297_vm1, %v15942_v2 }
  0x37   :  { %412 = vst.msk [vmem:[#allocation2 + $0x390] sm:$0xff] %vm297_vm1, %v15942_v2  ;;  %413 = vst.msk [vmem:[#allocation2 + $0x398] sm:$0xff] %vm297_vm1, %v15942_v2 }
  0x38   :  { %414 = vst.msk [vmem:[#allocation2 + $0x3a0] sm:$0xff] %vm297_vm1, %v15942_v2  ;;  %415 = vst.msk [vmem:[#allocation2 + $0x3a8] sm:$0xff] %vm297_vm1, %v15942_v2 }
  0x39   :  { %416 = vst.msk [vmem:[#allocation2 + $0x3b0] sm:$0xff] %vm297_vm1, %v15942_v2  ;;  %417 = vst.msk [vmem:[#allocation2 + $0x3b8] sm:$0xff] %vm297_vm1, %v15942_v2 }
  0x3a   :  { %418 = vst.msk [vmem:[#allocation2 + $0x3c0] sm:$0xff] %vm297_vm1, %v15942_v2  ;;  %419 = vst.msk [vmem:[#allocation2 + $0x3c8] sm:$0xff] %vm297_vm1, %v15942_v2 }
  0x3b   :  { %420 = vst.msk [vmem:[#allocation2 + $0x3d0] sm:$0xff] %vm297_vm1, %v15942_v2  ;;  %421 = vst.msk [vmem:[#allocation2 + $0x3d8] sm:$0xff] %vm297_vm1, %v15942_v2 }
  0x3c   :  { %422 = vst.msk [vmem:[#allocation2 + $0x3e0] sm:$0xff] %vm297_vm1, %v15942_v2  ;;  %424 = vst.msk [vmem:[#allocation2 + $0x3f0] sm:$0xff] %vm297_vm1, %v15942_v2 }
  0x3d   :  { %425 = vst.msk [vmem:[#allocation2 + $0x3f8] sm:$0xff] %vm297_vm1, %v15942_v2  ;;  %426 = vst.msk [vmem:[#allocation2 + $0x400] sm:$0xff] %vm297_vm1, %v15942_v2 }
  0x3e   :  { %427 = vst.msk [vmem:[#allocation2 + $0x408] sm:$0xff] %vm297_vm1, %v15942_v2  ;;  %428 = vst.msk [vmem:[#allocation2 + $0x410] sm:$0xff] %vm297_vm1, %v15942_v2 }
  0x3f   :  { %429 = vst.msk [vmem:[#allocation2 + $0x418] sm:$0xff] %vm297_vm1, %v15942_v2  ;;  %430 = vst.msk [vmem:[#allocation2 + $0x420] sm:$0xff] %vm297_vm1, %v15942_v2 }
  0x40   :  { %431 = vst.msk [vmem:[#allocation2 + $0x428] sm:$0xff] %vm297_vm1, %v15942_v2  ;;  %432 = vst.msk [vmem:[#allocation2 + $0x430] sm:$0xff] %vm297_vm1, %v15942_v2 }
  0x41   :  { %433 = vst.msk [vmem:[#allocation2 + $0x438] sm:$0xff] %vm297_vm1, %v15942_v2  ;;  %434 = vst.msk [vmem:[#allocation2 + $0x440] sm:$0xff] %vm297_vm1, %v15942_v2 }
  0x42   :  { %435 = vst.msk [vmem:[#allocation2 + $0x448] sm:$0xff] %vm297_vm1, %v15942_v2  ;;  %436 = vst.msk [vmem:[#allocation2 + $0x450] sm:$0xff] %vm297_vm1, %v15942_v2 }
  0x43   :  { %437 = vst.msk [vmem:[#allocation2 + $0x458] sm:$0xff] %vm297_vm1, %v15942_v2  ;;  %438 = vst.msk [vmem:[#allocation2 + $0x460] sm:$0xff] %vm297_vm1, %v15942_v2 }
  0x44   :  { %439 = vst.msk [vmem:[#allocation2 + $0x468] sm:$0xff] %vm297_vm1, %v15942_v2  ;;  %440 = vst.msk [vmem:[#allocation2 + $0x470] sm:$0xff] %vm297_vm1, %v15942_v2 }
  0x45   :  { %442 = vst.msk [vmem:[#allocation2 + $0x480] sm:$0xff] %vm297_vm1, %v15942_v2  ;;  %443 = vst.msk [vmem:[#allocation2 + $0x488] sm:$0xff] %vm297_vm1, %v15942_v2 }
  0x46   :  { %444 = vst.msk [vmem:[#allocation2 + $0x490] sm:$0xff] %vm297_vm1, %v15942_v2  ;;  %445 = vst.msk [vmem:[#allocation2 + $0x498] sm:$0xff] %vm297_vm1, %v15942_v2 }
  0x47   :  { %446 = vst.msk [vmem:[#allocation2 + $0x4a0] sm:$0xff] %vm297_vm1, %v15942_v2  ;;  %447 = vst.msk [vmem:[#allocation2 + $0x4a8] sm:$0xff] %vm297_vm1, %v15942_v2 }
  0x48   :  { %448 = vst.msk [vmem:[#allocation2 + $0x4b0] sm:$0xff] %vm297_vm1, %v15942_v2  ;;  %449 = vst.msk [vmem:[#allocation2 + $0x4b8] sm:$0xff] %vm297_vm1, %v15942_v2 }
  0x49   :  { %450 = vst.msk [vmem:[#allocation2 + $0x4c0] sm:$0xff] %vm297_vm1, %v15942_v2  ;;  %451 = vst.msk [vmem:[#allocation2 + $0x4c8] sm:$0xff] %vm297_vm1, %v15942_v2 }
  0x4a   :  { %452 = vst.msk [vmem:[#allocation2 + $0x4d0] sm:$0xff] %vm297_vm1, %v15942_v2  ;;  %453 = vst.msk [vmem:[#allocation2 + $0x4d8] sm:$0xff] %vm297_vm1, %v15942_v2 }
  0x4b   :  { %454 = vst.msk [vmem:[#allocation2 + $0x4e0] sm:$0xff] %vm297_vm1, %v15942_v2  ;;  %455 = vst.msk [vmem:[#allocation2 + $0x4e8] sm:$0xff] %vm297_vm1, %v15942_v2 }
  0x4c   :  { %456 = vst.msk [vmem:[#allocation2 + $0x4f0] sm:$0xff] %vm297_vm1, %v15942_v2  ;;  %457 = vst.msk [vmem:[#allocation2 + $0x4f8] sm:$0xff] %vm297_vm1, %v15942_v2 }
  0x4d   :  { %458 = vst.msk [vmem:[#allocation2 + $0x500] sm:$0xff] %vm297_vm1, %v15942_v2  ;;  %460 = vst.msk [vmem:[#allocation2 + $0x510] sm:$0xff] %vm297_vm1, %v15942_v2 }
  0x4e   :  { %461 = vst.msk [vmem:[#allocation2 + $0x518] sm:$0xff] %vm297_vm1, %v15942_v2  ;;  %462 = vst.msk [vmem:[#allocation2 + $0x520] sm:$0xff] %vm297_vm1, %v15942_v2 }
  0x4f   :  { %463 = vst.msk [vmem:[#allocation2 + $0x528] sm:$0xff] %vm297_vm1, %v15942_v2  ;;  %464 = vst.msk [vmem:[#allocation2 + $0x530] sm:$0xff] %vm297_vm1, %v15942_v2 }
  0x50   :  { %465 = vst.msk [vmem:[#allocation2 + $0x538] sm:$0xff] %vm297_vm1, %v15942_v2  ;;  %466 = vst.msk [vmem:[#allocation2 + $0x540] sm:$0xff] %vm297_vm1, %v15942_v2 }
  0x51   :  { %467 = vst.msk [vmem:[#allocation2 + $0x548] sm:$0xff] %vm297_vm1, %v15942_v2  ;;  %468 = vst.msk [vmem:[#allocation2 + $0x550] sm:$0xff] %vm297_vm1, %v15942_v2 }
  0x52   :  { %469 = vst.msk [vmem:[#allocation2 + $0x558] sm:$0xff] %vm297_vm1, %v15942_v2  ;;  %470 = vst.msk [vmem:[#allocation2 + $0x560] sm:$0xff] %vm297_vm1, %v15942_v2 }
  0x53   :  { %471 = vst.msk [vmem:[#allocation2 + $0x568] sm:$0xff] %vm297_vm1, %v15942_v2  ;;  %472 = vst.msk [vmem:[#allocation2 + $0x570] sm:$0xff] %vm297_vm1, %v15942_v2 }
  0x54   :  { %473 = vst.msk [vmem:[#allocation2 + $0x578] sm:$0xff] %vm297_vm1, %v15942_v2  ;;  %474 = vst.msk [vmem:[#allocation2 + $0x580] sm:$0xff] %vm297_vm1, %v15942_v2 }
  0x55   :  { %475 = vst.msk [vmem:[#allocation2 + $0x588] sm:$0xff] %vm297_vm1, %v15942_v2  ;;  %476 = vst.msk [vmem:[#allocation2 + $0x590] sm:$0xff] %vm297_vm1, %v15942_v2 }
  0x56   :  { %478 = vst.msk [vmem:[#allocation2 + $0x5a0] sm:$0xff] %vm297_vm1, %v15942_v2  ;;  %479 = vst.msk [vmem:[#allocation2 + $0x5a8] sm:$0xff] %vm297_vm1, %v15942_v2 }
  0x57   :  { %480 = vst.msk [vmem:[#allocation2 + $0x5b0] sm:$0xff] %vm297_vm1, %v15942_v2  ;;  %481 = vst.msk [vmem:[#allocation2 + $0x5b8] sm:$0xff] %vm297_vm1, %v15942_v2 }
  0x58   :  { %482 = vst.msk [vmem:[#allocation2 + $0x5c0] sm:$0xff] %vm297_vm1, %v15942_v2  ;;  %483 = vst.msk [vmem:[#allocation2 + $0x5c8] sm:$0xff] %vm297_vm1, %v15942_v2 }
  0x59   :  { %484 = vst.msk [vmem:[#allocation2 + $0x5d0] sm:$0xff] %vm297_vm1, %v15942_v2  ;;  %485 = vst.msk [vmem:[#allocation2 + $0x5d8] sm:$0xff] %vm297_vm1, %v15942_v2 }
  0x5a   :  { %486 = vst.msk [vmem:[#allocation2 + $0x5e0] sm:$0xff] %vm297_vm1, %v15942_v2  ;;  %487 = vst.msk [vmem:[#allocation2 + $0x5e8] sm:$0xff] %vm297_vm1, %v15942_v2 }
  0x5b   :  { %488 = vst.msk [vmem:[#allocation2 + $0x5f0] sm:$0xff] %vm297_vm1, %v15942_v2  ;;  %489 = vst.msk [vmem:[#allocation2 + $0x5f8] sm:$0xff] %vm297_vm1, %v15942_v2 }
  0x5c   :  { %490 = vst.msk [vmem:[#allocation2 + $0x600] sm:$0xff] %vm297_vm1, %v15942_v2  ;;  %491 = vst.msk [vmem:[#allocation2 + $0x608] sm:$0xff] %vm297_vm1, %v15942_v2 }
  0x5d   :  { %492 = vst.msk [vmem:[#allocation2 + $0x610] sm:$0xff] %vm297_vm1, %v15942_v2  ;;  %493 = vst.msk [vmem:[#allocation2 + $0x618] sm:$0xff] %vm297_vm1, %v15942_v2 }
  0x5e   :  { %494 = vst.msk [vmem:[#allocation2 + $0x620] sm:$0xff] %vm297_vm1, %v15942_v2  ;;  %496 = vst.msk [vmem:[#allocation2 + $0x630] sm:$0xff] %vm297_vm1, %v15942_v2 }
  0x5f   :  { %497 = vst.msk [vmem:[#allocation2 + $0x638] sm:$0xff] %vm297_vm1, %v15942_v2  ;;  %498 = vst.msk [vmem:[#allocation2 + $0x640] sm:$0xff] %vm297_vm1, %v15942_v2 }
  0x60   :  { %499 = vst.msk [vmem:[#allocation2 + $0x648] sm:$0xff] %vm297_vm1, %v15942_v2  ;;  %500 = vst.msk [vmem:[#allocation2 + $0x650] sm:$0xff] %vm297_vm1, %v15942_v2 }
  0x61   :  { %501 = vst.msk [vmem:[#allocation2 + $0x658] sm:$0xff] %vm297_vm1, %v15942_v2  ;;  %502 = vst.msk [vmem:[#allocation2 + $0x660] sm:$0xff] %vm297_vm1, %v15942_v2 }
  0x62   :  { %503 = vst.msk [vmem:[#allocation2 + $0x668] sm:$0xff] %vm297_vm1, %v15942_v2  ;;  %504 = vst.msk [vmem:[#allocation2 + $0x670] sm:$0xff] %vm297_vm1, %v15942_v2 }
  0x63   :  { %505 = vst.msk [vmem:[#allocation2 + $0x678] sm:$0xff] %vm297_vm1, %v15942_v2  ;;  %506 = vst.msk [vmem:[#allocation2 + $0x680] sm:$0xff] %vm297_vm1, %v15942_v2 }
  0x64   :  { %507 = vst.msk [vmem:[#allocation2 + $0x688] sm:$0xff] %vm297_vm1, %v15942_v2  ;;  %508 = vst.msk [vmem:[#allocation2 + $0x690] sm:$0xff] %vm297_vm1, %v15942_v2 }
  0x65   :  { %509 = vst.msk [vmem:[#allocation2 + $0x698] sm:$0xff] %vm297_vm1, %v15942_v2  ;;  %510 = vst.msk [vmem:[#allocation2 + $0x6a0] sm:$0xff] %vm297_vm1, %v15942_v2 }
  0x66   :  { %511 = vst.msk [vmem:[#allocation2 + $0x6a8] sm:$0xff] %vm297_vm1, %v15942_v2  ;;  %512 = vst.msk [vmem:[#allocation2 + $0x6b0] sm:$0xff] %vm297_vm1, %v15942_v2 }
  0x67   :  { %514 = vst.msk [vmem:[#allocation2 + $0x6c0] sm:$0xff] %vm297_vm1, %v15942_v2  ;;  %515 = vst.msk [vmem:[#allocation2 + $0x6c8] sm:$0xff] %vm297_vm1, %v15942_v2 }
  0x68   :  { %516 = vst.msk [vmem:[#allocation2 + $0x6d0] sm:$0xff] %vm297_vm1, %v15942_v2  ;;  %517 = vst.msk [vmem:[#allocation2 + $0x6d8] sm:$0xff] %vm297_vm1, %v15942_v2 }
  0x69   :  { %518 = vst.msk [vmem:[#allocation2 + $0x6e0] sm:$0xff] %vm297_vm1, %v15942_v2  ;;  %519 = vst.msk [vmem:[#allocation2 + $0x6e8] sm:$0xff] %vm297_vm1, %v15942_v2 }
  0x6a   :  { %520 = vst.msk [vmem:[#allocation2 + $0x6f0] sm:$0xff] %vm297_vm1, %v15942_v2  ;;  %521 = vst.msk [vmem:[#allocation2 + $0x6f8] sm:$0xff] %vm297_vm1, %v15942_v2 }
  0x6b   :  { %522 = vst.msk [vmem:[#allocation2 + $0x700] sm:$0xff] %vm297_vm1, %v15942_v2  ;;  %523 = vst.msk [vmem:[#allocation2 + $0x708] sm:$0xff] %vm297_vm1, %v15942_v2 }
  0x6c   :  { %524 = vst.msk [vmem:[#allocation2 + $0x710] sm:$0xff] %vm297_vm1, %v15942_v2  ;;  %525 = vst.msk [vmem:[#allocation2 + $0x718] sm:$0xff] %vm297_vm1, %v15942_v2 }
  0x6d   :  { %526 = vst.msk [vmem:[#allocation2 + $0x720] sm:$0xff] %vm297_vm1, %v15942_v2  ;;  %527 = vst.msk [vmem:[#allocation2 + $0x728] sm:$0xff] %vm297_vm1, %v15942_v2 }
  0x6e   :  { %528 = vst.msk [vmem:[#allocation2 + $0x730] sm:$0xff] %vm297_vm1, %v15942_v2  ;;  %529 = vst.msk [vmem:[#allocation2 + $0x738] sm:$0xff] %vm297_vm1, %v15942_v2 }
  0x6f   :  { %530 = vst.msk [vmem:[#allocation2 + $0x740] sm:$0xff] %vm297_vm1, %v15942_v2  ;;  %532 = vst.msk [vmem:[#allocation2 + $0x750] sm:$0xff] %vm297_vm1, %v15942_v2 }
  0x70   :  { %533 = vst.msk [vmem:[#allocation2 + $0x758] sm:$0xff] %vm297_vm1, %v15942_v2  ;;  %534 = vst.msk [vmem:[#allocation2 + $0x760] sm:$0xff] %vm297_vm1, %v15942_v2 }
  0x71   :  { %535 = vst.msk [vmem:[#allocation2 + $0x768] sm:$0xff] %vm297_vm1, %v15942_v2  ;;  %536 = vst.msk [vmem:[#allocation2 + $0x770] sm:$0xff] %vm297_vm1, %v15942_v2 }
  0x72   :  { %537 = vst.msk [vmem:[#allocation2 + $0x778] sm:$0xff] %vm297_vm1, %v15942_v2  ;;  %538 = vst.msk [vmem:[#allocation2 + $0x780] sm:$0xff] %vm297_vm1, %v15942_v2 }
  0x73   :  { %539 = vst.msk [vmem:[#allocation2 + $0x788] sm:$0xff] %vm297_vm1, %v15942_v2  ;;  %540 = vst.msk [vmem:[#allocation2 + $0x790] sm:$0xff] %vm297_vm1, %v15942_v2 }
  0x74   :  { %541 = vst.msk [vmem:[#allocation2 + $0x798] sm:$0xff] %vm297_vm1, %v15942_v2  ;;  %542 = vst.msk [vmem:[#allocation2 + $0x7a0] sm:$0xff] %vm297_vm1, %v15942_v2 }
  0x75   :  { %543 = vst.msk [vmem:[#allocation2 + $0x7a8] sm:$0xff] %vm297_vm1, %v15942_v2  ;;  %544 = vst.msk [vmem:[#allocation2 + $0x7b0] sm:$0xff] %vm297_vm1, %v15942_v2 }
  0x76   :  { %545 = vst.msk [vmem:[#allocation2 + $0x7b8] sm:$0xff] %vm297_vm1, %v15942_v2  ;;  %546 = vst.msk [vmem:[#allocation2 + $0x7c0] sm:$0xff] %vm297_vm1, %v15942_v2 }
  0x77   :  { %547 = vst.msk [vmem:[#allocation2 + $0x7c8] sm:$0xff] %vm297_vm1, %v15942_v2  ;;  %548 = vst.msk [vmem:[#allocation2 + $0x7d0] sm:$0xff] %vm297_vm1, %v15942_v2 }
  0x78   :  { %550 = vst.msk [vmem:[#allocation2 + $0x7e0] sm:$0xff] %vm297_vm1, %v15942_v2  ;;  %551 = vst.msk [vmem:[#allocation2 + $0x7e8] sm:$0xff] %vm297_vm1, %v15942_v2 }
  0x79   :  { %552 = vst.msk [vmem:[#allocation2 + $0x7f0] sm:$0xff] %vm297_vm1, %v15942_v2  ;;  %553 = vst.msk [vmem:[#allocation2 + $0x7f8] sm:$0xff] %vm297_vm1, %v15942_v2 }
  0x7a   :  { %554 = vst.msk [vmem:[#allocation2 + $0x800] sm:$0xff] %vm297_vm1, %v15942_v2  ;;  %555 = vst.msk [vmem:[#allocation2 + $0x808] sm:$0xff] %vm297_vm1, %v15942_v2 }
  0x7b   :  { %556 = vst.msk [vmem:[#allocation2 + $0x810] sm:$0xff] %vm297_vm1, %v15942_v2  ;;  %557 = vst.msk [vmem:[#allocation2 + $0x818] sm:$0xff] %vm297_vm1, %v15942_v2 }
  0x7c   :  { %558 = vst.msk [vmem:[#allocation2 + $0x820] sm:$0xff] %vm297_vm1, %v15942_v2  ;;  %559 = vst.msk [vmem:[#allocation2 + $0x828] sm:$0xff] %vm297_vm1, %v15942_v2 }
  0x7d   :  { %560 = vst.msk [vmem:[#allocation2 + $0x830] sm:$0xff] %vm297_vm1, %v15942_v2  ;;  %561 = vst.msk [vmem:[#allocation2 + $0x838] sm:$0xff] %vm297_vm1, %v15942_v2 }
  0x7e   :  { %562 = vst.msk [vmem:[#allocation2 + $0x840] sm:$0xff] %vm297_vm1, %v15942_v2  ;;  %563 = vst.msk [vmem:[#allocation2 + $0x848] sm:$0xff] %vm297_vm1, %v15942_v2 }
  0x7f   :  { %564 = vst.msk [vmem:[#allocation2 + $0x850] sm:$0xff] %vm297_vm1, %v15942_v2  ;;  %565 = vst.msk [vmem:[#allocation2 + $0x858] sm:$0xff] %vm297_vm1, %v15942_v2 }
  0x80   :  { %566 = vst.msk [vmem:[#allocation2 + $0x860] sm:$0xff] %vm297_vm1, %v15942_v2  ;;  %568 = vst.msk [vmem:[#allocation2 + $0x870] sm:$0xff] %vm297_vm1, %v15942_v2 }
  0x81   :  { %569 = vst.msk [vmem:[#allocation2 + $0x878] sm:$0xff] %vm297_vm1, %v15942_v2  ;;  %570 = vst.msk [vmem:[#allocation2 + $0x880] sm:$0xff] %vm297_vm1, %v15942_v2 }
  0x82   :  { %571 = vst.msk [vmem:[#allocation2 + $0x888] sm:$0xff] %vm297_vm1, %v15942_v2  ;;  %572 = vst.msk [vmem:[#allocation2 + $0x890] sm:$0xff] %vm297_vm1, %v15942_v2 }
  0x83   :  { %573 = vst.msk [vmem:[#allocation2 + $0x898] sm:$0xff] %vm297_vm1, %v15942_v2  ;;  %574 = vst.msk [vmem:[#allocation2 + $0x8a0] sm:$0xff] %vm297_vm1, %v15942_v2 }
  0x84   :  { %575 = vst.msk [vmem:[#allocation2 + $0x8a8] sm:$0xff] %vm297_vm1, %v15942_v2  ;;  %576 = vst.msk [vmem:[#allocation2 + $0x8b0] sm:$0xff] %vm297_vm1, %v15942_v2 }
  0x85   :  { %577 = vst.msk [vmem:[#allocation2 + $0x8b8] sm:$0xff] %vm297_vm1, %v15942_v2  ;;  %578 = vst.msk [vmem:[#allocation2 + $0x8c0] sm:$0xff] %vm297_vm1, %v15942_v2 }
  0x86   :  { %579 = vst.msk [vmem:[#allocation2 + $0x8c8] sm:$0xff] %vm297_vm1, %v15942_v2  ;;  %580 = vst.msk [vmem:[#allocation2 + $0x8d0] sm:$0xff] %vm297_vm1, %v15942_v2 }
  0x87   :  { %581 = vst.msk [vmem:[#allocation2 + $0x8d8] sm:$0xff] %vm297_vm1, %v15942_v2  ;;  %582 = vst.msk [vmem:[#allocation2 + $0x8e0] sm:$0xff] %vm297_vm1, %v15942_v2 }
  0x88   :  { %583 = vst.msk [vmem:[#allocation2 + $0x8e8] sm:$0xff] %vm297_vm1, %v15942_v2  ;;  %584 = vst.msk [vmem:[#allocation2 + $0x8f0] sm:$0xff] %vm297_vm1, %v15942_v2 }
  0x89   :  { %586 = vst.msk [vmem:[#allocation2 + $0x900] sm:$0xff] %vm297_vm1, %v15942_v2  ;;  %587 = vst.msk [vmem:[#allocation2 + $0x908] sm:$0xff] %vm297_vm1, %v15942_v2 }
  0x8a   :  { %588 = vst.msk [vmem:[#allocation2 + $0x910] sm:$0xff] %vm297_vm1, %v15942_v2  ;;  %589 = vst.msk [vmem:[#allocation2 + $0x918] sm:$0xff] %vm297_vm1, %v15942_v2 }
  0x8b   :  { %590 = vst.msk [vmem:[#allocation2 + $0x920] sm:$0xff] %vm297_vm1, %v15942_v2  ;;  %591 = vst.msk [vmem:[#allocation2 + $0x928] sm:$0xff] %vm297_vm1, %v15942_v2 }
  0x8c   :  { %592 = vst.msk [vmem:[#allocation2 + $0x930] sm:$0xff] %vm297_vm1, %v15942_v2  ;;  %593 = vst.msk [vmem:[#allocation2 + $0x938] sm:$0xff] %vm297_vm1, %v15942_v2 }
  0x8d   :  { %594 = vst.msk [vmem:[#allocation2 + $0x940] sm:$0xff] %vm297_vm1, %v15942_v2  ;;  %595 = vst.msk [vmem:[#allocation2 + $0x948] sm:$0xff] %vm297_vm1, %v15942_v2 }
  0x8e   :  { %596 = vst.msk [vmem:[#allocation2 + $0x950] sm:$0xff] %vm297_vm1, %v15942_v2  ;;  %597 = vst.msk [vmem:[#allocation2 + $0x958] sm:$0xff] %vm297_vm1, %v15942_v2 }
  0x8f   :  { %598 = vst.msk [vmem:[#allocation2 + $0x960] sm:$0xff] %vm297_vm1, %v15942_v2  ;;  %599 = vst.msk [vmem:[#allocation2 + $0x968] sm:$0xff] %vm297_vm1, %v15942_v2 }
  0x90   :  { %600 = vst.msk [vmem:[#allocation2 + $0x970] sm:$0xff] %vm297_vm1, %v15942_v2  ;;  %601 = vst.msk [vmem:[#allocation2 + $0x978] sm:$0xff] %vm297_vm1, %v15942_v2 }
  0x91   :  { %602 = vst.msk [vmem:[#allocation2 + $0x980] sm:$0xff] %vm297_vm1, %v15942_v2  ;;  %639 = vst.msk [vmem:[#allocation2 + $0x128] sm:$0xff] %vm297_vm1, %v57_v6  ;;  %v94_v6 = vld [vmem:[%s15931_s0 + $0x1a8] sm:$0xff] }
  0x92   :  { %641 = vst.msk [vmem:[#allocation2 + $0x138] sm:$0xff] %vm297_vm1, %v59_v7  ;;  %640 = vst.msk [vmem:[#allocation2 + $0x130] sm:$0xff] %vm297_vm1, %v58_v8  ;;  %v97_v7 = vld [vmem:[%s15931_s0 + $0x1c0] sm:$0xff]  ;;  %v99_v8 = vld [vmem:[%s15931_s0 + $0x1d0] sm:$0xff] }
  0x93   :  { %643 = vst.msk [vmem:[#allocation2 + $0x148] sm:$0xff] %vm297_vm1, %v61_v9  ;;  %645 = vst.msk [vmem:[#allocation2 + $0x158] sm:$0xff] %vm297_vm1, %v63_v10  ;;  %v96_v10 = vld [vmem:[%s15931_s0 + $0x1b8] sm:$0xff] }
  0x94   :  { %642 = vst.msk [vmem:[#allocation2 + $0x140] sm:$0xff] %vm297_vm1, %v60_v11  ;;  %644 = vst.msk [vmem:[#allocation2 + $0x150] sm:$0xff] %vm297_vm1, %v62_v12  ;;  %v98_v11 = vld [vmem:[%s15931_s0 + $0x1c8] sm:$0xff]  ;;  %v101_v12 = vld [vmem:[%s15931_s0 + $0x1e0] sm:$0xff] }
  0x95   :  { %647 = vst.msk [vmem:[#allocation2 + $0x168] sm:$0xff] %vm297_vm1, %v65_v13  ;;  %649 = vst.msk [vmem:[#allocation2 + $0x178] sm:$0xff] %vm297_vm1, %v67_v14  ;;  %v103_v14 = vld [vmem:[%s15931_s0 + $0x1f0] sm:$0xff] }
  0x96   :  { %646 = vst.msk [vmem:[#allocation2 + $0x160] sm:$0xff] %vm297_vm1, %v64_v15  ;;  %648 = vst.msk [vmem:[#allocation2 + $0x170] sm:$0xff] %vm297_vm1, %v66_v16  ;;  %v100_v15 = vld [vmem:[%s15931_s0 + $0x1d8] sm:$0xff]  ;;  %v102_v16 = vld [vmem:[%s15931_s0 + $0x1e8] sm:$0xff] }
  0x97   :  { %651 = vst.msk [vmem:[#allocation2 + $0x188] sm:$0xff] %vm297_vm1, %v69_v17  ;;  %653 = vst.msk [vmem:[#allocation2 + $0x198] sm:$0xff] %vm297_vm1, %v71_v18  ;;  %v121_v17 = vld [vmem:[%s15931_s0 + $0x280] sm:$0xff]  ;;  %v123_v18 = vld [vmem:[%s15931_s0 + $0x290] sm:$0xff] }
  0x98   :  { %650 = vst.msk [vmem:[#allocation2 + $0x180] sm:$0xff] %vm297_vm1, %v68_v19  ;;  %652 = vst.msk [vmem:[#allocation2 + $0x190] sm:$0xff] %vm297_vm1, %v70_v20  ;;  %v914_v49 = vld [vmem:[#allocation2 + $0x128] sm:$0xff] }
  0x99   :  { %671 = vst.msk [vmem:[#allocation2 + $0x248] sm:$0xff] %vm297_vm1, %v89_v21  ;;  %673 = vst.msk [vmem:[#allocation2 + $0x258] sm:$0xff] %vm297_vm1, %v91_v22  ;;  %v916_v51 = vld [vmem:[#allocation2 + $0x138] sm:$0xff]  ;;  %v915_v53 = vld [vmem:[#allocation2 + $0x130] sm:$0xff] }
  0x9a   :  { %672 = vst.msk [vmem:[#allocation2 + $0x250] sm:$0xff] %vm297_vm1, %v90_v23  ;;  %v11494_v56 = vpack.c.bf16 %v916_v51, %v914_v49  ;;  %v11496_v57 = vpack.c.bf16 %v915_v53, %v913_v52  ;;  %v918_v61 = vld [vmem:[#allocation2 + $0x148] sm:$0xff]  ;;  %v920_v62 = vld [vmem:[#allocation2 + $0x158] sm:$0xff]  ;;  %675 = vst.msk [vmem:[#allocation2 + $0x268] sm:$0xff] %vm297_vm1, %v93_v63 }
  0x9b   :  { %v917_v58 = vld [vmem:[#allocation2 + $0x140] sm:$0xff]  ;;  %v919_v59 = vld [vmem:[#allocation2 + $0x150] sm:$0xff]  ;;  %677 = vst.msk [vmem:[#allocation2 + $0x278] sm:$0xff] %vm297_vm1, %v95_v0  ;;  %674 = vst.msk [vmem:[#allocation2 + $0x260] sm:$0xff] %vm297_vm1, %v92_v1  ;;  %v11565_v20 = vpack.c.bf16 %v920_v62, %v918_v61 }
  0x9c   :  { %16062 = vst [vmem:[#allocation7_spill] sm:$0xff] %v11494_v56  ;;  %16063 = vst [vmem:[#allocation8_spill] sm:$0xff] %v11496_v57  ;;  %v922_v3 = vld [vmem:[#allocation2 + $0x168] sm:$0xff]  ;;  %v924_v4 = vld [vmem:[#allocation2 + $0x178] sm:$0xff]  ;;  %v11521_v9 = vpack.c.bf16 %v917_v58, %v915_v53  ;;  %9724 = vmatprep.mubr.msk.bf16.mxu0 %vm297_vm1, %v11494_v56  ;;  %9790 = vmatprep.mubr.msk.bf16.mxu1 %vm297_vm1, %v11496_v57  ;;  %v11567_v21 = vpack.c.bf16 %v919_v59, %v917_v58 }
  0x9d   :  { %v921_v60 = vld [vmem:[#allocation2 + $0x160] sm:$0xff]  ;;  %v923_v5 = vld [vmem:[#allocation2 + $0x170] sm:$0xff]  ;;  %676 = vst.msk [vmem:[#allocation2 + $0x270] sm:$0xff] %vm297_vm1, %v94_v6  ;;  %679 = vst.msk [vmem:[#allocation2 + $0x288] sm:$0xff] %vm297_vm1, %v97_v7  ;;  %v11578_v24 = vpack.c.bf16 %v924_v4, %v922_v3  ;;  %9725 = vmatmul.mubr.msk.bf16.gmra.mxu0 %vm297_vm1, %v11565_v20 }
  0x9e   :  { %16064 = vst [vmem:[#allocation9_spill] sm:$0xff] %v11521_v9  ;;  %681 = vst.msk [vmem:[#allocation2 + $0x298] sm:$0xff] %vm297_vm1, %v99_v8  ;;  %v11539_v13 = vpack.c.bf16 %v921_v60, %v919_v59  ;;  %v122_v19 = vld [vmem:[%s15931_s0 + $0x288] sm:$0xff]  ;;  %v125_v22 = vld [vmem:[%s15931_s0 + $0x2a0] sm:$0xff]  ;;  %v11580_v25 = vpack.c.bf16 %v923_v5, %v921_v60  ;;  %9791 = vmatmul.mubr.msk.bf16.gmra.mxu1 %vm297_vm1, %v11567_v21 }
  0x9f   :  { %678 = vst.msk [vmem:[#allocation2 + $0x280] sm:$0xff] %vm297_vm1, %v96_v10  ;;  %680 = vst.msk [vmem:[#allocation2 + $0x290] sm:$0xff] %vm297_vm1, %v98_v11  ;;  %v127_v23 = vld [vmem:[%s15931_s0 + $0x2b0] sm:$0xff]  ;;  %v925_v38 = vld [vmem:[#allocation2 + $0x180] sm:$0xff]  ;;  %9728 = vmatprep.mubr.msk.bf16.mxu0 %vm297_vm1, %v11578_v24 }
  0xa0   :  { %16065 = vst [vmem:[#allocation10_spill] sm:$0xff] %v11539_v13  ;;  %683 = vst.msk [vmem:[#allocation2 + $0x2a8] sm:$0xff] %vm297_vm1, %v101_v12  ;;  %v926_v39 = vld [vmem:[#allocation2 + $0x188] sm:$0xff]  ;;  %v11612_v40 = vpack.c.bf16 %v925_v38, %v923_v5  ;;  %9794 = vmatprep.mubr.msk.bf16.mxu1 %vm297_vm1, %v11580_v25  ;;  %v928_v41 = vld [vmem:[#allocation2 + $0x198] sm:$0xff] }
  0xa1   :  { %685 = vst.msk [vmem:[#allocation2 + $0x2b8] sm:$0xff] %vm297_vm1, %v103_v14  ;;  %682 = vst.msk [vmem:[#allocation2 + $0x2a0] sm:$0xff] %vm297_vm1, %v100_v15  ;;  %v927_v43 = vld [vmem:[#allocation2 + $0x190] sm:$0xff]  ;;  %v948_v44 = vld [vmem:[#allocation2 + $0x248] sm:$0xff]  ;;  %v11618_v49 = vpack.c.bf16 %v928_v41, %v926_v39 }
  0xa2   :  { %684 = vst.msk [vmem:[#allocation2 + $0x2b0] sm:$0xff] %vm297_vm1, %v102_v16  ;;  %16066 = vst [vmem:[#allocation11_spill] sm:$0xff] %v11565_v20  ;;  %v950_v45 = vld [vmem:[#allocation2 + $0x258] sm:$0xff]  ;;  %v949_v48 = vld [vmem:[#allocation2 + $0x250] sm:$0xff]  ;;  %v11620_v51 = vpack.c.bf16 %v927_v43, %v925_v38 }
  0xa3   :  { %16067 = vst [vmem:[#allocation12_spill] sm:$0xff] %v11567_v21  ;;  %703 = vst.msk [vmem:[#allocation2 + $0x368] sm:$0xff] %vm297_vm1, %v121_v17  ;;  %v133_v52 = vld [vmem:[%s15931_s0 + $0x2e0] sm:$0xff]  ;;  %v11625_v53 = vpack.c.bf16 %v950_v45, %v948_v44  ;;  %v11627_v54 = vpack.c.bf16 %v949_v48, %v947_v47  ;;  %v952_v60 = vld [vmem:[#allocation2 + $0x268] sm:$0xff] }
  0xa4   :  { %705 = vst.msk [vmem:[#allocation2 + $0x378] sm:$0xff] %vm297_vm1, %v123_v18  ;;  %704 = vst.msk [vmem:[#allocation2 + $0x370] sm:$0xff] %vm297_vm1, %v122_v19  ;;  %v951_v55 = vld [vmem:[#allocation2 + $0x260] sm:$0xff]  ;;  %v953_v58 = vld [vmem:[#allocation2 + $0x270] sm:$0xff] }
  0xa5   :  { %16068 = vst [vmem:[#allocation13_spill] sm:$0xff] %v11578_v24  ;;  %16069 = vst [vmem:[#allocation14_spill] sm:$0xff] %v11580_v25  ;;  %v954_v61 = vld [vmem:[#allocation2 + $0x278] sm:$0xff]  ;;  %v135_v62 = vld [vmem:[%s15931_s0 + $0x2f0] sm:$0xff]  ;;  %9729 = vmatmul.mubr.msk.bf16.gmra.mxu0 %vm297_vm1, %v11618_v49  ;;  %v11655_v7 = vpack.c.bf16 %v951_v55, %v949_v48 }
  0xa6   :  { %707 = vst.msk [vmem:[#allocation2 + $0x388] sm:$0xff] %vm297_vm1, %v125_v22  ;;  %709 = vst.msk [vmem:[#allocation2 + $0x398] sm:$0xff] %vm297_vm1, %v127_v23  ;;  %v955_v59 = vld [vmem:[#allocation2 + $0x280] sm:$0xff]  ;;  %v132_v63 = vld [vmem:[%s15931_s0 + $0x2d8] sm:$0xff]  ;;  %9795 = vmatmul.mubr.msk.bf16.gmra.mxu1 %vm297_vm1, %v11620_v51  ;;  %9732 = vmatprep.mubr.msk.bf16.mxu0 %vm297_vm1, %v11625_v53  ;;  %v11695_v22 = vpack.c.bf16 %v954_v61, %v952_v60  ;;  %v11697_v23 = vpack.c.bf16 %v953_v58, %v951_v55 }
  0xa7   :  { %706 = vst.msk [vmem:[#allocation2 + $0x380] sm:$0xff] %vm297_vm1, %v124_v26  ;;  %708 = vst.msk [vmem:[#allocation2 + $0x390] sm:$0xff] %vm297_vm1, %v126_v27  ;;  %v134_v0 = vld [vmem:[%s15931_s0 + $0x2e8] sm:$0xff]  ;;  %v958_v3 = vld [vmem:[#allocation2 + $0x298] sm:$0xff]  ;;  %9798 = vmatprep.mubr.msk.bf16.mxu1 %vm297_vm1, %v11627_v54  ;;  %v11670_v12 = vpack.c.bf16 %v955_v59, %v953_v58 }
  0xa8   :  { %711 = vst.msk [vmem:[#allocation2 + $0x3a8] sm:$0xff] %vm297_vm1, %v129_v32  ;;  %713 = vst.msk [vmem:[#allocation2 + $0x3b8] sm:$0xff] %vm297_vm1, %v131_v33  ;;  %v956_v1 = vld [vmem:[#allocation2 + $0x288] sm:$0xff]  ;;  %v153_v4 = vld [vmem:[%s15931_s0 + $0x380] sm:$0xff] }
  0xa9   :  { %710 = vst.msk [vmem:[#allocation2 + $0x3a0] sm:$0xff] %vm297_vm1, %v128_v35  ;;  %712 = vst.msk [vmem:[#allocation2 + $0x3b0] sm:$0xff] %vm297_vm1, %v130_v36  ;;  %v155_v5 = vld [vmem:[%s15931_s0 + $0x390] sm:$0xff]  ;;  %v154_v6 = vld [vmem:[%s15931_s0 + $0x388] sm:$0xff]  ;;  %v11708_v32 = vpack.c.bf16 %v958_v3, %v956_v1 }
  0xaa   :  { %16070 = vst [vmem:[#allocation15_spill] sm:$0xff] %v11612_v40  ;;  %16071 = vst [vmem:[#allocation16_spill] sm:$0xff] %v11618_v49  ;;  %v957_v8 = vld [vmem:[#allocation2 + $0x290] sm:$0xff]  ;;  %v157_v10 = vld [vmem:[%s15931_s0 + $0x3a0] sm:$0xff] }
  0xab   :  { %16072 = vst [vmem:[#allocation17_spill] sm:$0xff] %v11620_v51  ;;  %16073 = vst [vmem:[#allocation18_spill] sm:$0xff] %v11625_v53  ;;  %v159_v11 = vld [vmem:[%s15931_s0 + $0x3b0] sm:$0xff]  ;;  %v156_v14 = vld [vmem:[%s15931_s0 + $0x398] sm:$0xff]  ;;  %v11710_v33 = vpack.c.bf16 %v957_v8, %v955_v59 }
  0xac   :  { %16074 = vst [vmem:[#allocation19_spill] sm:$0xff] %v11627_v54  ;;  %715 = vst.msk [vmem:[#allocation2 + $0x3c8] sm:$0xff] %vm297_vm1, %v133_v52  ;;  %v158_v15 = vld [vmem:[%s15931_s0 + $0x3a8] sm:$0xff]  ;;  %v161_v16 = vld [vmem:[%s15931_s0 + $0x3c0] sm:$0xff] }
  0xad   :  { %717 = vst.msk [vmem:[#allocation2 + $0x3d8] sm:$0xff] %vm297_vm1, %v135_v62  ;;  %714 = vst.msk [vmem:[#allocation2 + $0x3c0] sm:$0xff] %vm297_vm1, %v132_v63  ;;  %v163_v17 = vld [vmem:[%s15931_s0 + $0x3d0] sm:$0xff]  ;;  %v160_v18 = vld [vmem:[%s15931_s0 + $0x3b8] sm:$0xff]  ;;  %9733 = vmatmul.mubr.msk.bf16.gmra.mxu0 %vm297_vm1, %v11695_v22 }
  0xae   :  { %716 = vst.msk [vmem:[#allocation2 + $0x3d0] sm:$0xff] %vm297_vm1, %v134_v0  ;;  %16075 = vst [vmem:[#allocation20_spill] sm:$0xff] %v11655_v7  ;;  %v162_v19 = vld [vmem:[%s15931_s0 + $0x3c8] sm:$0xff]  ;;  %v165_v26 = vld [vmem:[%s15931_s0 + $0x3e0] sm:$0xff]  ;;  %9799 = vmatmul.mubr.msk.bf16.gmra.mxu1 %vm297_vm1, %v11697_v23  ;;  %9736 = vmatprep.mubr.msk.bf16.mxu0 %vm297_vm1, %v11708_v32 }
  0xaf   :  { %735 = vst.msk [vmem:[#allocation2 + $0x488] sm:$0xff] %vm297_vm1, %v153_v4  ;;  %737 = vst.msk [vmem:[#allocation2 + $0x498] sm:$0xff] %vm297_vm1, %v155_v5  ;;  %v167_v27 = vld [vmem:[%s15931_s0 + $0x3f0] sm:$0xff]  ;;  %v164_v35 = vld [vmem:[%s15931_s0 + $0x3d8] sm:$0xff]  ;;  %9802 = vmatprep.mubr.msk.bf16.mxu1 %vm297_vm1, %v11710_v33 }
  0xb0   :  { %736 = vst.msk [vmem:[#allocation2 + $0x490] sm:$0xff] %vm297_vm1, %v154_v6  ;;  %16076 = vst [vmem:[#allocation21_spill] sm:$0xff] %v11670_v12  ;;  %v166_v36 = vld [vmem:[%s15931_s0 + $0x3e8] sm:$0xff]  ;;  %v185_v38 = vld [vmem:[%s15931_s0 + $0x480] sm:$0xff] }
  0xb1   :  { %739 = vst.msk [vmem:[#allocation2 + $0x4a8] sm:$0xff] %vm297_vm1, %v157_v10  ;;  %741 = vst.msk [vmem:[#allocation2 + $0x4b8] sm:$0xff] %vm297_vm1, %v159_v11  ;;  %v187_v39 = vld [vmem:[%s15931_s0 + $0x490] sm:$0xff]  ;;  %v186_v41 = vld [vmem:[%s15931_s0 + $0x488] sm:$0xff] }
  0xb2   :  { %738 = vst.msk [vmem:[#allocation2 + $0x4a0] sm:$0xff] %vm297_vm1, %v156_v14  ;;  %740 = vst.msk [vmem:[#allocation2 + $0x4b0] sm:$0xff] %vm297_vm1, %v158_v15  ;;  %v959_v43 = vld [vmem:[#allocation2 + $0x2a0] sm:$0xff]  ;;  %v960_v44 = vld [vmem:[#allocation2 + $0x2a8] sm:$0xff] }
  0xb3   :  { %743 = vst.msk [vmem:[#allocation2 + $0x4c8] sm:$0xff] %vm297_vm1, %v161_v16  ;;  %16077 = vst [vmem:[#allocation22_spill] sm:$0xff] %v11695_v22  ;;  %v981_v45 = vld [vmem:[#allocation2 + $0x360] sm:$0xff]  ;;  %v11738_v47 = vpack.c.bf16 %v959_v43, %v957_v8  ;;  %v962_v48 = vld [vmem:[#allocation2 + $0x2b8] sm:$0xff] }
  0xb4   :  { %16078 = vst [vmem:[#allocation23_spill] sm:$0xff] %v11697_v23  ;;  %745 = vst.msk [vmem:[#allocation2 + $0x4d8] sm:$0xff] %vm297_vm1, %v163_v17  ;;  %v961_v52 = vld [vmem:[#allocation2 + $0x2b0] sm:$0xff]  ;;  %v189_v55 = vld [vmem:[%s15931_s0 + $0x4a0] sm:$0xff]  ;;  %v11748_v61 = vpack.c.bf16 %v962_v48, %v960_v44 }
  0xb5   :  { %742 = vst.msk [vmem:[#allocation2 + $0x4c0] sm:$0xff] %vm297_vm1, %v160_v18  ;;  %744 = vst.msk [vmem:[#allocation2 + $0x4d0] sm:$0xff] %vm297_vm1, %v162_v19  ;;  %v982_v58 = vld [vmem:[#allocation2 + $0x368] sm:$0xff]  ;;  %v984_v59 = vld [vmem:[#allocation2 + $0x378] sm:$0xff]  ;;  %v11750_v62 = vpack.c.bf16 %v961_v52, %v959_v43 }
  0xb6   :  { %16079 = vst [vmem:[#allocation24_spill] sm:$0xff] %v11708_v32  ;;  %16080 = vst [vmem:[#allocation25_spill] sm:$0xff] %v11710_v33  ;;  %v983_v60 = vld [vmem:[#allocation2 + $0x370] sm:$0xff]  ;;  %v11755_v0 = vpack.c.bf16 %v984_v59, %v982_v58  ;;  %v985_v3 = vld [vmem:[#allocation2 + $0x380] sm:$0xff]  ;;  %9737 = vmatmul.mubr.msk.bf16.gmra.mxu0 %vm297_vm1, %v11748_v61 }
  0xb7   :  { %747 = vst.msk [vmem:[#allocation2 + $0x4e8] sm:$0xff] %vm297_vm1, %v165_v26  ;;  %749 = vst.msk [vmem:[#allocation2 + $0x4f8] sm:$0xff] %vm297_vm1, %v167_v27  ;;  %v191_v63 = vld [vmem:[%s15931_s0 + $0x4b0] sm:$0xff]  ;;  %v11757_v1 = vpack.c.bf16 %v983_v60, %v981_v45  ;;  %v989_v5 = vld [vmem:[#allocation2 + $0x3a0] sm:$0xff]  ;;  %9803 = vmatmul.mubr.msk.bf16.gmra.mxu1 %vm297_vm1, %v11750_v62  ;;  %v11789_v27 = vpack.c.bf16 %v985_v3, %v983_v60 }
  0xb8   :  { %746 = vst.msk [vmem:[#allocation2 + $0x4e0] sm:$0xff] %vm297_vm1, %v164_v35  ;;  %748 = vst.msk [vmem:[#allocation2 + $0x4f0] sm:$0xff] %vm297_vm1, %v166_v36  ;;  %v987_v4 = vld [vmem:[#allocation2 + $0x390] sm:$0xff]  ;;  %v188_v6 = vld [vmem:[%s15931_s0 + $0x498] sm:$0xff]  ;;  %9740 = vmatprep.mubr.msk.bf16.mxu0 %vm297_vm1, %v11755_v0 }
  0xb9   :  { %767 = vst.msk [vmem:[#allocation2 + $0x5a8] sm:$0xff] %vm297_vm1, %v185_v38  ;;  %769 = vst.msk [vmem:[#allocation2 + $0x5b8] sm:$0xff] %vm297_vm1, %v187_v39  ;;  %v986_v8 = vld [vmem:[#allocation2 + $0x388] sm:$0xff]  ;;  %v988_v10 = vld [vmem:[#allocation2 + $0x398] sm:$0xff]  ;;  %9806 = vmatprep.mubr.msk.bf16.mxu1 %vm297_vm1, %v11757_v1  ;;  %v11804_v39 = vpack.c.bf16 %v989_v5, %v987_v4 }
  0xba   :  { %768 = vst.msk [vmem:[#allocation2 + $0x5b0] sm:$0xff] %vm297_vm1, %v186_v41  ;;  %16081 = vst [vmem:[#allocation26_spill] sm:$0xff] %v11738_v47  ;;  %v190_v11 = vld [vmem:[%s15931_s0 + $0x4a8] sm:$0xff]  ;;  %v193_v14 = vld [vmem:[%s15931_s0 + $0x4c0] sm:$0xff]  ;;  %v11826_v52 = vpack.c.bf16 %v988_v10, %v986_v8 }
  0xbb   :  { %771 = vst.msk [vmem:[#allocation2 + $0x5c8] sm:$0xff] %vm297_vm1, %v189_v55  ;;  %16082 = vst [vmem:[#allocation27_spill] sm:$0xff] %v11748_v61  ;;  %v195_v15 = vld [vmem:[%s15931_s0 + $0x4d0] sm:$0xff]  ;;  %v990_v16 = vld [vmem:[#allocation2 + $0x3a8] sm:$0xff]  ;;  %v11828_v55 = vpack.c.bf16 %v987_v4, %v985_v3 }
  0xbc   :  { %16083 = vst [vmem:[#allocation28_spill] sm:$0xff] %v11750_v62  ;;  %16084 = vst [vmem:[#allocation29_spill] sm:$0xff] %v11755_v0  ;;  %v992_v17 = vld [vmem:[#allocation2 + $0x3b8] sm:$0xff]  ;;  %v194_v19 = vld [vmem:[%s15931_s0 + $0x4c8] sm:$0xff] }
  0xbd   :  { %16085 = vst [vmem:[#allocation30_spill] sm:$0xff] %v11757_v1  ;;  %773 = vst.msk [vmem:[#allocation2 + $0x5d8] sm:$0xff] %vm297_vm1, %v191_v63  ;;  %v192_v18 = vld [vmem:[%s15931_s0 + $0x4b8] sm:$0xff]  ;;  %v197_v26 = vld [vmem:[%s15931_s0 + $0x4e0] sm:$0xff]  ;;  %v11838_v60 = vpack.c.bf16 %v992_v17, %v990_v16 }
  0xbe   :  { %770 = vst.msk [vmem:[#allocation2 + $0x5c0] sm:$0xff] %vm297_vm1, %v188_v6  ;;  %772 = vst.msk [vmem:[#allocation2 + $0x5d0] sm:$0xff] %vm297_vm1, %v190_v11  ;;  %v991_v35 = vld [vmem:[#allocation2 + $0x3b0] sm:$0xff]  ;;  %v196_v38 = vld [vmem:[%s15931_s0 + $0x4d8] sm:$0xff]  ;;  %9741 = vmatmul.mubr.msk.bf16.gmra.mxu0 %vm297_vm1, %v11826_v52 }
  0xbf   :  { %775 = vst.msk [vmem:[#allocation2 + $0x5e8] sm:$0xff] %vm297_vm1, %v193_v14  ;;  %777 = vst.msk [vmem:[#allocation2 + $0x5f8] sm:$0xff] %vm297_vm1, %v195_v15  ;;  %v199_v36 = vld [vmem:[%s15931_s0 + $0x4f0] sm:$0xff]  ;;  %v198_v41 = vld [vmem:[%s15931_s0 + $0x4e8] sm:$0xff]  ;;  %v11840_v63 = vpack.c.bf16 %v991_v35, %v989_v5  ;;  %9807 = vmatmul.mubr.msk.bf16.gmra.mxu1 %vm297_vm1, %v11828_v55  ;;  %9744 = vmatprep.mubr.msk.bf16.mxu0 %vm297_vm1, %v11838_v60 }
  0xc0   :  { %16086 = vst [vmem:[#allocation31_spill] sm:$0xff] %v11789_v27  ;;  %774 = vst.msk [vmem:[#allocation2 + $0x5e0] sm:$0xff] %vm297_vm1, %v192_v18  ;;  %v217_v43 = vld [vmem:[%s15931_s0 + $0x580] sm:$0xff]  ;;  %v219_v44 = vld [vmem:[%s15931_s0 + $0x590] sm:$0xff] }
  0xc1   :  { %776 = vst.msk [vmem:[#allocation2 + $0x5f0] sm:$0xff] %vm297_vm1, %v194_v19  ;;  %779 = vst.msk [vmem:[#allocation2 + $0x608] sm:$0xff] %vm297_vm1, %v197_v26  ;;  %v218_v45 = vld [vmem:[%s15931_s0 + $0x588] sm:$0xff]  ;;  %v221_v48 = vld [vmem:[%s15931_s0 + $0x5a0] sm:$0xff]  ;;  %9810 = vmatprep.mubr.msk.bf16.mxu1 %vm297_vm1, %v11840_v63 }
  0xc2   :  { %16087 = vst [vmem:[#allocation32_spill] sm:$0xff] %v11804_v39  ;;  %781 = vst.msk [vmem:[#allocation2 + $0x618] sm:$0xff] %vm297_vm1, %v199_v36  ;;  %v223_v58 = vld [vmem:[%s15931_s0 + $0x5b0] sm:$0xff]  ;;  %v220_v59 = vld [vmem:[%s15931_s0 + $0x598] sm:$0xff] }
  0xc3   :  { %778 = vst.msk [vmem:[#allocation2 + $0x600] sm:$0xff] %vm297_vm1, %v196_v38  ;;  %780 = vst.msk [vmem:[#allocation2 + $0x610] sm:$0xff] %vm297_vm1, %v198_v41  ;;  %v222_v3 = vld [vmem:[%s15931_s0 + $0x5a8] sm:$0xff]  ;;  %v225_v4 = vld [vmem:[%s15931_s0 + $0x5c0] sm:$0xff] }
  0xc4   :  { %799 = vst.msk [vmem:[#allocation2 + $0x6c8] sm:$0xff] %vm297_vm1, %v217_v43  ;;  %801 = vst.msk [vmem:[#allocation2 + $0x6d8] sm:$0xff] %vm297_vm1, %v219_v44  ;;  %v227_v6 = vld [vmem:[%s15931_s0 + $0x5d0] sm:$0xff]  ;;  %v224_v5 = vld [vmem:[%s15931_s0 + $0x5b8] sm:$0xff] }
  0xc5   :  { %16088 = vst [vmem:[#allocation33_spill] sm:$0xff] %v11826_v52  ;;  %16089 = vst [vmem:[#allocation34_spill] sm:$0xff] %v11828_v55  ;;  %v226_v8 = vld [vmem:[%s15931_s0 + $0x5c8] sm:$0xff]  ;;  %v993_v10 = vld [vmem:[#allocation2 + $0x3c0] sm:$0xff] }
  0xc6   :  { %800 = vst.msk [vmem:[#allocation2 + $0x6d0] sm:$0xff] %vm297_vm1, %v218_v45  ;;  %803 = vst.msk [vmem:[#allocation2 + $0x6e8] sm:$0xff] %vm297_vm1, %v221_v48  ;;  %v994_v11 = vld [vmem:[#allocation2 + $0x3c8] sm:$0xff]  ;;  %v1015_v14 = vld [vmem:[#allocation2 + $0x480] sm:$0xff]  ;;  %v11868_v15 = vpack.c.bf16 %v993_v10, %v991_v35 }
  0xc7   :  { %16090 = vst [vmem:[#allocation35_spill] sm:$0xff] %v11838_v60  ;;  %16091 = vst [vmem:[#allocation36_spill] sm:$0xff] %v11840_v63  ;;  %v996_v16 = vld [vmem:[#allocation2 + $0x3d8] sm:$0xff]  ;;  %v11874_v17 = vld [vmem:[#allocation2 + $0x3d0] sm:$0xff] }
  0xc8   :  { %805 = vst.msk [vmem:[#allocation2 + $0x6f8] sm:$0xff] %vm297_vm1, %v223_v58  ;;  %802 = vst.msk [vmem:[#allocation2 + $0x6e0] sm:$0xff] %vm297_vm1, %v220_v59  ;;  %v229_v18 = vld [vmem:[%s15931_s0 + $0x5e0] sm:$0xff]  ;;  %v1016_v19 = vld [vmem:[#allocation2 + $0x488] sm:$0xff]  ;;  %v11883_v38 = vpack.c.bf16 %v996_v16, %v994_v11  ;;  %v11886_v41 = vpack.c.bf16 %v11874_v17, %v993_v10 }
  0xc9   :  { %804 = vst.msk [vmem:[#allocation2 + $0x6f0] sm:$0xff] %vm297_vm1, %v222_v3  ;;  %807 = vst.msk [vmem:[#allocation2 + $0x708] sm:$0xff] %vm297_vm1, %v225_v4  ;;  %v1018_v26 = vld [vmem:[#allocation2 + $0x498] sm:$0xff]  ;;  %v1017_v36 = vld [vmem:[#allocation2 + $0x490] sm:$0xff] }
  0xca   :  { %809 = vst.msk [vmem:[#allocation2 + $0x718] sm:$0xff] %vm297_vm1, %v227_v6  ;;  %806 = vst.msk [vmem:[#allocation2 + $0x700] sm:$0xff] %vm297_vm1, %v224_v5  ;;  %v231_v35 = vld [vmem:[%s15931_s0 + $0x5f0] sm:$0xff]  ;;  %v228_v43 = vld [vmem:[%s15931_s0 + $0x5d8] sm:$0xff]  ;;  %v11892_v44 = vpack.c.bf16 %v1018_v26, %v1016_v19  ;;  %v11894_v45 = vpack.c.bf16 %v1017_v36, %v1015_v14  ;;  %9745 = vmatmul.mubr.msk.bf16.gmra.mxu0 %vm297_vm1, %v11883_v38  ;;  %9811 = vmatmul.mubr.msk.bf16.gmra.mxu1 %vm297_vm1, %v11886_v41 }
  0xcb   :  { %808 = vst.msk [vmem:[#allocation2 + $0x710] sm:$0xff] %vm297_vm1, %v226_v8  ;;  %16092 = vst [vmem:[#allocation37_spill] sm:$0xff] %v11868_v15  ;;  %v1019_v48 = vld [vmem:[#allocation2 + $0x4a0] sm:$0xff]  ;;  %v230_v3 = vld [vmem:[%s15931_s0 + $0x5e8] sm:$0xff] }
  0xcc   :  { %811 = vst.msk [vmem:[#allocation2 + $0x728] sm:$0xff] %vm297_vm1, %v229_v18  ;;  %16093 = vst [vmem:[#allocation38_spill] sm:$0xff] %v11883_v38  ;;  %v1020_v4 = vld [vmem:[#allocation2 + $0x4a8] sm:$0xff]  ;;  %v1022_v6 = vld [vmem:[#allocation2 + $0x4b8] sm:$0xff]  ;;  %9748 = vmatprep.mubr.msk.bf16.mxu0 %vm297_vm1, %v11892_v44  ;;  %9814 = vmatprep.mubr.msk.bf16.mxu1 %vm297_vm1, %v11894_v45 }
  0xcd   :  { %16094 = vst [vmem:[#allocation39_spill] sm:$0xff] %v11886_v41  ;;  %813 = vst.msk [vmem:[#allocation2 + $0x738] sm:$0xff] %vm297_vm1, %v231_v35  ;;  %v1021_v5 = vld [vmem:[#allocation2 + $0x4b0] sm:$0xff]  ;;  %v232_v10 = vld [vmem:[%s15931_s0 + $0x5f8] sm:$0xff] }
  0xce   :  { %16095 = vst [vmem:[#allocation40_spill] sm:$0xff] %v11892_v44  ;;  %16096 = vst [vmem:[#allocation41_spill] sm:$0xff] %v11894_v45  ;;  %v249_v11 = vld [vmem:[%s15931_s0 + $0x680] sm:$0xff]  ;;  %v251_v14 = vld [vmem:[%s15931_s0 + $0x690] sm:$0xff]  ;;  %v11969_v2 = vpack.c.bf16 %v1021_v5, %v1019_v48 }
  0xcf   :  { %810 = vst.msk [vmem:[#allocation2 + $0x720] sm:$0xff] %vm297_vm1, %v228_v43  ;;  %812 = vst.msk [vmem:[#allocation2 + $0x730] sm:$0xff] %vm297_vm1, %v230_v3  ;;  %v1024_v16 = vld [vmem:[#allocation2 + $0x4c8] sm:$0xff]  ;;  %v1026_v18 = vld [vmem:[#allocation2 + $0x4d8] sm:$0xff]  ;;  %v11931_v43 = vpack.c.bf16 %v1019_v48, %v1017_v36 }
  0xd0   :  { %v11897_v58 = vld [vmem:[#allocation2 + $0x6f0] sm:$0xff]  ;;  %v1023_v19 = vld [vmem:[#allocation2 + $0x4c0] sm:$0xff]  ;;  %814 = vst.msk [vmem:[#allocation2 + $0x740] sm:$0xff] %vm297_vm1, %v232_v10  ;;  %831 = vst.msk [vmem:[#allocation2 + $0x7e8] sm:$0xff] %vm297_vm1, %v249_v11 }
  0xd1   :  { %v11899_v59 = vld [vmem:[#allocation2 + $0x700] sm:$0xff]  ;;  %833 = vst.msk [vmem:[#allocation2 + $0x7f8] sm:$0xff] %vm297_vm1, %v251_v14  ;;  %v250_v26 = vld [vmem:[%s15931_s0 + $0x688] sm:$0xff]  ;;  %16098 = vst [vmem:[#allocation43_spill] sm:$0xff] %v11931_v43 }
  0xd2   :  { %v11906_v8 = vpack.c.bf16 %v11899_v59, %v11897_v58  ;;  %v253_v35 = vld [vmem:[%s15931_s0 + $0x6a0] sm:$0xff]  ;;  %v11937_v3 = vld [vmem:[#allocation2 + $0x4d0] sm:$0xff]  ;;  %832 = vst.msk [vmem:[#allocation2 + $0x7f0] sm:$0xff] %vm297_vm1, %v250_v26  ;;  %v252_v36 = vld [vmem:[%s15931_s0 + $0x698] sm:$0xff]  ;;  %9815 = vmatmul.mubr.msk.bf16.gmra.mxu1 %vm297_vm1, %v11969_v2 }
  0xd3   :  { %v255_v10 = vld [vmem:[%s15931_s0 + $0x6b0] sm:$0xff]  ;;  %835 = vst.msk [vmem:[#allocation2 + $0x808] sm:$0xff] %vm297_vm1, %v253_v35  ;;  %v254_v11 = vld [vmem:[%s15931_s0 + $0x6a8] sm:$0xff]  ;;  %834 = vst.msk [vmem:[#allocation2 + $0x800] sm:$0xff] %vm297_vm1, %v252_v36  ;;  %v11967_v36 = vpack.c.bf16 %v1022_v6, %v1020_v4  ;;  %v11982_v50 = vpack.c.bf16 %v11937_v3, %v1023_v19 }
  0xd4   :  { %16097 = vst [vmem:[#allocation42_spill] sm:$0xff] %v11906_v8  ;;  %837 = vst.msk [vmem:[#allocation2 + $0x818] sm:$0xff] %vm297_vm1, %v255_v10  ;;  %v257_v14 = vld [vmem:[%s15931_s0 + $0x6c0] sm:$0xff]  ;;  %v259_v26 = vld [vmem:[%s15931_s0 + $0x6d0] sm:$0xff] }
  0xd5   :  { %836 = vst.msk [vmem:[#allocation2 + $0x810] sm:$0xff] %vm297_vm1, %v254_v11  ;;  %839 = vst.msk [vmem:[#allocation2 + $0x828] sm:$0xff] %vm297_vm1, %v257_v14  ;;  %v256_v35 = vld [vmem:[%s15931_s0 + $0x6b8] sm:$0xff]  ;;  %v258_v10 = vld [vmem:[%s15931_s0 + $0x6c8] sm:$0xff]  ;;  %9749 = vmatmul.mubr.msk.bf16.gmra.mxu0 %vm297_vm1, %v11967_v36  ;;  %9818 = vmatprep.mubr.msk.bf16.mxu1 %vm297_vm1, %v11982_v50 }
  0xd6   :  { %841 = vst.msk [vmem:[#allocation2 + $0x838] sm:$0xff] %vm297_vm1, %v259_v26  ;;  %16099 = vst [vmem:[#allocation44_spill] sm:$0xff] %v11967_v36  ;;  %v261_v11 = vld [vmem:[%s15931_s0 + $0x6e0] sm:$0xff]  ;;  %v263_v14 = vld [vmem:[%s15931_s0 + $0x6f0] sm:$0xff]  ;;  %v11979_v26 = vpack.c.bf16 %v1026_v18, %v1024_v16 }
  0xd7   :  { %16100 = vst [vmem:[#allocation45_spill] sm:$0xff] %v11969_v2  ;;  %838 = vst.msk [vmem:[#allocation2 + $0x820] sm:$0xff] %vm297_vm1, %v256_v35  ;;  %v260_v48 = vld [vmem:[%s15931_s0 + $0x6d8] sm:$0xff]  ;;  %v262_v4 = vld [vmem:[%s15931_s0 + $0x6e8] sm:$0xff]  ;;  %v12006_v35 = vpack.c.bf16 %v1023_v19, %v1021_v5 }
  0xd8   :  { %840 = vst.msk [vmem:[#allocation2 + $0x830] sm:$0xff] %vm297_vm1, %v258_v10  ;;  %16101 = vst [vmem:[#allocation46_spill] sm:$0xff] %v11979_v26  ;;  %v264_v6 = vld [vmem:[%s15931_s0 + $0x6f8] sm:$0xff]  ;;  %v8781_v16 = vld [vmem:[%s15930_s1 + $0x6] sm:$0x3]  ;;  %9752 = vmatprep.mubr.msk.bf16.mxu0 %vm297_vm1, %v11979_v26 }
  0xd9   :  { %16102 = vst [vmem:[#allocation47_spill] sm:$0xff] %v11982_v50  ;;  %843 = vst.msk [vmem:[#allocation2 + $0x848] sm:$0xff] %vm297_vm1, %v261_v11  ;;  %v12004_v18 = vld [vmem:[%s15930_s1 + $0x8] sm:$0x3]  ;;  %10653 = vmatprep.subr.msk.bf16.mxu1 %vm1331_vm0, %v8781_v16  ;;  %v2629_v10 = vsel %vm1331_vm0, %v8781_v16, 0  ;;  %v1030_v19 = vld [vmem:[#allocation2 + $0x4f8] sm:$0xff] }
  0xda   :  { %845 = vst.msk [vmem:[#allocation2 + $0x858] sm:$0xff] %vm297_vm1, %v263_v14  ;;  %842 = vst.msk [vmem:[#allocation2 + $0x840] sm:$0xff] %vm297_vm1, %v260_v48  ;;  %10654 = vmatprep.subr.msk.bf16.mxu0 %vm1331_vm0, %v12004_v18  ;;  %v1028_v11 = vld [vmem:[#allocation2 + $0x4e8] sm:$0xff]  ;;  %v1049_v14 = vld [vmem:[#allocation2 + $0x5a0] sm:$0xff]  ;;  %9913 = vmatpush3.bf16.msra.mxu1 %v2629_v10 }
  0xdb   :  { %844 = vst.msk [vmem:[#allocation2 + $0x850] sm:$0xff] %vm297_vm1, %v262_v4  ;;  %846 = vst.msk [vmem:[#allocation2 + $0x860] sm:$0xff] %vm297_vm1, %v264_v6  ;;  %v42_v5 = vld [vmem:[%s15931_s0 + $0x8] sm:$0xff]  ;;  %v1027_v48 = vld [vmem:[#allocation2 + $0x4e0] sm:$0xff]  ;;  %v12035_v50 = vpack.c.bf16 %v1030_v19, %v1028_v11 }
  0xdc   :  { %16103 = vst [vmem:[#allocation48_spill] sm:$0xff] %v12006_v35  ;;  %v12023_v4 = vld [vmem:[#allocation2 + $0x4f0] sm:$0xff]  ;;  %624 = vst.msk [vmem:[#allocation2 + $0xa0] sm:$0xff] %vm297_vm1, %v42_v5  ;;  %v1050_v6 = vld [vmem:[#allocation2 + $0x5a8] sm:$0xff]  ;;  %v12055_v11 = vpack.c.bf16 %v1027_v48, %v11937_v3 }
  0xdd   :  { %v1052_v16 = vld [vmem:[#allocation2 + $0x5b8] sm:$0xff]  ;;  %v12026_v37 = vld [vmem:[#allocation2 + $0x5b0] sm:$0xff]  ;;  %16104 = vst [vmem:[#allocation49_spill] sm:$0xff] %v12035_v50  ;;  %v12038_v2 = vpack.c.bf16 %v12023_v4, %v1027_v48  ;;  %v46_v10 = vld [vmem:[%s15931_s0 + $0x28] sm:$0xff]  ;;  %9753 = vmatmul.mubr.msk.bf16.gmra.mxu0 %vm297_vm1, %v12035_v50 }
  0xde   :  { %v12028_v34 = vld [vmem:[#allocation2 + $0x810] sm:$0xff]  ;;  %v12030_v36 = vld [vmem:[#allocation2 + $0x820] sm:$0xff]  ;;  %v44_v26 = vld [vmem:[%s15931_s0 + $0x18] sm:$0xff]  ;;  %v12048_v44 = vpack.c.bf16 %v1052_v16, %v1050_v6  ;;  %v12051_v45 = vpack.c.bf16 %v12026_v37, %v1049_v14  ;;  %628 = vst.msk [vmem:[#allocation2 + $0xc0] sm:$0xff] %vm297_vm1, %v46_v10 }
  0xdf   :  { %16105 = vst [vmem:[#allocation50_spill] sm:$0xff] %v12038_v2  ;;  %v12042_v5 = vpack.c.bf16 %v12030_v36, %v12028_v34  ;;  %626 = vst.msk [vmem:[#allocation2 + $0xb0] sm:$0xff] %vm297_vm1, %v44_v26  ;;  %v48_v19 = vld [vmem:[%s15931_s0 + $0x38] sm:$0xff]  ;;  %v50_v38 = vld [vmem:[%s15931_s0 + $0x48] sm:$0xff]  ;;  %9819 = vmatmul.mubr.msk.bf16.gmra.mxu1 %vm297_vm1, %v12038_v2 }
  0xe0   :  { %16107 = vst [vmem:[#allocation52_spill] sm:$0xff] %v12048_v44  ;;  %16108 = vst [vmem:[#allocation53_spill] sm:$0xff] %v12051_v45  ;;  %v1054_v41 = vld [vmem:[#allocation2 + $0x5c8] sm:$0xff]  ;;  %v1056_v26 = vld [vmem:[#allocation2 + $0x5d8] sm:$0xff]  ;;  %9756 = vmatprep.mubr.msk.bf16.mxu0 %vm297_vm1, %v12048_v44  ;;  %9822 = vmatprep.mubr.msk.bf16.mxu1 %vm297_vm1, %v12051_v45 }
  0xe1   :  { %16106 = vst [vmem:[#allocation51_spill] sm:$0xff] %v12042_v5  ;;  %16109 = vst [vmem:[#allocation54_spill] sm:$0xff] %v12055_v11  ;;  %v1053_v6 = vld [vmem:[#allocation2 + $0x5c0] sm:$0xff]  ;;  %v1055_v16 = vld [vmem:[#allocation2 + $0x5d0] sm:$0xff] }
  0xe2   :  { %630 = vst.msk [vmem:[#allocation2 + $0xd0] sm:$0xff] %vm297_vm1, %v48_v19  ;;  %632 = vst.msk [vmem:[#allocation2 + $0xe0] sm:$0xff] %vm297_vm1, %v50_v38  ;;  %v52_v3 = vld [vmem:[%s15931_s0 + $0x58] sm:$0xff]  ;;  %v54_v14 = vld [vmem:[%s15931_s0 + $0x68] sm:$0xff]  ;;  %v12123_v50 = vpack.c.bf16 %v1055_v16, %v1053_v6 }
  0xe3   :  { %v56_v48 = vld [vmem:[%s15931_s0 + $0x78] sm:$0xff]  ;;  %v1058_v10 = vld [vmem:[#allocation2 + $0x5e8] sm:$0xff]  ;;  %v1057_v19 = vld [vmem:[#allocation2 + $0x5e0] sm:$0xff]  ;;  %634 = vst.msk [vmem:[#allocation2 + $0xf0] sm:$0xff] %vm297_vm1, %v52_v3 }
  0xe4   :  { %v1060_v38 = vld [vmem:[#allocation2 + $0x5f8] sm:$0xff]  ;;  %v12078_v60 = vld [vmem:[#allocation2 + $0x5f0] sm:$0xff]  ;;  %636 = vst.msk [vmem:[#allocation2 + $0x100] sm:$0xff] %vm297_vm1, %v54_v14  ;;  %638 = vst.msk [vmem:[#allocation2 + $0x110] sm:$0xff] %vm297_vm1, %v56_v48 }
  0xe5   :  { %v74_v63 = vld [vmem:[%s15931_s0 + $0x108] sm:$0xff]  ;;  %v76_v3 = vld [vmem:[%s15931_s0 + $0x118] sm:$0xff]  ;;  %16111 = vst [vmem:[#allocation56_spill] sm:$0xff] %v12123_v50  ;;  %v12133_v2 = vpack.c.bf16 %v12078_v60, %v1057_v19  ;;  %v1121_v24 = vld [vmem:[#allocation2 + $0x800] sm:$0xff] }
  0xe6   :  { %656 = vst.msk [vmem:[#allocation2 + $0x1c0] sm:$0xff] %vm297_vm1, %v74_v63  ;;  %v78_v14 = vld [vmem:[%s15931_s0 + $0x128] sm:$0xff]  ;;  %v72_v48 = vld [vmem:[%s15931_s0 + $0xf8] sm:$0xff]  ;;  %658 = vst.msk [vmem:[#allocation2 + $0x1d0] sm:$0xff] %vm297_vm1, %v76_v3 }
  0xe7   :  { %660 = vst.msk [vmem:[#allocation2 + $0x1e0] sm:$0xff] %vm297_vm1, %v78_v14  ;;  %654 = vst.msk [vmem:[#allocation2 + $0x1a0] sm:$0xff] %vm297_vm1, %v72_v48  ;;  %v80_v63 = vld [vmem:[%s15931_s0 + $0x138] sm:$0xff]  ;;  %v82_v44 = vld [vmem:[%s15931_s0 + $0x148] sm:$0xff]  ;;  %v12121_v48 = vpack.c.bf16 %v1056_v26, %v1054_v41  ;;  %9823 = vmatmul.mubr.msk.bf16.gmra.mxu1 %vm297_vm1, %v12123_v50 }
  0xe8   :  { %v84_v45 = vld [vmem:[%s15931_s0 + $0x158] sm:$0xff]  ;;  %662 = vst.msk [vmem:[#allocation2 + $0x1f0] sm:$0xff] %vm297_vm1, %v80_v63  ;;  %664 = vst.msk [vmem:[#allocation2 + $0x200] sm:$0xff] %vm297_vm1, %v82_v44  ;;  %v86_v3 = vld [vmem:[%s15931_s0 + $0x168] sm:$0xff]  ;;  %v12130_v63 = vpack.c.bf16 %v1060_v38, %v1058_v10  ;;  %v12146_v10 = vpack.c.bf16 %v1053_v6, %v12026_v37  ;;  %9826 = vmatprep.mubr.msk.bf16.mxu1 %vm297_vm1, %v12133_v2 }
  0xe9   :  { %v88_v14 = vld [vmem:[%s15931_s0 + $0x178] sm:$0xff]  ;;  %666 = vst.msk [vmem:[#allocation2 + $0x210] sm:$0xff] %vm297_vm1, %v84_v45  ;;  %16110 = vst [vmem:[#allocation55_spill] sm:$0xff] %v12121_v48  ;;  %v106_v44 = vld [vmem:[%s15931_s0 + $0x208] sm:$0xff]  ;;  %9757 = vmatmul.mubr.msk.bf16.gmra.mxu0 %vm297_vm1, %v12121_v48 }
  0xea   :  { %668 = vst.msk [vmem:[#allocation2 + $0x220] sm:$0xff] %vm297_vm1, %v86_v3  ;;  %670 = vst.msk [vmem:[#allocation2 + $0x230] sm:$0xff] %vm297_vm1, %v88_v14  ;;  %v108_v41 = vld [vmem:[%s15931_s0 + $0x218] sm:$0xff]  ;;  %v110_v45 = vld [vmem:[%s15931_s0 + $0x228] sm:$0xff]  ;;  %9760 = vmatprep.mubr.msk.bf16.mxu0 %vm297_vm1, %v12130_v63 }
  0xeb   :  { %16112 = vst [vmem:[#allocation57_spill] sm:$0xff] %v12130_v63  ;;  %16113 = vst [vmem:[#allocation58_spill] sm:$0xff] %v12133_v2  ;;  %v104_v26 = vld [vmem:[%s15931_s0 + $0x1f8] sm:$0xff]  ;;  %v12148_v38 = vld [vmem:[#allocation2 + $0xc0] sm:$0xff] }
  0xec   :  { %688 = vst.msk [vmem:[#allocation2 + $0x2e0] sm:$0xff] %vm297_vm1, %v106_v44  ;;  %16114 = vst [vmem:[#allocation59_spill] sm:$0xff] %v12146_v10  ;;  %v12150_v3 = vld [vmem:[#allocation2 + $0xd0] sm:$0xff]  ;;  %v112_v14 = vld [vmem:[%s15931_s0 + $0x238] sm:$0xff]  ;;  %v12158_v44 = vpack.c.bf16 %v1057_v19, %v1055_v16 }
  0xed   :  { %690 = vst.msk [vmem:[#allocation2 + $0x2f0] sm:$0xff] %vm297_vm1, %v108_v41  ;;  %692 = vst.msk [vmem:[#allocation2 + $0x300] sm:$0xff] %vm297_vm1, %v110_v45  ;;  %v1062_v52 = vld [vmem:[#allocation2 + $0x608] sm:$0xff]  ;;  %v1064_v55 = vld [vmem:[#allocation2 + $0x618] sm:$0xff] }
  0xee   :  { %686 = vst.msk [vmem:[#allocation2 + $0x2c0] sm:$0xff] %vm297_vm1, %v104_v26  ;;  %16115 = vst [vmem:[#allocation60_spill] sm:$0xff] %v12158_v44  ;;  %v1061_v6 = vld [vmem:[#allocation2 + $0x600] sm:$0xff]  ;;  %v114_v16 = vld [vmem:[%s15931_s0 + $0x248] sm:$0xff]  ;;  %v12190_v2 = vpack.c.bf16 %v1064_v55, %v1062_v52 }
  0xef   :  { %694 = vst.msk [vmem:[#allocation2 + $0x310] sm:$0xff] %vm297_vm1, %v112_v14  ;;  %v1083_v41 = vld [vmem:[#allocation2 + $0x6c0] sm:$0xff]  ;;  %v116_v19 = vld [vmem:[%s15931_s0 + $0x258] sm:$0xff]  ;;  %v12177_v45 = vld [vmem:[#allocation2 + $0x610] sm:$0xff]  ;;  %v12209_v52 = vpack.c.bf16 %v1061_v6, %v12078_v60 }
  0xf0   :  { %v1084_v26 = vld [vmem:[#allocation2 + $0x6c8] sm:$0xff]  ;;  %v1086_v14 = vld [vmem:[#allocation2 + $0x6d8] sm:$0xff]  ;;  %696 = vst.msk [vmem:[#allocation2 + $0x320] sm:$0xff] %vm297_vm1, %v114_v16  ;;  %698 = vst.msk [vmem:[#allocation2 + $0x330] sm:$0xff] %vm297_vm1, %v116_v19  ;;  %v12193_v1 = vpack.c.bf16 %v12177_v45, %v1061_v6 }
  0xf1   :  { %v1085_v37 = vld [vmem:[#allocation2 + $0x6d0] sm:$0xff]  ;;  %v12181_v48 = vld [vmem:[#allocation2 + $0x1e0] sm:$0xff]  ;;  %v118_v63 = vld [vmem:[%s15931_s0 + $0x268] sm:$0xff]  ;;  %16116 = vst [vmem:[#allocation61_spill] sm:$0xff] %v12190_v2  ;;  %v12202_v0 = vpack.c.bf16 %v1086_v14, %v1084_v26  ;;  %9761 = vmatmul.mubr.msk.bf16.gmra.mxu0 %vm297_vm1, %v12190_v2 }
  0xf2   :  { %v12183_v50 = vld [vmem:[#allocation2 + $0x1f0] sm:$0xff]  ;;  %16117 = vst [vmem:[#allocation62_spill] sm:$0xff] %v12193_v1  ;;  %v120_v16 = vld [vmem:[%s15931_s0 + $0x278] sm:$0xff]  ;;  %700 = vst.msk [vmem:[#allocation2 + $0x340] sm:$0xff] %vm297_vm1, %v118_v63  ;;  %v12204_v61 = vpack.c.bf16 %v1085_v37, %v1083_v41  ;;  %9827 = vmatmul.mubr.msk.bf16.gmra.mxu1 %vm297_vm1, %v12193_v1 }
  0xf3   :  { %v138_v19 = vld [vmem:[%s15931_s0 + $0x308] sm:$0xff]  ;;  %16118 = vst [vmem:[#allocation63_spill] sm:$0xff] %v12202_v0  ;;  %702 = vst.msk [vmem:[#allocation2 + $0x350] sm:$0xff] %vm297_vm1, %v120_v16  ;;  %v140_v63 = vld [vmem:[%s15931_s0 + $0x318] sm:$0xff]  ;;  %9764 = vmatprep.mubr.msk.bf16.mxu0 %vm297_vm1, %v12202_v0 }
  0xf4   :  { %16119 = vst [vmem:[#allocation64_spill] sm:$0xff] %v12204_v61  ;;  %720 = vst.msk [vmem:[#allocation2 + $0x400] sm:$0xff] %vm297_vm1, %v138_v19  ;;  %v12211_v55 = vld [vmem:[#allocation2 + $0x300] sm:$0xff]  ;;  %v1088_v32 = vld [vmem:[#allocation2 + $0x6e8] sm:$0xff]  ;;  %9830 = vmatprep.mubr.msk.bf16.mxu1 %vm297_vm1, %v12204_v61 }
  0xf5   :  { %16120 = vst [vmem:[#allocation65_spill] sm:$0xff] %v12209_v52  ;;  %v1090_v26 = vld [vmem:[#allocation2 + $0x6f8] sm:$0xff]  ;;  %v1087_v14 = vld [vmem:[#allocation2 + $0x6e0] sm:$0xff]  ;;  %v142_v16 = vld [vmem:[%s15931_s0 + $0x328] sm:$0xff] }
  0xf6   :  { %v12213_v62 = vld [vmem:[#allocation2 + $0x310] sm:$0xff]  ;;  %722 = vst.msk [vmem:[#allocation2 + $0x410] sm:$0xff] %vm297_vm1, %v140_v63  ;;  %v136_v60 = vld [vmem:[%s15931_s0 + $0x2f8] sm:$0xff]  ;;  %v1092_v19 = vld [vmem:[#allocation2 + $0x708] sm:$0xff] }
  0xf7   :  { %v144_v6 = vld [vmem:[%s15931_s0 + $0x338] sm:$0xff]  ;;  %724 = vst.msk [vmem:[#allocation2 + $0x420] sm:$0xff] %vm297_vm1, %v142_v16  ;;  %718 = vst.msk [vmem:[#allocation2 + $0x3e0] sm:$0xff] %vm297_vm1, %v136_v60  ;;  %v146_v63 = vld [vmem:[%s15931_s0 + $0x348] sm:$0xff] }
  0xf8   :  { %v1094_v41 = vld [vmem:[#allocation2 + $0x718] sm:$0xff]  ;;  %726 = vst.msk [vmem:[#allocation2 + $0x430] sm:$0xff] %vm297_vm1, %v144_v6  ;;  %728 = vst.msk [vmem:[#allocation2 + $0x440] sm:$0xff] %vm297_vm1, %v146_v63  ;;  %v150_v60 = vld [vmem:[%s15931_s0 + $0x368] sm:$0xff] }
  0xf9   :  { %v148_v16 = vld [vmem:[%s15931_s0 + $0x358] sm:$0xff]  ;;  %v1093_v2 = vld [vmem:[#allocation2 + $0x710] sm:$0xff]  ;;  %732 = vst.msk [vmem:[#allocation2 + $0x460] sm:$0xff] %vm297_vm1, %v150_v60  ;;  %v170_v63 = vld [vmem:[%s15931_s0 + $0x408] sm:$0xff]  ;;  %v12271_v60 = vpack.c.bf16 %v1090_v26, %v1088_v32  ;;  %v12281_v1 = vpack.c.bf16 %v1094_v41, %v1092_v19  ;;  %v12296_v26 = vpack.c.bf16 %v1087_v14, %v1085_v37 }
  0xfa   :  { %v152_v6 = vld [vmem:[%s15931_s0 + $0x378] sm:$0xff]  ;;  %730 = vst.msk [vmem:[#allocation2 + $0x450] sm:$0xff] %vm297_vm1, %v148_v16  ;;  %752 = vst.msk [vmem:[#allocation2 + $0x520] sm:$0xff] %vm297_vm1, %v170_v63  ;;  %v174_v61 = vld [vmem:[%s15931_s0 + $0x428] sm:$0xff] }
  0xfb   :  { %734 = vst.msk [vmem:[#allocation2 + $0x470] sm:$0xff] %vm297_vm1, %v152_v6  ;;  %v172_v0 = vld [vmem:[%s15931_s0 + $0x418] sm:$0xff]  ;;  %16121 = vst [vmem:[#allocation66_spill] sm:$0xff] %v12271_v60  ;;  %v12274_v6 = vpack.c.bf16 %v11897_v58, %v1087_v14  ;;  %v178_v32 = vld [vmem:[%s15931_s0 + $0x448] sm:$0xff]  ;;  %9765 = vmatmul.mubr.msk.bf16.gmra.mxu0 %vm297_vm1, %v12271_v60 }
  0xfc   :  { %754 = vst.msk [vmem:[#allocation2 + $0x530] sm:$0xff] %vm297_vm1, %v172_v0  ;;  %v168_v16 = vld [vmem:[%s15931_s0 + $0x3f8] sm:$0xff]  ;;  %756 = vst.msk [vmem:[#allocation2 + $0x540] sm:$0xff] %vm297_vm1, %v174_v61  ;;  %v12284_v0 = vpack.c.bf16 %v1093_v2, %v11899_v59  ;;  %v182_v58 = vld [vmem:[%s15931_s0 + $0x468] sm:$0xff]  ;;  %9768 = vmatprep.mubr.msk.bf16.mxu0 %vm297_vm1, %v12281_v1 }
  0xfd   :  { %16122 = vst [vmem:[#allocation67_spill] sm:$0xff] %v12274_v6  ;;  %750 = vst.msk [vmem:[#allocation2 + $0x500] sm:$0xff] %vm297_vm1, %v168_v16  ;;  %v176_v63 = vld [vmem:[%s15931_s0 + $0x438] sm:$0xff]  ;;  %v202_v41 = vld [vmem:[%s15931_s0 + $0x508] sm:$0xff]  ;;  %9831 = vmatmul.mubr.msk.bf16.gmra.mxu1 %vm297_vm1, %v12274_v6 }
  0xfe   :  { %16123 = vst [vmem:[#allocation68_spill] sm:$0xff] %v12281_v1  ;;  %16124 = vst [vmem:[#allocation69_spill] sm:$0xff] %v12284_v0  ;;  %v180_v61 = vld [vmem:[%s15931_s0 + $0x458] sm:$0xff]  ;;  %v12307_v19 = vld [vmem:[#allocation2 + $0x420] sm:$0xff]  ;;  %9834 = vmatprep.mubr.msk.bf16.mxu1 %vm297_vm1, %v12284_v0 }
  0xff   :  { %758 = vst.msk [vmem:[#allocation2 + $0x550] sm:$0xff] %vm297_vm1, %v176_v63  ;;  %16125 = vst [vmem:[#allocation70_spill] sm:$0xff] %v12296_v26  ;;  %v184_v59 = vld [vmem:[%s15931_s0 + $0x478] sm:$0xff]  ;;  %v12309_v16 = vld [vmem:[#allocation2 + $0x430] sm:$0xff] }
 0x100   :  { %760 = vst.msk [vmem:[#allocation2 + $0x560] sm:$0xff] %vm297_vm1, %v178_v32  ;;  %762 = vst.msk [vmem:[#allocation2 + $0x570] sm:$0xff] %vm297_vm1, %v180_v61  ;;  %v1096_v37 = vld [vmem:[#allocation2 + $0x728] sm:$0xff]  ;;  %v1098_v14 = vld [vmem:[#allocation2 + $0x738] sm:$0xff] }
 0x101   :  { %764 = vst.msk [vmem:[#allocation2 + $0x580] sm:$0xff] %vm297_vm1, %v182_v58  ;;  %766 = vst.msk [vmem:[#allocation2 + $0x590] sm:$0xff] %vm297_vm1, %v184_v59  ;;  %v1117_v63 = vld [vmem:[#allocation2 + $0x7e0] sm:$0xff]  ;;  %v204_v61 = vld [vmem:[%s15931_s0 + $0x518] sm:$0xff]  ;;  %v12338_v0 = vpack.c.bf16 %v1098_v14, %v1096_v37  ;;  %v12419_v37 = vpack.c.bf16 %v12028_v34, %v1121_v24 }
 0x102   :  { %784 = vst.msk [vmem:[#allocation2 + $0x640] sm:$0xff] %vm297_vm1, %v202_v41  ;;  %v1095_v58 = vld [vmem:[#allocation2 + $0x720] sm:$0xff]  ;;  %v12326_v59 = vld [vmem:[#allocation2 + $0x730] sm:$0xff]  ;;  %v1118_v41 = vld [vmem:[#allocation2 + $0x7e8] sm:$0xff] }
 0x103   :  { %786 = vst.msk [vmem:[#allocation2 + $0x650] sm:$0xff] %vm297_vm1, %v204_v61  ;;  %v1120_v60 = vld [vmem:[#allocation2 + $0x7f8] sm:$0xff]  ;;  %v1119_v6 = vld [vmem:[#allocation2 + $0x7f0] sm:$0xff]  ;;  %v206_v32 = vld [vmem:[%s15931_s0 + $0x528] sm:$0xff]  ;;  %v12341_v22 = vpack.c.bf16 %v12326_v59, %v1095_v58  ;;  %9769 = vmatmul.mubr.msk.bf16.gmra.mxu0 %vm297_vm1, %v12338_v0 }
 0x104   :  { %v12332_v33 = vld [vmem:[#allocation2 + $0x540] sm:$0xff]  ;;  %788 = vst.msk [vmem:[#allocation2 + $0x660] sm:$0xff] %vm297_vm1, %v206_v32  ;;  %v200_v1 = vld [vmem:[%s15931_s0 + $0x4f8] sm:$0xff]  ;;  %16127 = vst [vmem:[#allocation72_spill] sm:$0xff] %v12338_v0  ;;  %v12352_v53 = vpack.c.bf16 %v1120_v60, %v1118_v41  ;;  %v12354_v54 = vpack.c.bf16 %v1119_v6, %v1117_v63 }
 0x105   :  { %16126 = vst [vmem:[#allocation71_spill] sm:$0xff] %v12332_v33  ;;  %16128 = vst [vmem:[#allocation73_spill] sm:$0xff] %v12341_v22  ;;  %v208_v23 = vld [vmem:[%s15931_s0 + $0x538] sm:$0xff]  ;;  %v210_v32 = vld [vmem:[%s15931_s0 + $0x548] sm:$0xff]  ;;  %9835 = vmatmul.mubr.msk.bf16.gmra.mxu1 %vm297_vm1, %v12341_v22 }
 0x106   :  { %v12343_v61 = vld [vmem:[#allocation2 + $0x550] sm:$0xff]  ;;  %782 = vst.msk [vmem:[#allocation2 + $0x620] sm:$0xff] %vm297_vm1, %v200_v1  ;;  %16130 = vst [vmem:[#allocation75_spill] sm:$0xff] %v12352_v53  ;;  %v12360_v1 = vpack.c.bf16 %v1095_v58, %v1093_v2  ;;  %v212_v14 = vld [vmem:[%s15931_s0 + $0x558] sm:$0xff]  ;;  %9772 = vmatprep.mubr.msk.bf16.mxu0 %vm297_vm1, %v12352_v53  ;;  %9838 = vmatprep.mubr.msk.bf16.mxu1 %vm297_vm1, %v12354_v54 }
 0x107   :  { %16129 = vst [vmem:[#allocation74_spill] sm:$0xff] %v12343_v61  ;;  %16131 = vst [vmem:[#allocation76_spill] sm:$0xff] %v12354_v54  ;;  %v1122_v49 = vld [vmem:[#allocation2 + $0x808] sm:$0xff]  ;;  %v1124_v51 = vld [vmem:[#allocation2 + $0x818] sm:$0xff] }
 0x108   :  { %790 = vst.msk [vmem:[#allocation2 + $0x670] sm:$0xff] %vm297_vm1, %v208_v23  ;;  %792 = vst.msk [vmem:[#allocation2 + $0x680] sm:$0xff] %vm297_vm1, %v210_v32  ;;  %v214_v60 = vld [vmem:[%s15931_s0 + $0x568] sm:$0xff]  ;;  %v216_v63 = vld [vmem:[%s15931_s0 + $0x578] sm:$0xff] }
 0x109   :  { %16132 = vst [vmem:[#allocation77_spill] sm:$0xff] %v12360_v1  ;;  %794 = vst.msk [vmem:[#allocation2 + $0x690] sm:$0xff] %vm297_vm1, %v212_v14  ;;  %v234_v2 = vld [vmem:[%s15931_s0 + $0x608] sm:$0xff]  ;;  %v1128_v58 = vld [vmem:[#allocation2 + $0x838] sm:$0xff] }
 0x10a   :  { %v1126_v23 = vld [vmem:[#allocation2 + $0x828] sm:$0xff]  ;;  %796 = vst.msk [vmem:[#allocation2 + $0x6a0] sm:$0xff] %vm297_vm1, %v214_v60  ;;  %798 = vst.msk [vmem:[#allocation2 + $0x6b0] sm:$0xff] %vm297_vm1, %v216_v63  ;;  %v236_v41 = vld [vmem:[%s15931_s0 + $0x618] sm:$0xff] }
 0x10b   :  { %816 = vst.msk [vmem:[#allocation2 + $0x760] sm:$0xff] %vm297_vm1, %v234_v2  ;;  %v238_v32 = vld [vmem:[%s15931_s0 + $0x628] sm:$0xff]  ;;  %818 = vst.msk [vmem:[#allocation2 + $0x770] sm:$0xff] %vm297_vm1, %v236_v41  ;;  %v240_v14 = vld [vmem:[%s15931_s0 + $0x638] sm:$0xff] }
 0x10c   :  { %v242_v60 = vld [vmem:[%s15931_s0 + $0x648] sm:$0xff]  ;;  %v1127_v63 = vld [vmem:[#allocation2 + $0x830] sm:$0xff]  ;;  %820 = vst.msk [vmem:[#allocation2 + $0x780] sm:$0xff] %vm297_vm1, %v238_v32  ;;  %822 = vst.msk [vmem:[#allocation2 + $0x790] sm:$0xff] %vm297_vm1, %v240_v14 }
 0x10d   :  { %824 = vst.msk [vmem:[#allocation2 + $0x7a0] sm:$0xff] %vm297_vm1, %v242_v60  ;;  %v244_v2 = vld [vmem:[%s15931_s0 + $0x658] sm:$0xff]  ;;  %v246_v41 = vld [vmem:[%s15931_s0 + $0x668] sm:$0xff]  ;;  %v12416_v60 = vpack.c.bf16 %v1124_v51, %v1122_v49  ;;  %16134 = vst [vmem:[#allocation79_spill] sm:$0xff] %v12419_v37  ;;  %v12433_v49 = vpack.c.bf16 %v1127_v63, %v12030_v36  ;;  %v12437_v51 = vpack.c.bf16 %v1121_v24, %v1119_v6  ;;  %9839 = vmatmul.mubr.msk.bf16.gmra.mxu1 %vm297_vm1, %v12419_v37 }
 0x10e   :  { %826 = vst.msk [vmem:[#allocation2 + $0x7b0] sm:$0xff] %vm297_vm1, %v244_v2  ;;  %828 = vst.msk [vmem:[#allocation2 + $0x7c0] sm:$0xff] %vm297_vm1, %v246_v41  ;;  %v266_v32 = vld [vmem:[%s15931_s0 + $0x708] sm:$0xff]  ;;  %v268_v14 = vld [vmem:[%s15931_s0 + $0x718] sm:$0xff]  ;;  %v12430_v41 = vpack.c.bf16 %v1128_v58, %v1126_v23 }
 0x10f   :  { %16133 = vst [vmem:[#allocation78_spill] sm:$0xff] %v12416_v60  ;;  %v12421_v53 = vld [vmem:[#allocation2 + $0x660] sm:$0xff]  ;;  %v12423_v54 = vld [vmem:[#allocation2 + $0x670] sm:$0xff]  ;;  %848 = vst.msk [vmem:[#allocation2 + $0x880] sm:$0xff] %vm297_vm1, %v266_v32  ;;  %9773 = vmatmul.mubr.msk.bf16.gmra.mxu0 %vm297_vm1, %v12416_v60  ;;  %9842 = vmatprep.mubr.msk.bf16.mxu1 %vm297_vm1, %v12433_v49 }
 0x110   :  { %16135 = vst [vmem:[#allocation80_spill] sm:$0xff] %v12421_v53  ;;  %16136 = vst [vmem:[#allocation81_spill] sm:$0xff] %v12423_v54  ;;  %v270_v2 = vld [vmem:[%s15931_s0 + $0x728] sm:$0xff]  ;;  %v272_v32 = vld [vmem:[%s15931_s0 + $0x738] sm:$0xff]  ;;  %9776 = vmatprep.mubr.msk.bf16.mxu0 %vm297_vm1, %v12430_v41 }
 0x111   :  { %850 = vst.msk [vmem:[#allocation2 + $0x890] sm:$0xff] %vm297_vm1, %v268_v14  ;;  %16137 = vst [vmem:[#allocation82_spill] sm:$0xff] %v12430_v41  ;;  %v1130_v0 = vld [vmem:[#allocation2 + $0x848] sm:$0xff]  ;;  %v1132_v22 = vld [vmem:[#allocation2 + $0x858] sm:$0xff] }
 0x112   :  { %16138 = vst [vmem:[#allocation83_spill] sm:$0xff] %v12433_v49  ;;  %16139 = vst [vmem:[#allocation84_spill] sm:$0xff] %v12437_v51  ;;  %v1129_v36 = vld [vmem:[#allocation2 + $0x840] sm:$0xff]  ;;  %v274_v24 = vld [vmem:[%s15931_s0 + $0x748] sm:$0xff]  ;;  %v12474_v49 = vpack.c.bf16 %v1132_v22, %v1130_v0 }
 0x113   :  { %852 = vst.msk [vmem:[#allocation2 + $0x8a0] sm:$0xff] %vm297_vm1, %v270_v2  ;;  %854 = vst.msk [vmem:[#allocation2 + $0x8b0] sm:$0xff] %vm297_vm1, %v272_v32  ;;  %v276_v6 = vld [vmem:[%s15931_s0 + $0x758] sm:$0xff]  ;;  %v12458_v23 = vld [vmem:[#allocation2 + $0x850] sm:$0xff]  ;;  %v12486_v37 = vpack.c.bf16 %v1129_v36, %v1127_v63 }
 0x114   :  { %v12460_v58 = vld [vmem:[#allocation2 + $0x780] sm:$0xff]  ;;  %v12462_v14 = vld [vmem:[#allocation2 + $0x790] sm:$0xff]  ;;  %856 = vst.msk [vmem:[#allocation2 + $0x8c0] sm:$0xff] %vm297_vm1, %v274_v24  ;;  %858 = vst.msk [vmem:[#allocation2 + $0x8d0] sm:$0xff] %vm297_vm1, %v276_v6  ;;  %v12477_v60 = vpack.c.bf16 %v12458_v23, %v1129_v36  ;;  %v16147_v36 = vpack.c.bf16 %v11465_v29, %v11463_v28  ;;  %v3115_v29 = vsel %vm1331_vm0, %v12004_v18, 0 }
 0x115   :  { %16140 = vst [vmem:[#allocation85_spill] sm:$0xff] %v12460_v58  ;;  %16141 = vst [vmem:[#allocation86_spill] sm:$0xff] %v12462_v14  ;;  %v896_v2 = vld [vmem:[#allocation2 + $0x90] sm:$0xff]  ;;  %v12466_v32 = vld [vmem:[#allocation2 + $0xa0] sm:$0xff] }
 0x116   :  { %v278_v41 = vld [vmem:[%s15931_s0 + $0x768] sm:$0xff]  ;;  %16142 = vst [vmem:[#allocation87_spill] sm:$0xff] %v12474_v49  ;;  %16143 = vst [vmem:[#allocation88_spill] sm:$0xff] %v12477_v60  ;;  %v41_v24 = vld [vmem:[%s15931_s0] sm:$0xff]  ;;  %v2498_v34 = vpack.c.bf16 %v12466_v32, %v896_v2  ;;  %9843 = vmatmul.mubr.msk.bf16.gmra.mxu1 %vm297_vm1, %v12477_v60  ;;  %v16148_v60 = vpack.c.bf16 %v11469_v31, %v11467_v30 }
 0x117   :  { %860 = vst.msk [vmem:[#allocation2 + $0x8e0] sm:$0xff] %vm297_vm1, %v278_v41  ;;  %v43_v6 = vld [vmem:[%s15931_s0 + $0x10] sm:$0xff]  ;;  %16144 = vst [vmem:[#allocation89_spill] sm:$0xff] %v12486_v37  ;;  %v45_v22 = vld [vmem:[%s15931_s0 + $0x20] sm:$0xff]  ;;  %9777 = vmatmul.mubr.msk.bf16.gmra.mxu0 %vm297_vm1, %v12474_v49 }
 0x118   :  { %623 = vst.msk [vmem:[#allocation2 + $0x98] sm:$0xff] %vm297_vm1, %v41_v24  ;;  %625 = vst.msk [vmem:[#allocation2 + $0xa8] sm:$0xff] %vm297_vm1, %v43_v6  ;;  %v47_v0 = vld [vmem:[%s15931_s0 + $0x30] sm:$0xff]  ;;  %9848 = vmatprep.mubr.msk.bf16.mxu0 %vm297_vm1, %v16147_v36  ;;  %9914 = vmatprep.mubr.msk.bf16.mxu1 %vm297_vm1, %v2498_v34  ;;  %v12515_v6 = vld [vmem:[#allocation2 + $0xe0] sm:$0xff] }
 0x119   :  { %627 = vst.msk [vmem:[#allocation2 + $0xb8] sm:$0xff] %vm297_vm1, %v45_v22  ;;  %629 = vst.msk [vmem:[#allocation2 + $0xc8] sm:$0xff] %vm297_vm1, %v47_v0  ;;  %v12511_v2 = vld [vmem:[#allocation2 + $0xb0] sm:$0xff]  ;;  %v49_v0 = vld [vmem:[%s15931_s0 + $0x40] sm:$0xff]  ;;  %v2500_v34 = vpack.c.bf16 %v12515_v6, %v12150_v3 }
 0x11a   :  { %v12502_v63 = vld [vmem:[#allocation2 + $0x8a0] sm:$0xff]  ;;  %v12504_v41 = vld [vmem:[#allocation2 + $0x8b0] sm:$0xff]  ;;  %v2499_v22 = vpack.c.bf16 %v12148_v38, %v12511_v2  ;;  %v8847_v28 = vld [vmem:[%s15930_s1 + $0xa] sm:$0x3]  ;;  %631 = vst.msk [vmem:[#allocation2 + $0xd8] sm:$0xff] %vm297_vm1, %v49_v0 }
 0x11b   :  { %16145 = vst [vmem:[#allocation90_spill] sm:$0xff] %v12502_v63  ;;  %16146 = vst [vmem:[#allocation91_spill] sm:$0xff] %v12504_v41  ;;  %10655 = vmatprep.subr.msk.bf16.mxu1 %vm1331_vm0, %v8847_v28  ;;  %v51_v36 = vld [vmem:[%s15931_s0 + $0x50] sm:$0xff]  ;;  %v53_v24 = vld [vmem:[%s15931_s0 + $0x60] sm:$0xff]  ;;  %v3601_v49 = vsel %vm1331_vm0, %v8847_v28, 0 }
 0x11c   :  { %v55_v0 = vld [vmem:[%s15931_s0 + $0x70] sm:$0xff]  ;;  %633 = vst.msk [vmem:[#allocation2 + $0xe8] sm:$0xff] %vm297_vm1, %v51_v36  ;;  %635 = vst.msk [vmem:[#allocation2 + $0xf8] sm:$0xff] %vm297_vm1, %v53_v24  ;;  %v12554_v28 = vld [vmem:[%s15930_s1 + $0xc] sm:$0x3]  ;;  %v16149_v36 = vpack.c.bf16 %v11487_v46, %v11480_v42 }
 0x11d   :  { %637 = vst.msk [vmem:[#allocation2 + $0x108] sm:$0xff] %vm297_vm1, %v55_v0  ;;  %v895_v24 = vld [vmem:[#allocation2 + $0x80] sm:$0xff]  ;;  %v12560_v0 = vld [vmem:[#allocation2 + $0xf0] sm:$0xff] }
 0x11e   :  { %9915 = vmatmul.mubr.msk.bf16.vlgmr.msra.gmra.mxu1 %vm297_vm1, %v2499_v22  ;;  %v12562_v18 = vld [vmem:[#allocation2 + $0x100] sm:$0xff]  ;;  %v930_v30 = vld [vmem:[#allocation2 + $0x1b0] sm:$0xff] }
 0x11f   :  { %9849 = vmatmul.mubr.msk.bf16.vlgmr.msra.gmra.mxu0 %vm297_vm1, %v16148_v60  ;;  %9918 = vmatprep.mubr.msk.bf16.mxu1 %vm297_vm1, %v2500_v34  ;;  %v12565_v31 = vld [vmem:[#allocation2 + $0x1c0] sm:$0xff]  ;;  %v10724_v60 = vld [vmem:[#allocation2 + $0x70] sm:$0xff]  ;;  %v2501_v42 = vpack.c.bf16 %v12562_v18, %v12560_v0 }
 0x120   :  { %9979 = vmatpush3.bf16.msra.mxu0 %v3115_v29  ;;  %9852 = vmatprep.mubr.msk.bf16.mxu0 %vm297_vm1, %v16149_v36  ;;  %v2015_v22 = vpack.c.bf16 %v895_v24, %v10724_v60  ;;  %v73_v46 = vld [vmem:[%s15931_s0 + $0x100] sm:$0xff]  ;;  %v75_v29 = vld [vmem:[%s15931_s0 + $0x110] sm:$0xff]  ;;  %v2502_v34 = vpack.c.bf16 %v12565_v31, %v930_v30 }
 0x121   :  { %10045 = vmatpush3.bf16.msra.mxu1 %v3601_v49  ;;  %10656 = vmatprep.subr.msk.bf16.mxu0 %vm1331_vm0, %v12554_v28  ;;  %655 = vst.msk [vmem:[#allocation2 + $0x1b8] sm:$0xff] %vm297_vm1, %v73_v46  ;;  %657 = vst.msk [vmem:[#allocation2 + $0x1c8] sm:$0xff] %vm297_vm1, %v75_v29  ;;  %v77_v49 = vld [vmem:[%s15931_s0 + $0x120] sm:$0xff]  ;;  %v79_v36 = vld [vmem:[%s15931_s0 + $0x130] sm:$0xff] }
 0x122   :  { %659 = vst.msk [vmem:[#allocation2 + $0x1d8] sm:$0xff] %vm297_vm1, %v77_v49  ;;  %661 = vst.msk [vmem:[#allocation2 + $0x1e8] sm:$0xff] %vm297_vm1, %v79_v36  ;;  %v12595_v30 = vld [vmem:[#allocation2 + $0x1d0] sm:$0xff]  ;;  %v12597_v60 = vld [vmem:[#allocation2 + $0x200] sm:$0xff] }
 0x123   :  { %v2503_v46 = vpack.c.bf16 %v12181_v48, %v12595_v30  ;;  %v81_v29 = vld [vmem:[%s15931_s0 + $0x140] sm:$0xff]  ;;  %v87_v49 = vld [vmem:[%s15931_s0 + $0x170] sm:$0xff] }
 0x124   :  { %663 = vst.msk [vmem:[#allocation2 + $0x1f8] sm:$0xff] %vm297_vm1, %v81_v29  ;;  %669 = vst.msk [vmem:[#allocation2 + $0x228] sm:$0xff] %vm297_vm1, %v87_v49  ;;  %v929_v29 = vld [vmem:[#allocation2 + $0x1a0] sm:$0xff]  ;;  %v964_v36 = vld [vmem:[#allocation2 + $0x2d0] sm:$0xff] }
 0x125   :  { %v12629_v24 = vld [vmem:[#allocation2 + $0x220] sm:$0xff]  ;;  %v998_v25 = vld [vmem:[#allocation2 + $0x3f0] sm:$0xff] }
 0x126   :  { %9919 = vmatmul.mubr.msk.bf16.gmra.mxu1 %vm297_vm1, %v2501_v42  ;;  %v83_v42 = vld [vmem:[%s15931_s0 + $0x150] sm:$0xff]  ;;  %v12694_v20 = vld [vmem:[#allocation2 + $0x400] sm:$0xff] }
 0x127   :  { %9853 = vmatmul.mubr.msk.bf16.gmra.mxu0 %vm297_vm1, %v2015_v22  ;;  %9922 = vmatprep.mubr.msk.bf16.mxu1 %vm297_vm1, %v2502_v34  ;;  %v2504_v22 = vpack.c.bf16 %v12597_v60, %v12183_v50  ;;  %665 = vst.msk [vmem:[#allocation2 + $0x208] sm:$0xff] %vm297_vm1, %v83_v42  ;;  %v85_v34 = vld [vmem:[%s15931_s0 + $0x160] sm:$0xff]  ;;  %v12627_v42 = vld [vmem:[#allocation2 + $0x210] sm:$0xff] }
 0x128   :  { %9856 = vmatprep.mubr.msk.bf16.mxu0 %vm297_vm1, %v11521_v9  ;;  %667 = vst.msk [vmem:[#allocation2 + $0x218] sm:$0xff] %vm297_vm1, %v85_v34  ;;  %v12631_v9 = vld [vmem:[#allocation2 + $0x2e0] sm:$0xff]  ;;  %v10725_v34 = vld [vmem:[#allocation2 + $0x190] sm:$0xff] }
 0x129   :  { %v12633_v49 = vpack.c.bf16 %v929_v29, %v10725_v34  ;;  %v109_v29 = vld [vmem:[%s15931_s0 + $0x220] sm:$0xff]  ;;  %v111_v34 = vld [vmem:[%s15931_s0 + $0x230] sm:$0xff] }
 0x12a   :  { %691 = vst.msk [vmem:[#allocation2 + $0x2f8] sm:$0xff] %vm297_vm1, %v109_v29  ;;  %693 = vst.msk [vmem:[#allocation2 + $0x308] sm:$0xff] %vm297_vm1, %v111_v34  ;;  %v113_v29 = vld [vmem:[%s15931_s0 + $0x240] sm:$0xff]  ;;  %v1032_v21 = vld [vmem:[#allocation2 + $0x510] sm:$0xff] }
 0x12b   :  { %16150 = vst [vmem:[#allocation92_spill] sm:$0xff] %v12633_v49  ;;  %695 = vst.msk [vmem:[#allocation2 + $0x318] sm:$0xff] %vm297_vm1, %v113_v29  ;;  %v963_v29 = vld [vmem:[#allocation2 + $0x2c0] sm:$0xff]  ;;  %v12819_v57 = vld [vmem:[#allocation2 + $0x570] sm:$0xff] }
 0x12c   :  { %v12757_v56 = vld [vmem:[#allocation2 + $0x520] sm:$0xff] }
 0x12e   :  { %9923 = vmatmul.mubr.msk.bf16.gmra.mxu1 %vm297_vm1, %v2503_v46  ;;  %v105_v46 = vld [vmem:[%s15931_s0 + $0x200] sm:$0xff] }
 0x12f   :  { %9857 = vmatmul.mubr.msk.bf16.gmra.mxu0 %vm297_vm1, %v11539_v13  ;;  %9926 = vmatprep.mubr.msk.bf16.mxu1 %vm297_vm1, %v2504_v22  ;;  %v2505_v13 = vpack.c.bf16 %v12629_v24, %v12627_v42  ;;  %v107_v22 = vld [vmem:[%s15931_s0 + $0x210] sm:$0xff]  ;;  %687 = vst.msk [vmem:[#allocation2 + $0x2d8] sm:$0xff] %vm297_vm1, %v105_v46  ;;  %v12662_v46 = vld [vmem:[#allocation2 + $0x320] sm:$0xff] }
 0x130   :  { %9860 = vmatprep.mubr.msk.bf16.mxu0 %vm297_vm1, %v11612_v40  ;;  %v2506_v40 = vpack.c.bf16 %v12631_v9, %v964_v36  ;;  %689 = vst.msk [vmem:[#allocation2 + $0x2e8] sm:$0xff] %vm297_vm1, %v107_v22  ;;  %v12660_v36 = vld [vmem:[#allocation2 + $0x2f0] sm:$0xff]  ;;  %v2508_v34 = vpack.c.bf16 %v12662_v46, %v12213_v62 }
 0x131   :  { %v2507_v22 = vpack.c.bf16 %v12211_v55, %v12660_v36 }
 0x136   :  { %9927 = vmatmul.mubr.msk.bf16.gmra.mxu1 %vm297_vm1, %v2505_v13  ;;  %v115_v13 = vld [vmem:[%s15931_s0 + $0x250] sm:$0xff] }
 0x137   :  { %9861 = vmatmul.mubr.msk.bf16.gmra.mxu0 %vm297_vm1, %v12633_v49  ;;  %9930 = vmatprep.mubr.msk.bf16.mxu1 %vm297_vm1, %v2506_v40  ;;  %697 = vst.msk [vmem:[#allocation2 + $0x328] sm:$0xff] %vm297_vm1, %v115_v13  ;;  %v117_v40 = vld [vmem:[%s15931_s0 + $0x260] sm:$0xff]  ;;  %v12690_v13 = vld [vmem:[#allocation2 + $0x330] sm:$0xff] }
 0x138   :  { %9864 = vmatprep.mubr.msk.bf16.mxu0 %vm297_vm1, %v11655_v7  ;;  %v119_v7 = vld [vmem:[%s15931_s0 + $0x270] sm:$0xff]  ;;  %699 = vst.msk [vmem:[#allocation2 + $0x338] sm:$0xff] %vm297_vm1, %v117_v40  ;;  %v12692_v49 = vld [vmem:[#allocation2 + $0x340] sm:$0xff] }
 0x139   :  { %701 = vst.msk [vmem:[#allocation2 + $0x348] sm:$0xff] %vm297_vm1, %v119_v7  ;;  %v10726_v40 = vld [vmem:[#allocation2 + $0x2b0] sm:$0xff] }
 0x13a   :  { %v12696_v7 = vpack.c.bf16 %v963_v29, %v10726_v40  ;;  %v141_v29 = vld [vmem:[%s15931_s0 + $0x320] sm:$0xff]  ;;  %v143_v40 = vld [vmem:[%s15931_s0 + $0x330] sm:$0xff] }
 0x13b   :  { %723 = vst.msk [vmem:[#allocation2 + $0x418] sm:$0xff] %vm297_vm1, %v141_v29  ;;  %725 = vst.msk [vmem:[#allocation2 + $0x428] sm:$0xff] %vm297_vm1, %v143_v40  ;;  %v145_v29 = vld [vmem:[%s15931_s0 + $0x340] sm:$0xff] }
 0x13c   :  { %16151 = vst [vmem:[#allocation93_spill] sm:$0xff] %v12696_v7  ;;  %727 = vst.msk [vmem:[#allocation2 + $0x438] sm:$0xff] %vm297_vm1, %v145_v29  ;;  %v997_v29 = vld [vmem:[#allocation2 + $0x3e0] sm:$0xff] }
 0x13e   :  { %9931 = vmatmul.mubr.msk.bf16.gmra.mxu1 %vm297_vm1, %v2507_v22  ;;  %v137_v22 = vld [vmem:[%s15931_s0 + $0x300] sm:$0xff] }
 0x13f   :  { %9865 = vmatmul.mubr.msk.bf16.gmra.mxu0 %vm297_vm1, %v11670_v12  ;;  %9934 = vmatprep.mubr.msk.bf16.mxu1 %vm297_vm1, %v2508_v34  ;;  %v2509_v12 = vpack.c.bf16 %v12692_v49, %v12690_v13  ;;  %v139_v34 = vld [vmem:[%s15931_s0 + $0x310] sm:$0xff]  ;;  %719 = vst.msk [vmem:[#allocation2 + $0x3f8] sm:$0xff] %vm297_vm1, %v137_v22  ;;  %v12725_v22 = vld [vmem:[#allocation2 + $0x440] sm:$0xff] }
 0x140   :  { %9868 = vmatprep.mubr.msk.bf16.mxu0 %vm297_vm1, %v11738_v47  ;;  %v2510_v47 = vpack.c.bf16 %v12694_v20, %v998_v25  ;;  %721 = vst.msk [vmem:[#allocation2 + $0x408] sm:$0xff] %vm297_vm1, %v139_v34  ;;  %v12723_v25 = vld [vmem:[#allocation2 + $0x410] sm:$0xff]  ;;  %v2512_v40 = vpack.c.bf16 %v12725_v22, %v12309_v16 }
 0x141   :  { %v2511_v34 = vpack.c.bf16 %v12307_v19, %v12723_v25 }
 0x146   :  { %9935 = vmatmul.mubr.msk.bf16.gmra.mxu1 %vm297_vm1, %v2509_v12  ;;  %v147_v12 = vld [vmem:[%s15931_s0 + $0x350] sm:$0xff] }
 0x147   :  { %9869 = vmatmul.mubr.msk.bf16.gmra.mxu0 %vm297_vm1, %v12696_v7  ;;  %9938 = vmatprep.mubr.msk.bf16.mxu1 %vm297_vm1, %v2510_v47  ;;  %729 = vst.msk [vmem:[#allocation2 + $0x448] sm:$0xff] %vm297_vm1, %v147_v12  ;;  %v149_v47 = vld [vmem:[%s15931_s0 + $0x360] sm:$0xff]  ;;  %v12753_v12 = vld [vmem:[#allocation2 + $0x450] sm:$0xff] }
 0x148   :  { %9872 = vmatprep.mubr.msk.bf16.mxu0 %vm297_vm1, %v11789_v27  ;;  %v151_v27 = vld [vmem:[%s15931_s0 + $0x370] sm:$0xff]  ;;  %731 = vst.msk [vmem:[#allocation2 + $0x458] sm:$0xff] %vm297_vm1, %v149_v47  ;;  %v12755_v7 = vld [vmem:[#allocation2 + $0x460] sm:$0xff] }
 0x149   :  { %733 = vst.msk [vmem:[#allocation2 + $0x468] sm:$0xff] %vm297_vm1, %v151_v27  ;;  %v12760_v27 = vpack.c.bf16 %v997_v29, %v11874_v17  ;;  %v2513_v47 = vpack.c.bf16 %v12755_v7, %v12753_v12  ;;  %v173_v17 = vld [vmem:[%s15931_s0 + $0x420] sm:$0xff]  ;;  %v175_v29 = vld [vmem:[%s15931_s0 + $0x430] sm:$0xff] }
 0x14a   :  { %755 = vst.msk [vmem:[#allocation2 + $0x538] sm:$0xff] %vm297_vm1, %v173_v17  ;;  %757 = vst.msk [vmem:[#allocation2 + $0x548] sm:$0xff] %vm297_vm1, %v175_v29  ;;  %v177_v17 = vld [vmem:[%s15931_s0 + $0x440] sm:$0xff] }
 0x14b   :  { %16152 = vst [vmem:[#allocation94_spill] sm:$0xff] %v12760_v27  ;;  %759 = vst.msk [vmem:[#allocation2 + $0x558] sm:$0xff] %vm297_vm1, %v177_v17 }
 0x14e   :  { %9939 = vmatmul.mubr.msk.bf16.gmra.mxu1 %vm297_vm1, %v2511_v34  ;;  %v169_v34 = vld [vmem:[%s15931_s0 + $0x400] sm:$0xff] }
 0x14f   :  { %9873 = vmatmul.mubr.msk.bf16.gmra.mxu0 %vm297_vm1, %v11804_v39  ;;  %9942 = vmatprep.mubr.msk.bf16.mxu1 %vm297_vm1, %v2512_v40  ;;  %v171_v40 = vld [vmem:[%s15931_s0 + $0x410] sm:$0xff]  ;;  %751 = vst.msk [vmem:[#allocation2 + $0x518] sm:$0xff] %vm297_vm1, %v169_v34  ;;  %v12789_v34 = vld [vmem:[#allocation2 + $0x560] sm:$0xff]  ;;  %v9784_v39 = vpop.f32.mrf.mxu1 }
 0x150   :  { %9876 = vmatprep.mubr.msk.bf16.mxu0 %vm297_vm1, %v11868_v15  ;;  %v2514_v15 = vpack.c.bf16 %v12757_v56, %v1032_v21  ;;  %753 = vst.msk [vmem:[#allocation2 + $0x528] sm:$0xff] %vm297_vm1, %v171_v40  ;;  %v12787_v21 = vld [vmem:[#allocation2 + $0x530] sm:$0xff]  ;;  %16154 = vst [vmem:[#allocation96_spill] sm:$0xff] %v12789_v34  ;;  %v2516_v29 = vpack.c.bf16 %v12789_v34, %v12343_v61  ;;  %v12823_v34 = vld [vmem:[#allocation2 + $0x640] sm:$0xff] }
 0x151   :  { %16153 = vst [vmem:[#allocation95_spill] sm:$0xff] %v12787_v21  ;;  %v2515_v40 = vpack.c.bf16 %v12332_v33, %v12787_v21  ;;  %v1757_v33 = vpop.f32.mrf.mxu1  ;;  %v1066_v61 = vld [vmem:[#allocation2 + $0x630] sm:$0xff]  ;;  %16157 = vst [vmem:[#allocation99_spill] sm:$0xff] %v12823_v34 }
 0x156   :  { %9943 = vmatmul.mubr.msk.bf16.gmra.mxu1 %vm297_vm1, %v2513_v47  ;;  %v179_v47 = vld [vmem:[%s15931_s0 + $0x450] sm:$0xff] }
 0x157   :  { %9877 = vmatmul.mubr.msk.bf16.gmra.mxu0 %vm297_vm1, %v12760_v27  ;;  %9946 = vmatprep.mubr.msk.bf16.mxu1 %vm297_vm1, %v2514_v15  ;;  %761 = vst.msk [vmem:[#allocation2 + $0x568] sm:$0xff] %vm297_vm1, %v179_v47  ;;  %v181_v15 = vld [vmem:[%s15931_s0 + $0x460] sm:$0xff]  ;;  %v9718_v27 = vpop.f32.mrf.mxu0 }
 0x158   :  { %9880 = vmatprep.mubr.msk.bf16.mxu0 %vm297_vm1, %v11931_v43  ;;  %v183_v43 = vld [vmem:[%s15931_s0 + $0x470] sm:$0xff]  ;;  %763 = vst.msk [vmem:[#allocation2 + $0x578] sm:$0xff] %vm297_vm1, %v181_v15  ;;  %v12814_v17 = vadd.f32 %v9784_v39, %v9718_v27  ;;  %v1031_v47 = vld [vmem:[#allocation2 + $0x500] sm:$0xff]  ;;  %v9785_v39 = vpop.f32.mrf.mxu1 }
 0x159   :  { %765 = vst.msk [vmem:[#allocation2 + $0x588] sm:$0xff] %vm297_vm1, %v183_v43  ;;  %v12821_v15 = vld [vmem:[#allocation2 + $0x580] sm:$0xff]  ;;  %v1369_v43 = vpop.f32.mrf.mxu0  ;;  %v12828_v27 = vpack.c.bf16 %v1031_v47, %v12023_v4  ;;  %v207_v47 = vld [vmem:[%s15931_s0 + $0x530] sm:$0xff] }
 0x15a   :  { %16155 = vst [vmem:[#allocation97_spill] sm:$0xff] %v12814_v17  ;;  %16156 = vst [vmem:[#allocation98_spill] sm:$0xff] %v12821_v15  ;;  %v203_v17 = vld [vmem:[%s15931_s0 + $0x510] sm:$0xff]  ;;  %v205_v4 = vld [vmem:[%s15931_s0 + $0x520] sm:$0xff] }
 0x15b   :  { %16158 = vst [vmem:[#allocation100_spill] sm:$0xff] %v12828_v27  ;;  %785 = vst.msk [vmem:[#allocation2 + $0x648] sm:$0xff] %vm297_vm1, %v203_v17 }
 0x15c   :  { %787 = vst.msk [vmem:[#allocation2 + $0x658] sm:$0xff] %vm297_vm1, %v205_v4  ;;  %789 = vst.msk [vmem:[#allocation2 + $0x668] sm:$0xff] %vm297_vm1, %v207_v47 }
 0x15e   :  { %9947 = vmatmul.mubr.msk.bf16.gmra.mxu1 %vm297_vm1, %v2515_v40  ;;  %v9719_v40 = vpop.f32.mrf.mxu0 }
 0x15f   :  { %9881 = vmatmul.mubr.msk.bf16.gmra.mxu0 %vm297_vm1, %v12006_v35  ;;  %9950 = vmatprep.mubr.msk.bf16.mxu1 %vm297_vm1, %v2516_v29  ;;  %v12825_v35 = vadd.f32 %v1757_v33, %v1369_v43  ;;  %v201_v29 = vld [vmem:[%s15931_s0 + $0x500] sm:$0xff]  ;;  %v12838_v21 = vadd.f32 %v9785_v39, %v9719_v40  ;;  %v2518_v33 = vpack.c.bf16 %v12823_v34, %v1066_v61 }
 0x160   :  { %9884 = vmatprep.mubr.msk.bf16.mxu0 %vm297_vm1, %v12055_v11  ;;  %v2517_v11 = vpack.c.bf16 %v12821_v15, %v12819_v57  ;;  %783 = vst.msk [vmem:[#allocation2 + $0x638] sm:$0xff] %vm297_vm1, %v201_v29  ;;  %v1372_v43 = vpop.f32.mrf.mxu0  ;;  %v1760_v15 = vpop.f32.mrf.mxu1  ;;  %v12861_v29 = vld [vmem:[#allocation2 + $0x650] sm:$0xff] }
 0x161   :  { %v12851_v40 = vadd.f32 %v1760_v15, %v1372_v43  ;;  %v12863_v15 = vld [vmem:[#allocation2 + $0x680] sm:$0xff] }
 0x162   :  { %v9722_v61 = vpop.f32.mrf.mxu0  ;;  %v9788_v39 = vpop.f32.mrf.mxu1  ;;  %16160 = vst [vmem:[#allocation102_spill] sm:$0xff] %v12863_v15 }
 0x163   :  { %16159 = vst [vmem:[#allocation101_spill] sm:$0xff] %v12851_v40  ;;  %v12856_v17 = vadd.f32 %v9788_v39, %v9722_v61  ;;  %v209_v61 = vld [vmem:[%s15931_s0 + $0x540] sm:$0xff] }
 0x164   :  { %v1385_v4 = vpop.f32.mrf.mxu0  ;;  %v1773_v47 = vpop.f32.mrf.mxu1  ;;  %791 = vst.msk [vmem:[#allocation2 + $0x678] sm:$0xff] %vm297_vm1, %v209_v61 }
 0x165   :  { %v12865_v43 = vadd.f32 %v1773_v47, %v1385_v4 }
 0x166   :  { %9951 = vmatmul.mubr.msk.bf16.gmra.mxu1 %vm297_vm1, %v2517_v11  ;;  %v9723_v40 = vpop.f32.mrf.mxu0  ;;  %v9789_v34 = vpop.f32.mrf.mxu1  ;;  %v2519_v11 = vpack.c.bf16 %v12421_v53, %v12861_v29 }
 0x167   :  { %9885 = vmatmul.mubr.msk.bf16.gmra.mxu0 %vm297_vm1, %v12828_v27  ;;  %9954 = vmatprep.mubr.msk.bf16.mxu1 %vm297_vm1, %v2518_v33  ;;  %v12872_v39 = vadd.f32 %v9789_v34, %v9723_v40  ;;  %v2520_v33 = vpack.c.bf16 %v12863_v15, %v12423_v54  ;;  %v213_v27 = vld [vmem:[%s15931_s0 + $0x560] sm:$0xff]  ;;  %v215_v34 = vld [vmem:[%s15931_s0 + $0x570] sm:$0xff] }
 0x168   :  { %9888 = vmatprep.mubr.msk.bf16.mxu0 %vm297_vm1, %v12146_v10  ;;  %v211_v10 = vld [vmem:[%s15931_s0 + $0x550] sm:$0xff]  ;;  %v1388_v4 = vpop.f32.mrf.mxu0  ;;  %v1776_v47 = vpop.f32.mrf.mxu1  ;;  %795 = vst.msk [vmem:[#allocation2 + $0x698] sm:$0xff] %vm297_vm1, %v213_v27  ;;  %797 = vst.msk [vmem:[#allocation2 + $0x6a8] sm:$0xff] %vm297_vm1, %v215_v34  ;;  %v1065_v54 = vld [vmem:[#allocation2 + $0x620] sm:$0xff] }
 0x169   :  { %16161 = vst [vmem:[#allocation103_spill] sm:$0xff] %v12872_v39  ;;  %793 = vst.msk [vmem:[#allocation2 + $0x688] sm:$0xff] %vm297_vm1, %v211_v10  ;;  %v12887_v40 = vadd.f32 %v1776_v47, %v1388_v4  ;;  %v12899_v4 = vld [vmem:[#allocation2 + $0x690] sm:$0xff]  ;;  %v12901_v27 = vld [vmem:[#allocation2 + $0x6a0] sm:$0xff] }
 0x16a   :  { %v9726_v53 = vpop.f32.mrf.mxu0  ;;  %v9792_v61 = vpop.f32.mrf.mxu1  ;;  %16164 = vst [vmem:[#allocation106_spill] sm:$0xff] %v12901_v27  ;;  %v12903_v15 = vld [vmem:[#allocation2 + $0x760] sm:$0xff] }
 0x16b   :  { %16162 = vst [vmem:[#allocation104_spill] sm:$0xff] %v12887_v40  ;;  %v12894_v10 = vadd.f32 %v9792_v61, %v9726_v53  ;;  %v1100_v40 = vld [vmem:[#allocation2 + $0x750] sm:$0xff]  ;;  %16165 = vst [vmem:[#allocation107_spill] sm:$0xff] %v12903_v15  ;;  %v12908_v61 = vpack.c.bf16 %v1065_v54, %v12177_v45  ;;  %v237_v54 = vld [vmem:[%s15931_s0 + $0x620] sm:$0xff] }
 0x16c   :  { %v1401_v47 = vpop.f32.mrf.mxu0  ;;  %v1789_v34 = vpop.f32.mrf.mxu1  ;;  %v239_v45 = vld [vmem:[%s15931_s0 + $0x630] sm:$0xff]  ;;  %819 = vst.msk [vmem:[#allocation2 + $0x778] sm:$0xff] %vm297_vm1, %v237_v54 }
 0x16d   :  { %16163 = vst [vmem:[#allocation105_spill] sm:$0xff] %v12894_v10  ;;  %16166 = vst [vmem:[#allocation108_spill] sm:$0xff] %v12908_v61  ;;  %v235_v10 = vld [vmem:[%s15931_s0 + $0x610] sm:$0xff] }
 0x16e   :  { %9955 = vmatmul.mubr.msk.bf16.gmra.mxu1 %vm297_vm1, %v2519_v11  ;;  %v9727_v11 = vpop.f32.mrf.mxu0  ;;  %v9793_v53 = vpop.f32.mrf.mxu1  ;;  %817 = vst.msk [vmem:[#allocation2 + $0x768] sm:$0xff] %vm297_vm1, %v235_v10  ;;  %821 = vst.msk [vmem:[#allocation2 + $0x788] sm:$0xff] %vm297_vm1, %v239_v45 }
 0x16f   :  { %9889 = vmatmul.mubr.msk.bf16.gmra.mxu0 %vm297_vm1, %v12158_v44  ;;  %9958 = vmatprep.mubr.msk.bf16.mxu1 %vm297_vm1, %v2520_v33  ;;  %v12905_v44 = vadd.f32 %v1789_v34, %v1401_v47  ;;  %v233_v33 = vld [vmem:[%s15931_s0 + $0x600] sm:$0xff]  ;;  %v12918_v39 = vadd.f32 %v9793_v53, %v9727_v11  ;;  %v2522_v47 = vpack.c.bf16 %v12903_v15, %v1100_v40 }
 0x170   :  { %9892 = vmatprep.mubr.msk.bf16.mxu0 %vm297_vm1, %v12209_v52  ;;  %v2521_v52 = vpack.c.bf16 %v12901_v27, %v12899_v4  ;;  %815 = vst.msk [vmem:[#allocation2 + $0x758] sm:$0xff] %vm297_vm1, %v233_v33  ;;  %v1404_v34 = vpop.f32.mrf.mxu0  ;;  %v1792_v27 = vpop.f32.mrf.mxu1  ;;  %v12941_v33 = vld [vmem:[#allocation2 + $0x770] sm:$0xff] }
 0x171   :  { %v12931_v11 = vadd.f32 %v1792_v27, %v1404_v34  ;;  %v12943_v27 = vld [vmem:[#allocation2 + $0x7a0] sm:$0xff] }
 0x172   :  { %v9730_v40 = vpop.f32.mrf.mxu0  ;;  %v9796_v53 = vpop.f32.mrf.mxu1  ;;  %16168 = vst [vmem:[#allocation110_spill] sm:$0xff] %v12943_v27 }
 0x173   :  { %16167 = vst [vmem:[#allocation109_spill] sm:$0xff] %v12931_v11  ;;  %v12936_v10 = vadd.f32 %v9796_v53, %v9730_v40  ;;  %v241_v40 = vld [vmem:[%s15931_s0 + $0x640] sm:$0xff] }
 0x174   :  { %v1417_v54 = vpop.f32.mrf.mxu0  ;;  %v1805_v45 = vpop.f32.mrf.mxu1  ;;  %823 = vst.msk [vmem:[#allocation2 + $0x798] sm:$0xff] %vm297_vm1, %v241_v40  ;;  %v248_v40 = vld [vmem:[%s15931_s0 + $0x678] sm:$0xff] }
 0x175   :  { %v12945_v34 = vadd.f32 %v1805_v45, %v1417_v54  ;;  %830 = vst.msk [vmem:[#allocation2 + $0x7d0] sm:$0xff] %vm297_vm1, %v248_v40 }
 0x176   :  { %9959 = vmatmul.mubr.msk.bf16.gmra.mxu1 %vm297_vm1, %v2521_v52  ;;  %v9731_v11 = vpop.f32.mrf.mxu0  ;;  %v9797_v15 = vpop.f32.mrf.mxu1  ;;  %v2523_v52 = vpack.c.bf16 %v12460_v58, %v12941_v33 }
 0x177   :  { %9893 = vmatmul.mubr.msk.bf16.gmra.mxu0 %vm297_vm1, %v12908_v61  ;;  %9962 = vmatprep.mubr.msk.bf16.mxu1 %vm297_vm1, %v2522_v47  ;;  %v12952_v53 = vadd.f32 %v9797_v15, %v9731_v11  ;;  %v2524_v47 = vpack.c.bf16 %v12943_v27, %v12462_v14  ;;  %v245_v61 = vld [vmem:[%s15931_s0 + $0x660] sm:$0xff]  ;;  %v247_v15 = vld [vmem:[%s15931_s0 + $0x670] sm:$0xff] }
 0x178   :  { %9896 = vmatprep.mubr.msk.bf16.mxu0 %vm297_vm1, %v12296_v26  ;;  %v243_v26 = vld [vmem:[%s15931_s0 + $0x650] sm:$0xff]  ;;  %v1420_v54 = vpop.f32.mrf.mxu0  ;;  %v1808_v45 = vpop.f32.mrf.mxu1  ;;  %827 = vst.msk [vmem:[#allocation2 + $0x7b8] sm:$0xff] %vm297_vm1, %v245_v61  ;;  %829 = vst.msk [vmem:[#allocation2 + $0x7c8] sm:$0xff] %vm297_vm1, %v247_v15  ;;  %v1099_v14 = vld [vmem:[#allocation2 + $0x740] sm:$0xff] }
 0x179   :  { %16169 = vst [vmem:[#allocation111_spill] sm:$0xff] %v12952_v53  ;;  %825 = vst.msk [vmem:[#allocation2 + $0x7a8] sm:$0xff] %vm297_vm1, %v243_v26  ;;  %v12967_v11 = vadd.f32 %v1808_v45, %v1420_v54  ;;  %v12983_v61 = vld [vmem:[#allocation2 + $0x7b0] sm:$0xff]  ;;  %v12985_v45 = vld [vmem:[#allocation2 + $0x7c0] sm:$0xff]  ;;  %v12992_v40 = vpack.c.bf16 %v1099_v14, %v12326_v59 }
 0x17a   :  { %v9734_v58 = vpop.f32.mrf.mxu0  ;;  %v9800_v26 = vpop.f32.mrf.mxu1  ;;  %16172 = vst [vmem:[#allocation114_spill] sm:$0xff] %v12985_v45  ;;  %v1134_v27 = vld [vmem:[#allocation2 + $0x870] sm:$0xff]  ;;  %v269_v59 = vld [vmem:[%s15931_s0 + $0x720] sm:$0xff] }
 0x17b   :  { %16170 = vst [vmem:[#allocation112_spill] sm:$0xff] %v12967_v11  ;;  %v12978_v54 = vadd.f32 %v9800_v26, %v9734_v58  ;;  %16174 = vst [vmem:[#allocation116_spill] sm:$0xff] %v12992_v40  ;;  %v271_v14 = vld [vmem:[%s15931_s0 + $0x730] sm:$0xff] }
 0x17c   :  { %v1433_v15 = vpop.f32.mrf.mxu0  ;;  %v1821_v11 = vpop.f32.mrf.mxu1  ;;  %851 = vst.msk [vmem:[#allocation2 + $0x898] sm:$0xff] %vm297_vm1, %v269_v59  ;;  %853 = vst.msk [vmem:[#allocation2 + $0x8a8] sm:$0xff] %vm297_vm1, %v271_v14 }
 0x17d   :  { %16171 = vst [vmem:[#allocation113_spill] sm:$0xff] %v12978_v54  ;;  %v267_v54 = vld [vmem:[%s15931_s0 + $0x710] sm:$0xff] }
 0x17e   :  { %9963 = vmatmul.mubr.msk.bf16.gmra.mxu1 %vm297_vm1, %v2523_v52  ;;  %v12989_v52 = vadd.f32 %v1821_v11, %v1433_v15  ;;  %v9735_v58 = vpop.f32.mrf.mxu0  ;;  %v9801_v26 = vpop.f32.mrf.mxu1  ;;  %849 = vst.msk [vmem:[#allocation2 + $0x888] sm:$0xff] %vm297_vm1, %v267_v54 }
 0x17f   :  { %9897 = vmatmul.mubr.msk.bf16.gmra.mxu0 %vm297_vm1, %v11906_v8  ;;  %9966 = vmatprep.mubr.msk.bf16.mxu1 %vm297_vm1, %v2524_v47  ;;  %v12987_v8 = vld [vmem:[#allocation2 + $0x880] sm:$0xff]  ;;  %v13002_v53 = vadd.f32 %v9801_v26, %v9735_v58 }
 0x180   :  { %9900 = vmatprep.mubr.msk.bf16.mxu0 %vm297_vm1, %v12360_v1  ;;  %16173 = vst [vmem:[#allocation115_spill] sm:$0xff] %v12987_v8  ;;  %v2525_v1 = vpack.c.bf16 %v12985_v45, %v12983_v61  ;;  %v265_v47 = vld [vmem:[%s15931_s0 + $0x700] sm:$0xff]  ;;  %v2526_v11 = vpack.c.bf16 %v12987_v8, %v1134_v27  ;;  %v1436_v15 = vpop.f32.mrf.mxu0  ;;  %v1824_v45 = vpop.f32.mrf.mxu1 }
 0x181   :  { %16175 = vst [vmem:[#allocation117_spill] sm:$0xff] %v13002_v53  ;;  %847 = vst.msk [vmem:[#allocation2 + $0x878] sm:$0xff] %vm297_vm1, %v265_v47  ;;  %v13015_v58 = vadd.f32 %v1824_v45, %v1436_v15  ;;  %v13025_v47 = vld [vmem:[#allocation2 + $0x890] sm:$0xff]  ;;  %v13027_v45 = vld [vmem:[#allocation2 + $0x8c0] sm:$0xff] }
 0x182   :  { %v9738_v27 = vpop.f32.mrf.mxu0  ;;  %v9804_v26 = vpop.f32.mrf.mxu1  ;;  %16178 = vst [vmem:[#allocation120_spill] sm:$0xff] %v13025_v47  ;;  %16179 = vst [vmem:[#allocation121_spill] sm:$0xff] %v13027_v45 }
 0x183   :  { %16176 = vst [vmem:[#allocation118_spill] sm:$0xff] %v13015_v58  ;;  %v13020_v54 = vadd.f32 %v9804_v26, %v9738_v27  ;;  %v273_v27 = vld [vmem:[%s15931_s0 + $0x740] sm:$0xff] }
 0x184   :  { %v1449_v59 = vpop.f32.mrf.mxu0  ;;  %v1837_v14 = vpop.f32.mrf.mxu1  ;;  %855 = vst.msk [vmem:[#allocation2 + $0x8b8] sm:$0xff] %vm297_vm1, %v273_v27  ;;  %v280_v27 = vld [vmem:[%s15931_s0 + $0x778] sm:$0xff] }
 0x185   :  { %16177 = vst [vmem:[#allocation119_spill] sm:$0xff] %v13020_v54  ;;  %v13029_v15 = vadd.f32 %v1837_v14, %v1449_v59  ;;  %862 = vst.msk [vmem:[#allocation2 + $0x8f0] sm:$0xff] %vm297_vm1, %v280_v27 }
 0x186   :  { %9967 = vmatmul.mubr.msk.bf16.gmra.mxu1 %vm297_vm1, %v2525_v1  ;;  %v9739_v58 = vpop.f32.mrf.mxu0  ;;  %v9805_v8 = vpop.f32.mrf.mxu1  ;;  %v2527_v1 = vpack.c.bf16 %v12502_v63, %v13025_v47 }
 0x187   :  { %9901 = vmatmul.mubr.msk.bf16.gmra.mxu0 %vm297_vm1, %v12992_v40  ;;  %9970 = vmatprep.mubr.msk.bf16.mxu1 %vm297_vm1, %v2526_v11  ;;  %16180 = vst [vmem:[#allocation122_spill] sm:$0xff] %v13029_v15  ;;  %v13036_v26 = vadd.f32 %v9805_v8, %v9739_v58  ;;  %v2528_v11 = vpack.c.bf16 %v13027_v45, %v12504_v41  ;;  %v277_v40 = vld [vmem:[%s15931_s0 + $0x760] sm:$0xff]  ;;  %v279_v8 = vld [vmem:[%s15931_s0 + $0x770] sm:$0xff]  ;;  %v897_v45 = vld [vmem:[#allocation2 + $0x98] sm:$0xff] }
 0x188   :  { %9904 = vmatprep.mubr.msk.bf16.mxu0 %vm297_vm1, %v12437_v51  ;;  %v275_v51 = vld [vmem:[%s15931_s0 + $0x750] sm:$0xff]  ;;  %v1452_v59 = vpop.f32.mrf.mxu0  ;;  %v1840_v14 = vpop.f32.mrf.mxu1  ;;  %859 = vst.msk [vmem:[#allocation2 + $0x8d8] sm:$0xff] %vm297_vm1, %v277_v40  ;;  %861 = vst.msk [vmem:[#allocation2 + $0x8e8] sm:$0xff] %vm297_vm1, %v279_v8  ;;  %v1133_v41 = vld [vmem:[#allocation2 + $0x860] sm:$0xff] }
 0x189   :  { %16181 = vst [vmem:[#allocation123_spill] sm:$0xff] %v13036_v26  ;;  %857 = vst.msk [vmem:[#allocation2 + $0x8c8] sm:$0xff] %vm297_vm1, %v275_v51  ;;  %v13051_v58 = vadd.f32 %v1840_v14, %v1452_v59  ;;  %v13067_v40 = vld [vmem:[#allocation2 + $0x8d0] sm:$0xff]  ;;  %v13069_v14 = vld [vmem:[#allocation2 + $0x8e0] sm:$0xff] }
 0x18a   :  { %v9742_v63 = vpop.f32.mrf.mxu0  ;;  %v9808_v51 = vpop.f32.mrf.mxu1 }
 0x18b   :  { %16182 = vst [vmem:[#allocation124_spill] sm:$0xff] %v13051_v58  ;;  %v13062_v59 = vadd.f32 %v9808_v51, %v9742_v63  ;;  %v2529_v51 = vpack.c.bf16 %v13069_v14, %v13067_v40 }
 0x18c   :  { %v1465_v8 = vpop.f32.mrf.mxu0  ;;  %v1853_v58 = vpop.f32.mrf.mxu1 }
 0x18d   :  { %16183 = vst [vmem:[#allocation125_spill] sm:$0xff] %v13062_v59  ;;  %v13071_v26 = vadd.f32 %v1853_v58, %v1465_v8  ;;  %v903_v58 = vld [vmem:[#allocation2 + $0xc8] sm:$0xff] }
 0x18e   :  { %9971 = vmatmul.mubr.msk.bf16.gmra.mxu1 %vm297_vm1, %v2527_v1  ;;  %v13074_v1 = vpack.c.bf16 %v1133_v41, %v12458_v23  ;;  %v9743_v63 = vpop.f32.mrf.mxu0  ;;  %v9809_v27 = vpop.f32.mrf.mxu1  ;;  %v901_v41 = vld [vmem:[#allocation2 + $0xb8] sm:$0xff]  ;;  %v907_v8 = vld [vmem:[#allocation2 + $0xe8] sm:$0xff] }
 0x18f   :  { %9905 = vmatmul.mubr.msk.bf16.gmra.mxu0 %vm297_vm1, %v12042_v5  ;;  %9974 = vmatprep.mubr.msk.bf16.mxu1 %vm297_vm1, %v2528_v11  ;;  %v899_v5 = vld [vmem:[#allocation2 + $0xa8] sm:$0xff] }
 0x190   :  { %9908 = vmatprep.mubr.msk.bf16.mxu0 %vm297_vm1, %v12486_v37  ;;  %16184 = vst [vmem:[#allocation126_spill] sm:$0xff] %v13074_v1  ;;  %v13078_v37 = vadd.f32 %v9809_v27, %v9743_v63  ;;  %v2984_v11 = vpack.c.bf16 %v899_v5, %v897_v45  ;;  %v1468_v59 = vpop.f32.mrf.mxu0  ;;  %v1856_v15 = vpop.f32.mrf.mxu1  ;;  %v16186_v5 = vpack.c.bf16 %v12511_v2, %v12466_v32  ;;  %v3975_v2 = vsel %vm1331_vm0, %v12554_v28, 0  ;;  %v912_v28 = vld [vmem:[#allocation2 + $0x110] sm:$0xff] }
 0x191   :  { %v13080_v54 = vadd.f32 %v1856_v15, %v1468_v59  ;;  %v905_v59 = vld [vmem:[#allocation2 + $0xd8] sm:$0xff] }
 0x192   :  { %v9746_v47 = vpop.f32.mrf.mxu0  ;;  %v9812_v53 = vpop.f32.mrf.mxu1 }
 0x193   :  { %v13085_v23 = vadd.f32 %v9812_v53, %v9746_v47  ;;  %v2986_v47 = vpack.c.bf16 %v907_v8, %v905_v59  ;;  %v911_v8 = vld [vmem:[#allocation2 + $0x108] sm:$0xff] }
 0x194   :  { %v1481_v45 = vpop.f32.mrf.mxu0  ;;  %v1869_v15 = vpop.f32.mrf.mxu1 }
 0x195   :  { %16185 = vst [vmem:[#allocation127_spill] sm:$0xff] %v13085_v23  ;;  %v13092_v63 = vadd.f32 %v1869_v15, %v1481_v45 }
 0x196   :  { %9975 = vmatmul.mubr.msk.bf16.gmra.mxu1 %vm297_vm1, %v2529_v51  ;;  %v9747_v27 = vpop.f32.mrf.mxu0  ;;  %v2985_v51 = vpack.c.bf16 %v903_v58, %v901_v41  ;;  %v13113_v58 = vld [vmem:[%s15930_s1 + $0x10] sm:$0x3] }
 0x197   :  { %9909 = vmatmul.mubr.msk.bf16.gmra.mxu0 %vm297_vm1, %v13074_v1  ;;  %10046 = vmatprep.mubr.msk.bf16.mxu1 %vm297_vm1, %v16186_v5  ;;  %v9813_v1 = vpop.f32.mrf.mxu1 }
 0x198   :  { %9980 = vmatprep.mubr.msk.bf16.mxu0 %vm297_vm1, %v2984_v11  ;;  %v13094_v53 = vadd.f32 %v9813_v1, %v9747_v27  ;;  %v8913_v11 = vld [vmem:[%s15930_s1 + $0xe] sm:$0x3]  ;;  %v1484_v23 = vpop.f32.mrf.mxu0  ;;  %v16189_v1 = vpack.c.bf16 %v12150_v3, %v12148_v38  ;;  %v16191_v38 = vpack.c.bf16 %v12560_v0, %v12515_v6  ;;  %v931_v3 = vld [vmem:[#allocation2 + $0x1b8] sm:$0xff] }
 0x199   :  { %v1872_v32 = vpop.f32.mrf.mxu1  ;;  %10657 = vmatprep.subr.msk.bf16.mxu1 %vm1331_vm0, %v8913_v11  ;;  %v4349_v45 = vsel %vm1331_vm0, %v8913_v11, 0  ;;  %v933_v11 = vld [vmem:[#allocation2 + $0x1c8] sm:$0xff] }
 0x19a   :  { %16187 = vst [vmem:[#allocation128_spill] sm:$0xff] %v13094_v53  ;;  %v13102_v5 = vadd.f32 %v1872_v32, %v1484_v23  ;;  %v9750_v15 = vpop.f32.mrf.mxu0  ;;  %v909_v23 = vld [vmem:[#allocation2 + $0xf8] sm:$0xff] }
 0x19b   :  { %v9816_v41 = vpop.f32.mrf.mxu1 }
 0x19c   :  { %16188 = vst [vmem:[#allocation129_spill] sm:$0xff] %v13102_v5  ;;  %v13115_v59 = vadd.f32 %v9816_v41, %v9750_v15  ;;  %v1497_v27 = vpop.f32.mrf.mxu0  ;;  %v2987_v41 = vpack.c.bf16 %v911_v8, %v909_v23  ;;  %v16192_v23 = vpack.c.bf16 %v12595_v30, %v12565_v31 }
 0x19e   :  { %10047 = vmatmul.mubr.msk.bf16.vlgmr.msra.gmra.mxu1 %vm297_vm1, %v16189_v1  ;;  %16190 = vst [vmem:[#allocation130_spill] sm:$0xff] %v13115_v59  ;;  %v2988_v59 = vpack.c.bf16 %v933_v11, %v931_v3 }
 0x19f   :  { %9981 = vmatmul.mubr.msk.bf16.vlgmr.msra.gmra.mxu0 %vm297_vm1, %v2985_v51  ;;  %v1885_v51 = vpop.f32.mrf.mxu1  ;;  %10050 = vmatprep.mubr.msk.bf16.mxu1 %vm297_vm1, %v16191_v38 }
 0x1a0   :  { %10111 = vmatpush3.bf16.msra.mxu0 %v3975_v2  ;;  %9984 = vmatprep.mubr.msk.bf16.mxu0 %vm297_vm1, %v2986_v47  ;;  %v13122_v32 = vadd.f32 %v1885_v51, %v1497_v27  ;;  %v3473_v2 = vpack.c.bf16 %v912_v28, %v12562_v18  ;;  %v9751_v47 = vpop.f32.mrf.mxu0  ;;  %v935_v18 = vld [vmem:[#allocation2 + $0x1d8] sm:$0xff]  ;;  %v937_v28 = vld [vmem:[#allocation2 + $0x1e8] sm:$0xff] }
 0x1a1   :  { %10177 = vmatpush3.bf16.msra.mxu1 %v4349_v45  ;;  %10658 = vmatprep.subr.msk.bf16.mxu0 %vm1331_vm0, %v13113_v58  ;;  %v9817_v15 = vpop.f32.mrf.mxu1  ;;  %v939_v27 = vld [vmem:[#allocation2 + $0x1f8] sm:$0xff]  ;;  %v941_v51 = vld [vmem:[#allocation2 + $0x208] sm:$0xff] }
 0x1a2   :  { %v13127_v1 = vadd.f32 %v9817_v15, %v9751_v47  ;;  %v1500_v5 = vpop.f32.mrf.mxu0  ;;  %v2990_v15 = vpack.c.bf16 %v941_v51, %v939_v27  ;;  %v965_v27 = vld [vmem:[#allocation2 + $0x2d8] sm:$0xff]  ;;  %v967_v51 = vld [vmem:[#allocation2 + $0x2e8] sm:$0xff] }
 0x1a3   :  { %v1888_v6 = vpop.f32.mrf.mxu1 }
 0x1a4   :  { %v13129_v0 = vadd.f32 %v1888_v6, %v1500_v5  ;;  %v9754_v38 = vpop.f32.mrf.mxu0 }
 0x1a5   :  { %v9820_v53 = vpop.f32.mrf.mxu1 }
 0x1a6   :  { %10051 = vmatmul.mubr.msk.bf16.gmra.mxu1 %vm297_vm1, %v3473_v2  ;;  %v13133_v45 = vadd.f32 %v9820_v53, %v9754_v38  ;;  %v1513_v8 = vpop.f32.mrf.mxu0  ;;  %v2989_v2 = vpack.c.bf16 %v937_v28, %v935_v18  ;;  %v946_v18 = vld [vmem:[#allocation2 + $0x230] sm:$0xff] }
 0x1a7   :  { %9985 = vmatmul.mubr.msk.bf16.gmra.mxu0 %vm297_vm1, %v2987_v41  ;;  %10054 = vmatprep.mubr.msk.bf16.mxu1 %vm297_vm1, %v16192_v23  ;;  %v1901_v5 = vpop.f32.mrf.mxu1  ;;  %v16193_v23 = vpack.c.bf16 %v12183_v50, %v12181_v48 }
 0x1a8   :  { %9988 = vmatprep.mubr.msk.bf16.mxu0 %vm297_vm1, %v2988_v59  ;;  %v13140_v3 = vadd.f32 %v1901_v5, %v1513_v8  ;;  %v9755_v11 = vpop.f32.mrf.mxu0  ;;  %v3476_v59 = vpack.c.bf16 %v12627_v42, %v12597_v60  ;;  %v943_v8 = vld [vmem:[#allocation2 + $0x218] sm:$0xff]  ;;  %v945_v60 = vld [vmem:[#allocation2 + $0x228] sm:$0xff] }
 0x1a9   :  { %v9821_v47 = vpop.f32.mrf.mxu1 }
 0x1aa   :  { %v13142_v53 = vadd.f32 %v9821_v47, %v9755_v11  ;;  %v1516_v41 = vpop.f32.mrf.mxu0  ;;  %v3477_v47 = vpack.c.bf16 %v946_v18, %v12629_v24  ;;  %v969_v18 = vld [vmem:[#allocation2 + $0x2f8] sm:$0xff] }
 0x1ab   :  { %v1904_v6 = vpop.f32.mrf.mxu1 }
 0x1ac   :  { %v13146_v31 = vadd.f32 %v1904_v6, %v1516_v41  ;;  %v9758_v30 = vpop.f32.mrf.mxu0  ;;  %v2992_v6 = vpack.c.bf16 %v967_v51, %v965_v27 }
 0x1ad   :  { %v9824_v38 = vpop.f32.mrf.mxu1 }
 0x1ae   :  { %10055 = vmatmul.mubr.msk.bf16.gmra.mxu1 %vm297_vm1, %v16193_v23  ;;  %v13153_v28 = vadd.f32 %v9824_v38, %v9758_v30  ;;  %v1529_v42 = vpop.f32.mrf.mxu0 }
 0x1af   :  { %9989 = vmatmul.mubr.msk.bf16.gmra.mxu0 %vm297_vm1, %v2989_v2  ;;  %10058 = vmatprep.mubr.msk.bf16.mxu1 %vm297_vm1, %v3476_v59  ;;  %v1917_v5 = vpop.f32.mrf.mxu1  ;;  %v2991_v2 = vpack.c.bf16 %v945_v60, %v943_v8  ;;  %v971_v8 = vld [vmem:[#allocation2 + $0x308] sm:$0xff] }
 0x1b0   :  { %16194 = vst [vmem:[#allocation131_spill] sm:$0xff] %v13153_v28  ;;  %9992 = vmatprep.mubr.msk.bf16.mxu0 %vm297_vm1, %v2990_v15  ;;  %v13157_v11 = vadd.f32 %v1917_v5, %v1529_v42  ;;  %v9759_v50 = vpop.f32.mrf.mxu0  ;;  %v3478_v15 = vpack.c.bf16 %v12660_v36, %v12631_v9  ;;  %v973_v36 = vld [vmem:[#allocation2 + $0x318] sm:$0xff]  ;;  %v975_v42 = vld [vmem:[#allocation2 + $0x328] sm:$0xff] }
 0x1b1   :  { %v9825_v48 = vpop.f32.mrf.mxu1 }
 0x1b2   :  { %v13160_v41 = vadd.f32 %v9825_v48, %v9759_v50  ;;  %v1532_v30 = vpop.f32.mrf.mxu0  ;;  %v2993_v50 = vpack.c.bf16 %v971_v8, %v969_v18  ;;  %v980_v18 = vld [vmem:[#allocation2 + $0x350] sm:$0xff] }
 0x1b3   :  { %v1920_v38 = vpop.f32.mrf.mxu1 }
 0x1b4   :  { %v13164_v59 = vadd.f32 %v1920_v38, %v1532_v30  ;;  %v9762_v23 = vpop.f32.mrf.mxu0 }
 0x1b5   :  { %v9828_v28 = vpop.f32.mrf.mxu1 }
 0x1b6   :  { %10059 = vmatmul.mubr.msk.bf16.gmra.mxu1 %vm297_vm1, %v3477_v47  ;;  %v13168_v24 = vadd.f32 %v9828_v28, %v9762_v23  ;;  %v1545_v60 = vpop.f32.mrf.mxu0  ;;  %v2994_v47 = vpack.c.bf16 %v975_v42, %v973_v36  ;;  %v3480_v28 = vpack.c.bf16 %v12690_v13, %v12662_v46  ;;  %v16195_v23 = vpack.c.bf16 %v12213_v62, %v12211_v55  ;;  %v979_v46 = vld [vmem:[#allocation2 + $0x348] sm:$0xff]  ;;  %v999_v36 = vld [vmem:[#allocation2 + $0x3f8] sm:$0xff] }
 0x1b7   :  { %9993 = vmatmul.mubr.msk.bf16.gmra.mxu0 %vm297_vm1, %v2991_v2  ;;  %10062 = vmatprep.mubr.msk.bf16.mxu1 %vm297_vm1, %v3478_v15  ;;  %v1933_v9 = vpop.f32.mrf.mxu1  ;;  %v1001_v42 = vld [vmem:[#allocation2 + $0x408] sm:$0xff] }
 0x1b8   :  { %9996 = vmatprep.mubr.msk.bf16.mxu0 %vm297_vm1, %v2992_v6  ;;  %v13172_v5 = vadd.f32 %v1933_v9, %v1545_v60  ;;  %v9763_v27 = vpop.f32.mrf.mxu0  ;;  %v977_v60 = vld [vmem:[#allocation2 + $0x338] sm:$0xff] }
 0x1b9   :  { %v9829_v51 = vpop.f32.mrf.mxu1 }
 0x1ba   :  { %v13174_v48 = vadd.f32 %v9829_v51, %v9763_v27  ;;  %v1548_v2 = vpop.f32.mrf.mxu0  ;;  %v3481_v51 = vpack.c.bf16 %v980_v18, %v12692_v49  ;;  %v1003_v18 = vld [vmem:[#allocation2 + $0x418] sm:$0xff] }
 0x1bb   :  { %v1936_v6 = vpop.f32.mrf.mxu1 }
 0x1bc   :  { %v13178_v30 = vadd.f32 %v1936_v6, %v1548_v2  ;;  %v9766_v15 = vpop.f32.mrf.mxu0  ;;  %v2996_v6 = vpack.c.bf16 %v1001_v42, %v999_v36 }
 0x1bd   :  { %v9832_v38 = vpop.f32.mrf.mxu1 }
 0x1be   :  { %10063 = vmatmul.mubr.msk.bf16.gmra.mxu1 %vm297_vm1, %v16195_v23  ;;  %v13185_v8 = vadd.f32 %v9832_v38, %v9766_v15  ;;  %v1561_v13 = vpop.f32.mrf.mxu0 }
 0x1bf   :  { %9997 = vmatmul.mubr.msk.bf16.gmra.mxu0 %vm297_vm1, %v2993_v50  ;;  %10066 = vmatprep.mubr.msk.bf16.mxu1 %vm297_vm1, %v3480_v28  ;;  %v1949_v9 = vpop.f32.mrf.mxu1  ;;  %v2995_v50 = vpack.c.bf16 %v979_v46, %v977_v60  ;;  %v1005_v60 = vld [vmem:[#allocation2 + $0x428] sm:$0xff] }
 0x1c0   :  { %16196 = vst [vmem:[#allocation132_spill] sm:$0xff] %v13185_v8  ;;  %10000 = vmatprep.mubr.msk.bf16.mxu0 %vm297_vm1, %v2994_v47  ;;  %v13189_v27 = vadd.f32 %v1949_v9, %v1561_v13  ;;  %v9767_v62 = vpop.f32.mrf.mxu0  ;;  %v3482_v47 = vpack.c.bf16 %v12723_v25, %v12694_v20  ;;  %v1007_v25 = vld [vmem:[#allocation2 + $0x438] sm:$0xff]  ;;  %v1009_v13 = vld [vmem:[#allocation2 + $0x448] sm:$0xff] }
 0x1c1   :  { %v9833_v55 = vpop.f32.mrf.mxu1 }
 0x1c2   :  { %v13192_v2 = vadd.f32 %v9833_v55, %v9767_v62  ;;  %v1564_v15 = vpop.f32.mrf.mxu0  ;;  %v2997_v62 = vpack.c.bf16 %v1005_v60, %v1003_v18  ;;  %v1014_v18 = vld [vmem:[#allocation2 + $0x470] sm:$0xff] }
 0x1c3   :  { %v1952_v38 = vpop.f32.mrf.mxu1 }
 0x1c4   :  { %v13196_v28 = vadd.f32 %v1952_v38, %v1564_v15  ;;  %v9770_v23 = vpop.f32.mrf.mxu0 }
 0x1c5   :  { %v9836_v8 = vpop.f32.mrf.mxu1 }
 0x1c6   :  { %10067 = vmatmul.mubr.msk.bf16.gmra.mxu1 %vm297_vm1, %v3481_v51  ;;  %v13200_v49 = vadd.f32 %v9836_v8, %v9770_v23  ;;  %v1577_v46 = vpop.f32.mrf.mxu0  ;;  %v2998_v51 = vpack.c.bf16 %v1009_v13, %v1007_v25  ;;  %v3484_v8 = vpack.c.bf16 %v12753_v12, %v12725_v22  ;;  %v16199_v23 = vpack.c.bf16 %v12309_v16, %v12307_v19  ;;  %v1013_v22 = vld [vmem:[#allocation2 + $0x468] sm:$0xff]  ;;  %v1033_v25 = vld [vmem:[#allocation2 + $0x518] sm:$0xff] }
 0x1c7   :  { %10001 = vmatmul.mubr.msk.bf16.gmra.mxu0 %vm297_vm1, %v2995_v50  ;;  %10070 = vmatprep.mubr.msk.bf16.mxu1 %vm297_vm1, %v3482_v47  ;;  %v1965_v20 = vpop.f32.mrf.mxu1  ;;  %v1035_v13 = vld [vmem:[#allocation2 + $0x528] sm:$0xff] }
 0x1c8   :  { %10004 = vmatprep.mubr.msk.bf16.mxu0 %vm297_vm1, %v2996_v6  ;;  %v13204_v9 = vadd.f32 %v1965_v20, %v1577_v46  ;;  %v9771_v36 = vpop.f32.mrf.mxu0  ;;  %v1011_v46 = vld [vmem:[#allocation2 + $0x458] sm:$0xff] }
 0x1c9   :  { %v9837_v42 = vpop.f32.mrf.mxu1 }
 0x1ca   :  { %v13206_v55 = vadd.f32 %v9837_v42, %v9771_v36  ;;  %v1580_v50 = vpop.f32.mrf.mxu0  ;;  %v3485_v42 = vpack.c.bf16 %v1014_v18, %v12755_v7  ;;  %v1037_v18 = vld [vmem:[#allocation2 + $0x538] sm:$0xff] }
 0x1cb   :  { %v1968_v6 = vpop.f32.mrf.mxu1 }
 0x1cc   :  { %16197 = vst [vmem:[#allocation133_spill] sm:$0xff] %v13206_v55  ;;  %v13210_v15 = vadd.f32 %v1968_v6, %v1580_v50  ;;  %v3000_v6 = vpack.c.bf16 %v1035_v13, %v1033_v25 }
 0x1cd   :  { %v9840_v38 = vpop.f32.mrf.mxu1 }
 0x1ce   :  { %16198 = vst [vmem:[#allocation134_spill] sm:$0xff] %v13210_v15  ;;  %10071 = vmatmul.mubr.msk.bf16.gmra.mxu1 %vm297_vm1, %v16199_v23 }
 0x1cf   :  { %v9774_v47 = vpop.f32.mrf.mxu0  ;;  %10005 = vmatmul.mubr.msk.bf16.gmra.mxu0 %vm297_vm1, %v2997_v62  ;;  %10074 = vmatprep.mubr.msk.bf16.mxu1 %vm297_vm1, %v3484_v8  ;;  %v1981_v20 = vpop.f32.mrf.mxu1  ;;  %v2999_v62 = vpack.c.bf16 %v1013_v22, %v1011_v46  ;;  %v1039_v46 = vld [vmem:[#allocation2 + $0x548] sm:$0xff] }
 0x1d0   :  { %v13217_v60 = vadd.f32 %v9840_v38, %v9774_v47  ;;  %10008 = vmatprep.mubr.msk.bf16.mxu0 %vm297_vm1, %v2998_v51  ;;  %v16203_v51 = vld [vmem:[#allocation95_spill] sm:$0xff] }
 0x1d1   :  { %v1593_v12 = vpop.f32.mrf.mxu0  ;;  %v9841_v16 = vpop.f32.mrf.mxu1  ;;  %v3486_v47 = vpack.c.bf16 %v16203_v51, %v12757_v56 }
 0x1d2   :  { %16200 = vst [vmem:[#allocation135_spill] sm:$0xff] %v13217_v60  ;;  %v13221_v36 = vadd.f32 %v1981_v20, %v1593_v12  ;;  %v1041_v12 = vld [vmem:[#allocation2 + $0x558] sm:$0xff]  ;;  %v1043_v20 = vld [vmem:[#allocation2 + $0x568] sm:$0xff] }
 0x1d3   :  { %v9775_v19 = vpop.f32.mrf.mxu0  ;;  %v1984_v23 = vpop.f32.mrf.mxu1 }
 0x1d4   :  { %16201 = vst [vmem:[#allocation136_spill] sm:$0xff] %v13221_v36  ;;  %v13224_v50 = vadd.f32 %v9841_v16, %v9775_v19  ;;  %v3001_v16 = vpack.c.bf16 %v1039_v46, %v1037_v18  ;;  %v1048_v18 = vld [vmem:[#allocation2 + $0x590] sm:$0xff] }
 0x1d5   :  { %v1596_v38 = vpop.f32.mrf.mxu0  ;;  %v16213_v46 = vld [vmem:[#allocation97_spill] sm:$0xff] }
 0x1d6   :  { %16202 = vst [vmem:[#allocation137_spill] sm:$0xff] %v13224_v50  ;;  %v13228_v8 = vadd.f32 %v1984_v23, %v1596_v38  ;;  %v9844_v15 = vpop.f32.mrf.mxu1  ;;  %10075 = vmatmul.mubr.msk.bf16.gmra.mxu1 %vm297_vm1, %v3485_v42  ;;  %v3002_v42 = vpack.c.bf16 %v1043_v20, %v1041_v12  ;;  %v1045_v12 = vld [vmem:[#allocation2 + $0x578] sm:$0xff] }
 0x1d7   :  { %v9778_v60 = vpop.f32.mrf.mxu0  ;;  %10009 = vmatmul.mubr.msk.bf16.gmra.mxu0 %vm297_vm1, %v2999_v62  ;;  %10078 = vmatprep.mubr.msk.bf16.mxu1 %vm297_vm1, %v3486_v47  ;;  %v16216_v36 = vld [vmem:[#allocation101_spill] sm:$0xff] }
 0x1d8   :  { %16204 = vst [vmem:[#allocation95_spill] sm:$0xff] %v13228_v8  ;;  %v13232_v7 = vadd.f32 %v9844_v15, %v9778_v60  ;;  %10012 = vmatprep.mubr.msk.bf16.mxu0 %vm297_vm1, %v3000_v6  ;;  %v1997_v56 = vpop.f32.mrf.mxu1  ;;  %v16208_v15 = vld [vmem:[#allocation96_spill] sm:$0xff] }
 0x1d9   :  { %v1609_v22 = vpop.f32.mrf.mxu0  ;;  %v3488_v60 = vpack.c.bf16 %v12819_v57, %v16208_v15  ;;  %v1047_v57 = vld [vmem:[#allocation2 + $0x588] sm:$0xff]  ;;  %v1067_v15 = vld [vmem:[#allocation2 + $0x638] sm:$0xff] }
 0x1da   :  { %16205 = vst [vmem:[#allocation138_spill] sm:$0xff] %v13232_v7  ;;  %v13236_v25 = vadd.f32 %v1997_v56, %v1609_v22  ;;  %v9845_v19 = vpop.f32.mrf.mxu1  ;;  %v16210_v7 = vld [vmem:[#allocation74_spill] sm:$0xff]  ;;  %v16211_v22 = vld [vmem:[#allocation71_spill] sm:$0xff] }
 0x1db   :  { %v9779_v13 = vpop.f32.mrf.mxu0  ;;  %v16212_v56 = vpack.c.bf16 %v16210_v7, %v16211_v22  ;;  %v16214_v7 = vld [vmem:[#allocation98_spill] sm:$0xff] }
 0x1dc   :  { %16206 = vst [vmem:[#allocation139_spill] sm:$0xff] %v13236_v25  ;;  %v13238_v62 = vadd.f32 %v9845_v19, %v9779_v13  ;;  %v2000_v51 = vpop.f32.mrf.mxu1  ;;  %v3489_v22 = vpack.c.bf16 %v1048_v18, %v16214_v7  ;;  %v16215_v25 = vld [vmem:[#allocation99_spill] sm:$0xff] }
 0x1dd   :  { %v1612_v6 = vpop.f32.mrf.mxu0 }
 0x1de   :  { %16207 = vst [vmem:[#allocation140_spill] sm:$0xff] %v13238_v62  ;;  %v13242_v38 = vadd.f32 %v2000_v51, %v1612_v6  ;;  %v9916_v23 = vpop.f32.mrf.mxu1  ;;  %10079 = vmatmul.mubr.msk.bf16.gmra.mxu1 %vm297_vm1, %v16212_v56  ;;  %v1069_v6 = vld [vmem:[#allocation2 + $0x648] sm:$0xff]  ;;  %v3003_v62 = vpack.c.bf16 %v1047_v57, %v1045_v12  ;;  %v1071_v12 = vld [vmem:[#allocation2 + $0x658] sm:$0xff] }
 0x1df   :  { %v9850_v47 = vpop.f32.mrf.mxu0  ;;  %10013 = vmatmul.mubr.msk.bf16.gmra.mxu0 %vm297_vm1, %v3001_v16  ;;  %10082 = vmatprep.mubr.msk.bf16.mxu1 %vm297_vm1, %v3488_v60  ;;  %v3490_v60 = vpack.c.bf16 %v12861_v29, %v16215_v25  ;;  %v1073_v29 = vld [vmem:[#allocation2 + $0x668] sm:$0xff] }
 0x1e0   :  { %16209 = vst [vmem:[#allocation96_spill] sm:$0xff] %v13242_v38  ;;  %v2436_v13 = vadd.f32 %v9850_v47, %v16213_v46  ;;  %10016 = vmatprep.mubr.msk.bf16.mxu0 %vm297_vm1, %v3002_v42  ;;  %v2665_v19 = vpop.f32.mrf.mxu1  ;;  %v3004_v46 = vpack.c.bf16 %v1069_v6, %v1067_v15  ;;  %v3005_v15 = vpack.c.bf16 %v1073_v29, %v1071_v12  ;;  %v1082_v29 = vld [vmem:[#allocation2 + $0x6b0] sm:$0xff] }
 0x1e1   :  { %v2179_v20 = vpop.f32.mrf.mxu0 }
 0x1e2   :  { %v2434_v16 = vadd.f32 %v2179_v20, %v12825_v35  ;;  %v13253_v51 = vadd.f32 %v9916_v23, %v2436_v13  ;;  %v9917_v38 = vpop.f32.mrf.mxu1 }
 0x1e3   :  { %v9851_v56 = vpop.f32.mrf.mxu0 }
 0x1e4   :  { %v2437_v47 = vadd.f32 %v9851_v56, %v12838_v21  ;;  %v13257_v42 = vadd.f32 %v2665_v19, %v2434_v16  ;;  %v2668_v50 = vpop.f32.mrf.mxu1  ;;  %v16218_v16 = vld [vmem:[#allocation102_spill] sm:$0xff] }
 0x1e5   :  { %v2182_v8 = vpop.f32.mrf.mxu0  ;;  %v3492_v7 = vpack.c.bf16 %v12899_v4, %v16218_v16  ;;  %v1079_v4 = vld [vmem:[#allocation2 + $0x698] sm:$0xff] }
 0x1e6   :  { %v2435_v55 = vadd.f32 %v2182_v8, %v16216_v36  ;;  %v13262_v35 = vadd.f32 %v9917_v38, %v2437_v47  ;;  %v9920_v18 = vpop.f32.mrf.mxu1  ;;  %10083 = vmatmul.mubr.msk.bf16.gmra.mxu1 %vm297_vm1, %v3489_v22  ;;  %v1075_v8 = vld [vmem:[#allocation2 + $0x678] sm:$0xff]  ;;  %v1077_v38 = vld [vmem:[#allocation2 + $0x688] sm:$0xff] }
 0x1e7   :  { %v9854_v23 = vpop.f32.mrf.mxu0  ;;  %10017 = vmatmul.mubr.msk.bf16.gmra.mxu0 %vm297_vm1, %v3003_v62  ;;  %10086 = vmatprep.mubr.msk.bf16.mxu1 %vm297_vm1, %v3490_v60  ;;  %v3006_v6 = vpack.c.bf16 %v1077_v38, %v1075_v8  ;;  %v16219_v47 = vld [vmem:[#allocation104_spill] sm:$0xff]  ;;  %v16226_v16 = vld [vmem:[#allocation106_spill] sm:$0xff] }
 0x1e8   :  { %v2440_v21 = vadd.f32 %v9854_v23, %v12856_v17  ;;  %v13267_v13 = vadd.f32 %v2668_v50, %v2435_v55  ;;  %10020 = vmatprep.mubr.msk.bf16.mxu0 %vm297_vm1, %v3004_v46  ;;  %v2681_v36 = vpop.f32.mrf.mxu1  ;;  %v16217_v17 = vld [vmem:[#allocation103_spill] sm:$0xff] }
 0x1e9   :  { %v2195_v25 = vpop.f32.mrf.mxu0  ;;  %v1081_v38 = vld [vmem:[#allocation2 + $0x6a8] sm:$0xff] }
 0x1ea   :  { %v2438_v57 = vadd.f32 %v2195_v25, %v12865_v43  ;;  %v13272_v62 = vadd.f32 %v9920_v18, %v2440_v21  ;;  %v9921_v19 = vpop.f32.mrf.mxu1  ;;  %v16221_v18 = vld [vmem:[#allocation81_spill] sm:$0xff]  ;;  %v16222_v21 = vld [vmem:[#allocation80_spill] sm:$0xff] }
 0x1eb   :  { %v9855_v20 = vpop.f32.mrf.mxu0  ;;  %v16223_v12 = vpack.c.bf16 %v16221_v18, %v16222_v21  ;;  %v16224_v25 = vld [vmem:[#allocation105_spill] sm:$0xff]  ;;  %v16227_v21 = vld [vmem:[#allocation107_spill] sm:$0xff] }
 0x1ec   :  { %v2441_v55 = vadd.f32 %v9855_v20, %v16217_v17  ;;  %v13275_v50 = vadd.f32 %v2681_v36, %v2438_v57  ;;  %v2684_v56 = vpop.f32.mrf.mxu1 }
 0x1ed   :  { %v2198_v22 = vpop.f32.mrf.mxu0 }
 0x1ee   :  { %v2439_v46 = vadd.f32 %v2198_v22, %v16219_v47  ;;  %v13280_v60 = vadd.f32 %v9921_v19, %v2441_v55  ;;  %v9924_v23 = vpop.f32.mrf.mxu1  ;;  %10087 = vmatmul.mubr.msk.bf16.gmra.mxu1 %vm297_vm1, %v16223_v12  ;;  %v1101_v19 = vld [vmem:[#allocation2 + $0x758] sm:$0xff]  ;;  %v3493_v22 = vpack.c.bf16 %v1082_v29, %v16226_v16 }
 0x1ef   :  { %v9858_v43 = vpop.f32.mrf.mxu0  ;;  %10021 = vmatmul.mubr.msk.bf16.gmra.mxu0 %vm297_vm1, %v3005_v15  ;;  %10090 = vmatprep.mubr.msk.bf16.mxu1 %vm297_vm1, %v3492_v7  ;;  %v1103_v15 = vld [vmem:[#allocation2 + $0x768] sm:$0xff]  ;;  %v3494_v7 = vpack.c.bf16 %v12941_v33, %v16227_v21 }
 0x1f0   :  { %16220 = vst [vmem:[#allocation74_spill] sm:$0xff] %v13280_v60  ;;  %v2444_v36 = vadd.f32 %v9858_v43, %v16224_v25  ;;  %v13288_v8 = vadd.f32 %v2684_v56, %v2439_v46  ;;  %10024 = vmatprep.mubr.msk.bf16.mxu0 %vm297_vm1, %v3006_v6  ;;  %v2697_v20 = vpop.f32.mrf.mxu1  ;;  %v3007_v56 = vpack.c.bf16 %v1081_v38, %v1079_v4  ;;  %v1105_v4 = vld [vmem:[#allocation2 + $0x778] sm:$0xff]  ;;  %v1107_v33 = vld [vmem:[#allocation2 + $0x788] sm:$0xff] }
 0x1f1   :  { %v2211_v57 = vpop.f32.mrf.mxu0  ;;  %v3008_v18 = vpack.c.bf16 %v1103_v15, %v1101_v19 }
 0x1f2   :  { %16225 = vst [vmem:[#allocation71_spill] sm:$0xff] %v13288_v8  ;;  %v2442_v17 = vadd.f32 %v2211_v57, %v12905_v44  ;;  %v13293_v55 = vadd.f32 %v9924_v23, %v2444_v36  ;;  %v9925_v43 = vpop.f32.mrf.mxu1  ;;  %v16228_v8 = vld [vmem:[#allocation109_spill] sm:$0xff] }
 0x1f3   :  { %v9859_v47 = vpop.f32.mrf.mxu0  ;;  %v1109_v57 = vld [vmem:[#allocation2 + $0x798] sm:$0xff] }
 0x1f4   :  { %v2445_v46 = vadd.f32 %v9859_v47, %v12918_v39  ;;  %v13297_v6 = vadd.f32 %v2697_v20, %v2442_v17  ;;  %v2700_v25 = vpop.f32.mrf.mxu1  ;;  %v1111_v20 = vld [vmem:[#allocation2 + $0x7a8] sm:$0xff] }
 0x1f5   :  { %v2214_v12 = vpop.f32.mrf.mxu0 }
 0x1f6   :  { %v2443_v60 = vadd.f32 %v2214_v12, %v16228_v8  ;;  %v13302_v44 = vadd.f32 %v9925_v43, %v2445_v46  ;;  %v9928_v29 = vpop.f32.mrf.mxu1  ;;  %10091 = vmatmul.mubr.msk.bf16.gmra.mxu1 %vm297_vm1, %v3493_v22  ;;  %v3009_v22 = vpack.c.bf16 %v1107_v33, %v1105_v4  ;;  %v3010_v43 = vpack.c.bf16 %v1111_v20, %v1109_v57  ;;  %v16235_v33 = vld [vmem:[#allocation113_spill] sm:$0xff]  ;;  %v1115_v57 = vld [vmem:[#allocation2 + $0x7c8] sm:$0xff] }
 0x1f7   :  { %v9862_v23 = vpop.f32.mrf.mxu0  ;;  %10025 = vmatmul.mubr.msk.bf16.gmra.mxu0 %vm297_vm1, %v3007_v56  ;;  %10094 = vmatprep.mubr.msk.bf16.mxu1 %vm297_vm1, %v3494_v7  ;;  %v16230_v56 = vld [vmem:[#allocation110_spill] sm:$0xff]  ;;  %v16231_v7 = vld [vmem:[#allocation112_spill] sm:$0xff] }
 0x1f8   :  { %v2448_v39 = vadd.f32 %v9862_v23, %v12936_v10  ;;  %v13307_v36 = vadd.f32 %v2700_v25, %v2443_v60  ;;  %10028 = vmatprep.mubr.msk.bf16.mxu0 %vm297_vm1, %v3008_v18  ;;  %v2713_v8 = vpop.f32.mrf.mxu1  ;;  %v16229_v10 = vld [vmem:[#allocation111_spill] sm:$0xff]  ;;  %v3496_v46 = vpack.c.bf16 %v12983_v61, %v16230_v56  ;;  %v1113_v61 = vld [vmem:[#allocation2 + $0x7b8] sm:$0xff]  ;;  %v1116_v20 = vld [vmem:[#allocation2 + $0x7d0] sm:$0xff] }
 0x1f9   :  { %v2227_v38 = vpop.f32.mrf.mxu0 }
 0x1fa   :  { %v2446_v19 = vadd.f32 %v2227_v38, %v12945_v34  ;;  %v13312_v15 = vadd.f32 %v9928_v29, %v2448_v39  ;;  %v9929_v16 = vpop.f32.mrf.mxu1  ;;  %v16232_v29 = vld [vmem:[#allocation86_spill] sm:$0xff]  ;;  %v16233_v39 = vld [vmem:[#allocation85_spill] sm:$0xff] }
 0x1fb   :  { %v9863_v17 = vpop.f32.mrf.mxu0  ;;  %v16234_v4 = vpack.c.bf16 %v16232_v29, %v16233_v39 }
 0x1fc   :  { %v2449_v60 = vadd.f32 %v9863_v17, %v16229_v10  ;;  %v13315_v47 = vadd.f32 %v2713_v8, %v2446_v19  ;;  %v2716_v21 = vpop.f32.mrf.mxu1 }
 0x1fd   :  { %v2230_v18 = vpop.f32.mrf.mxu0 }
 0x1fe   :  { %v2447_v12 = vadd.f32 %v2230_v18, %v16231_v7  ;;  %v13320_v25 = vadd.f32 %v9929_v16, %v2449_v60  ;;  %v9932_v23 = vpop.f32.mrf.mxu1  ;;  %10095 = vmatmul.mubr.msk.bf16.gmra.mxu1 %vm297_vm1, %v16234_v4  ;;  %v1135_v16 = vld [vmem:[#allocation2 + $0x878] sm:$0xff]  ;;  %v3011_v7 = vpack.c.bf16 %v1115_v57, %v1113_v61  ;;  %v16239_v4 = vld [vmem:[#allocation115_spill] sm:$0xff] }
 0x1ff   :  { %v9866_v34 = vpop.f32.mrf.mxu0  ;;  %10029 = vmatmul.mubr.msk.bf16.gmra.mxu0 %vm297_vm1, %v3009_v22  ;;  %10098 = vmatprep.mubr.msk.bf16.mxu1 %vm297_vm1, %v3496_v46  ;;  %v1137_v22 = vld [vmem:[#allocation2 + $0x888] sm:$0xff]  ;;  %v281_v57 = vld [vmem:[%s15931_s0 + $0x780] sm:$0xff] }
 0x200   :  { %v2452_v38 = vadd.f32 %v9866_v34, %v16235_v33  ;;  %v13328_v8 = vadd.f32 %v2716_v21, %v2447_v12  ;;  %10032 = vmatprep.mubr.msk.bf16.mxu0 %vm297_vm1, %v3010_v43  ;;  %v2729_v17 = vpop.f32.mrf.mxu1  ;;  %v16237_v21 = vld [vmem:[#allocation114_spill] sm:$0xff]  ;;  %v282_v43 = vld [vmem:[%s15931_s0 + $0x788] sm:$0xff]  ;;  %v16238_v34 = vld [vmem:[#allocation117_spill] sm:$0xff]  ;;  %v3012_v39 = vpack.c.bf16 %v1137_v22, %v1135_v16  ;;  %863 = vst.msk [vmem:[#allocation2 + $0x908] sm:$0xff] %vm297_vm1, %v281_v57 }
 0x201   :  { %v2243_v19 = vpop.f32.mrf.mxu0  ;;  %v3497_v12 = vpack.c.bf16 %v1116_v20, %v16237_v21  ;;  %v16240_v33 = vld [vmem:[#allocation120_spill] sm:$0xff]  ;;  %864 = vst.msk [vmem:[#allocation2 + $0x910] sm:$0xff] %vm297_vm1, %v282_v43  ;;  %v285_v22 = vld [vmem:[%s15931_s0 + $0x7a0] sm:$0xff] }
 0x202   :  { %16236 = vst [vmem:[#allocation97_spill] sm:$0xff] %v13328_v8  ;;  %v2450_v10 = vadd.f32 %v2243_v19, %v12989_v52  ;;  %v13333_v60 = vadd.f32 %v9932_v23, %v2452_v38  ;;  %v9933_v18 = vpop.f32.mrf.mxu1  ;;  %v3498_v8 = vpack.c.bf16 %v16240_v33, %v16239_v4  ;;  %v284_v52 = vld [vmem:[%s15931_s0 + $0x798] sm:$0xff]  ;;  %v286_v23 = vld [vmem:[%s15931_s0 + $0x7a8] sm:$0xff]  ;;  %v283_v20 = vld [vmem:[%s15931_s0 + $0x790] sm:$0xff] }
 0x203   :  { %v9867_v56 = vpop.f32.mrf.mxu0  ;;  %866 = vst.msk [vmem:[#allocation2 + $0x920] sm:$0xff] %vm297_vm1, %v284_v52  ;;  %868 = vst.msk [vmem:[#allocation2 + $0x930] sm:$0xff] %vm297_vm1, %v286_v23  ;;  %v16241_v19 = vld [vmem:[#allocation118_spill] sm:$0xff]  ;;  %v1141_v4 = vld [vmem:[#allocation2 + $0x8a8] sm:$0xff] }
 0x204   :  { %v2453_v46 = vadd.f32 %v9867_v56, %v16238_v34  ;;  %v13340_v29 = vadd.f32 %v2729_v17, %v2450_v10  ;;  %v2732_v61 = vpop.f32.mrf.mxu1  ;;  %865 = vst.msk [vmem:[#allocation2 + $0x918] sm:$0xff] %vm297_vm1, %v283_v20  ;;  %v287_v10 = vld [vmem:[%s15931_s0 + $0x7b0] sm:$0xff]  ;;  %867 = vst.msk [vmem:[#allocation2 + $0x928] sm:$0xff] %vm297_vm1, %v285_v22  ;;  %v1145_v23 = vld [vmem:[#allocation2 + $0x8c8] sm:$0xff] }
 0x205   :  { %v2246_v38 = vpop.f32.mrf.mxu0  ;;  %869 = vst.msk [vmem:[#allocation2 + $0x938] sm:$0xff] %vm297_vm1, %v287_v10 }
 0x206   :  { %v2451_v17 = vadd.f32 %v2246_v38, %v16241_v19  ;;  %v13360_v16 = vadd.f32 %v9933_v18, %v2453_v46  ;;  %v9936_v21 = vpop.f32.mrf.mxu1  ;;  %10099 = vmatmul.mubr.msk.bf16.gmra.mxu1 %vm297_vm1, %v3497_v12  ;;  %v16242_v18 = vld [vmem:[#allocation119_spill] sm:$0xff]  ;;  %v1139_v46 = vld [vmem:[#allocation2 + $0x898] sm:$0xff] }
 0x207   :  { %v9870_v56 = vpop.f32.mrf.mxu0  ;;  %10033 = vmatmul.mubr.msk.bf16.gmra.mxu0 %vm297_vm1, %v3011_v7  ;;  %10102 = vmatprep.mubr.msk.bf16.mxu1 %vm297_vm1, %v3498_v8  ;;  %v1143_v7 = vld [vmem:[#allocation2 + $0x8b8] sm:$0xff]  ;;  %v3013_v22 = vpack.c.bf16 %v1141_v4, %v1139_v46 }
 0x208   :  { %v2456_v43 = vadd.f32 %v9870_v56, %v16242_v18  ;;  %v13375_v34 = vadd.f32 %v2732_v61, %v2451_v17  ;;  %10036 = vmatprep.mubr.msk.bf16.mxu0 %vm297_vm1, %v3012_v39  ;;  %v2745_v52 = vpop.f32.mrf.mxu1  ;;  %v16243_v38 = vld [vmem:[#allocation122_spill] sm:$0xff]  ;;  %v16244_v39 = vld [vmem:[#allocation123_spill] sm:$0xff]  ;;  %v3014_v8 = vpack.c.bf16 %v1145_v23, %v1143_v7  ;;  %v16245_v56 = vld [vmem:[#allocation121_spill] sm:$0xff] }
 0x209   :  { %v2259_v33 = vpop.f32.mrf.mxu0  ;;  %v288_v61 = vld [vmem:[%s15931_s0 + $0x7b8] sm:$0xff]  ;;  %v3500_v18 = vpack.c.bf16 %v13067_v40, %v16245_v56  ;;  %v294_v40 = vld [vmem:[%s15931_s0 + $0x7e8] sm:$0xff] }
 0x20a   :  { %v2454_v12 = vadd.f32 %v2259_v33, %v16243_v38  ;;  %v13380_v57 = vadd.f32 %v9936_v21, %v2456_v43  ;;  %v9937_v19 = vpop.f32.mrf.mxu1  ;;  %v290_v21 = vld [vmem:[%s15931_s0 + $0x7c8] sm:$0xff]  ;;  %870 = vst.msk [vmem:[#allocation2 + $0x940] sm:$0xff] %vm297_vm1, %v288_v61  ;;  %v292_v4 = vld [vmem:[%s15931_s0 + $0x7d8] sm:$0xff]  ;;  %876 = vst.msk [vmem:[#allocation2 + $0x970] sm:$0xff] %vm297_vm1, %v294_v40 }
 0x20b   :  { %v9871_v20 = vpop.f32.mrf.mxu0  ;;  %872 = vst.msk [vmem:[#allocation2 + $0x950] sm:$0xff] %vm297_vm1, %v290_v21  ;;  %v16246_v33 = vld [vmem:[#allocation124_spill] sm:$0xff]  ;;  %v1147_v23 = vld [vmem:[#allocation2 + $0x8d8] sm:$0xff]  ;;  %874 = vst.msk [vmem:[#allocation2 + $0x960] sm:$0xff] %vm297_vm1, %v292_v4 }
 0x20c   :  { %v2457_v17 = vadd.f32 %v9871_v20, %v16244_v39  ;;  %v13386_v10 = vadd.f32 %v2745_v52, %v2454_v12  ;;  %v2748_v46 = vpop.f32.mrf.mxu1  ;;  %v16248_v20 = vld [vmem:[#allocation91_spill] sm:$0xff]  ;;  %v16249_v61 = vld [vmem:[#allocation90_spill] sm:$0xff]  ;;  %v16251_v56 = vld [vmem:[#allocation125_spill] sm:$0xff] }
 0x20d   :  { %v2262_v43 = vpop.f32.mrf.mxu0  ;;  %v16250_v39 = vpack.c.bf16 %v16248_v20, %v16249_v61  ;;  %v1149_v4 = vld [vmem:[#allocation2 + $0x8e8] sm:$0xff]  ;;  %v295_v40 = vld [vmem:[%s15931_s0 + $0x7f0] sm:$0xff] }
 0x20e   :  { %v2455_v52 = vadd.f32 %v2262_v43, %v16246_v33  ;;  %v13399_v7 = vadd.f32 %v9937_v19, %v2457_v17  ;;  %v9940_v12 = vpop.f32.mrf.mxu1  ;;  %v289_v19 = vld [vmem:[%s15931_s0 + $0x7c0] sm:$0xff]  ;;  %v291_v17 = vld [vmem:[%s15931_s0 + $0x7d0] sm:$0xff]  ;;  %877 = vst.msk [vmem:[#allocation2 + $0x978] sm:$0xff] %vm297_vm1, %v295_v40  ;;  %v3015_v61 = vpack.c.bf16 %v1149_v4, %v1147_v23 }
 0x20f   :  { %v9874_v38 = vpop.f32.mrf.mxu0  ;;  %10037 = vmatmul.mubr.msk.bf16.gmra.mxu0 %vm297_vm1, %v3013_v22  ;;  %10103 = vmatmul.mubr.msk.bf16.gmra.mxu1 %vm297_vm1, %v16250_v39  ;;  %v293_v22 = vld [vmem:[%s15931_s0 + $0x7e0] sm:$0xff]  ;;  %v1150_v33 = vld [vmem:[#allocation2 + $0x8f0] sm:$0xff]  ;;  %871 = vst.msk [vmem:[#allocation2 + $0x948] sm:$0xff] %vm297_vm1, %v289_v19  ;;  %873 = vst.msk [vmem:[#allocation2 + $0x958] sm:$0xff] %vm297_vm1, %v291_v17 }
 0x210   :  { %16247 = vst [vmem:[#allocation98_spill] sm:$0xff] %v13399_v7  ;;  %v2460_v21 = vadd.f32 %v9874_v38, %v16251_v56  ;;  %v13421_v43 = vadd.f32 %v2748_v46, %v2455_v52  ;;  %10040 = vmatprep.mubr.msk.bf16.mxu0 %vm297_vm1, %v3014_v8  ;;  %10106 = vmatprep.mubr.msk.bf16.mxu1 %vm297_vm1, %v3500_v18  ;;  %875 = vst.msk [vmem:[#allocation2 + $0x968] sm:$0xff] %vm297_vm1, %v293_v22  ;;  %v2761_v38 = vpop.f32.mrf.mxu1  ;;  %v13439_v22 = vld [vmem:[#allocation2 + $0x930] sm:$0xff] }
 0x211   :  { %v2275_v20 = vpop.f32.mrf.mxu0  ;;  %v3501_v39 = vpack.c.bf16 %v1150_v33, %v13069_v14  ;;  %16253 = vst [vmem:[#allocation101_spill] sm:$0xff] %v13439_v22  ;;  %v13441_v7 = vld [vmem:[#allocation2 + $0x940] sm:$0xff]  ;;  %v16257_v33 = vld [vmem:[#allocation8_spill] sm:$0xff] }
 0x212   :  { %16252 = vst [vmem:[#allocation99_spill] sm:$0xff] %v13421_v43  ;;  %v2458_v8 = vadd.f32 %v2275_v20, %v13071_v26  ;;  %v13433_v46 = vadd.f32 %v9940_v12, %v2460_v21  ;;  %v9941_v52 = vpop.f32.mrf.mxu1  ;;  %16254 = vst [vmem:[#allocation103_spill] sm:$0xff] %v13441_v7  ;;  %v16258_v20 = vld [vmem:[#allocation7_spill] sm:$0xff] }
 0x213   :  { %v9875_v18 = vpop.f32.mrf.mxu0 }
 0x214   :  { %v2461_v19 = vadd.f32 %v9875_v18, %v13078_v37  ;;  %v13437_v17 = vadd.f32 %v2761_v38, %v2458_v8  ;;  %v2764_v43 = vpop.f32.mrf.mxu1  ;;  %v16255_v37 = vld [vmem:[#allocation127_spill] sm:$0xff] }
 0x215   :  { %v2278_v56 = vpop.f32.mrf.mxu0 }
 0x216   :  { %v2459_v40 = vadd.f32 %v2278_v56, %v13080_v54  ;;  %v13444_v26 = vadd.f32 %v9941_v52, %v2461_v19  ;;  %v9944_v14 = vpop.f32.mrf.mxu1  ;;  %v16259_v19 = vld [vmem:[#allocation128_spill] sm:$0xff] }
 0x217   :  { %v9878_v23 = vpop.f32.mrf.mxu0  ;;  %10041 = vmatmul.mubr.msk.bf16.gmra.mxu0 %vm297_vm1, %v3015_v61  ;;  %10107 = vmatmul.mubr.msk.bf16.gmra.mxu1 %vm297_vm1, %v3501_v39 }
 0x218   :  { %v2464_v21 = vadd.f32 %v9878_v23, %v16255_v37  ;;  %v13451_v4 = vadd.f32 %v2764_v43, %v2459_v40  ;;  %10112 = vmatprep.mubr.msk.bf16.mxu0 %vm297_vm1, %v16257_v33  ;;  %10178 = vmatprep.mubr.msk.bf16.mxu1 %vm297_vm1, %v16258_v20  ;;  %v2777_v38 = vpop.f32.mrf.mxu1  ;;  %v4723_v23 = vsel %vm1331_vm0, %v13113_v58, 0  ;;  %v16260_v37 = vld [vmem:[#allocation129_spill] sm:$0xff] }
 0x219   :  { %v2291_v54 = vpop.f32.mrf.mxu0 }
 0x21a   :  { %16256 = vst [vmem:[#allocation102_spill] sm:$0xff] %v13451_v4  ;;  %v2462_v8 = vadd.f32 %v2291_v54, %v13092_v63  ;;  %v13458_v18 = vadd.f32 %v9944_v14, %v2464_v21  ;;  %v9945_v61 = vpop.f32.mrf.mxu1  ;;  %v16261_v4 = vld [vmem:[#allocation12_spill] sm:$0xff]  ;;  %v16262_v14 = vld [vmem:[#allocation11_spill] sm:$0xff]  ;;  %v16263_v21 = vld [vmem:[#allocation130_spill] sm:$0xff] }
 0x21b   :  { %v9879_v52 = vpop.f32.mrf.mxu0 }
 0x21c   :  { %v2465_v39 = vadd.f32 %v9879_v52, %v16259_v19  ;;  %v13461_v56 = vadd.f32 %v2777_v38, %v2462_v8  ;;  %v2780_v40 = vpop.f32.mrf.mxu1  ;;  %v16264_v8 = vld [vmem:[#allocation14_spill] sm:$0xff] }
 0x21d   :  { %v2294_v43 = vpop.f32.mrf.mxu0 }
 0x21e   :  { %v2463_v33 = vadd.f32 %v2294_v43, %v16260_v37  ;;  %v13466_v20 = vadd.f32 %v9945_v61, %v2465_v39  ;;  %v9948_v63 = vpop.f32.mrf.mxu1  ;;  %v16265_v61 = vld [vmem:[#allocation13_spill] sm:$0xff] }
 0x21f   :  { %v9882_v12 = vpop.f32.mrf.mxu0  ;;  %10113 = vmatmul.mubr.msk.bf16.vlgmr.msra.gmra.mxu0 %vm297_vm1, %v16261_v4  ;;  %10179 = vmatmul.mubr.msk.bf16.vlgmr.msra.gmra.mxu1 %vm297_vm1, %v16262_v14 }
 0x220   :  { %v2468_v54 = vadd.f32 %v9882_v12, %v16263_v21  ;;  %v13473_v38 = vadd.f32 %v2780_v40, %v2463_v33  ;;  %10243 = vmatpush3.bf16.msra.mxu0 %v4723_v23  ;;  %10116 = vmatprep.mubr.msk.bf16.mxu0 %vm297_vm1, %v16264_v8  ;;  %v2793_v52 = vpop.f32.mrf.mxu1  ;;  %v16266_v8 = vld [vmem:[#allocation17_spill] sm:$0xff] }
 0x221   :  { %v2307_v58 = vpop.f32.mrf.mxu0  ;;  %10182 = vmatprep.mubr.msk.bf16.mxu1 %vm297_vm1, %v16265_v61 }
 0x222   :  { %v2466_v19 = vadd.f32 %v2307_v58, %v13122_v32  ;;  %v13480_v4 = vadd.f32 %v9948_v63, %v2468_v54  ;;  %v9949_v43 = vpop.f32.mrf.mxu1  ;;  %v16267_v32 = vld [vmem:[#allocation16_spill] sm:$0xff]  ;;  %v16269_v58 = vld [vmem:[#allocation18_spill] sm:$0xff] }
 0x223   :  { %v9883_v39 = vpop.f32.mrf.mxu0 }
 0x224   :  { %v2469_v37 = vadd.f32 %v9883_v39, %v13127_v1  ;;  %v13483_v12 = vadd.f32 %v2793_v52, %v2466_v19  ;;  %v2796_v23 = vpop.f32.mrf.mxu1  ;;  %v16268_v1 = vld [vmem:[#allocation19_spill] sm:$0xff] }
 0x225   :  { %v2310_v40 = vpop.f32.mrf.mxu0 }
 0x226   :  { %v2467_v33 = vadd.f32 %v2310_v40, %v13129_v0  ;;  %v13486_v14 = vadd.f32 %v9949_v43, %v2469_v37  ;;  %v9952_v61 = vpop.f32.mrf.mxu1 }
 0x227   :  { %v9886_v21 = vpop.f32.mrf.mxu0  ;;  %10117 = vmatmul.mubr.msk.bf16.gmra.mxu0 %vm297_vm1, %v16266_v8  ;;  %10183 = vmatmul.mubr.msk.bf16.gmra.mxu1 %vm297_vm1, %v16267_v32 }
 0x228   :  { %v2472_v63 = vadd.f32 %v9886_v21, %v13133_v45  ;;  %v13493_v54 = vadd.f32 %v2796_v23, %v2467_v33  ;;  %10120 = vmatprep.mubr.msk.bf16.mxu0 %vm297_vm1, %v16268_v1  ;;  %10186 = vmatprep.mubr.msk.bf16.mxu1 %vm297_vm1, %v16269_v58  ;;  %v2809_v52 = vpop.f32.mrf.mxu1  ;;  %v16270_v1 = vld [vmem:[#allocation23_spill] sm:$0xff] }
 0x229   :  { %v2323_v0 = vpop.f32.mrf.mxu0 }
 0x22a   :  { %v2470_v19 = vadd.f32 %v2323_v0, %v13140_v3  ;;  %v13500_v39 = vadd.f32 %v9952_v61, %v2472_v63  ;;  %v9953_v37 = vpop.f32.mrf.mxu1  ;;  %v16271_v3 = vld [vmem:[#allocation22_spill] sm:$0xff]  ;;  %v16272_v61 = vld [vmem:[#allocation131_spill] sm:$0xff] }
 0x22b   :  { %v9887_v43 = vpop.f32.mrf.mxu0 }
 0x22c   :  { %v2473_v40 = vadd.f32 %v9887_v43, %v13142_v53  ;;  %v13503_v8 = vadd.f32 %v2809_v52, %v2470_v19  ;;  %v2812_v23 = vpop.f32.mrf.mxu1  ;;  %v16274_v53 = vld [vmem:[#allocation25_spill] sm:$0xff]  ;;  %v16275_v52 = vld [vmem:[#allocation24_spill] sm:$0xff] }
 0x22d   :  { %v2326_v45 = vpop.f32.mrf.mxu0 }
 0x22e   :  { %v2471_v33 = vadd.f32 %v2326_v45, %v13146_v31  ;;  %v13506_v21 = vadd.f32 %v9953_v37, %v2473_v40  ;;  %v9956_v58 = vpop.f32.mrf.mxu1 }
 0x22f   :  { %v9890_v32 = vpop.f32.mrf.mxu0  ;;  %10121 = vmatmul.mubr.msk.bf16.gmra.mxu0 %vm297_vm1, %v16270_v1  ;;  %10187 = vmatmul.mubr.msk.bf16.gmra.mxu1 %vm297_vm1, %v16271_v3 }
 0x230   :  { %v2476_v63 = vadd.f32 %v9890_v32, %v16272_v61  ;;  %v13513_v0 = vadd.f32 %v2812_v23, %v2471_v33  ;;  %10124 = vmatprep.mubr.msk.bf16.mxu0 %vm297_vm1, %v16274_v53  ;;  %10190 = vmatprep.mubr.msk.bf16.mxu1 %vm297_vm1, %v16275_v52  ;;  %v2825_v19 = vpop.f32.mrf.mxu1  ;;  %v16276_v52 = vld [vmem:[#allocation28_spill] sm:$0xff] }
 0x231   :  { %v2339_v31 = vpop.f32.mrf.mxu0 }
 0x232   :  { %16273 = vst [vmem:[#allocation104_spill] sm:$0xff] %v13513_v0  ;;  %v2474_v43 = vadd.f32 %v2339_v31, %v13157_v11  ;;  %v13520_v37 = vadd.f32 %v9956_v58, %v2476_v63  ;;  %v9957_v45 = vpop.f32.mrf.mxu1  ;;  %v16277_v11 = vld [vmem:[#allocation27_spill] sm:$0xff]  ;;  %v16279_v31 = vld [vmem:[#allocation29_spill] sm:$0xff] }
 0x233   :  { %v9891_v40 = vpop.f32.mrf.mxu0 }
 0x234   :  { %v2477_v1 = vadd.f32 %v9891_v40, %v13160_v41  ;;  %v13523_v3 = vadd.f32 %v2825_v19, %v2474_v43  ;;  %v2828_v33 = vpop.f32.mrf.mxu1  ;;  %v16278_v41 = vld [vmem:[#allocation30_spill] sm:$0xff] }
 0x235   :  { %v2342_v23 = vpop.f32.mrf.mxu0 }
 0x236   :  { %v2475_v32 = vadd.f32 %v2342_v23, %v13164_v59  ;;  %v13526_v61 = vadd.f32 %v9957_v45, %v2477_v1  ;;  %v9960_v0 = vpop.f32.mrf.mxu1 }
 0x237   :  { %v9894_v53 = vpop.f32.mrf.mxu0  ;;  %10125 = vmatmul.mubr.msk.bf16.gmra.mxu0 %vm297_vm1, %v16276_v52  ;;  %10191 = vmatmul.mubr.msk.bf16.gmra.mxu1 %vm297_vm1, %v16277_v11 }
 0x238   :  { %v2480_v58 = vadd.f32 %v9894_v53, %v13168_v24  ;;  %v13533_v63 = vadd.f32 %v2828_v33, %v2475_v32  ;;  %10128 = vmatprep.mubr.msk.bf16.mxu0 %vm297_vm1, %v16278_v41  ;;  %10194 = vmatprep.mubr.msk.bf16.mxu1 %vm297_vm1, %v16279_v31  ;;  %v2841_v19 = vpop.f32.mrf.mxu1  ;;  %v16280_v41 = vld [vmem:[#allocation34_spill] sm:$0xff] }
 0x239   :  { %v2355_v59 = vpop.f32.mrf.mxu0 }
 0x23a   :  { %v2478_v43 = vadd.f32 %v2355_v59, %v13172_v5  ;;  %v13540_v40 = vadd.f32 %v9960_v0, %v2480_v58  ;;  %v9961_v1 = vpop.f32.mrf.mxu1  ;;  %v16281_v5 = vld [vmem:[#allocation33_spill] sm:$0xff]  ;;  %v16282_v0 = vld [vmem:[#allocation132_spill] sm:$0xff] }
 0x23b   :  { %v9895_v45 = vpop.f32.mrf.mxu0 }
 0x23c   :  { %v2481_v23 = vadd.f32 %v9895_v45, %v13174_v48  ;;  %v13543_v52 = vadd.f32 %v2841_v19, %v2478_v43  ;;  %v2844_v33 = vpop.f32.mrf.mxu1  ;;  %v16284_v48 = vld [vmem:[#allocation36_spill] sm:$0xff]  ;;  %v16285_v19 = vld [vmem:[#allocation35_spill] sm:$0xff] }
 0x23d   :  { %v2358_v24 = vpop.f32.mrf.mxu0 }
 0x23e   :  { %v2479_v32 = vadd.f32 %v2358_v24, %v13178_v30  ;;  %v13546_v53 = vadd.f32 %v9961_v1, %v2481_v23  ;;  %v9964_v31 = vpop.f32.mrf.mxu1 }
 0x23f   :  { %v9898_v11 = vpop.f32.mrf.mxu0  ;;  %10129 = vmatmul.mubr.msk.bf16.gmra.mxu0 %vm297_vm1, %v16280_v41  ;;  %10195 = vmatmul.mubr.msk.bf16.gmra.mxu1 %vm297_vm1, %v16281_v5 }
 0x240   :  { %v2484_v58 = vadd.f32 %v9898_v11, %v16282_v0  ;;  %v13553_v59 = vadd.f32 %v2844_v33, %v2479_v32  ;;  %10132 = vmatprep.mubr.msk.bf16.mxu0 %vm297_vm1, %v16284_v48  ;;  %10198 = vmatprep.mubr.msk.bf16.mxu1 %vm297_vm1, %v16285_v19  ;;  %v2857_v43 = vpop.f32.mrf.mxu1  ;;  %v16287_v19 = vld [vmem:[#allocation39_spill] sm:$0xff] }
 0x241   :  { %v2371_v30 = vpop.f32.mrf.mxu0 }
 0x242   :  { %16283 = vst [vmem:[#allocation81_spill] sm:$0xff] %v13553_v59  ;;  %v2482_v45 = vadd.f32 %v2371_v30, %v13189_v27  ;;  %v13560_v1 = vadd.f32 %v9964_v31, %v2484_v58  ;;  %v9965_v24 = vpop.f32.mrf.mxu1  ;;  %v16288_v27 = vld [vmem:[#allocation38_spill] sm:$0xff]  ;;  %v16291_v30 = vld [vmem:[#allocation40_spill] sm:$0xff] }
 0x243   :  { %v9899_v23 = vpop.f32.mrf.mxu0 }
 0x244   :  { %v2485_v41 = vadd.f32 %v9899_v23, %v13192_v2  ;;  %v13563_v5 = vadd.f32 %v2857_v43, %v2482_v45  ;;  %v2860_v32 = vpop.f32.mrf.mxu1  ;;  %v16290_v2 = vld [vmem:[#allocation41_spill] sm:$0xff] }
 0x245   :  { %v2374_v33 = vpop.f32.mrf.mxu0 }
 0x246   :  { %v2483_v11 = vadd.f32 %v2374_v33, %v13196_v28  ;;  %v13566_v0 = vadd.f32 %v9965_v24, %v2485_v41  ;;  %v9968_v59 = vpop.f32.mrf.mxu1  ;;  %v16293_v33 = vld [vmem:[#allocation133_spill] sm:$0xff] }
 0x247   :  { %v9902_v48 = vpop.f32.mrf.mxu0  ;;  %10133 = vmatmul.mubr.msk.bf16.gmra.mxu0 %vm297_vm1, %v16287_v19  ;;  %10199 = vmatmul.mubr.msk.bf16.gmra.mxu1 %vm297_vm1, %v16288_v27 }
 0x248   :  { %16286 = vst [vmem:[#allocation80_spill] sm:$0xff] %v13566_v0  ;;  %v2488_v31 = vadd.f32 %v9902_v48, %v13200_v49  ;;  %v13573_v58 = vadd.f32 %v2860_v32, %v2483_v11  ;;  %10136 = vmatprep.mubr.msk.bf16.mxu0 %vm297_vm1, %v16290_v2  ;;  %10202 = vmatprep.mubr.msk.bf16.mxu1 %vm297_vm1, %v16291_v30  ;;  %v2873_v43 = vpop.f32.mrf.mxu1  ;;  %v16295_v11 = vld [vmem:[#allocation134_spill] sm:$0xff]  ;;  %v16297_v30 = vld [vmem:[#allocation45_spill] sm:$0xff] }
 0x249   :  { %v2387_v28 = vpop.f32.mrf.mxu0 }
 0x24a   :  { %16289 = vst [vmem:[#allocation105_spill] sm:$0xff] %v13573_v58  ;;  %v2486_v45 = vadd.f32 %v2387_v28, %v13204_v9  ;;  %v13580_v23 = vadd.f32 %v9968_v59, %v2488_v31  ;;  %v9969_v41 = vpop.f32.mrf.mxu1  ;;  %v16298_v9 = vld [vmem:[#allocation44_spill] sm:$0xff]  ;;  %v16299_v59 = vld [vmem:[#allocation135_spill] sm:$0xff] }
 0x24b   :  { %v9903_v24 = vpop.f32.mrf.mxu0 }
 0x24c   :  { %16292 = vst [vmem:[#allocation106_spill] sm:$0xff] %v13580_v23  ;;  %v2489_v19 = vadd.f32 %v9903_v24, %v16293_v33  ;;  %v13583_v27 = vadd.f32 %v2873_v43, %v2486_v45  ;;  %v2876_v32 = vpop.f32.mrf.mxu1  ;;  %v16301_v43 = vld [vmem:[#allocation47_spill] sm:$0xff]  ;;  %v16302_v45 = vld [vmem:[#allocation46_spill] sm:$0xff]  ;;  %v16303_v33 = vld [vmem:[#allocation136_spill] sm:$0xff] }
 0x24d   :  { %v2390_v49 = vpop.f32.mrf.mxu0 }
 0x24e   :  { %16294 = vst [vmem:[#allocation107_spill] sm:$0xff] %v13583_v27  ;;  %v2487_v48 = vadd.f32 %v2390_v49, %v16295_v11  ;;  %v13586_v2 = vadd.f32 %v9969_v41, %v2489_v19  ;;  %v9972_v0 = vpop.f32.mrf.mxu1 }
 0x24f   :  { %v9906_v58 = vpop.f32.mrf.mxu0  ;;  %10137 = vmatmul.mubr.msk.bf16.gmra.mxu0 %vm297_vm1, %v16297_v30  ;;  %10203 = vmatmul.mubr.msk.bf16.gmra.mxu1 %vm297_vm1, %v16298_v9 }
 0x250   :  { %16296 = vst [vmem:[#allocation109_spill] sm:$0xff] %v13586_v2  ;;  %v2492_v31 = vadd.f32 %v9906_v58, %v16299_v59  ;;  %v13593_v28 = vadd.f32 %v2876_v32, %v2487_v48  ;;  %10140 = vmatprep.mubr.msk.bf16.mxu0 %vm297_vm1, %v16301_v43  ;;  %10206 = vmatprep.mubr.msk.bf16.mxu1 %vm297_vm1, %v16302_v45  ;;  %v2889_v41 = vpop.f32.mrf.mxu1  ;;  %v16305_v2 = vld [vmem:[#allocation137_spill] sm:$0xff]  ;;  %v16307_v48 = vld [vmem:[#allocation95_spill] sm:$0xff]  ;;  %v16309_v45 = vld [vmem:[#allocation50_spill] sm:$0xff] }
 0x251   :  { %v2403_v24 = vpop.f32.mrf.mxu0 }
 0x252   :  { %16300 = vst [vmem:[#allocation111_spill] sm:$0xff] %v13593_v28  ;;  %v2490_v19 = vadd.f32 %v2403_v24, %v16303_v33  ;;  %v13600_v49 = vadd.f32 %v9972_v0, %v2492_v31  ;;  %v9973_v30 = vpop.f32.mrf.mxu1  ;;  %v16310_v24 = vld [vmem:[#allocation49_spill] sm:$0xff]  ;;  %v16311_v0 = vld [vmem:[#allocation138_spill] sm:$0xff] }
 0x253   :  { %v9907_v11 = vpop.f32.mrf.mxu0 }
 0x254   :  { %16304 = vst [vmem:[#allocation110_spill] sm:$0xff] %v13600_v49  ;;  %v2493_v9 = vadd.f32 %v9907_v11, %v16305_v2  ;;  %v13603_v27 = vadd.f32 %v2889_v41, %v2490_v19  ;;  %v2892_v32 = vpop.f32.mrf.mxu1  ;;  %v16313_v2 = vld [vmem:[#allocation53_spill] sm:$0xff]  ;;  %v16314_v41 = vld [vmem:[#allocation52_spill] sm:$0xff] }
 0x255   :  { %v2406_v58 = vpop.f32.mrf.mxu0 }
 0x256   :  { %16306 = vst [vmem:[#allocation112_spill] sm:$0xff] %v13603_v27  ;;  %v2491_v59 = vadd.f32 %v2406_v58, %v16307_v48  ;;  %v13606_v43 = vadd.f32 %v9973_v30, %v2493_v9  ;;  %v9976_v23 = vpop.f32.mrf.mxu1  ;;  %v16315_v30 = vld [vmem:[#allocation139_spill] sm:$0xff] }
 0x257   :  { %v9910_v28 = vpop.f32.mrf.mxu0  ;;  %10141 = vmatmul.mubr.msk.bf16.gmra.mxu0 %vm297_vm1, %v16309_v45  ;;  %10207 = vmatmul.mubr.msk.bf16.gmra.mxu1 %vm297_vm1, %v16310_v24 }
 0x258   :  { %16308 = vst [vmem:[#allocation86_spill] sm:$0xff] %v13606_v43  ;;  %v2496_v31 = vadd.f32 %v9910_v28, %v16311_v0  ;;  %v13613_v33 = vadd.f32 %v2892_v32, %v2491_v59  ;;  %10144 = vmatprep.mubr.msk.bf16.mxu0 %vm297_vm1, %v16313_v2  ;;  %10210 = vmatprep.mubr.msk.bf16.mxu1 %vm297_vm1, %v16314_v41  ;;  %v2905_v11 = vpop.f32.mrf.mxu1  ;;  %v16316_v43 = vld [vmem:[#allocation140_spill] sm:$0xff] }
 0x259   :  { %v2419_v19 = vpop.f32.mrf.mxu0  ;;  %v16317_v59 = vld [vmem:[#allocation96_spill] sm:$0xff] }
 0x25a   :  { %16312 = vst [vmem:[#allocation85_spill] sm:$0xff] %v13613_v33  ;;  %v2494_v9 = vadd.f32 %v2419_v19, %v16315_v30  ;;  %v13620_v58 = vadd.f32 %v9976_v23, %v2496_v31  ;;  %v9977_v45 = vpop.f32.mrf.mxu1  ;;  %v16318_v41 = vld [vmem:[#allocation56_spill] sm:$0xff]  ;;  %v16319_v19 = vld [vmem:[#allocation55_spill] sm:$0xff]  ;;  %v16320_v31 = vld [vmem:[#allocation58_spill] sm:$0xff] }
 0x25b   :  { %v9911_v48 = vpop.f32.mrf.mxu0 }
 0x25c   :  { %v2497_v24 = vadd.f32 %v9911_v48, %v16316_v43  ;;  %v13623_v27 = vadd.f32 %v2905_v11, %v2494_v9  ;;  %v2908_v32 = vpop.f32.mrf.mxu1  ;;  %v16321_v11 = vld [vmem:[#allocation57_spill] sm:$0xff] }
 0x25d   :  { %v2422_v28 = vpop.f32.mrf.mxu0 }
 0x25e   :  { %v2495_v0 = vadd.f32 %v2422_v28, %v16317_v59  ;;  %v13626_v2 = vadd.f32 %v9977_v45, %v2497_v24  ;;  %v10048_v49 = vpop.f32.mrf.mxu1 }
 0x25f   :  { %v9982_v33 = vpop.f32.mrf.mxu0  ;;  %10145 = vmatmul.mubr.msk.bf16.gmra.mxu0 %vm297_vm1, %v16318_v41  ;;  %10211 = vmatmul.mubr.msk.bf16.gmra.mxu1 %vm297_vm1, %v16319_v19 }
 0x260   :  { %v13632_v23 = vadd.f32 %v2908_v32, %v2495_v0  ;;  %v3408_v43 = vadd.f32 %v9982_v33, %v13253_v51  ;;  %10148 = vmatprep.mubr.msk.bf16.mxu0 %vm297_vm1, %v16320_v31  ;;  %10214 = vmatprep.mubr.msk.bf16.mxu1 %vm297_vm1, %v16321_v11  ;;  %v3637_v9 = vpop.f32.mrf.mxu1  ;;  %v16323_v31 = vld [vmem:[#allocation62_spill] sm:$0xff] }
 0x261   :  { %v3151_v30 = vpop.f32.mrf.mxu0 }
 0x262   :  { %v3406_v48 = vadd.f32 %v3151_v30, %v13257_v42  ;;  %v13640_v45 = vadd.f32 %v10048_v49, %v3408_v43  ;;  %v10049_v28 = vpop.f32.mrf.mxu1  ;;  %v16324_v42 = vld [vmem:[#allocation61_spill] sm:$0xff]  ;;  %v16327_v30 = vld [vmem:[#allocation63_spill] sm:$0xff] }
 0x263   :  { %v9983_v24 = vpop.f32.mrf.mxu0 }
 0x264   :  { %v3409_v59 = vadd.f32 %v9983_v24, %v13262_v35  ;;  %v13643_v32 = vadd.f32 %v3637_v9, %v3406_v48  ;;  %v3640_v51 = vpop.f32.mrf.mxu1  ;;  %v16326_v35 = vld [vmem:[#allocation64_spill] sm:$0xff] }
 0x265   :  { %v3154_v0 = vpop.f32.mrf.mxu0 }
 0x266   :  { %v3407_v33 = vadd.f32 %v3154_v0, %v13267_v13  ;;  %v13646_v41 = vadd.f32 %v10049_v28, %v3409_v59  ;;  %v10052_v11 = vpop.f32.mrf.mxu1  ;;  %v16328_v0 = vld [vmem:[#allocation74_spill] sm:$0xff] }
 0x267   :  { %v9986_v19 = vpop.f32.mrf.mxu0  ;;  %10149 = vmatmul.mubr.msk.bf16.gmra.mxu0 %vm297_vm1, %v16323_v31  ;;  %10215 = vmatmul.mubr.msk.bf16.gmra.mxu1 %vm297_vm1, %v16324_v42 }
 0x268   :  { %16322 = vst [vmem:[#allocation113_spill] sm:$0xff] %v13646_v41  ;;  %v3412_v49 = vadd.f32 %v9986_v19, %v13272_v62  ;;  %v13653_v43 = vadd.f32 %v3640_v51, %v3407_v33  ;;  %10152 = vmatprep.mubr.msk.bf16.mxu0 %vm297_vm1, %v16326_v35  ;;  %10218 = vmatprep.mubr.msk.bf16.mxu1 %vm297_vm1, %v16327_v30  ;;  %v3653_v9 = vpop.f32.mrf.mxu1  ;;  %v16329_v33 = vld [vmem:[#allocation71_spill] sm:$0xff] }
 0x269   :  { %v3167_v13 = vpop.f32.mrf.mxu0  ;;  %v16330_v30 = vld [vmem:[#allocation67_spill] sm:$0xff] }
 0x26a   :  { %16325 = vst [vmem:[#allocation114_spill] sm:$0xff] %v13653_v43  ;;  %v3410_v48 = vadd.f32 %v3167_v13, %v13275_v50  ;;  %v13660_v24 = vadd.f32 %v10052_v11, %v3412_v49  ;;  %v10053_v59 = vpop.f32.mrf.mxu1  ;;  %v16331_v50 = vld [vmem:[#allocation66_spill] sm:$0xff]  ;;  %v16332_v13 = vld [vmem:[#allocation69_spill] sm:$0xff] }
 0x26b   :  { %v9987_v28 = vpop.f32.mrf.mxu0 }
 0x26c   :  { %v3413_v31 = vadd.f32 %v9987_v28, %v16328_v0  ;;  %v13663_v42 = vadd.f32 %v3653_v9, %v3410_v48  ;;  %v3656_v51 = vpop.f32.mrf.mxu1  ;;  %v16333_v9 = vld [vmem:[#allocation68_spill] sm:$0xff] }
 0x26d   :  { %v3170_v62 = vpop.f32.mrf.mxu0 }
 0x26e   :  { %v3411_v19 = vadd.f32 %v3170_v62, %v16329_v33  ;;  %v13666_v35 = vadd.f32 %v10053_v59, %v3413_v31  ;;  %v10056_v41 = vpop.f32.mrf.mxu1 }
 0x26f   :  { %v9990_v43 = vpop.f32.mrf.mxu0  ;;  %10153 = vmatmul.mubr.msk.bf16.gmra.mxu0 %vm297_vm1, %v16330_v30  ;;  %10219 = vmatmul.mubr.msk.bf16.gmra.mxu1 %vm297_vm1, %v16331_v50 }
 0x270   :  { %v3416_v11 = vadd.f32 %v9990_v43, %v13293_v55  ;;  %v13673_v49 = vadd.f32 %v3656_v51, %v3411_v19  ;;  %10156 = vmatprep.mubr.msk.bf16.mxu0 %vm297_vm1, %v16332_v13  ;;  %10222 = vmatprep.mubr.msk.bf16.mxu1 %vm297_vm1, %v16333_v9  ;;  %v3669_v28 = vpop.f32.mrf.mxu1  ;;  %v16334_v13 = vld [vmem:[#allocation73_spill] sm:$0xff] }
 0x271   :  { %v3183_v48 = vpop.f32.mrf.mxu0 }
 0x272   :  { %v3414_v59 = vadd.f32 %v3183_v48, %v13297_v6  ;;  %v13680_v0 = vadd.f32 %v10056_v41, %v3416_v11  ;;  %v10057_v62 = vpop.f32.mrf.mxu1  ;;  %v16335_v6 = vld [vmem:[#allocation72_spill] sm:$0xff]  ;;  %v16338_v48 = vld [vmem:[#allocation75_spill] sm:$0xff] }
 0x273   :  { %v9991_v31 = vpop.f32.mrf.mxu0 }
 0x274   :  { %v3417_v33 = vadd.f32 %v9991_v31, %v13302_v44  ;;  %v13683_v30 = vadd.f32 %v3669_v28, %v3414_v59  ;;  %v3672_v43 = vpop.f32.mrf.mxu1  ;;  %v16337_v44 = vld [vmem:[#allocation76_spill] sm:$0xff] }
 0x275   :  { %v3186_v55 = vpop.f32.mrf.mxu0 }
 0x276   :  { %v3415_v51 = vadd.f32 %v3186_v55, %v13307_v36  ;;  %v13686_v19 = vadd.f32 %v10057_v62, %v3417_v33  ;;  %v10060_v9 = vpop.f32.mrf.mxu1 }
 0x277   :  { %v9994_v50 = vpop.f32.mrf.mxu0  ;;  %10157 = vmatmul.mubr.msk.bf16.gmra.mxu0 %vm297_vm1, %v16334_v13  ;;  %10223 = vmatmul.mubr.msk.bf16.gmra.mxu1 %vm297_vm1, %v16335_v6 }
 0x278   :  { %v3420_v41 = vadd.f32 %v9994_v50, %v13312_v15  ;;  %v13693_v11 = vadd.f32 %v3672_v43, %v3415_v51  ;;  %10160 = vmatprep.mubr.msk.bf16.mxu0 %vm297_vm1, %v16337_v44  ;;  %10226 = vmatprep.mubr.msk.bf16.mxu1 %vm297_vm1, %v16338_v48  ;;  %v3685_v28 = vpop.f32.mrf.mxu1  ;;  %v16340_v51 = vld [vmem:[#allocation97_spill] sm:$0xff]  ;;  %v16342_v48 = vld [vmem:[#allocation79_spill] sm:$0xff] }
 0x279   :  { %v3199_v36 = vpop.f32.mrf.mxu0 }
 0x27a   :  { %16336 = vst [vmem:[#allocation117_spill] sm:$0xff] %v13693_v11  ;;  %v3418_v59 = vadd.f32 %v3199_v36, %v13315_v47  ;;  %v13700_v31 = vadd.f32 %v10060_v9, %v3420_v41  ;;  %v10061_v33 = vpop.f32.mrf.mxu1  ;;  %v16343_v47 = vld [vmem:[#allocation78_spill] sm:$0xff] }
 0x27b   :  { %v9995_v62 = vpop.f32.mrf.mxu0  ;;  %v16346_v36 = vld [vmem:[#allocation82_spill] sm:$0xff] }
 0x27c   :  { %v3421_v55 = vadd.f32 %v9995_v62, %v13320_v25  ;;  %v13703_v13 = vadd.f32 %v3685_v28, %v3418_v59  ;;  %v3688_v43 = vpop.f32.mrf.mxu1  ;;  %v16345_v25 = vld [vmem:[#allocation83_spill] sm:$0xff] }
 0x27d   :  { %v3202_v15 = vpop.f32.mrf.mxu0  ;;  %v1151_v28 = vld [vmem:[#allocation2 + $0x900] sm:$0xff] }
 0x27e   :  { %16339 = vst [vmem:[#allocation115_spill] sm:$0xff] %v13703_v13  ;;  %v3419_v50 = vadd.f32 %v3202_v15, %v16340_v51  ;;  %v13706_v6 = vadd.f32 %v10061_v33, %v3421_v55  ;;  %v10064_v11 = vpop.f32.mrf.mxu1  ;;  %v13719_v33 = vld [vmem:[#allocation2 + $0x910] sm:$0xff]  ;;  %v1152_v55 = vld [vmem:[#allocation2 + $0x908] sm:$0xff]  ;;  %v1154_v15 = vld [vmem:[#allocation2 + $0x918] sm:$0xff] }
 0x27f   :  { %v9998_v44 = vpop.f32.mrf.mxu0  ;;  %10161 = vmatmul.mubr.msk.bf16.gmra.mxu0 %vm297_vm1, %v16342_v48  ;;  %10227 = vmatmul.mubr.msk.bf16.gmra.mxu1 %vm297_vm1, %v16343_v47  ;;  %16347 = vst [vmem:[#allocation119_spill] sm:$0xff] %v13719_v33  ;;  %v3956_v47 = vpack.c.bf16 %v13719_v33, %v1151_v28  ;;  %v13741_v28 = vld [vmem:[#allocation2 + $0x920] sm:$0xff] }
 0x280   :  { %16341 = vst [vmem:[#allocation120_spill] sm:$0xff] %v13706_v6  ;;  %v3424_v9 = vadd.f32 %v9998_v44, %v13333_v60  ;;  %v13713_v41 = vadd.f32 %v3688_v43, %v3419_v50  ;;  %10164 = vmatprep.mubr.msk.bf16.mxu0 %vm297_vm1, %v16345_v25  ;;  %10230 = vmatprep.mubr.msk.bf16.mxu1 %vm297_vm1, %v16346_v36  ;;  %v3701_v62 = vpop.f32.mrf.mxu1 }
 0x281   :  { %v3215_v59 = vpop.f32.mrf.mxu0  ;;  %v4330_v25 = vpack.c.bf16 %v1154_v15, %v1152_v55 }
 0x282   :  { %16344 = vst [vmem:[#allocation118_spill] sm:$0xff] %v13713_v41  ;;  %v3422_v51 = vadd.f32 %v3215_v59, %v13340_v29  ;;  %v13722_v48 = vadd.f32 %v10064_v11, %v3424_v9  ;;  %v10065_v43 = vpop.f32.mrf.mxu1  ;;  %v16350_v11 = vld [vmem:[#allocation88_spill] sm:$0xff]  ;;  %v16351_v59 = vld [vmem:[#allocation87_spill] sm:$0xff] }
 0x283   :  { %v9999_v60 = vpop.f32.mrf.mxu0 }
 0x284   :  { %v3425_v50 = vadd.f32 %v9999_v60, %v13360_v16  ;;  %v13725_v44 = vadd.f32 %v3701_v62, %v3422_v51  ;;  %v13728_v41 = vpop.f32.mrf.mxu1  ;;  %v1158_v62 = vld [vmem:[#allocation2 + $0x938] sm:$0xff]  ;;  %v13744_v51 = vld [vmem:[#allocation2 + $0x950] sm:$0xff]  ;;  %v1160_v60 = vld [vmem:[#allocation2 + $0x948] sm:$0xff] }
 0x285   :  { %v3218_v36 = vpop.f32.mrf.mxu0  ;;  %16348 = vst [vmem:[#allocation122_spill] sm:$0xff] %v13728_v41  ;;  %16352 = vst [vmem:[#allocation121_spill] sm:$0xff] %v13744_v51 }
 0x286   :  { %v13731_v6 = vadd.f32 %v3218_v36, %v13375_v34  ;;  %v13733_v13 = vadd.f32 %v10065_v43, %v3425_v50  ;;  %v10068_v9 = vpop.f32.mrf.mxu1  ;;  %v1156_v34 = vld [vmem:[#allocation2 + $0x928] sm:$0xff]  ;;  %v1162_v43 = vld [vmem:[#allocation2 + $0x958] sm:$0xff] }
 0x287   :  { %v10002_v29 = vpop.f32.mrf.mxu0  ;;  %10165 = vmatmul.mubr.msk.bf16.gmra.mxu0 %vm297_vm1, %v16350_v11  ;;  %10231 = vmatmul.mubr.msk.bf16.gmra.mxu1 %vm297_vm1, %v16351_v59  ;;  %v16353_v59 = vld [vmem:[#allocation98_spill] sm:$0xff]  ;;  %v4332_v33 = vpack.c.bf16 %v1162_v43, %v1160_v60 }
 0x288   :  { %16349 = vst [vmem:[#allocation123_spill] sm:$0xff] %v13731_v6  ;;  %v3428_v16 = vadd.f32 %v10002_v29, %v13380_v57  ;;  %10168 = vmatprep.mubr.msk.bf16.mxu0 %vm297_vm1, %v3956_v47  ;;  %10234 = vmatprep.mubr.msk.bf16.mxu1 %vm297_vm1, %v4330_v25  ;;  %v3717_v15 = vpop.f32.mrf.mxu1  ;;  %v3957_v47 = vpack.c.bf16 %v13439_v22, %v13741_v28  ;;  %v13769_v60 = vld [vmem:[#allocation2 + $0x960] sm:$0xff] }
 0x289   :  { %v3231_v55 = vpop.f32.mrf.mxu0  ;;  %v4331_v29 = vpack.c.bf16 %v1158_v62, %v1156_v34  ;;  %v3958_v6 = vpack.c.bf16 %v13744_v51, %v13441_v7 }
 0x28a   :  { %v3426_v50 = vadd.f32 %v3231_v55, %v13386_v10  ;;  %v13747_v36 = vadd.f32 %v10068_v9, %v3428_v16  ;;  %v10069_v57 = vpop.f32.mrf.mxu1  ;;  %v296_v10 = vld [vmem:[%s15931_s0 + $0x7f8] sm:$0xff]  ;;  %v16355_v55 = vld [vmem:[#allocation99_spill] sm:$0xff] }
 0x28b   :  { %v10003_v11 = vpop.f32.mrf.mxu0  ;;  %878 = vst.msk [vmem:[#allocation2 + $0x980] sm:$0xff] %vm297_vm1, %v296_v10 }
 0x28c   :  { %v3429_v25 = vadd.f32 %v10003_v11, %v16353_v59  ;;  %v13752_v41 = vadd.f32 %v3717_v15, %v3426_v50  ;;  %v13759_v16 = vpop.f32.mrf.mxu1  ;;  %v13773_v50 = vld [vmem:[#allocation2 + $0x970] sm:$0xff]  ;;  %v1164_v11 = vld [vmem:[#allocation2 + $0x968] sm:$0xff]  ;;  %v1166_v59 = vld [vmem:[#allocation2 + $0x978] sm:$0xff] }
 0x28d   :  { %v3234_v9 = vpop.f32.mrf.mxu0  ;;  %16354 = vst [vmem:[#allocation124_spill] sm:$0xff] %v13759_v16 }
 0x28e   :  { %v13763_v22 = vadd.f32 %v3234_v9, %v16355_v55  ;;  %v13765_v34 = vadd.f32 %v10069_v57, %v3429_v25  ;;  %v10072_v15 = vpop.f32.mrf.mxu1  ;;  %v3959_v55 = vpack.c.bf16 %v13773_v50, %v13769_v60 }
 0x28f   :  { %v10006_v62 = vpop.f32.mrf.mxu0  ;;  %10169 = vmatmul.mubr.msk.bf16.gmra.mxu0 %vm297_vm1, %v3957_v47  ;;  %10235 = vmatmul.mubr.msk.bf16.gmra.mxu1 %vm297_vm1, %v4331_v29 }
 0x290   :  { %16356 = vst [vmem:[#allocation91_spill] sm:$0xff] %v13763_v22  ;;  %v3432_v43 = vadd.f32 %v10006_v62, %v13433_v46  ;;  %10172 = vmatprep.mubr.msk.bf16.mxu0 %vm297_vm1, %v3958_v6  ;;  %10238 = vmatprep.mubr.msk.bf16.mxu1 %vm297_vm1, %v4332_v33  ;;  %v3733_v25 = vpop.f32.mrf.mxu1  ;;  %v4333_v46 = vpack.c.bf16 %v1166_v59, %v1164_v11  ;;  %v16358_v22 = vld [vmem:[#allocation102_spill] sm:$0xff]  ;;  %v16360_v11 = vld [vmem:[#allocation9_spill] sm:$0xff] }
 0x291   :  { %v3247_v57 = vpop.f32.mrf.mxu0 }
 0x292   :  { %v3430_v10 = vadd.f32 %v3247_v57, %v13437_v17  ;;  %v13777_v47 = vadd.f32 %v10072_v15, %v3432_v43  ;;  %v10073_v29 = vpop.f32.mrf.mxu1 }
 0x293   :  { %v10007_v9 = vpop.f32.mrf.mxu0 }
 0x294   :  { %v3433_v6 = vadd.f32 %v10007_v9, %v13444_v26  ;;  %v13782_v62 = vadd.f32 %v3733_v25, %v3430_v10  ;;  %v13784_v33 = vpop.f32.mrf.mxu1 }
 0x295   :  { %v3250_v16 = vpop.f32.mrf.mxu0  ;;  %16357 = vst [vmem:[#allocation90_spill] sm:$0xff] %v13784_v33  ;;  %v16397_v33 = vld [vmem:[#allocation48_spill] sm:$0xff] }
 0x296   :  { %v13787_v7 = vadd.f32 %v3250_v16, %v16358_v22  ;;  %v13789_v51 = vadd.f32 %v10073_v29, %v3433_v6  ;;  %v10076_v15 = vpop.f32.mrf.mxu1 }
 0x297   :  { %v10010_v17 = vpop.f32.mrf.mxu0  ;;  %10173 = vmatmul.mubr.msk.bf16.gmra.mxu0 %vm297_vm1, %v3959_v55  ;;  %10239 = vmatmul.mubr.msk.bf16.gmra.mxu1 %vm297_vm1, %v4333_v46 }
 0x298   :  { %16359 = vst [vmem:[#allocation125_spill] sm:$0xff] %v13787_v7  ;;  %v3436_v43 = vadd.f32 %v10010_v17, %v13458_v18  ;;  %10244 = vmatprep.mubr.msk.bf16.mxu0 %vm297_vm1, %v16360_v11  ;;  %v3749_v59 = vpop.f32.mrf.mxu1  ;;  %v16363_v17 = vld [vmem:[#allocation10_spill] sm:$0xff] }
 0x299   :  { %v3263_v26 = vpop.f32.mrf.mxu0 }
 0x29a   :  { %v3434_v57 = vadd.f32 %v3263_v26, %v13461_v56  ;;  %v13797_v25 = vadd.f32 %v10076_v15, %v3436_v43  ;;  %v10077_v16 = vpop.f32.mrf.mxu1  ;;  %v16364_v43 = vld [vmem:[#allocation15_spill] sm:$0xff] }
 0x29b   :  { %v10011_v22 = vpop.f32.mrf.mxu0 }
 0x29c   :  { %v3437_v10 = vadd.f32 %v10011_v22, %v13466_v20  ;;  %v13800_v9 = vadd.f32 %v3749_v59, %v3434_v57  ;;  %v13802_v55 = vpop.f32.mrf.mxu1 }
 0x29d   :  { %v3266_v29 = vpop.f32.mrf.mxu0  ;;  %16361 = vst [vmem:[#allocation127_spill] sm:$0xff] %v13802_v55 }
 0x29e   :  { %v13805_v18 = vadd.f32 %v3266_v29, %v13473_v38  ;;  %v13807_v46 = vadd.f32 %v10077_v16, %v3437_v10  ;;  %v10080_v56 = vpop.f32.mrf.mxu1 }
 0x29f   :  { %v10014_v6 = vpop.f32.mrf.mxu0  ;;  %10245 = vmatmul.mubr.msk.bf16.vlgmr.msra.gmra.mxu0 %vm297_vm1, %v16363_v17 }
 0x2a0   :  { %16362 = vst [vmem:[#allocation8_spill] sm:$0xff] %v13805_v18  ;;  %v3440_v15 = vadd.f32 %v10014_v6, %v13480_v4  ;;  %10248 = vmatprep.mubr.msk.bf16.mxu0 %vm297_vm1, %v16364_v43  ;;  %v3765_v11 = vpop.f32.mrf.mxu1  ;;  %v16367_v43 = vld [vmem:[#allocation92_spill] sm:$0xff]  ;;  %v16394_v18 = vld [vmem:[#allocation111_spill] sm:$0xff] }
 0x2a1   :  { %v3279_v20 = vpop.f32.mrf.mxu0 }
 0x2a2   :  { %v3438_v26 = vadd.f32 %v3279_v20, %v13483_v12  ;;  %v13815_v59 = vadd.f32 %v10080_v56, %v3440_v15  ;;  %v10081_v57 = vpop.f32.mrf.mxu1  ;;  %v16368_v15 = vld [vmem:[#allocation20_spill] sm:$0xff] }
 0x2a3   :  { %v10015_v38 = vpop.f32.mrf.mxu0 }
 0x2a4   :  { %v3441_v22 = vadd.f32 %v10015_v38, %v13486_v14  ;;  %v13818_v16 = vadd.f32 %v3765_v11, %v3438_v26  ;;  %v13820_v29 = vpop.f32.mrf.mxu1 }
 0x2a5   :  { %v3282_v10 = vpop.f32.mrf.mxu0  ;;  %16365 = vst [vmem:[#allocation7_spill] sm:$0xff] %v13820_v29  ;;  %v16370_v29 = vld [vmem:[#allocation104_spill] sm:$0xff] }
 0x2a6   :  { %v13823_v4 = vadd.f32 %v3282_v10, %v13493_v54  ;;  %v13825_v6 = vadd.f32 %v10081_v57, %v3441_v22  ;;  %v10084_v12 = vpop.f32.mrf.mxu1 }
 0x2a7   :  { %v10018_v17 = vpop.f32.mrf.mxu0  ;;  %10249 = vmatmul.mubr.msk.bf16.gmra.mxu0 %vm297_vm1, %v16367_v43 }
 0x2a8   :  { %16366 = vst [vmem:[#allocation128_spill] sm:$0xff] %v13823_v4  ;;  %v3444_v56 = vadd.f32 %v10018_v17, %v13500_v39  ;;  %10252 = vmatprep.mubr.msk.bf16.mxu0 %vm297_vm1, %v16368_v15  ;;  %v3781_v20 = vpop.f32.mrf.mxu1  ;;  %v16372_v4 = vld [vmem:[#allocation21_spill] sm:$0xff] }
 0x2a9   :  { %v3295_v14 = vpop.f32.mrf.mxu0 }
 0x2aa   :  { %v3442_v11 = vadd.f32 %v3295_v14, %v13503_v8  ;;  %v13833_v26 = vadd.f32 %v10084_v12, %v3444_v56  ;;  %v10085_v38 = vpop.f32.mrf.mxu1  ;;  %v16373_v56 = vld [vmem:[#allocation26_spill] sm:$0xff] }
 0x2ab   :  { %v10019_v54 = vpop.f32.mrf.mxu0 }
 0x2ac   :  { %v3445_v57 = vadd.f32 %v10019_v54, %v13506_v21  ;;  %v13836_v22 = vadd.f32 %v3781_v20, %v3442_v11  ;;  %v13838_v43 = vpop.f32.mrf.mxu1 }
 0x2ad   :  { %v3298_v10 = vpop.f32.mrf.mxu0  ;;  %16369 = vst [vmem:[#allocation129_spill] sm:$0xff] %v13838_v43  ;;  %v16376_v43 = vld [vmem:[#allocation93_spill] sm:$0xff] }
 0x2ae   :  { %v13841_v39 = vadd.f32 %v3298_v10, %v16370_v29  ;;  %v13843_v17 = vadd.f32 %v10085_v38, %v3445_v57  ;;  %v10088_v8 = vpop.f32.mrf.mxu1 }
 0x2af   :  { %v10022_v15 = vpop.f32.mrf.mxu0  ;;  %10253 = vmatmul.mubr.msk.bf16.gmra.mxu0 %vm297_vm1, %v16372_v4 }
 0x2b0   :  { %16371 = vst [vmem:[#allocation12_spill] sm:$0xff] %v13841_v39  ;;  %v3448_v12 = vadd.f32 %v10022_v15, %v13520_v37  ;;  %10256 = vmatprep.mubr.msk.bf16.mxu0 %vm297_vm1, %v16373_v56  ;;  %v3797_v14 = vpop.f32.mrf.mxu1  ;;  %v16381_v39 = vld [vmem:[#allocation32_spill] sm:$0xff] }
 0x2b1   :  { %v3311_v21 = vpop.f32.mrf.mxu0 }
 0x2b2   :  { %v3446_v20 = vadd.f32 %v3311_v21, %v13523_v3  ;;  %v13851_v11 = vadd.f32 %v10088_v8, %v3448_v12  ;;  %v10089_v54 = vpop.f32.mrf.mxu1  ;;  %v10661_v8 = vld [vmem:[%s15932_s3 + $0x8] sm:$0xff]  }
 0x2b3   :  { %v10023_v29 = vpop.f32.mrf.mxu0  ;;  %v16377_v12 = vld [vmem:[#allocation31_spill] sm:$0xff]  ;;  %10308 = vmatprep.subr.bf16.mxu1 %v10661_v8 }
 0x2b4   :  { %v3449_v38 = vadd.f32 %v10023_v29, %v13526_v61  ;;  %v13854_v57 = vadd.f32 %v3797_v14, %v3446_v20  ;;  %v13856_v4 = vpop.f32.mrf.mxu1  ;;  %10309 = vmatpush3.bf16.msra.mxu1 %v10661_v8  ;;  %v16382_v8 = vld [vmem:[#allocation37_spill] sm:$0xff] }
 0x2b5   :  { %v3314_v10 = vpop.f32.mrf.mxu0  ;;  %16374 = vst [vmem:[#allocation11_spill] sm:$0xff] %v13856_v4 }
 0x2b6   :  { %v13859_v37 = vadd.f32 %v3314_v10, %v13533_v63  ;;  %v13861_v15 = vadd.f32 %v10089_v54, %v3449_v38  ;;  %v10092_v3 = vpop.f32.mrf.mxu1 }
 0x2b7   :  { %v10026_v56 = vpop.f32.mrf.mxu0  ;;  %10257 = vmatmul.mubr.msk.bf16.gmra.mxu0 %vm297_vm1, %v16376_v43 }
 0x2b8   :  { %16375 = vst [vmem:[#allocation130_spill] sm:$0xff] %v13859_v37  ;;  %v3452_v61 = vadd.f32 %v10026_v56, %v13540_v40  ;;  %10260 = vmatprep.mubr.msk.bf16.mxu0 %vm297_vm1, %v16377_v12  ;;  %v3813_v14 = vpop.f32.mrf.mxu1  ;;  %v16379_v40 = vld [vmem:[#allocation81_spill] sm:$0xff] }
 0x2b9   :  { %v3327_v21 = vpop.f32.mrf.mxu0 }
 0x2ba   :  { %v3450_v63 = vadd.f32 %v3327_v21, %v13543_v52  ;;  %v13872_v20 = vadd.f32 %v10092_v3, %v3452_v61  ;;  %v10093_v43 = vpop.f32.mrf.mxu1 }
 0x2bb   :  { %v10027_v29 = vpop.f32.mrf.mxu0 }
 0x2bc   :  { %v3453_v54 = vadd.f32 %v10027_v29, %v13546_v53  ;;  %v13875_v38 = vadd.f32 %v3813_v14, %v3450_v63  ;;  %v13877_v4 = vpop.f32.mrf.mxu1 }
 0x2bd   :  { %v3330_v10 = vpop.f32.mrf.mxu0  ;;  %16378 = vst [vmem:[#allocation14_spill] sm:$0xff] %v13877_v4  ;;  %v16385_v4 = vld [vmem:[#allocation105_spill] sm:$0xff] }
 0x2be   :  { %v13880_v56 = vadd.f32 %v3330_v10, %v16379_v40  ;;  %v13882_v12 = vadd.f32 %v10093_v43, %v3453_v54  ;;  %v10096_v52 = vpop.f32.mrf.mxu1  ;;  %v16383_v43 = vld [vmem:[#allocation80_spill] sm:$0xff] }
 0x2bf   :  { %v10030_v37 = vpop.f32.mrf.mxu0  ;;  %10261 = vmatmul.mubr.msk.bf16.gmra.mxu0 %vm297_vm1, %v16381_v39 }
 0x2c0   :  { %16380 = vst [vmem:[#allocation13_spill] sm:$0xff] %v13880_v56  ;;  %v3456_v3 = vadd.f32 %v10030_v37, %v13560_v1  ;;  %10264 = vmatprep.mubr.msk.bf16.mxu0 %vm297_vm1, %v16382_v8  ;;  %v3829_v61 = vpop.f32.mrf.mxu1  ;;  %v16387_v56 = vld [vmem:[#allocation94_spill] sm:$0xff] }
 0x2c1   :  { %v3343_v53 = vpop.f32.mrf.mxu0 }
 0x2c2   :  { %v3454_v21 = vadd.f32 %v3343_v53, %v13563_v5  ;;  %v13890_v14 = vadd.f32 %v10096_v52, %v3456_v3  ;;  %v10097_v29 = vpop.f32.mrf.mxu1  ;;  %v16388_v52 = vld [vmem:[#allocation106_spill] sm:$0xff]  ;;  %v16389_v53 = vld [vmem:[#allocation43_spill] sm:$0xff] }
 0x2c3   :  { %v10031_v63 = vpop.f32.mrf.mxu0 }
 0x2c4   :  { %v3457_v54 = vadd.f32 %v10031_v63, %v16383_v43  ;;  %v13893_v10 = vadd.f32 %v3829_v61, %v3454_v21  ;;  %v13895_v39 = vpop.f32.mrf.mxu1  ;;  %v16390_v63 = vld [vmem:[#allocation107_spill] sm:$0xff] }
 0x2c5   :  { %v3346_v40 = vpop.f32.mrf.mxu0  ;;  %16384 = vst [vmem:[#allocation17_spill] sm:$0xff] %v13895_v39 }
 0x2c6   :  { %v13898_v1 = vadd.f32 %v3346_v40, %v16385_v4  ;;  %v13900_v37 = vadd.f32 %v10097_v29, %v3457_v54  ;;  %v10100_v5 = vpop.f32.mrf.mxu1  ;;  %v16391_v29 = vld [vmem:[#allocation109_spill] sm:$0xff] }
 0x2c7   :  { %v10034_v8 = vpop.f32.mrf.mxu0  ;;  %10265 = vmatmul.mubr.msk.bf16.gmra.mxu0 %vm297_vm1, %v16387_v56 }
 0x2c8   :  { %16386 = vst [vmem:[#allocation16_spill] sm:$0xff] %v13898_v1  ;;  %v3460_v3 = vadd.f32 %v10034_v8, %v16388_v52  ;;  %10268 = vmatprep.mubr.msk.bf16.mxu0 %vm297_vm1, %v16389_v53  ;;  %v3845_v21 = vpop.f32.mrf.mxu1 }
 0x2c9   :  { %v3359_v61 = vpop.f32.mrf.mxu0 }
 0x2ca   :  { %v3458_v43 = vadd.f32 %v3359_v61, %v16390_v63  ;;  %v13908_v39 = vadd.f32 %v10100_v5, %v3460_v3  ;;  %v10101_v40 = vpop.f32.mrf.mxu1  ;;  %v16398_v3 = vld [vmem:[#allocation110_spill] sm:$0xff] }
 0x2cb   :  { %v10035_v4 = vpop.f32.mrf.mxu0  ;;  %v16399_v63 = vld [vmem:[#allocation54_spill] sm:$0xff] }
 0x2cc   :  { %v3461_v54 = vadd.f32 %v10035_v4, %v16391_v29  ;;  %v13911_v1 = vadd.f32 %v3845_v21, %v3458_v43  ;;  %v13913_v56 = vpop.f32.mrf.mxu1  ;;  %v16400_v4 = vld [vmem:[#allocation112_spill] sm:$0xff] }
 0x2cd   :  { %v3362_v55 = vpop.f32.mrf.mxu0  ;;  %16393 = vst [vmem:[#allocation18_spill] sm:$0xff] %v13913_v56 }
 0x2ce   :  { %16392 = vst [vmem:[#allocation19_spill] sm:$0xff] %v13911_v1  ;;  %v13916_v8 = vadd.f32 %v3362_v55, %v16394_v18  ;;  %v13918_v52 = vadd.f32 %v10101_v40, %v3461_v54  ;;  %v16401_v40 = vld [vmem:[#allocation86_spill] sm:$0xff]  ;;  %v16404_v1 = vld [vmem:[#allocation100_spill] sm:$0xff] }
 0x2cf   :  { %v10038_v53 = vpop.f32.mrf.mxu0  ;;  %10269 = vmatmul.mubr.msk.bf16.gmra.mxu0 %vm297_vm1, %v16397_v33  ;;  %v10104_v5 = vpop.f32.mrf.mxu1 }
 0x2d0   :  { %16395 = vst [vmem:[#allocation23_spill] sm:$0xff] %v13916_v8  ;;  %16396 = vst [vmem:[#allocation22_spill] sm:$0xff] %v13918_v52  ;;  %v3464_v61 = vadd.f32 %v10038_v53, %v16398_v3  ;;  %10272 = vmatprep.mubr.msk.bf16.mxu0 %vm297_vm1, %v16399_v63  ;;  %v16403_v52 = vld [vmem:[#allocation85_spill] sm:$0xff] }
 0x2d1   :  { %v3375_v21 = vpop.f32.mrf.mxu0  ;;  %v3861_v43 = vpop.f32.mrf.mxu1 }
 0x2d2   :  { %v3462_v29 = vadd.f32 %v3375_v21, %v16400_v4  ;;  %v13926_v56 = vadd.f32 %v10104_v5, %v3464_v61  ;;  %v16405_v21 = vld [vmem:[#allocation59_spill] sm:$0xff] }
 0x2d3   :  { %v10039_v55 = vpop.f32.mrf.mxu0  ;;  %v10105_v18 = vpop.f32.mrf.mxu1 }
 0x2d4   :  { %v3465_v54 = vadd.f32 %v10039_v55, %v16401_v40  ;;  %v13929_v8 = vadd.f32 %v3861_v43, %v3462_v29 }
 0x2d5   :  { %v3378_v7 = vpop.f32.mrf.mxu0  ;;  %v13931_v33 = vpop.f32.mrf.mxu1 }
 0x2d6   :  { %16402 = vst [vmem:[#allocation131_spill] sm:$0xff] %v13931_v33  ;;  %v13934_v53 = vadd.f32 %v3378_v7, %v16403_v52  ;;  %v13936_v3 = vadd.f32 %v10105_v18, %v3465_v54  ;;  %v16407_v33 = vld [vmem:[#allocation60_spill] sm:$0xff] }
 0x2d7   :  { %v10042_v63 = vpop.f32.mrf.mxu0  ;;  %10273 = vmatmul.mubr.msk.bf16.gmra.mxu0 %vm297_vm1, %v16404_v1  ;;  %v10108_v5 = vpop.f32.mrf.mxu1 }
 0x2d8   :  { %v3468_v61 = vadd.f32 %v10042_v63, %v13620_v58  ;;  %10276 = vmatprep.mubr.msk.bf16.mxu0 %vm297_vm1, %v16405_v21 }
 0x2d9   :  { %v3391_v43 = vpop.f32.mrf.mxu0  ;;  %v3877_v4 = vpop.f32.mrf.mxu1 }
 0x2da   :  { %v3466_v29 = vadd.f32 %v3391_v43, %v13623_v27  ;;  %v13944_v55 = vadd.f32 %v10108_v5, %v3468_v61 }
 0x2db   :  { %v10043_v7 = vpop.f32.mrf.mxu0  ;;  %v10109_v52 = vpop.f32.mrf.mxu1 }
 0x2dc   :  { %v3469_v18 = vadd.f32 %v10043_v7, %v13626_v2  ;;  %v13947_v40 = vadd.f32 %v3877_v4, %v3466_v29  ;;  %v16408_v2 = vld [vmem:[#allocation65_spill] sm:$0xff] }
 0x2dd   :  { %v3394_v54 = vpop.f32.mrf.mxu0  ;;  %v13949_v1 = vpop.f32.mrf.mxu1  ;;  %v16409_v7 = vld [vmem:[#allocation113_spill] sm:$0xff] }
 0x2de   :  { %v13952_v58 = vadd.f32 %v3394_v54, %v13632_v23  ;;  %v13954_v63 = vadd.f32 %v10109_v52, %v3469_v18 }
 0x2df   :  { %v10114_v21 = vpop.f32.mrf.mxu0  ;;  %10277 = vmatmul.mubr.msk.bf16.gmra.mxu0 %vm297_vm1, %v16407_v33  ;;  %v13958_v27 = vpop.f32.mrf.mxu1 }
 0x2e0   :  { %16406 = vst [vmem:[#allocation25_spill] sm:$0xff] %v13954_v63  ;;  %v13961_v5 = vadd.f32 %v10114_v21, %v13640_v45  ;;  %10280 = vmatprep.mubr.msk.bf16.mxu0 %vm297_vm1, %v16408_v2  ;;  %v16411_v45 = vld [vmem:[#allocation114_spill] sm:$0xff]  ;;  %v16412_v2 = vld [vmem:[#allocation108_spill] sm:$0xff] }
 0x2e1   :  { %v4011_v61 = vpop.f32.mrf.mxu0  ;;  %v13965_v43 = vpop.f32.mrf.mxu1 }
 0x2e2   :  { %v13968_v23 = vadd.f32 %v4011_v61, %v13643_v32  ;;  %v16413_v61 = vld [vmem:[#allocation70_spill] sm:$0xff] }
 0x2e3   :  { %v10115_v4 = vpop.f32.mrf.mxu0  ;;  %v13970_v29 = vpop.f32.mrf.mxu1 }
 0x2e4   :  { %v13973_v52 = vadd.f32 %v10115_v4, %v16409_v7 }
 0x2e5   :  { %v4014_v33 = vpop.f32.mrf.mxu0  ;;  %v13975_v18 = vpop.f32.mrf.mxu1 }
 0x2e6   :  { %16410 = vst [vmem:[#allocation24_spill] sm:$0xff] %v13975_v18  ;;  %v13978_v54 = vadd.f32 %v4014_v33, %v16411_v45  ;;  %v16416_v33 = vmov 0.0  }
 0x2e7   :  { %v10118_v21 = vpop.f32.mrf.mxu0  ;;  %10281 = vmatmul.mubr.msk.bf16.gmra.mxu0 %vm297_vm1, %v16412_v2  ;;  %v13982_v63 = vpop.f32.mrf.mxu1  ;;  %5489 = vst.msk [vmem:[#allocation3 + $0x68] sm:$0xff] %vm5475_vm2, %v16416_v33  ;;  %5476 = vst.msk [vmem:[#allocation3] sm:$0xff] %vm5475_vm2, %v16416_v33 }
 0x2e8   :  { %v13985_v32 = vadd.f32 %v10118_v21, %v13660_v24  ;;  %10284 = vmatprep.mubr.msk.bf16.mxu0 %vm297_vm1, %v16413_v61  ;;  %5477 = vst.msk [vmem:[#allocation3 + $0x8] sm:$0xff] %vm5475_vm2, %v16416_v33  ;;  %5478 = vst.msk [vmem:[#allocation3 + $0x10] sm:$0xff] %vm5475_vm2, %v16416_v33 }
 0x2e9   :  { %v4027_v4 = vpop.f32.mrf.mxu0  ;;  %v13989_v7 = vpop.f32.mrf.mxu1  ;;  %5479 = vst.msk [vmem:[#allocation3 + $0x18] sm:$0xff] %vm5475_vm2, %v16416_v33  ;;  %5480 = vst.msk [vmem:[#allocation3 + $0x20] sm:$0xff] %vm5475_vm2, %v16416_v33 }
 0x2ea   :  { %16414 = vst [vmem:[#allocation28_spill] sm:$0xff] %v13989_v7  ;;  %v13992_v18 = vadd.f32 %v4027_v4, %v13663_v42  ;;  %5481 = vst.msk [vmem:[#allocation3 + $0x28] sm:$0xff] %vm5475_vm2, %v16416_v33  ;;  %v16420_v4 = vld [vmem:[#allocation42_spill] sm:$0xff] }
 0x2eb   :  { %5482 = vst.msk [vmem:[#allocation3 + $0x30] sm:$0xff] %vm5475_vm2, %v16416_v33  ;;  %5483 = vst.msk [vmem:[#allocation3 + $0x38] sm:$0xff] %vm5475_vm2, %v16416_v33  ;;  %v10119_v24 = vpop.f32.mrf.mxu0  ;;  %v14159_v45 = vpop.f32.mrf.mxu1 }
 0x2ec   :  { %16415 = vst [vmem:[#allocation27_spill] sm:$0xff] %v13992_v18  ;;  %5484 = vst.msk [vmem:[#allocation3 + $0x40] sm:$0xff] %vm5475_vm2, %v16416_v33  ;;  %v14157_v42 = vadd.f32 %v10119_v24, %v13666_v35 }
 0x2ed   :  { %5486 = vst.msk [vmem:[#allocation3 + $0x50] sm:$0xff] %vm5475_vm2, %v16416_v33  ;;  %5487 = vst.msk [vmem:[#allocation3 + $0x58] sm:$0xff] %vm5475_vm2, %v16416_v33  ;;  %v4030_v21 = vpop.f32.mrf.mxu0  ;;  %v14169_v18 = vpop.f32.mrf.mxu1 }
 0x2ee   :  { %5488 = vst.msk [vmem:[#allocation3 + $0x60] sm:$0xff] %vm5475_vm2, %v16416_v33  ;;  %5490 = vst.msk [vmem:[#allocation3 + $0x70] sm:$0xff] %vm5475_vm2, %v16416_v33  ;;  %v14162_v2 = vadd.f32 %v4030_v21, %v13673_v49 }
 0x2ef   :  { %5491 = vst.msk [vmem:[#allocation3 + $0x78] sm:$0xff] %vm5475_vm2, %v16416_v33  ;;  %5492 = vst.msk [vmem:[#allocation3 + $0x80] sm:$0xff] %vm5475_vm2, %v16416_v33  ;;  %v10122_v61 = vpop.f32.mrf.mxu0  ;;  %10285 = vmatmul.mubr.msk.bf16.gmra.mxu0 %vm297_vm1, %v16420_v4  ;;  %v16425_v4 = vld [vmem:[#allocation117_spill] sm:$0xff] }
 0x2f0   :  { %5493 = vst.msk [vmem:[#allocation3 + $0x88] sm:$0xff] %vm5475_vm2, %v16416_v33  ;;  %5494 = vst.msk [vmem:[#allocation3 + $0x90] sm:$0xff] %vm5475_vm2, %v16416_v33  ;;  %v14167_v7 = vadd.f32 %v10122_v61, %v13680_v0  ;;  %v16427_v61 = vld [vmem:[#allocation116_spill] sm:$0xff] }
 0x2f1   :  { %5496 = vst.msk [vmem:[#allocation3 + $0xa0] sm:$0xff] %vm5475_vm2, %v16416_v33  ;;  %5497 = vst.msk [vmem:[#allocation3 + $0xa8] sm:$0xff] %vm5475_vm2, %v16416_v33  ;;  %v4043_v35 = vpop.f32.mrf.mxu0 }
 0x2f2   :  { %5498 = vst.msk [vmem:[#allocation3 + $0xb0] sm:$0xff] %vm5475_vm2, %v16416_v33  ;;  %5499 = vst.msk [vmem:[#allocation3 + $0xb8] sm:$0xff] %vm5475_vm2, %v16416_v33  ;;  %v14174_v24 = vadd.f32 %v4043_v35, %v13683_v30  ;;  %v16430_v30 = vld [vmem:[#allocation84_spill] sm:$0xff] }
 0x2f3   :  { %5500 = vst.msk [vmem:[#allocation3 + $0xc0] sm:$0xff] %vm5475_vm2, %v16416_v33  ;;  %5501 = vst.msk [vmem:[#allocation3 + $0xc8] sm:$0xff] %vm5475_vm2, %v16416_v33 }
 0x2f4   :  { %5502 = vst.msk [vmem:[#allocation3 + $0xd0] sm:$0xff] %vm5475_vm2, %v16416_v33  ;;  %5503 = vst.msk [vmem:[#allocation3 + $0xd8] sm:$0xff] %vm5475_vm2, %v16416_v33 }
 0x2f5   :  { %5504 = vst.msk [vmem:[#allocation3 + $0xe0] sm:$0xff] %vm5475_vm2, %v16416_v33  ;;  %5506 = vst.msk [vmem:[#allocation3 + $0xf0] sm:$0xff] %vm5475_vm2, %v16416_v33 }
 0x2f6   :  { %5507 = vst.msk [vmem:[#allocation3 + $0xf8] sm:$0xff] %vm5475_vm2, %v16416_v33  ;;  %5508 = vst.msk [vmem:[#allocation3 + $0x100] sm:$0xff] %vm5475_vm2, %v16416_v33 }
 0x2f7   :  { %5509 = vst.msk [vmem:[#allocation3 + $0x108] sm:$0xff] %vm5475_vm2, %v16416_v33  ;;  %5510 = vst.msk [vmem:[#allocation3 + $0x110] sm:$0xff] %vm5475_vm2, %v16416_v33 }
 0x2f8   :  { %5511 = vst.msk [vmem:[#allocation3 + $0x118] sm:$0xff] %vm5475_vm2, %v16416_v33  ;;  %5512 = vst.msk [vmem:[#allocation3 + $0x120] sm:$0xff] %vm5475_vm2, %v16416_v33 }
 0x2f9   :  { %5513 = vst.msk [vmem:[#allocation3 + $0x128] sm:$0xff] %vm5475_vm2, %v16416_v33  ;;  %5514 = vst.msk [vmem:[#allocation3 + $0x130] sm:$0xff] %vm5475_vm2, %v16416_v33 }
 0x2fa   :  { %5516 = vst.msk [vmem:[#allocation3 + $0x140] sm:$0xff] %vm5475_vm2, %v16416_v33  ;;  %5517 = vst.msk [vmem:[#allocation3 + $0x148] sm:$0xff] %vm5475_vm2, %v16416_v33 }
 0x2fb   :  { %5518 = vst.msk [vmem:[#allocation3 + $0x150] sm:$0xff] %vm5475_vm2, %v16416_v33  ;;  %5519 = vst.msk [vmem:[#allocation3 + $0x158] sm:$0xff] %vm5475_vm2, %v16416_v33 }
 0x2fc   :  { %5520 = vst.msk [vmem:[#allocation3 + $0x160] sm:$0xff] %vm5475_vm2, %v16416_v33  ;;  %5521 = vst.msk [vmem:[#allocation3 + $0x168] sm:$0xff] %vm5475_vm2, %v16416_v33 }
 0x2fd   :  { %5522 = vst.msk [vmem:[#allocation3 + $0x170] sm:$0xff] %vm5475_vm2, %v16416_v33  ;;  %5523 = vst.msk [vmem:[#allocation3 + $0x178] sm:$0xff] %vm5475_vm2, %v16416_v33 }
 0x2fe   :  { %5524 = vst.msk [vmem:[#allocation3 + $0x180] sm:$0xff] %vm5475_vm2, %v16416_v33  ;;  %5526 = vst.msk [vmem:[#allocation3 + $0x190] sm:$0xff] %vm5475_vm2, %v16416_v33 }
 0x2ff   :  { %5527 = vst.msk [vmem:[#allocation3 + $0x198] sm:$0xff] %vm5475_vm2, %v16416_v33  ;;  %5528 = vst.msk [vmem:[#allocation3 + $0x1a0] sm:$0xff] %vm5475_vm2, %v16416_v33 }
 0x300   :  { %5529 = vst.msk [vmem:[#allocation3 + $0x1a8] sm:$0xff] %vm5475_vm2, %v16416_v33  ;;  %5530 = vst.msk [vmem:[#allocation3 + $0x1b0] sm:$0xff] %vm5475_vm2, %v16416_v33 }
 0x301   :  { %5531 = vst.msk [vmem:[#allocation3 + $0x1b8] sm:$0xff] %vm5475_vm2, %v16416_v33  ;;  %5532 = vst.msk [vmem:[#allocation3 + $0x1c0] sm:$0xff] %vm5475_vm2, %v16416_v33 }
 0x302   :  { %5533 = vst.msk [vmem:[#allocation3 + $0x1c8] sm:$0xff] %vm5475_vm2, %v16416_v33  ;;  %5534 = vst.msk [vmem:[#allocation3 + $0x1d0] sm:$0xff] %vm5475_vm2, %v16416_v33 }
 0x303   :  { %5536 = vst.msk [vmem:[#allocation3 + $0x1e0] sm:$0xff] %vm5475_vm2, %v16416_v33  ;;  %5537 = vst.msk [vmem:[#allocation3 + $0x1e8] sm:$0xff] %vm5475_vm2, %v16416_v33 }
 0x304   :  { %5538 = vst.msk [vmem:[#allocation3 + $0x1f0] sm:$0xff] %vm5475_vm2, %v16416_v33  ;;  %5539 = vst.msk [vmem:[#allocation3 + $0x1f8] sm:$0xff] %vm5475_vm2, %v16416_v33 }
 0x305   :  { %5540 = vst.msk [vmem:[#allocation3 + $0x200] sm:$0xff] %vm5475_vm2, %v16416_v33  ;;  %5541 = vst.msk [vmem:[#allocation3 + $0x208] sm:$0xff] %vm5475_vm2, %v16416_v33 }
 0x306   :  { %5542 = vst.msk [vmem:[#allocation3 + $0x210] sm:$0xff] %vm5475_vm2, %v16416_v33  ;;  %5543 = vst.msk [vmem:[#allocation3 + $0x218] sm:$0xff] %vm5475_vm2, %v16416_v33 }
 0x307   :  { %5544 = vst.msk [vmem:[#allocation3 + $0x220] sm:$0xff] %vm5475_vm2, %v16416_v33  ;;  %5546 = vst.msk [vmem:[#allocation3 + $0x230] sm:$0xff] %vm5475_vm2, %v16416_v33 }
 0x308   :  { %5547 = vst.msk [vmem:[#allocation3 + $0x238] sm:$0xff] %vm5475_vm2, %v16416_v33  ;;  %5548 = vst.msk [vmem:[#allocation3 + $0x240] sm:$0xff] %vm5475_vm2, %v16416_v33 }
 0x309   :  { %5549 = vst.msk [vmem:[#allocation3 + $0x248] sm:$0xff] %vm5475_vm2, %v16416_v33  ;;  %5550 = vst.msk [vmem:[#allocation3 + $0x250] sm:$0xff] %vm5475_vm2, %v16416_v33 }
 0x30a   :  { %5551 = vst.msk [vmem:[#allocation3 + $0x258] sm:$0xff] %vm5475_vm2, %v16416_v33  ;;  %5552 = vst.msk [vmem:[#allocation3 + $0x260] sm:$0xff] %vm5475_vm2, %v16416_v33 }
 0x30b   :  { %5553 = vst.msk [vmem:[#allocation3 + $0x268] sm:$0xff] %vm5475_vm2, %v16416_v33  ;;  %5554 = vst.msk [vmem:[#allocation3 + $0x270] sm:$0xff] %vm5475_vm2, %v16416_v33 }
 0x30c   :  { %5556 = vst.msk [vmem:[#allocation3 + $0x280] sm:$0xff] %vm5475_vm2, %v16416_v33  ;;  %5557 = vst.msk [vmem:[#allocation3 + $0x288] sm:$0xff] %vm5475_vm2, %v16416_v33 }
 0x30d   :  { %5558 = vst.msk [vmem:[#allocation3 + $0x290] sm:$0xff] %vm5475_vm2, %v16416_v33  ;;  %5559 = vst.msk [vmem:[#allocation3 + $0x298] sm:$0xff] %vm5475_vm2, %v16416_v33 }
 0x30e   :  { %5560 = vst.msk [vmem:[#allocation3 + $0x2a0] sm:$0xff] %vm5475_vm2, %v16416_v33  ;;  %5561 = vst.msk [vmem:[#allocation3 + $0x2a8] sm:$0xff] %vm5475_vm2, %v16416_v33 }
 0x30f   :  { %5562 = vst.msk [vmem:[#allocation3 + $0x2b0] sm:$0xff] %vm5475_vm2, %v16416_v33  ;;  %5563 = vst.msk [vmem:[#allocation3 + $0x2b8] sm:$0xff] %vm5475_vm2, %v16416_v33 }
 0x310   :  { %5564 = vst.msk [vmem:[#allocation3 + $0x2c0] sm:$0xff] %vm5475_vm2, %v16416_v33  ;;  %16417 = vst [vmem:[#allocation30_spill] sm:$0xff] %v14157_v42  ;;  %v16422_v33 = vld [vmem:[#allocation77_spill] sm:$0xff]  ;;  %v14176_v42 = vpop.f32.mrf.mxu1 }
 0x311   :  { %16418 = vst [vmem:[#allocation29_spill] sm:$0xff] %v14159_v45  ;;  %16419 = vst [vmem:[#allocation34_spill] sm:$0xff] %v14162_v2  ;;  %10288 = vmatprep.mubr.msk.bf16.mxu0 %vm297_vm1, %v16422_v33  ;;  %v10123_v45 = vpop.f32.mrf.mxu0 }
 0x312   :  { %16421 = vst [vmem:[#allocation33_spill] sm:$0xff] %v14167_v7  ;;  %16423 = vst [vmem:[#allocation132_spill] sm:$0xff] %v14174_v24  ;;  %v14179_v49 = vadd.f32 %v10123_v45, %v13686_v19  ;;  %10289 = vmatmul.mubr.msk.bf16.gmra.mxu0 %vm297_vm1, %v16427_v61  ;;  %v14186_v7 = vpop.f32.mrf.mxu1  ;;  %v16431_v24 = vld [vmem:[#allocation115_spill] sm:$0xff]  ;;  %v16434_v61 = vld [vmem:[#allocation120_spill] sm:$0xff] }
 0x313   :  { %v4046_v21 = vpop.f32.mrf.mxu0  ;;  %16428 = vst [vmem:[#allocation39_spill] sm:$0xff] %v14186_v7  ;;  %10292 = vmatprep.mubr.msk.bf16.mxu0 %vm297_vm1, %v16430_v30 }
 0x314   :  { %16424 = vst [vmem:[#allocation36_spill] sm:$0xff] %v14179_v49  ;;  %v14182_v2 = vadd.f32 %v4046_v21, %v16425_v4  ;;  %v10662_v21 = vld [vmem:[%s15932_s3 + $0x20] sm:$0xff]   ;;  %v14199_v4 = vpop.f32.mrf.mxu1 }
 0x315   :  { %v10126_v0 = vpop.f32.mrf.mxu0  ;;  %16433 = vst [vmem:[#allocation40_spill] sm:$0xff] %v14199_v4  ;;  %10380 = vmatprep.subr.bf16.mxu0 %v10662_v21 }
 0x316   :  { %16426 = vst [vmem:[#allocation35_spill] sm:$0xff] %v14182_v2  ;;  %v14189_v33 = vadd.f32 %v10126_v0, %v13700_v31  ;;  %v16436_v31 = vld [vmem:[#allocation118_spill] sm:$0xff]  ;;  %10381 = vmatpush3.bf16.msra.mxu0 %v10662_v21 }
 0x317   :  { %v4059_v35 = vpop.f32.mrf.mxu0 }
 0x318   :  { %16429 = vst [vmem:[#allocation38_spill] sm:$0xff] %v14189_v33  ;;  %v14194_v19 = vadd.f32 %v4059_v35, %v16431_v24  ;;  %v16438_v33 = vld [vmem:[#allocation51_spill] sm:$0xff]  ;;  %v14209_v24 = vpop.f32.mrf.mxu1 }
 0x319   :  { %v10127_v45 = vpop.f32.mrf.mxu0  ;;  %16439 = vst [vmem:[#allocation45_spill] sm:$0xff] %v14209_v24  ;;  %v5644_v24 = vld [vmem:[#allocation3 + $0x18] sm:$0xff] }
 0x31a   :  { %16432 = vst [vmem:[#allocation41_spill] sm:$0xff] %v14194_v19  ;;  %v14202_v2 = vadd.f32 %v10127_v45, %v16434_v61  ;;  %10293 = vmatmul.mubr.msk.bf16.gmra.mxu0 %vm297_vm1, %v16438_v33  ;;  %v16441_v19 = vld [vmem:[#allocation89_spill] sm:$0xff] }
 0x31b   :  { %v4062_v49 = vpop.f32.mrf.mxu0  ;;  %10296 = vmatprep.mubr.msk.bf16.mxu0 %vm297_vm1, %v16441_v19  ;;  %v5648_v19 = vld [vmem:[#allocation3 + $0x38] sm:$0xff] }
 0x31c   :  { %16435 = vst [vmem:[#allocation133_spill] sm:$0xff] %v14202_v2  ;;  %v14205_v0 = vadd.f32 %v4062_v49, %v16436_v31  ;;  %v14219_v49 = vpop.f32.mrf.mxu1  ;;  %v16442_v31 = vld [vmem:[#allocation119_spill] sm:$0xff] }
 0x31d   :  { %v10130_v30 = vpop.f32.mrf.mxu0  ;;  %v4704_v33 = vpack.c.bf16 %v13741_v28, %v16442_v31  ;;  %v16445_v31 = vld [vmem:[#allocation121_spill] sm:$0xff] }
 0x31e   :  { %16437 = vst [vmem:[#allocation134_spill] sm:$0xff] %v14205_v0  ;;  %v14212_v35 = vadd.f32 %v10130_v30, %v13722_v48  ;;  %v5642_v0 = vld [vmem:[#allocation3 + $0x8] sm:$0xff] }
 0x31f   :  { %v4075_v45 = vpop.f32.mrf.mxu0  ;;  %v5732_v30 = vpack.c.bf16 %v5644_v24, %v5642_v0 }
 0x320   :  { %16440 = vst [vmem:[#allocation44_spill] sm:$0xff] %v14212_v35  ;;  %v14217_v61 = vadd.f32 %v4075_v45, %v13725_v44  ;;  %v5646_v35 = vld [vmem:[#allocation3 + $0x28] sm:$0xff]  ;;  %v16443_v44 = vld [vmem:[#allocation126_spill] sm:$0xff]  ;;  %v14231_v45 = vpop.f32.mrf.mxu1 }
 0x321   :  { %v10131_v2 = vpop.f32.mrf.mxu0  ;;  %v5733_v4 = vpack.c.bf16 %v5648_v19, %v5646_v35  ;;  %10310 = vmatprep.mubr.msk.bf16.mxu1 %vm5475_vm2, %v5732_v30  ;;  %v4706_v30 = vpack.c.bf16 %v13769_v60, %v16445_v31 }
 0x322   :  { %v14222_v21 = vadd.f32 %v10131_v2, %v13733_v13  ;;  %10297 = vmatmul.mubr.msk.bf16.gmra.mxu0 %vm297_vm1, %v16443_v44  ;;  %v14241_v24 = vpop.f32.mrf.mxu1 }
 0x323   :  { %v14226_v48 = vpop.f32.mrf.mxu0  ;;  %10300 = vmatprep.mubr.msk.bf16.mxu0 %vm297_vm1, %v4704_v33  ;;  %10311 = vmatmul.mubr.msk.bf16.vlgmr.msra.gmra.mxu1 %vm5475_vm2, %v5733_v4  ;;  %v16447_v33 = vld [vmem:[#allocation101_spill] sm:$0xff] }
 0x324   :  { %v14254_v4 = vpop.f32.mrf.mxu1 }
 0x325   :  { %v10134_v7 = vpop.f32.mrf.mxu0 }
 0x326   :  { %v14234_v13 = vadd.f32 %v10134_v7, %v13747_v36  ;;  %v16446_v7 = vld [vmem:[#allocation103_spill] sm:$0xff] }
 0x327   :  { %v4091_v28 = vpop.f32.mrf.mxu0  ;;  %v16448_v44 = vpack.c.bf16 %v16446_v7, %v16447_v33 }
 0x328   :  { %v14239_v2 = vadd.f32 %v4091_v28, %v13752_v41 }
 0x329   :  { %v10135_v0 = vpop.f32.mrf.mxu0 }
 0x32a   :  { %v14244_v35 = vadd.f32 %v10135_v0, %v13765_v34  ;;  %10301 = vmatmul.mubr.msk.bf16.gmra.mxu0 %vm297_vm1, %v16448_v44  ;;  %v1167_v34 = vld [vmem:[#allocation2 + $0x980] sm:$0xff] }
 0x32b   :  { %v14248_v19 = vpop.f32.mrf.mxu0  ;;  %10304 = vmatprep.mubr.msk.bf16.mxu0 %vm297_vm1, %v4706_v30  ;;  %v4707_v31 = vpack.c.bf16 %v1167_v34, %v13773_v50 }
 0x32c   :  { %16444 = vst [vmem:[#allocation135_spill] sm:$0xff] %v14244_v35  ;;  %v14264_v35 = vpop.f32.mrf.mxu1 }
 0x32d   :  { %v10138_v36 = vpop.f32.mrf.mxu0 }
 0x32e   :  { %v14257_v41 = vadd.f32 %v10138_v36, %v13777_v47  ;;  %v14272_v47 = vpop.f32.mrf.mxu1 }
 0x32f   :  { %v4107_v28 = vpop.f32.mrf.mxu0 }
 0x330   :  { %v14261_v0 = vadd.f32 %v4107_v28, %v13782_v62  ;;  %v14280_v34 = vpop.f32.mrf.mxu1 }
 0x331   :  { %v10139_v60 = vpop.f32.mrf.mxu0 }
 0x332   :  { %v14267_v7 = vadd.f32 %v10139_v60, %v13789_v51  ;;  %10305 = vmatmul.mubr.msk.bf16.gmra.mxu0 %vm297_vm1, %v4707_v31 }
 0x333   :  { %v14269_v33 = vpop.f32.mrf.mxu0 }
 0x334   :  { %16449 = vst [vmem:[#allocation47_spill] sm:$0xff] %v14267_v7  ;;  %v14287_v7 = vpop.f32.mrf.mxu1 }
 0x335   :  { %v10142_v44 = vpop.f32.mrf.mxu0 }
 0x336   :  { %v14275_v30 = vadd.f32 %v10142_v44, %v13797_v25 }
 0x337   :  { %v4123_v62 = vpop.f32.mrf.mxu0 }
 0x338   :  { %16450 = vst [vmem:[#allocation46_spill] sm:$0xff] %v14275_v30  ;;  %v14278_v36 = vadd.f32 %v4123_v62, %v13800_v9  ;;  %v14295_v62 = vpop.f32.mrf.mxu1 }
 0x339   :  { %v10143_v50 = vpop.f32.mrf.mxu0 }
 0x33a   :  { %16451 = vst [vmem:[#allocation136_spill] sm:$0xff] %v14278_v36  ;;  %v14283_v51 = vadd.f32 %v10143_v50, %v13807_v46 }
 0x33b   :  { %v14285_v28 = vpop.f32.mrf.mxu0 }
 0x33c   :  { %16452 = vst [vmem:[#allocation137_spill] sm:$0xff] %v14283_v51  ;;  %16453 = vst [vmem:[#allocation95_spill] sm:$0xff] %v14285_v28  ;;  %v14302_v51 = vpop.f32.mrf.mxu1 }
 0x33d   :  { %v10146_v60 = vpop.f32.mrf.mxu0 }
 0x33e   :  { %v14290_v31 = vadd.f32 %v10146_v60, %v13815_v59 }
 0x33f   :  { %v4139_v25 = vpop.f32.mrf.mxu0 }
 0x340   :  { %16454 = vst [vmem:[#allocation50_spill] sm:$0xff] %v14290_v31  ;;  %v14293_v44 = vadd.f32 %v4139_v25, %v13818_v16  ;;  %v14310_v25 = vpop.f32.mrf.mxu1  ;;  %v16493_v31 = vld [vmem:[#allocation125_spill] sm:$0xff] }
 0x341   :  { %v10147_v9 = vpop.f32.mrf.mxu0 }
 0x342   :  { %16455 = vst [vmem:[#allocation49_spill] sm:$0xff] %v14293_v44  ;;  %v14298_v36 = vadd.f32 %v10147_v9, %v13825_v6 }
 0x343   :  { %v14300_v46 = vpop.f32.mrf.mxu0 }
 0x344   :  { %16456 = vst [vmem:[#allocation138_spill] sm:$0xff] %v14298_v36  ;;  %16457 = vst [vmem:[#allocation53_spill] sm:$0xff] %v14300_v46  ;;  %v14317_v36 = vpop.f32.mrf.mxu1 }
 0x345   :  { %v10150_v50 = vpop.f32.mrf.mxu0 }
 0x346   :  { %v14305_v28 = vadd.f32 %v10150_v50, %v13833_v26 }
 0x347   :  { %v4155_v59 = vpop.f32.mrf.mxu0 }
 0x348   :  { %16458 = vst [vmem:[#allocation52_spill] sm:$0xff] %v14305_v28  ;;  %v14308_v60 = vadd.f32 %v4155_v59, %v13836_v22  ;;  %v14325_v59 = vpop.f32.mrf.mxu1 }
 0x349   :  { %v10151_v16 = vpop.f32.mrf.mxu0 }
 0x34a   :  { %16459 = vst [vmem:[#allocation139_spill] sm:$0xff] %v14308_v60  ;;  %v14313_v44 = vadd.f32 %v10151_v16, %v13843_v17 }
 0x34b   :  { %v14315_v6 = vpop.f32.mrf.mxu0 }
 0x34c   :  { %16460 = vst [vmem:[#allocation140_spill] sm:$0xff] %v14313_v44  ;;  %16461 = vst [vmem:[#allocation96_spill] sm:$0xff] %v14315_v6  ;;  %v14332_v44 = vpop.f32.mrf.mxu1 }
 0x34d   :  { %v10154_v9 = vpop.f32.mrf.mxu0 }
 0x34e   :  { %v14320_v46 = vadd.f32 %v10154_v9, %v13851_v11 }
 0x34f   :  { %v4171_v26 = vpop.f32.mrf.mxu0 }
 0x350   :  { %16462 = vst [vmem:[#allocation56_spill] sm:$0xff] %v14320_v46  ;;  %v14323_v50 = vadd.f32 %v4171_v26, %v13854_v57  ;;  %v14340_v26 = vpop.f32.mrf.mxu1 }
 0x351   :  { %v10155_v22 = vpop.f32.mrf.mxu0 }
 0x352   :  { %16463 = vst [vmem:[#allocation55_spill] sm:$0xff] %v14323_v50  ;;  %v14328_v60 = vadd.f32 %v10155_v22, %v13861_v15 }
 0x353   :  { %v14330_v17 = vpop.f32.mrf.mxu0 }
 0x354   :  { %16464 = vst [vmem:[#allocation58_spill] sm:$0xff] %v14328_v60  ;;  %16465 = vst [vmem:[#allocation57_spill] sm:$0xff] %v14330_v17  ;;  %v14347_v60 = vpop.f32.mrf.mxu1 }
 0x355   :  { %v10158_v16 = vpop.f32.mrf.mxu0 }
 0x356   :  { %v14335_v6 = vadd.f32 %v10158_v16, %v13872_v20 }
 0x357   :  { %v4187_v11 = vpop.f32.mrf.mxu0 }
 0x358   :  { %16466 = vst [vmem:[#allocation62_spill] sm:$0xff] %v14335_v6  ;;  %v14338_v9 = vadd.f32 %v4187_v11, %v13875_v38  ;;  %v10663_v11 = vld [vmem:[%s15932_s3] sm:$0xff]  }
 0x359   :  { %v10159_v57 = vpop.f32.mrf.mxu0  ;;  %10326 = vmatprep.subr.bf16.mxu1 %v10663_v11  ;;  %v16480_v6 = vld [vmem:[#allocation22_spill] sm:$0xff] }
 0x35a   :  { %16467 = vst [vmem:[#allocation61_spill] sm:$0xff] %v14338_v9  ;;  %v14343_v50 = vadd.f32 %v10159_v57, %v13882_v12  ;;  %v14358_v9 = vpop.f32.mrf.mxu1  ;;  %10327 = vmatpush3.bf16.msra.mxu1 %v10663_v11 }
 0x35b   :  { %v14345_v15 = vpop.f32.mrf.mxu0  ;;  %16472 = vst [vmem:[#allocation67_spill] sm:$0xff] %v14358_v9  ;;  %v16516_v9 = vld [vmem:[#allocation18_spill] sm:$0xff] }
 0x35c   :  { %16468 = vst [vmem:[#allocation64_spill] sm:$0xff] %v14343_v50  ;;  %16469 = vst [vmem:[#allocation63_spill] sm:$0xff] %v14345_v15 }
 0x35d   :  { %v10162_v22 = vpop.f32.mrf.mxu0 }
 0x35e   :  { %v14350_v17 = vadd.f32 %v10162_v22, %v13890_v14  ;;  %v14365_v22 = vpop.f32.mrf.mxu1 }
 0x35f   :  { %v4203_v20 = vpop.f32.mrf.mxu0  ;;  %16475 = vst [vmem:[#allocation68_spill] sm:$0xff] %v14365_v22  ;;  %v16514_v22 = vld [vmem:[#allocation17_spill] sm:$0xff] }
 0x360   :  { %16470 = vst [vmem:[#allocation74_spill] sm:$0xff] %v14350_v17  ;;  %v14353_v16 = vadd.f32 %v4203_v20, %v13893_v10  ;;  %v14373_v15 = vpop.f32.mrf.mxu1 }
 0x361   :  { %v10163_v38 = vpop.f32.mrf.mxu0  ;;  %16479 = vst [vmem:[#allocation76_spill] sm:$0xff] %v14373_v15  ;;  %v16513_v15 = vld [vmem:[#allocation16_spill] sm:$0xff] }
 0x362   :  { %16471 = vst [vmem:[#allocation71_spill] sm:$0xff] %v14353_v16  ;;  %v14361_v12 = vadd.f32 %v10163_v38, %v13900_v37  ;;  %v16477_v16 = vld [vmem:[#allocation19_spill] sm:$0xff]  ;;  %v14380_v11 = vpop.f32.mrf.mxu1 }
 0x363   :  { %v14363_v57 = vpop.f32.mrf.mxu0  ;;  %16483 = vst [vmem:[#allocation79_spill] sm:$0xff] %v14380_v11  ;;  %v16494_v11 = vld [vmem:[#allocation90_spill] sm:$0xff] }
 0x364   :  { %16473 = vst [vmem:[#allocation66_spill] sm:$0xff] %v14361_v12  ;;  %16474 = vst [vmem:[#allocation69_spill] sm:$0xff] %v14363_v57 }
 0x365   :  { %v10166_v14 = vpop.f32.mrf.mxu0 }
 0x366   :  { %v14368_v10 = vadd.f32 %v10166_v14, %v13908_v39  ;;  %v5079_v39 = vlaneseq }
 0x367   :  { %v4219_v20 = vpop.f32.mrf.mxu0 }
 0x368   :  { %16476 = vst [vmem:[#allocation73_spill] sm:$0xff] %v14368_v10  ;;  %v14371_v17 = vadd.f32 %v4219_v20, %v16477_v16  ;;  %v14388_v20 = vpop.f32.mrf.mxu1 }
 0x369   :  { %v10167_v50 = vpop.f32.mrf.mxu0  ;;  %16486 = vst [vmem:[#allocation82_spill] sm:$0xff] %v14388_v20 }
 0x36a   :  { %16478 = vst [vmem:[#allocation72_spill] sm:$0xff] %v14371_v17  ;;  %v14376_v37 = vadd.f32 %v10167_v50, %v16480_v6  ;;  %v5080_v6 = vshrl.u32 %v5079_v39, 7  ;;  %v16498_v39 = vld [vmem:[#allocation8_spill] sm:$0xff] }
 0x36b   :  { %v14378_v38 = vpop.f32.mrf.mxu0 }
 0x36c   :  { %16481 = vst [vmem:[#allocation75_spill] sm:$0xff] %v14376_v37  ;;  %16482 = vst [vmem:[#allocation97_spill] sm:$0xff] %v14378_v38  ;;  %v16489_v37 = vld [vmem:[#allocation123_spill] sm:$0xff]  ;;  %v16490_v38 = vld [vmem:[#allocation122_spill] sm:$0xff] }
 0x36d   :  { %v10170_v12 = vpop.f32.mrf.mxu0  ;;  %v3909_v46 = vadd.f32 %v16490_v38, %v16489_v37  ;;  %v16502_v37 = vld [vmem:[#allocation7_spill] sm:$0xff] }
 0x36e   :  { %v14383_v57 = vadd.f32 %v10170_v12, %v13926_v56  ;;  %v16491_v56 = vld [vmem:[#allocation91_spill] sm:$0xff]  ;;  %v16492_v12 = vld [vmem:[#allocation124_spill] sm:$0xff] }
 0x36f   :  { %v4235_v14 = vpop.f32.mrf.mxu0 }
 0x370   :  { %16484 = vst [vmem:[#allocation78_spill] sm:$0xff] %v14383_v57  ;;  %v14386_v10 = vadd.f32 %v4235_v14, %v13929_v8  ;;  %v3913_v57 = vadd.f32 %v16492_v12, %v16491_v56  ;;  %v3917_v8 = vadd.f32 %v16494_v11, %v16493_v31  ;;  %v14401_v14 = vpop.f32.mrf.mxu1  ;;  %v5078_v31 = vld [vmem:[%s15933_s2] sm:$0x7]  ;;  %v14419_v11 = vsub.s32 1, %v5080_v6 }
 0x371   :  { %v10171_v16 = vpop.f32.mrf.mxu0  ;;  %16495 = vst [vmem:[#allocation98_spill] sm:$0xff] %v14401_v14  ;;  %v14421_v56 = vsub.s32 2, %v5080_v6  ;;  %v16510_v14 = vld [vmem:[#allocation13_spill] sm:$0xff] }
 0x372   :  { %16485 = vst [vmem:[#allocation83_spill] sm:$0xff] %v14386_v10  ;;  %v14391_v17 = vadd.f32 %v10171_v16, %v13936_v3  ;;  %v14406_v3 = vsub.s32 0, %v5080_v6  ;;  %v16499_v16 = vld [vmem:[#allocation127_spill] sm:$0xff]  ;;  %16504 = vst [vmem:[#allocation15_spill] sm:$0xff] %v14419_v11 }
 0x373   :  { %v14393_v50 = vpop.f32.mrf.mxu0  ;;  %16505 = vst [vmem:[#allocation92_spill] sm:$0xff] %v14421_v56  ;;  %v16515_v6 = vld [vmem:[#allocation23_spill] sm:$0xff] }
 0x374   :  { %16487 = vst [vmem:[#allocation88_spill] sm:$0xff] %v14391_v17  ;;  %16488 = vst [vmem:[#allocation87_spill] sm:$0xff] %v14393_v50  ;;  %v14410_v17 = vadd.f32 %v16499_v16, %v16498_v39  ;;  %v16501_v50 = vld [vmem:[#allocation128_spill] sm:$0xff]  ;;  %v16509_v39 = vld [vmem:[#allocation11_spill] sm:$0xff]  ;;  %v14444_v30 = vadd.f32 %v16516_v9, %v16515_v6 }
 0x375   :  { %v10174_v28 = vpop.f32.mrf.mxu0  ;;  %16497 = vst [vmem:[#allocation102_spill] sm:$0xff] %v14406_v3  ;;  %v14414_v38 = vadd.f32 %v16502_v37, %v16501_v50  ;;  %v16511_v50 = vld [vmem:[#allocation14_spill] sm:$0xff]  ;;  %v16523_v6 = vld [vmem:[#allocation28_spill] sm:$0xff] }
 0x376   :  { %v14404_v10 = vadd.f32 %v10174_v28, %v13944_v55  ;;  %16500 = vst [vmem:[#allocation9_spill] sm:$0xff] %v14410_v17  ;;  %v16506_v55 = vld [vmem:[#allocation12_spill] sm:$0xff]  ;;  %v16507_v28 = vld [vmem:[#allocation129_spill] sm:$0xff]  ;;  %v14433_v37 = vadd.f32 %v16511_v50, %v16510_v14  ;;  %v14440_v17 = vadd.f32 %v16514_v22, %v16513_v15  ;;  %v4640_v15 = vadd.f32 %v13965_v43, %v13968_v23  ;;  %v14458_v22 = vpop.f32.mrf.mxu1  ;;  %v16522_v23 = vld [vmem:[#allocation27_spill] sm:$0xff] }
 0x377   :  { %16503 = vst [vmem:[#allocation10_spill] sm:$0xff] %v14414_v38  ;;  %v4251_v20 = vpop.f32.mrf.mxu0  ;;  %v14425_v12 = vadd.f32 %v16507_v28, %v16506_v55  ;;  %v16517_v55 = vld [vmem:[#allocation131_spill] sm:$0xff]  ;;  %v4646_v43 = vadd.f32 %v13982_v63, %v13985_v32  ;;  %v16530_v63 = vld [vmem:[#allocation36_spill] sm:$0xff] }
 0x378   :  { %16496 = vst [vmem:[#allocation99_spill] sm:$0xff] %v14404_v10  ;;  %v16508_v10 = vld [vmem:[#allocation130_spill] sm:$0xff]  ;;  %v14436_v38 = vadd.f32 %v4251_v20, %v13947_v40  ;;  %v14448_v28 = vadd.f32 %v16517_v55, %v13934_v53  ;;  %v4642_v40 = vadd.f32 %v13958_v27, %v13961_v5  ;;  %v16518_v20 = vld [vmem:[#allocation25_spill] sm:$0xff]  ;;  %v4643_v53 = vadd.f32 %v13970_v29, %v13973_v52  ;;  %v16531_v32 = vld [vmem:[#allocation40_spill] sm:$0xff] }
 0x379   :  { %v14429_v16 = vadd.f32 %v16509_v39, %v16508_v10  ;;  %v14452_v10 = vadd.f32 %v13949_v1, %v13952_v58  ;;  %v10175_v14 = vpop.f32.mrf.mxu0  ;;  %v14464_v39 = vrot.slane %v5078_v31, %v14406_v3  ;;  %v16520_v1 = vld [vmem:[#allocation24_spill] sm:$0xff]  ;;  %v14473_v27 = vrot.slane %v5078_v31, %v14419_v11  ;;  %v16525_v29 = vld [vmem:[#allocation29_spill] sm:$0xff] }
 0x37a   :  { %16512 = vst [vmem:[#allocation20_spill] sm:$0xff] %v14436_v38  ;;  %v14461_v9 = vadd.f32 %v10175_v14, %v16518_v20  ;;  %v4641_v58 = vadd.f32 %v16520_v1, %v13978_v54  ;;  %v14476_v5 = vrot.slane %v5078_v31, %v14421_v56  ;;  %v14482_v55 = vadd.f32 %v16523_v6, %v16522_v23  ;;  %v16524_v14 = vld [vmem:[#allocation30_spill] sm:$0xff]  ;;  %v16527_v1 = vld [vmem:[#allocation33_spill] sm:$0xff]  ;;  %v16528_v31 = vld [vmem:[#allocation132_spill] sm:$0xff] }
 0x37b   :  { %v14470_v50 = vpop.f32.mrf.mxu0  ;;  %v14486_v52 = vadd.f32 %v16525_v29, %v16524_v14  ;;  %v16526_v54 = vld [vmem:[#allocation34_spill] sm:$0xff]  ;;  %v14494_v11 = vadd.f32 %v14176_v42, %v16527_v1  ;;  %v16529_v56 = vld [vmem:[#allocation39_spill] sm:$0xff]  ;;  %v14502_v23 = vadd.f32 %v16531_v32, %v16530_v63  ;;  %v4283_v6 = vadd.f32 %v14226_v48, %v3909_v46  ;;  %v16535_v42 = vld [vmem:[#allocation41_spill] sm:$0xff] }
 0x37c   :  { %16519 = vst [vmem:[#allocation104_spill] sm:$0xff] %v14461_v9  ;;  %16521 = vst [vmem:[#allocation21_spill] sm:$0xff] %v14470_v50  ;;  %v14490_v20 = vadd.f32 %v14169_v18, %v16526_v54  ;;  %v14498_v3 = vadd.f32 %v16529_v56, %v16528_v31  ;;  %v16532_v29 = vld [vmem:[#allocation35_spill] sm:$0xff]  ;;  %v16533_v9 = vld [vmem:[#allocation45_spill] sm:$0xff]  ;;  %v14515_v1 = vadd.f32 %v14231_v45, %v16535_v42  ;;  %v14517_v56 = vpop.f32.mrf.mxu1 }
 0x37d   :  { %v10246_v14 = vpop.f32.mrf.mxu0  ;;  %v14507_v38 = vadd.f32 %v16533_v9, %v16532_v29  ;;  %v16534_v18 = vld [vmem:[#allocation38_spill] sm:$0xff]  ;;  %v16536_v63 = vld [vmem:[#allocation133_spill] sm:$0xff]  ;;  %v16538_v9 = vld [vmem:[#allocation44_spill] sm:$0xff]  ;;  %v14534_v45 = vadd.f32 %v14272_v47, %v14217_v61  ;;  %v14553_v61 = vadd.f32 %v14302_v51, %v14239_v2  ;;  %v14568_v2 = vadd.f32 %v14325_v59, %v14257_v41 }
 0x37e   :  { %v14511_v54 = vadd.f32 %v14219_v49, %v16534_v18  ;;  %v5016_v31 = vadd.f32 %v10246_v14, %v4642_v40  ;;  %v14521_v32 = vadd.f32 %v14241_v24, %v16536_v63  ;;  %v16537_v48 = vld [vmem:[#allocation134_spill] sm:$0xff]  ;;  %v14529_v29 = vadd.f32 %v14264_v35, %v16538_v9 }
 0x37f   :  { %v14525_v46 = vadd.f32 %v14254_v4, %v16537_v48  ;;  %v4287_v49 = vadd.f32 %v14248_v19, %v3913_v57  ;;  %v4759_v18 = vpop.f32.mrf.mxu0  ;;  %v14538_v40 = vadd.f32 %v14280_v34, %v14222_v21  ;;  %v10664_v4 = vld [vmem:[%s15932_s3 + $0x10] sm:$0xff]   ;;  %v14545_v35 = vadd.f32 %v14287_v7, %v4283_v6  ;;  %v14556_v34 = vpop.f32.mrf.mxu1  ;;  %v16539_v7 = vld [vmem:[#allocation135_spill] sm:$0xff] }
 0x380   :  { %v5085_v24 = vadd.f32 %v14464_v39, %v5016_v31  ;;  %v5014_v14 = vadd.f32 %v4759_v18, %v4640_v15  ;;  %v14549_v19 = vadd.f32 %v14295_v62, %v14234_v13  ;;  %v4291_v21 = vadd.f32 %v14269_v33, %v3917_v8  ;;  %10344 = vmatprep.subr.bf16.mxu1 %v10664_v4  ;;  %v14577_v62 = vld [vmem:[%s15932_s3 + $0x30] sm:$0xff]   ;;  %v16541_v18 = vld [vmem:[#allocation46_spill] sm:$0xff] }
 0x381   :  { %v10247_v47 = vpop.f32.mrf.mxu0  ;;  %v14561_v6 = vadd.f32 %v14310_v25, %v16539_v7  ;;  %v14564_v13 = vadd.f32 %v14317_v36, %v4287_v49  ;;  %v14572_v33 = vadd.f32 %v14332_v44, %v14261_v0  ;;  %10416 = vmatprep.subr.bf16.mxu0 %v14577_v62  ;;  %v14589_v63 = vpop.f32.mrf.mxu1 }
 0x382   :  { %vm5149_vm3 = vcmp.ge.f32.partialorder %v5085_v24, 0.0  ;;  %v5213_v57 = vmul.f32 0.2, %v5085_v24  ;;  %v5083_v15 = vadd.f32 %v14464_v39, %v5014_v14  ;;  %v5017_v42 = vadd.f32 %v10247_v47, %v4643_v53  ;;  %v16540_v53 = vld [vmem:[#allocation47_spill] sm:$0xff] }
 0x383   :  { %v4762_v51 = vpop.f32.mrf.mxu0  ;;  %v14582_v31 = vadd.f32 %v14340_v26, %v16540_v53  ;;  %v14585_v41 = vadd.f32 %v14347_v60, %v4291_v21  ;;  %v16543_v21 = vld [vmem:[#allocation9_spill] sm:$0xff]  ;;  %v16544_v47 = vld [vmem:[#allocation95_spill] sm:$0xff]  ;;  %v14605_v53 = vpop.f32.mrf.mxu1 }
 0x384   :  { %v5277_v8 = vsel %vm5149_vm3, %v5085_v24, %v5213_v57  ;;  %vm5147_vm4 = vcmp.ge.f32.partialorder %v5083_v15, 0.0  ;;  %v5211_v25 = vmul.f32 0.2, %v5083_v15  ;;  %v5086_v36 = vadd.f32 %v14464_v39, %v5017_v42  ;;  %v16542_v24 = vld [vmem:[#allocation67_spill] sm:$0xff] }
 0x385   :  { %v5345_v0 = vmul.f32 %v14473_v27, %v5277_v8  ;;  %v5015_v44 = vadd.f32 %v4762_v51, %v4641_v58  ;;  %v10250_v59 = vpop.f32.mrf.mxu0  ;;  %v14593_v14 = vadd.f32 %v16542_v24, %v16541_v18  ;;  %v4295_v57 = vadd.f32 %v16544_v47, %v16543_v21 }
 0x386   :  { %v5275_v48 = vsel %vm5147_vm4, %v5083_v15, %v5211_v25  ;;  %vm5150_vm5 = vcmp.ge.f32.partialorder %v5086_v36, 0.0  ;;  %v5214_v9 = vmul.f32 0.2, %v5086_v36  ;;  %v5020_v49 = vadd.f32 %v10250_v59, %v4646_v43  ;;  %v16545_v59 = vld [vmem:[#allocation136_spill] sm:$0xff] }
 0x387   :  { %v5413_v26 = vadd.f32 %v14476_v5, %v5345_v0  ;;  %v5343_v60 = vmul.f32 %v14473_v27, %v5275_v48  ;;  %v5084_v4 = vadd.f32 %v14464_v39, %v5015_v44  ;;  %v4775_v58 = vpop.f32.mrf.mxu0  ;;  %v16546_v48 = vld [vmem:[#allocation68_spill] sm:$0xff] }
 0x388   :  { %v5278_v42 = vsel %vm5150_vm5, %v5086_v36, %v5214_v9  ;;  %v5089_v15 = vadd.f32 %v14464_v39, %v5020_v49  ;;  %v5018_v7 = vadd.f32 %v4775_v58, %v14482_v55  ;;  %v14611_v55 = vadd.f32 %v16546_v48, %v16545_v59  ;;  %v16547_v9 = vld [vmem:[#allocation137_spill] sm:$0xff]  ;;  %v16548_v49 = vld [vmem:[#allocation76_spill] sm:$0xff]  ;;  %v14631_v48 = vpop.f32.mrf.mxu1 }
 0x389   :  { %5579 = vst.msk [vmem:[#allocation3 + $0x68] sm:$0xff] %vm5475_vm2, %v5413_v26  ;;  %v5411_v43 = vadd.f32 %v14476_v5, %v5343_v60  ;;  %v5346_v51 = vmul.f32 %v14473_v27, %v5278_v42  ;;  %vm5148_vm6 = vcmp.ge.f32.partialorder %v5084_v4, 0.0  ;;  %v5212_v8 = vmul.f32 0.2, %v5084_v4  ;;  %v10251_v25 = vpop.f32.mrf.mxu0 }
 0x38a   :  { %vm5153_vm7 = vcmp.ge.f32.partialorder %v5089_v15, 0.0  ;;  %v5217_v0 = vmul.f32 0.2, %v5089_v15  ;;  %v5087_v44 = vadd.f32 %v14464_v39, %v5018_v7  ;;  %v5021_v36 = vadd.f32 %v10251_v25, %v14486_v52  ;;  %v16549_v52 = vld [vmem:[#allocation79_spill] sm:$0xff] }
 0x38b   :  { %v14615_v18 = vadd.f32 %v16548_v49, %v16547_v9  ;;  %5577 = vst.msk [vmem:[#allocation3 + $0x58] sm:$0xff] %vm5475_vm2, %v5411_v43  ;;  %v5414_v24 = vadd.f32 %v14476_v5, %v5346_v51  ;;  %v5276_v26 = vsel %vm5148_vm6, %v5084_v4, %v5212_v8  ;;  %v4778_v60 = vpop.f32.mrf.mxu0  ;;  %v14621_v42 = vadd.f32 %v16549_v52, %v4295_v57  ;;  %v16550_v51 = vld [vmem:[#allocation50_spill] sm:$0xff] }
 0x38c   :  { %v5344_v58 = vmul.f32 %v14473_v27, %v5276_v26  ;;  %v5281_v21 = vsel %vm5153_vm7, %v5089_v15, %v5217_v0  ;;  %vm5151_vm8 = vcmp.ge.f32.partialorder %v5087_v44, 0.0  ;;  %v5215_v47 = vmul.f32 0.2, %v5087_v44  ;;  %v16551_v4 = vld [vmem:[#allocation82_spill] sm:$0xff]  ;;  %v16553_v26 = vld [vmem:[#allocation53_spill] sm:$0xff] }
 0x38d   :  { %5580 = vst.msk [vmem:[#allocation3 + $0x70] sm:$0xff] %vm5475_vm2, %v5414_v24  ;;  %v5349_v7 = vmul.f32 %v14473_v27, %v5281_v21  ;;  %v5090_v25 = vadd.f32 %v14464_v39, %v5021_v36  ;;  %v5019_v43 = vadd.f32 %v4778_v60, %v14490_v20  ;;  %v10254_v59 = vpop.f32.mrf.mxu0  ;;  %v14629_v8 = vadd.f32 %v16551_v4, %v16550_v51  ;;  %v16552_v20 = vld [vmem:[#allocation10_spill] sm:$0xff] }
 0x38e   :  { %v5412_v15 = vadd.f32 %v14476_v5, %v5344_v58  ;;  %v5279_v0 = vsel %vm5151_vm8, %v5087_v44, %v5215_v47  ;;  %v5024_v57 = vadd.f32 %v10254_v59, %v14494_v11  ;;  %v4299_v60 = vadd.f32 %v16553_v26, %v16552_v20  ;;  %v16554_v58 = vld [vmem:[#allocation49_spill] sm:$0xff]  ;;  %v16555_v11 = vld [vmem:[#allocation98_spill] sm:$0xff] }
 0x38f   :  { %v5417_v9 = vadd.f32 %v14476_v5, %v5349_v7  ;;  %v5347_v49 = vmul.f32 %v14473_v27, %v5279_v0  ;;  %vm5154_vm9 = vcmp.ge.f32.partialorder %v5090_v25, 0.0  ;;  %v5218_v36 = vmul.f32 0.2, %v5090_v25  ;;  %v4791_v24 = vpop.f32.mrf.mxu0  ;;  %v16556_v7 = vld [vmem:[#allocation138_spill] sm:$0xff]  ;;  %v14653_v0 = vpop.f32.mrf.mxu1 }
 0x390   :  { %5578 = vst.msk [vmem:[#allocation3 + $0x60] sm:$0xff] %vm5475_vm2, %v5412_v15  ;;  %v5088_v21 = vadd.f32 %v14464_v39, %v5019_v43  ;;  %v5093_v52 = vadd.f32 %v14464_v39, %v5024_v57  ;;  %v5022_v44 = vadd.f32 %v4791_v24, %v14498_v3  ;;  %v14645_v47 = vadd.f32 %v16555_v11, %v16554_v58  ;;  %v5653_v24 = vld [vmem:[#allocation3 + $0x68] sm:$0xff] }
 0x391   :  { %v14649_v59 = vadd.f32 %v14458_v22, %v16556_v7  ;;  %5583 = vst.msk [vmem:[#allocation3 + $0x88] sm:$0xff] %vm5475_vm2, %v5417_v9  ;;  %v5415_v51 = vadd.f32 %v14476_v5, %v5347_v49  ;;  %v5282_v4 = vsel %vm5154_vm9, %v5090_v25, %v5218_v36  ;;  %v10255_v15 = vpop.f32.mrf.mxu0  ;;  %v14660_v25 = vadd.f32 %v14517_v56, %v4299_v60 }
 0x392   :  { %v5350_v43 = vmul.f32 %v14473_v27, %v5282_v4  ;;  %vm5152_vm10 = vcmp.ge.f32.partialorder %v5088_v21, 0.0  ;;  %v5216_v3 = vmul.f32 0.2, %v5088_v21  ;;  %vm5157_vm11 = vcmp.ge.f32.partialorder %v5093_v52, 0.0  ;;  %v5651_v57 = vld [vmem:[#allocation3 + $0x58] sm:$0xff] }
 0x393   :  { %5581 = vst.msk [vmem:[#allocation3 + $0x78] sm:$0xff] %vm5475_vm2, %v5415_v51  ;;  %v5221_v20 = vmul.f32 0.2, %v5093_v52  ;;  %v5091_v22 = vadd.f32 %v14464_v39, %v5022_v44  ;;  %v5025_v9 = vadd.f32 %v10255_v15, %v14502_v23  ;;  %v4794_v26 = vpop.f32.mrf.mxu0  ;;  %v6305_v49 = vpack.c.bf16 %v5653_v24, %v5651_v57  ;;  %v14666_v44 = vpop.f32.mrf.mxu1  ;;  %v16558_v15 = vld [vmem:[#allocation139_spill] sm:$0xff] }
 0x394   :  { %v5418_v36 = vadd.f32 %v14476_v5, %v5350_v43  ;;  %v5280_v58 = vsel %vm5152_vm10, %v5088_v21, %v5216_v3  ;;  %v5023_v11 = vadd.f32 %v4794_v26, %v14507_v38  ;;  %v16557_v21 = vld [vmem:[#allocation52_spill] sm:$0xff]  ;;  %v14679_v43 = vadd.f32 %v14589_v63, %v16558_v15 }
 0x395   :  { %v5348_v7 = vmul.f32 %v14473_v27, %v5280_v58  ;;  %v5285_v4 = vsel %vm5157_vm11, %v5093_v52, %v5221_v20  ;;  %vm5155_vm12 = vcmp.ge.f32.partialorder %v5091_v22, 0.0  ;;  %v5219_v51 = vmul.f32 0.2, %v5091_v22  ;;  %v10258_v50 = vpop.f32.mrf.mxu0  ;;  %10382 = vmatprep.mubr.msk.bf16.mxu0 %vm5475_vm2, %v6305_v49  ;;  %v16559_v49 = vld [vmem:[#allocation96_spill] sm:$0xff] }
 0x396   :  { %5584 = vst.msk [vmem:[#allocation3 + $0x90] sm:$0xff] %vm5475_vm2, %v5418_v36  ;;  %v5353_v23 = vmul.f32 %v14473_v27, %v5285_v4  ;;  %v5094_v56 = vadd.f32 %v14464_v39, %v5025_v9  ;;  %v5092_v60 = vadd.f32 %v14464_v39, %v5023_v11  ;;  %v5028_v38 = vadd.f32 %v10258_v50, %v14511_v54 }
 0x397   :  { %v14675_v52 = vadd.f32 %v14556_v34, %v16557_v21  ;;  %v5416_v3 = vadd.f32 %v14476_v5, %v5348_v7  ;;  %v5283_v57 = vsel %vm5155_vm12, %v5091_v22, %v5219_v51  ;;  %v4807_v24 = vpop.f32.mrf.mxu0  ;;  %v4303_v36 = vadd.f32 %v16559_v49, %v14425_v12  ;;  %v14689_v22 = vpop.f32.mrf.mxu1 }
 0x398   :  { %v5421_v20 = vadd.f32 %v14476_v5, %v5353_v23  ;;  %v5351_v9 = vmul.f32 %v14473_v27, %v5283_v57  ;;  %vm5158_vm13 = vcmp.ge.f32.partialorder %v5094_v56, 0.0  ;;  %v5222_v26 = vmul.f32 0.2, %v5094_v56  ;;  %v16560_v57 = vld [vmem:[#allocation140_spill] sm:$0xff] }
 0x399   :  { %5582 = vst.msk [vmem:[#allocation3 + $0x80] sm:$0xff] %vm5475_vm2, %v5416_v3  ;;  %vm5156_vm14 = vcmp.ge.f32.partialorder %v5092_v60, 0.0  ;;  %v5220_v50 = vmul.f32 0.2, %v5092_v60  ;;  %v5097_v54 = vadd.f32 %v14464_v39, %v5028_v38  ;;  %v5026_v34 = vadd.f32 %v4807_v24, %v14515_v1  ;;  %v10259_v63 = vpop.f32.mrf.mxu0 }
 0x39a   :  { %5587 = vst.msk [vmem:[#allocation3 + $0xb8] sm:$0xff] %vm5475_vm2, %v5421_v20  ;;  %v5419_v58 = vadd.f32 %v14476_v5, %v5351_v9  ;;  %v5286_v11 = vsel %vm5158_vm13, %v5094_v56, %v5222_v26  ;;  %v5029_v7 = vadd.f32 %v10259_v63, %v14521_v32  ;;  %v5655_v4 = vld [vmem:[#allocation3 + $0x78] sm:$0xff]  ;;  %v5657_v56 = vld [vmem:[#allocation3 + $0x88] sm:$0xff]  ;;  %v14702_v32 = vadd.f32 %v14605_v53, %v16560_v57  ;;  %v14705_v26 = vpop.f32.mrf.mxu1 }
 0x39b   :  { %v5354_v51 = vmul.f32 %v14473_v27, %v5286_v11  ;;  %v5284_v23 = vsel %vm5156_vm14, %v5092_v60, %v5220_v50  ;;  %vm5161_vm15 = vcmp.ge.f32.partialorder %v5097_v54, 0.0  ;;  %v5225_v38 = vmul.f32 0.2, %v5097_v54  ;;  %v4810_v1 = vpop.f32.mrf.mxu0 }
 0x39c   :  { %5585 = vst.msk [vmem:[#allocation3 + $0xa8] sm:$0xff] %vm5475_vm2, %v5419_v58  ;;  %v5352_v12 = vmul.f32 %v14473_v27, %v5284_v23  ;;  %v5095_v21 = vadd.f32 %v14464_v39, %v5026_v34  ;;  %v5098_v15 = vadd.f32 %v14464_v39, %v5029_v7  ;;  %v5027_v3 = vadd.f32 %v4810_v1, %v14525_v46 }
 0x39d   :  { %v5422_v60 = vadd.f32 %v14476_v5, %v5354_v51  ;;  %v5289_v24 = vsel %vm5161_vm15, %v5097_v54, %v5225_v38  ;;  %v10262_v20 = vpop.f32.mrf.mxu0  ;;  %v6306_v9 = vpack.c.bf16 %v5657_v56, %v5655_v4  ;;  %v14714_v58 = vadd.f32 %v14631_v48, %v4303_v36  ;;  %v10667_v48 = vld [vmem:[%s15932_s3 + $0x40] sm:$0xff]   ;;  %v14724_v36 = vpop.f32.mrf.mxu1 }
 0x39e   :  { %v5420_v50 = vadd.f32 %v14476_v5, %v5352_v12  ;;  %v5357_v34 = vmul.f32 %v14473_v27, %v5289_v24  ;;  %vm5159_vm0 = vcmp.ge.f32.partialorder %v5095_v21, 0.0  ;;  %v5223_v63 = vmul.f32 0.2, %v5095_v21 }
 0x39f   :  { %5588 = vst.msk [vmem:[#allocation3 + $0xc0] sm:$0xff] %vm5475_vm2, %v5422_v60  ;;  %vm5162_vm1 = vcmp.ge.f32.partialorder %v5098_v15, 0.0  ;;  %v5226_v46 = vmul.f32 0.2, %v5098_v15  ;;  %v5096_v53 = vadd.f32 %v14464_v39, %v5027_v3  ;;  %v5032_v49 = vadd.f32 %v10262_v20, %v14529_v29  ;;  %10383 = vmatmul.mubr.msk.bf16.vlgmr.msra.gmra.mxu0 %vm5475_vm2, %v6306_v9  ;;  %v4823_v54 = vpop.f32.mrf.mxu0  ;;  %v16562_v3 = vld [vmem:[#allocation57_spill] sm:$0xff] }
 0x3a0   :  { %5586 = vst.msk [vmem:[#allocation3 + $0xb0] sm:$0xff] %vm5475_vm2, %v5420_v50  ;;  %v5425_v11 = vadd.f32 %v14476_v5, %v5357_v34  ;;  %v5287_v7 = vsel %vm5159_vm0, %v5095_v21, %v5223_v63  ;;  %v5030_v4 = vadd.f32 %v4823_v54, %v14534_v45  ;;  %10417 = vmatpush3.bf16.msra.mxu0 %v14577_v62  ;;  %v16561_v21 = vld [vmem:[#allocation56_spill] sm:$0xff] }
 0x3a1   :  { %v5355_v51 = vmul.f32 %v14473_v27, %v5287_v7  ;;  %v5290_v23 = vsel %vm5162_vm1, %v5098_v15, %v5226_v46  ;;  %vm5160_vm3 = vcmp.ge.f32.partialorder %v5096_v53, 0.0  ;;  %v5224_v29 = vmul.f32 0.2, %v5096_v53  ;;  %v10263_v38 = vpop.f32.mrf.mxu0  ;;  %10452 = vmatprep.subr.bf16.mxu0 %v10667_v48  ;;  %v5662_v46 = vld [vmem:[#allocation3 + $0xb8] sm:$0xff] }
 0x3a2   :  { %5591 = vst.msk [vmem:[#allocation3 + $0xd8] sm:$0xff] %vm5475_vm2, %v5425_v11  ;;  %v5358_v1 = vmul.f32 %v14473_v27, %v5290_v23  ;;  %v5101_v45 = vadd.f32 %v14464_v39, %v5032_v49  ;;  %v5099_v62 = vadd.f32 %v14464_v39, %v5030_v4  ;;  %v5033_v12 = vadd.f32 %v10263_v38, %v14538_v40 }
 0x3a3   :  { %v14733_v15 = vadd.f32 %v14653_v0, %v16561_v21  ;;  %v4307_v56 = vadd.f32 %v16562_v3, %v14429_v16  ;;  %v5423_v57 = vadd.f32 %v14476_v5, %v5355_v51  ;;  %v5288_v60 = vsel %vm5160_vm3, %v5096_v53, %v5224_v29  ;;  %v4826_v24 = vpop.f32.mrf.mxu0  ;;  %v5660_v20 = vld [vmem:[#allocation3 + $0xa8] sm:$0xff]  ;;  %v14743_v53 = vpop.f32.mrf.mxu1 }
 0x3a4   :  { %v5426_v9 = vadd.f32 %v14476_v5, %v5358_v1  ;;  %v5356_v50 = vmul.f32 %v14473_v27, %v5288_v60  ;;  %vm5165_vm4 = vcmp.ge.f32.partialorder %v5101_v45, 0.0  ;;  %v5229_v34 = vmul.f32 0.2, %v5101_v45  ;;  %v16563_v1 = vld [vmem:[#allocation55_spill] sm:$0xff] }
 0x3a5   :  { %5589 = vst.msk [vmem:[#allocation3 + $0xc8] sm:$0xff] %vm5475_vm2, %v5423_v57  ;;  %vm5163_vm5 = vcmp.ge.f32.partialorder %v5099_v62, 0.0  ;;  %v5227_v40 = vmul.f32 0.2, %v5099_v62  ;;  %v5102_v0 = vadd.f32 %v14464_v39, %v5033_v12  ;;  %v5031_v16 = vadd.f32 %v4826_v24, %v14545_v35  ;;  %v10266_v63 = vpop.f32.mrf.mxu0  ;;  %v14767_v60 = vpop.f32.mrf.mxu1 }
 0x3a6   :  { %5592 = vst.msk [vmem:[#allocation3 + $0xe0] sm:$0xff] %vm5475_vm2, %v5426_v9  ;;  %v5424_v49 = vadd.f32 %v14476_v5, %v5356_v50  ;;  %v5293_v54 = vsel %vm5165_vm4, %v5101_v45, %v5229_v34  ;;  %v5036_v11 = vadd.f32 %v10266_v63, %v14549_v19  ;;  %v14748_v7 = vpack.c.bf16 %v5662_v46, %v5660_v20 }
 0x3a7   :  { %v5361_v4 = vmul.f32 %v14473_v27, %v5293_v54  ;;  %v5291_v51 = vsel %vm5163_vm5, %v5099_v62, %v5227_v40  ;;  %vm5166_vm6 = vcmp.ge.f32.partialorder %v5102_v0, 0.0  ;;  %v5230_v23 = vmul.f32 0.2, %v5102_v0  ;;  %v4839_v29 = vpop.f32.mrf.mxu0  ;;  %v16564_v62 = vld [vmem:[#allocation58_spill] sm:$0xff] }
 0x3a8   :  { %5590 = vst.msk [vmem:[#allocation3 + $0xd0] sm:$0xff] %vm5475_vm2, %v5424_v49  ;;  %v5359_v35 = vmul.f32 %v14473_v27, %v5291_v51  ;;  %v5100_v38 = vadd.f32 %v14464_v39, %v5031_v16  ;;  %v5105_v48 = vadd.f32 %v14464_v39, %v5036_v11  ;;  %10314 = vmatprep.mubr.msk.bf16.mxu1 %vm5475_vm2, %v14748_v7 }
 0x3a9   :  { %v5034_v19 = vadd.f32 %v4839_v29, %v14553_v61  ;;  %v14760_v45 = vadd.f32 %v14666_v44, %v16563_v1  ;;  %v14764_v12 = vadd.f32 %v14689_v22, %v16564_v62  ;;  %v5429_v21 = vadd.f32 %v14476_v5, %v5361_v4  ;;  %v10267_v57 = vpop.f32.mrf.mxu0  ;;  %v14781_v4 = vpop.f32.mrf.mxu1 }
 0x3aa   :  { %v5294_v3 = vsel %vm5166_vm6, %v5102_v0, %v5230_v23  ;;  %v5427_v24 = vadd.f32 %v14476_v5, %v5359_v35  ;;  %vm5164_vm7 = vcmp.ge.f32.partialorder %v5100_v38, 0.0  ;;  %v5228_v61 = vmul.f32 0.2, %v5100_v38  ;;  %v16565_v23 = vld [vmem:[#allocation62_spill] sm:$0xff] }
 0x3ab   :  { %v5362_v20 = vmul.f32 %v14473_v27, %v5294_v3  ;;  %5595 = vst.msk [vmem:[#allocation3 + $0x108] sm:$0xff] %vm5475_vm2, %v5429_v21  ;;  %vm5169_vm8 = vcmp.ge.f32.partialorder %v5105_v48, 0.0  ;;  %v5233_v44 = vmul.f32 0.2, %v5105_v48  ;;  %v5103_v9 = vadd.f32 %v14464_v39, %v5034_v19  ;;  %v4842_v50 = vpop.f32.mrf.mxu0 }
 0x3ac   :  { %v5037_v22 = vadd.f32 %v10267_v57, %v14561_v6  ;;  %v14775_v34 = vadd.f32 %v14705_v26, %v4307_v56  ;;  %5593 = vst.msk [vmem:[#allocation3 + $0xf8] sm:$0xff] %vm5475_vm2, %v5427_v24  ;;  %v5292_v0 = vsel %vm5164_vm7, %v5100_v38, %v5228_v61  ;;  %v5035_v16 = vadd.f32 %v4842_v50, %v14564_v13  ;;  %v5664_v63 = vld [vmem:[#allocation3 + $0xc8] sm:$0xff]  ;;  %v5666_v13 = vld [vmem:[#allocation3 + $0xd8] sm:$0xff]  ;;  %v10228_v61 = vpop.f32.mrf.mxu1 }
 0x3ad   :  { %v5430_v40 = vadd.f32 %v14476_v5, %v5362_v20  ;;  %v5360_v46 = vmul.f32 %v14473_v27, %v5292_v0  ;;  %v5297_v49 = vsel %vm5169_vm8, %v5105_v48, %v5233_v44  ;;  %vm5167_vm9 = vcmp.ge.f32.partialorder %v5103_v9, 0.0  ;;  %v10270_v11 = vpop.f32.mrf.mxu0  ;;  %v16566_v24 = vld [vmem:[#allocation61_spill] sm:$0xff] }
 0x3ae   :  { %v5231_v54 = vmul.f32 0.2, %v5103_v9  ;;  %v5365_v6 = vmul.f32 %v14473_v27, %v5297_v49  ;;  %v5106_v26 = vadd.f32 %v14464_v39, %v5037_v22  ;;  %v5104_v56 = vadd.f32 %v14464_v39, %v5035_v16 }
 0x3af   :  { %5596 = vst.msk [vmem:[#allocation3 + $0x110] sm:$0xff] %vm5475_vm2, %v5430_v40  ;;  %v5040_v51 = vadd.f32 %v10270_v11, %v14568_v2  ;;  %v14790_v29 = vadd.f32 %v14724_v36, %v16565_v23  ;;  %v5428_v35 = vadd.f32 %v14476_v5, %v5360_v46  ;;  %v14793_v48 = vpack.c.bf16 %v5666_v13, %v5664_v63  ;;  %v4855_v19 = vpop.f32.mrf.mxu0  ;;  %v4577_v13 = vpop.f32.mrf.mxu1 }
 0x3b0   :  { %v5295_v38 = vsel %vm5167_vm9, %v5103_v9, %v5231_v54  ;;  %v5433_v1 = vadd.f32 %v14476_v5, %v5365_v6  ;;  %vm5170_vm10 = vcmp.ge.f32.partialorder %v5106_v26, 0.0  ;;  %v5234_v21 = vmul.f32 0.2, %v5106_v26 }
 0x3b1   :  { %v5363_v62 = vmul.f32 %v14473_v27, %v5295_v38  ;;  %5594 = vst.msk [vmem:[#allocation3 + $0x100] sm:$0xff] %vm5475_vm2, %v5428_v35  ;;  %vm5168_vm11 = vcmp.ge.f32.partialorder %v5104_v56, 0.0  ;;  %v5232_v2 = vmul.f32 0.2, %v5104_v56  ;;  %v5109_v3 = vadd.f32 %v14464_v39, %v5040_v51  ;;  %10315 = vmatmul.mubr.msk.bf16.gmra.mxu1 %vm5475_vm2, %v14793_v48  ;;  %v10271_v57 = vpop.f32.mrf.mxu0 }
 0x3b2   :  { %v5038_v36 = vadd.f32 %v4855_v19, %v14572_v33  ;;  %v14804_v20 = vadd.f32 %v14743_v53, %v16566_v24  ;;  %5599 = vst.msk [vmem:[#allocation3 + $0x128] sm:$0xff] %vm5475_vm2, %v5433_v1  ;;  %v5298_v9 = vsel %vm5170_vm10, %v5106_v26, %v5234_v21  ;;  %v5041_v22 = vadd.f32 %v10271_v57, %v14582_v31  ;;  %v5671_v54 = vld [vmem:[#allocation3 + $0x108] sm:$0xff] }
 0x3b3   :  { %v5431_v44 = vadd.f32 %v14476_v5, %v5363_v62  ;;  %v5366_v50 = vmul.f32 %v14473_v27, %v5298_v9  ;;  %v5296_v40 = vsel %vm5168_vm11, %v5104_v56, %v5232_v2  ;;  %vm5173_vm12 = vcmp.ge.f32.partialorder %v5109_v3, 0.0  ;;  %v4858_v16 = vpop.f32.mrf.mxu0  ;;  %v5669_v33 = vld [vmem:[#allocation3 + $0xf8] sm:$0xff]  ;;  %v16567_v31 = vld [vmem:[#allocation63_spill] sm:$0xff]  ;;  %v16568_v62 = vld [vmem:[#allocation64_spill] sm:$0xff]  ;;  %v10229_v9 = vpop.f32.mrf.mxu1 }
 0x3b4   :  { %v5237_v0 = vmul.f32 0.2, %v5109_v3  ;;  %v5364_v53 = vmul.f32 %v14473_v27, %v5296_v40  ;;  %v5107_v63 = vadd.f32 %v14464_v39, %v5038_v36  ;;  %v5110_v46 = vadd.f32 %v14464_v39, %v5041_v22 }
 0x3b5   :  { %5597 = vst.msk [vmem:[#allocation3 + $0x118] sm:$0xff] %vm5475_vm2, %v5431_v44  ;;  %v5039_v49 = vadd.f32 %v4858_v16, %v14585_v41  ;;  %v4311_v11 = vadd.f32 %v16567_v31, %v14433_v37  ;;  %v5434_v6 = vadd.f32 %v14476_v5, %v5366_v50  ;;  %v10274_v56 = vpop.f32.mrf.mxu0  ;;  %v6307_v51 = vpack.c.bf16 %v5671_v54, %v5669_v33 }
 0x3b6   :  { %v5301_v26 = vsel %vm5173_vm12, %v5109_v3, %v5237_v0  ;;  %v5432_v23 = vadd.f32 %v14476_v5, %v5364_v53  ;;  %vm5171_vm13 = vcmp.ge.f32.partialorder %v5107_v63, 0.0  ;;  %v5235_v38 = vmul.f32 0.2, %v5107_v63 }
 0x3b7   :  { %v5369_v35 = vmul.f32 %v14473_v27, %v5301_v26  ;;  %5600 = vst.msk [vmem:[#allocation3 + $0x130] sm:$0xff] %vm5475_vm2, %v5434_v6  ;;  %vm5174_vm14 = vcmp.ge.f32.partialorder %v5110_v46, 0.0  ;;  %v5238_v41 = vmul.f32 0.2, %v5110_v46  ;;  %v5108_v19 = vadd.f32 %v14464_v39, %v5039_v49  ;;  %10386 = vmatprep.mubr.msk.bf16.mxu0 %vm5475_vm2, %v6307_v51  ;;  %v4871_v1 = vpop.f32.mrf.mxu0  ;;  %v4580_v26 = vpop.f32.mrf.mxu1 }
 0x3b8   :  { %v5044_v37 = vadd.f32 %v10274_v56, %v14593_v14  ;;  %v14826_v21 = vadd.f32 %v14767_v60, %v16568_v62  ;;  %5598 = vst.msk [vmem:[#allocation3 + $0x120] sm:$0xff] %vm5475_vm2, %v5432_v23  ;;  %v5299_v3 = vsel %vm5171_vm13, %v5107_v63, %v5235_v38  ;;  %v5042_v36 = vadd.f32 %v4871_v1, %v14611_v55  ;;  %v16569_v55 = vld [vmem:[#allocation74_spill] sm:$0xff] }
 0x3b9   :  { %v5437_v2 = vadd.f32 %v14476_v5, %v5369_v35  ;;  %v5367_v57 = vmul.f32 %v14473_v27, %v5299_v3  ;;  %v5302_v24 = vsel %vm5174_vm14, %v5110_v46, %v5238_v41  ;;  %vm5172_vm15 = vcmp.ge.f32.partialorder %v5108_v19, 0.0  ;;  %v10275_v14 = vpop.f32.mrf.mxu0  ;;  %v5675_v6 = vld [vmem:[#allocation3 + $0x128] sm:$0xff] }
 0x3ba   :  { %v5236_v44 = vmul.f32 0.2, %v5108_v19  ;;  %v5370_v22 = vmul.f32 %v14473_v27, %v5302_v24  ;;  %v5113_v60 = vadd.f32 %v14464_v39, %v5044_v37  ;;  %v5111_v50 = vadd.f32 %v14464_v39, %v5042_v36  ;;  %v16571_v36 = vld [vmem:[#allocation69_spill] sm:$0xff] }
 0x3bb   :  { %5603 = vst.msk [vmem:[#allocation3 + $0x158] sm:$0xff] %vm5475_vm2, %v5437_v2  ;;  %v5045_v40 = vadd.f32 %v10275_v14, %v14615_v18  ;;  %v14838_v0 = vadd.f32 %v14781_v4, %v4311_v11  ;;  %v14841_v16 = vadd.f32 %v10228_v61, %v16569_v55  ;;  %v5435_v33 = vadd.f32 %v14476_v5, %v5367_v57  ;;  %v4874_v63 = vpop.f32.mrf.mxu0 }
 0x3bc   :  { %v5300_v53 = vsel %vm5172_vm15, %v5108_v19, %v5236_v44  ;;  %v5673_v46 = vld [vmem:[#allocation3 + $0x118] sm:$0xff]  ;;  %v5438_v49 = vadd.f32 %v14476_v5, %v5370_v22  ;;  %vm5177_vm0 = vcmp.ge.f32.partialorder %v5113_v60, 0.0  ;;  %v5241_v31 = vmul.f32 0.2, %v5113_v60  ;;  %v10232_v22 = vpop.f32.mrf.mxu1 }
 0x3bd   :  { %v5368_v54 = vmul.f32 %v14473_v27, %v5300_v53  ;;  %5601 = vst.msk [vmem:[#allocation3 + $0x148] sm:$0xff] %vm5475_vm2, %v5435_v33  ;;  %vm5175_vm1 = vcmp.ge.f32.partialorder %v5111_v50, 0.0  ;;  %v5239_v18 = vmul.f32 0.2, %v5111_v50  ;;  %v5114_v4 = vadd.f32 %v14464_v39, %v5045_v40  ;;  %v10278_v11 = vpop.f32.mrf.mxu0  ;;  %v16572_v33 = vld [vmem:[#allocation66_spill] sm:$0xff] }
 0x3be   :  { %v5043_v61 = vadd.f32 %v4874_v63, %v14621_v42  ;;  %5604 = vst.msk [vmem:[#allocation3 + $0x160] sm:$0xff] %vm5475_vm2, %v5438_v49  ;;  %v5305_v51 = vsel %vm5177_vm0, %v5113_v60, %v5241_v31  ;;  %v5048_v23 = vadd.f32 %v10278_v11, %v14629_v8  ;;  %v6308_v35 = vpack.c.bf16 %v5675_v6, %v5673_v46  ;;  %v16570_v8 = vld [vmem:[#allocation71_spill] sm:$0xff]  ;;  %v4593_v11 = vpop.f32.mrf.mxu1 }
 0x3bf   :  { %v5436_v56 = vadd.f32 %v14476_v5, %v5368_v54  ;;  %v5373_v38 = vmul.f32 %v14473_v27, %v5305_v51  ;;  %v5303_v41 = vsel %vm5175_vm1, %v5111_v50, %v5239_v18  ;;  %vm5178_vm3 = vcmp.ge.f32.partialorder %v5114_v4, 0.0  ;;  %v4887_v37 = vpop.f32.mrf.mxu0 }
 0x3c0   :  { %v5242_v19 = vmul.f32 0.2, %v5114_v4  ;;  %v5371_v42 = vmul.f32 %v14473_v27, %v5303_v41  ;;  %v5112_v1 = vadd.f32 %v14464_v39, %v5043_v61  ;;  %v5117_v62 = vadd.f32 %v14464_v39, %v5048_v23  ;;  %10387 = vmatmul.mubr.msk.bf16.gmra.mxu0 %vm5475_vm2, %v6308_v35 }
 0x3c1   :  { %5602 = vst.msk [vmem:[#allocation3 + $0x150] sm:$0xff] %vm5475_vm2, %v5436_v56  ;;  %v5046_v2 = vadd.f32 %v4887_v37, %v14645_v47  ;;  %v14860_v3 = vadd.f32 %v4577_v13, %v16570_v8  ;;  %v4315_v57 = vadd.f32 %v16571_v36, %v14440_v17  ;;  %v5441_v24 = vadd.f32 %v14476_v5, %v5373_v38  ;;  %v10279_v14 = vpop.f32.mrf.mxu0  ;;  %v10233_v36 = vpop.f32.mrf.mxu1 }
 0x3c2   :  { %v5306_v44 = vsel %vm5178_vm3, %v5114_v4, %v5242_v19  ;;  %v5439_v60 = vadd.f32 %v14476_v5, %v5371_v42  ;;  %vm5176_vm4 = vcmp.ge.f32.partialorder %v5112_v1, 0.0  ;;  %v5240_v40 = vmul.f32 0.2, %v5112_v1  ;;  %v5680_v51 = vld [vmem:[#allocation3 + $0x158] sm:$0xff] }
 0x3c3   :  { %v5374_v50 = vmul.f32 %v14473_v27, %v5306_v44  ;;  %5607 = vst.msk [vmem:[#allocation3 + $0x178] sm:$0xff] %vm5475_vm2, %v5441_v24  ;;  %vm5181_vm5 = vcmp.ge.f32.partialorder %v5117_v62, 0.0  ;;  %v5245_v47 = vmul.f32 0.2, %v5117_v62  ;;  %v5115_v13 = vadd.f32 %v14464_v39, %v5046_v2  ;;  %v4890_v17 = vpop.f32.mrf.mxu0  ;;  %v16573_v2 = vld [vmem:[#allocation73_spill] sm:$0xff] }
 0x3c4   :  { %v5049_v55 = vadd.f32 %v10279_v14, %v14649_v59  ;;  %v14871_v53 = vadd.f32 %v10229_v9, %v16572_v33  ;;  %5605 = vst.msk [vmem:[#allocation3 + $0x168] sm:$0xff] %vm5475_vm2, %v5439_v60  ;;  %v5304_v46 = vsel %vm5176_vm4, %v5112_v1, %v5240_v40  ;;  %v5047_v49 = vadd.f32 %v4890_v17, %v14660_v25  ;;  %v5678_v54 = vld [vmem:[#allocation3 + $0x148] sm:$0xff] }
 0x3c5   :  { %v5442_v63 = vadd.f32 %v14476_v5, %v5374_v50  ;;  %v5372_v31 = vmul.f32 %v14473_v27, %v5304_v46  ;;  %v5309_v18 = vsel %vm5181_vm5, %v5117_v62, %v5245_v47  ;;  %vm5179_vm6 = vcmp.ge.f32.partialorder %v5115_v13, 0.0  ;;  %v10282_v61 = vpop.f32.mrf.mxu0 }
 0x3c6   :  { %v5243_v4 = vmul.f32 0.2, %v5115_v13  ;;  %v5377_v59 = vmul.f32 %v14473_v27, %v5309_v18  ;;  %v5118_v9 = vadd.f32 %v14464_v39, %v5049_v55  ;;  %v5116_v6 = vadd.f32 %v14464_v39, %v5047_v49 }
 0x3c7   :  { %5608 = vst.msk [vmem:[#allocation3 + $0x180] sm:$0xff] %vm5475_vm2, %v5442_v63  ;;  %v5052_v56 = vadd.f32 %v10282_v61, %v14675_v52  ;;  %v14882_v25 = vadd.f32 %v4580_v26, %v4315_v57  ;;  %v5440_v23 = vadd.f32 %v14476_v5, %v5372_v31  ;;  %v14885_v38 = vpack.c.bf16 %v5680_v51, %v5678_v54  ;;  %v4903_v41 = vpop.f32.mrf.mxu0  ;;  %v4596_v31 = vpop.f32.mrf.mxu1 }
 0x3c8   :  { %v5307_v35 = vsel %vm5179_vm6, %v5115_v13, %v5243_v4  ;;  %v5445_v19 = vadd.f32 %v14476_v5, %v5377_v59  ;;  %vm5182_vm7 = vcmp.ge.f32.partialorder %v5118_v9, 0.0  ;;  %v5246_v42 = vmul.f32 0.2, %v5118_v9 }
 0x3c9   :  { %v5375_v37 = vmul.f32 %v14473_v27, %v5307_v35  ;;  %5606 = vst.msk [vmem:[#allocation3 + $0x170] sm:$0xff] %vm5475_vm2, %v5440_v23  ;;  %vm5180_vm8 = vcmp.ge.f32.partialorder %v5116_v6, 0.0  ;;  %v5244_v1 = vmul.f32 0.2, %v5116_v6  ;;  %v5121_v52 = vadd.f32 %v14464_v39, %v5052_v56  ;;  %10318 = vmatprep.mubr.msk.bf16.mxu1 %vm5475_vm2, %v14885_v38  ;;  %v10283_v62 = vpop.f32.mrf.mxu0 }
 0x3ca   :  { %v5050_v26 = vadd.f32 %v4903_v41, %v14679_v43  ;;  %v14895_v8 = vadd.f32 %v10232_v22, %v16573_v2  ;;  %5611 = vst.msk [vmem:[#allocation3 + $0x1a8] sm:$0xff] %vm5475_vm2, %v5445_v19  ;;  %v5310_v24 = vsel %vm5182_vm7, %v5118_v9, %v5246_v42  ;;  %v5053_v44 = vadd.f32 %v10283_v62, %v14702_v32  ;;  %v5684_v17 = vld [vmem:[#allocation3 + $0x178] sm:$0xff]  ;;  %v10236_v42 = vpop.f32.mrf.mxu1  ;;  %v16576_v62 = vld [vmem:[#allocation75_spill] sm:$0xff] }
 0x3cb   :  { %v5443_v57 = vadd.f32 %v14476_v5, %v5375_v37  ;;  %v5378_v14 = vmul.f32 %v14473_v27, %v5310_v24  ;;  %v5308_v60 = vsel %vm5180_vm8, %v5116_v6, %v5244_v1  ;;  %vm5185_vm9 = vcmp.ge.f32.partialorder %v5121_v52, 0.0  ;;  %v4906_v40 = vpop.f32.mrf.mxu0  ;;  %v5682_v47 = vld [vmem:[#allocation3 + $0x168] sm:$0xff]  ;;  %v16574_v32 = vld [vmem:[#allocation97_spill] sm:$0xff] }
 0x3cc   :  { %v5249_v50 = vmul.f32 0.2, %v5121_v52  ;;  %v5376_v43 = vmul.f32 %v14473_v27, %v5308_v60  ;;  %v5119_v22 = vadd.f32 %v14464_v39, %v5050_v26  ;;  %v5122_v13 = vadd.f32 %v14464_v39, %v5053_v44  ;;  %v16575_v6 = vld [vmem:[#allocation72_spill] sm:$0xff] }
 0x3cd   :  { %5609 = vst.msk [vmem:[#allocation3 + $0x198] sm:$0xff] %vm5475_vm2, %v5443_v57  ;;  %v5051_v55 = vadd.f32 %v4906_v40, %v14714_v58  ;;  %v4319_v33 = vadd.f32 %v16574_v32, %v14444_v30  ;;  %v5446_v63 = vadd.f32 %v14476_v5, %v5378_v14  ;;  %v10286_v49 = vpop.f32.mrf.mxu0  ;;  %v14909_v54 = vpack.c.bf16 %v5684_v17, %v5682_v47 }
 0x3ce   :  { %v5313_v46 = vsel %vm5185_vm9, %v5121_v52, %v5249_v50  ;;  %v5444_v18 = vadd.f32 %v14476_v5, %v5376_v43  ;;  %vm5183_vm10 = vcmp.ge.f32.partialorder %v5119_v22, 0.0  ;;  %v5247_v61 = vmul.f32 0.2, %v5119_v22 }
 0x3cf   :  { %v5381_v4 = vmul.f32 %v14473_v27, %v5313_v46  ;;  %5612 = vst.msk [vmem:[#allocation3 + $0x1b0] sm:$0xff] %vm5475_vm2, %v5446_v63  ;;  %vm5186_vm11 = vcmp.ge.f32.partialorder %v5122_v13, 0.0  ;;  %v5250_v58 = vmul.f32 0.2, %v5122_v13  ;;  %v5120_v59 = vadd.f32 %v14464_v39, %v5051_v55  ;;  %10319 = vmatmul.mubr.msk.bf16.gmra.mxu1 %vm5475_vm2, %v14909_v54  ;;  %v4919_v9 = vpop.f32.mrf.mxu0 }
 0x3d0   :  { %v5056_v30 = vadd.f32 %v10286_v49, %v14733_v15  ;;  %v14919_v56 = vadd.f32 %v4593_v11, %v16575_v6  ;;  %5610 = vst.msk [vmem:[#allocation3 + $0x1a0] sm:$0xff] %vm5475_vm2, %v5444_v18  ;;  %v5311_v23 = vsel %vm5183_vm10, %v5119_v22, %v5247_v61  ;;  %v5054_v35 = vadd.f32 %v4919_v9, %v14760_v45 }
 0x3d1   :  { %v5449_v51 = vadd.f32 %v14476_v5, %v5381_v4  ;;  %v5379_v41 = vmul.f32 %v14473_v27, %v5311_v23  ;;  %v5314_v19 = vsel %vm5186_vm11, %v5122_v13, %v5250_v58  ;;  %vm5184_vm12 = vcmp.ge.f32.partialorder %v5120_v59, 0.0  ;;  %v10287_v15 = vpop.f32.mrf.mxu0  ;;  %v5689_v22 = vld [vmem:[#allocation3 + $0x1a8] sm:$0xff]  ;;  %v4609_v13 = vpop.f32.mrf.mxu1 }
 0x3d2   :  { %v5248_v37 = vmul.f32 0.2, %v5120_v59  ;;  %v5382_v1 = vmul.f32 %v14473_v27, %v5314_v19  ;;  %v5125_v11 = vadd.f32 %v14464_v39, %v5056_v30  ;;  %v5123_v52 = vadd.f32 %v14464_v39, %v5054_v35 }
 0x3d3   :  { %5615 = vst.msk [vmem:[#allocation3 + $0x1c8] sm:$0xff] %vm5475_vm2, %v5449_v51  ;;  %v5057_v26 = vadd.f32 %v10287_v15, %v14764_v12  ;;  %v14931_v2 = vadd.f32 %v10233_v36, %v16576_v62  ;;  %v14933_v45 = vadd.f32 %v4596_v31, %v4319_v33  ;;  %v5447_v57 = vadd.f32 %v14476_v5, %v5379_v41  ;;  %v4922_v44 = vpop.f32.mrf.mxu0  ;;  %v10237_v19 = vpop.f32.mrf.mxu1 }
 0x3d4   :  { %v5312_v24 = vsel %vm5184_vm12, %v5120_v59, %v5248_v37  ;;  %v5687_v14 = vld [vmem:[#allocation3 + $0x198] sm:$0xff]  ;;  %v5450_v60 = vadd.f32 %v14476_v5, %v5382_v1  ;;  %vm5189_vm13 = vcmp.ge.f32.partialorder %v5125_v11, 0.0  ;;  %v5253_v40 = vmul.f32 0.2, %v5125_v11  ;;  %v16578_v59 = vld [vmem:[#allocation83_spill] sm:$0xff] }
 0x3d5   :  { %v5380_v50 = vmul.f32 %v14473_v27, %v5312_v24  ;;  %5613 = vst.msk [vmem:[#allocation3 + $0x1b8] sm:$0xff] %vm5475_vm2, %v5447_v57  ;;  %vm5187_vm14 = vcmp.ge.f32.partialorder %v5123_v52, 0.0  ;;  %v5251_v12 = vmul.f32 0.2, %v5123_v52  ;;  %v5126_v36 = vadd.f32 %v14464_v39, %v5057_v26  ;;  %v10290_v43 = vpop.f32.mrf.mxu0  ;;  %v16579_v1 = vld [vmem:[#allocation87_spill] sm:$0xff] }
 0x3d6   :  { %v5055_v47 = vadd.f32 %v4922_v44, %v14775_v34  ;;  %5616 = vst.msk [vmem:[#allocation3 + $0x1d0] sm:$0xff] %vm5475_vm2, %v5450_v60  ;;  %v5317_v17 = vsel %vm5189_vm13, %v5125_v11, %v5253_v40  ;;  %v5060_v32 = vadd.f32 %v10290_v43, %v14790_v29  ;;  %v6309_v33 = vpack.c.bf16 %v5689_v22, %v5687_v14  ;;  %v16577_v29 = vld [vmem:[#allocation78_spill] sm:$0xff] }
 0x3d7   :  { %v5448_v55 = vadd.f32 %v14476_v5, %v5380_v50  ;;  %v5385_v63 = vmul.f32 %v14473_v27, %v5317_v17  ;;  %v5315_v46 = vsel %vm5187_vm14, %v5123_v52, %v5251_v12  ;;  %vm5190_vm15 = vcmp.ge.f32.partialorder %v5126_v36, 0.0  ;;  %v4935_v31 = vpop.f32.mrf.mxu0 }
 0x3d8   :  { %v5254_v49 = vmul.f32 0.2, %v5126_v36  ;;  %v5383_v34 = vmul.f32 %v14473_v27, %v5315_v46  ;;  %v5124_v18 = vadd.f32 %v14464_v39, %v5055_v47  ;;  %v5129_v4 = vadd.f32 %v14464_v39, %v5060_v32  ;;  %10390 = vmatprep.mubr.msk.bf16.mxu0 %vm5475_vm2, %v6309_v33  ;;  %v4612_v47 = vpop.f32.mrf.mxu1 }
 0x3d9   :  { %5614 = vst.msk [vmem:[#allocation3 + $0x1c0] sm:$0xff] %vm5475_vm2, %v5448_v55  ;;  %v5058_v61 = vadd.f32 %v4935_v31, %v14804_v20  ;;  %v14952_v58 = vadd.f32 %v10236_v42, %v16577_v29  ;;  %v14955_v30 = vadd.f32 %v4609_v13, %v16578_v59  ;;  %v5453_v9 = vadd.f32 %v14476_v5, %v5385_v63  ;;  %v10291_v51 = vpop.f32.mrf.mxu0  ;;  %v14991_v29 = vld [vmem:[#allocation3 + $0x10] sm:$0xff] }
 0x3da   :  { %v5318_v6 = vsel %vm5190_vm15, %v5126_v36, %v5254_v49  ;;  %v5451_v23 = vadd.f32 %v14476_v5, %v5383_v34  ;;  %vm5188_vm0 = vcmp.ge.f32.partialorder %v5124_v18, 0.0  ;;  %v5252_v41 = vmul.f32 0.2, %v5124_v18  ;;  %v5693_v12 = vld [vmem:[#allocation3 + $0x1c8] sm:$0xff] }
 0x3db   :  { %v5386_v35 = vmul.f32 %v14473_v27, %v5318_v6  ;;  %5619 = vst.msk [vmem:[#allocation3 + $0x1f8] sm:$0xff] %vm5475_vm2, %v5453_v9  ;;  %vm5193_vm1 = vcmp.ge.f32.partialorder %v5129_v4, 0.0  ;;  %v5257_v20 = vmul.f32 0.2, %v5129_v4  ;;  %v5127_v37 = vadd.f32 %v14464_v39, %v5058_v61  ;;  %v4938_v42 = vpop.f32.mrf.mxu0  ;;  %v16580_v36 = vld [vmem:[#allocation88_spill] sm:$0xff]  ;;  %v14989_v61 = vld [vmem:[#allocation3] sm:$0xff] }
 0x3dc   :  { %v5061_v15 = vadd.f32 %v10291_v51, %v14826_v21  ;;  %v4323_v11 = vadd.f32 %v16579_v1, %v14448_v28  ;;  %5617 = vst.msk [vmem:[#allocation3 + $0x1e8] sm:$0xff] %vm5475_vm2, %v5451_v23  ;;  %v5316_v26 = vsel %vm5188_vm0, %v5124_v18, %v5252_v41  ;;  %v5059_v62 = vadd.f32 %v4938_v42, %v14838_v0  ;;  %v5691_v57 = vld [vmem:[#allocation3 + $0x1b8] sm:$0xff] }
 0x3dd   :  { %v5454_v52 = vadd.f32 %v14476_v5, %v5386_v35  ;;  %v5384_v24 = vmul.f32 %v14473_v27, %v5316_v26  ;;  %v5321_v44 = vsel %vm5193_vm1, %v5129_v4, %v5257_v20  ;;  %vm5191_vm3 = vcmp.ge.f32.partialorder %v5127_v37, 0.0  ;;  %v10294_v60 = vpop.f32.mrf.mxu0  ;;  %v10240_v20 = vpop.f32.mrf.mxu1  ;;  %v15006_v26 = vld [vmem:[#allocation3 + $0x30] sm:$0xff] }
 0x3de   :  { %v5255_v14 = vmul.f32 0.2, %v5127_v37  ;;  %v5389_v21 = vmul.f32 %v14473_v27, %v5321_v44  ;;  %v5130_v28 = vadd.f32 %v14464_v39, %v5061_v15  ;;  %v5128_v50 = vadd.f32 %v14464_v39, %v5059_v62 }
 0x3df   :  { %5620 = vst.msk [vmem:[#allocation3 + $0x200] sm:$0xff] %vm5475_vm2, %v5454_v52  ;;  %v5064_v40 = vadd.f32 %v10294_v60, %v14841_v16  ;;  %v14975_v0 = vadd.f32 %v10237_v19, %v16580_v36  ;;  %v5452_v43 = vadd.f32 %v14476_v5, %v5384_v24  ;;  %v6310_v13 = vpack.c.bf16 %v5693_v12, %v5691_v57  ;;  %v4951_v55 = vpop.f32.mrf.mxu0  ;;  %v15004_v52 = vld [vmem:[#allocation3 + $0x20] sm:$0xff]  ;;  %v4625_v12 = vpop.f32.mrf.mxu1 }
 0x3e0   :  { %v5319_v22 = vsel %vm5191_vm3, %v5127_v37, %v5255_v14  ;;  %v5457_v17 = vadd.f32 %v14476_v5, %v5389_v21  ;;  %vm5194_vm4 = vcmp.ge.f32.partialorder %v5130_v28, 0.0  ;;  %v5258_v33 = vmul.f32 0.2, %v5130_v28 }
 0x3e1   :  { %v5387_v32 = vmul.f32 %v14473_v27, %v5319_v22  ;;  %5618 = vst.msk [vmem:[#allocation3 + $0x1f0] sm:$0xff] %vm5475_vm2, %v5452_v43  ;;  %vm5192_vm5 = vcmp.ge.f32.partialorder %v5128_v50, 0.0  ;;  %v5256_v16 = vmul.f32 0.2, %v5128_v50  ;;  %v5133_v63 = vadd.f32 %v14464_v39, %v5064_v40  ;;  %10391 = vmatmul.mubr.msk.bf16.gmra.mxu0 %vm5475_vm2, %v6310_v13  ;;  %v10295_v49 = vpop.f32.mrf.mxu0 }
 0x3e2   :  { %v5062_v46 = vadd.f32 %v4951_v55, %v14860_v3  ;;  %v14984_v31 = vadd.f32 %v4612_v47, %v4323_v11  ;;  %5623 = vst.msk [vmem:[#allocation3 + $0x218] sm:$0xff] %vm5475_vm2, %v5457_v17  ;;  %v5322_v18 = vsel %vm5194_vm4, %v5130_v28, %v5258_v33  ;;  %v5065_v4 = vadd.f32 %v10295_v49, %v14871_v53  ;;  %v5698_v19 = vld [vmem:[#allocation3 + $0x1f8] sm:$0xff]  ;;  %v16581_v17 = vld [vmem:[#allocation99_spill] sm:$0xff] }
 0x3e3   :  { %v5455_v34 = vadd.f32 %v14476_v5, %v5387_v32  ;;  %v5390_v59 = vmul.f32 %v14473_v27, %v5322_v18  ;;  %v5320_v9 = vsel %vm5192_vm5, %v5128_v50, %v5256_v16  ;;  %vm5197_vm6 = vcmp.ge.f32.partialorder %v5133_v63, 0.0  ;;  %v4954_v3 = vpop.f32.mrf.mxu0  ;;  %v5696_v51 = vld [vmem:[#allocation3 + $0x1e8] sm:$0xff]  ;;  %v16582_v33 = vld [vmem:[#allocation21_spill] sm:$0xff] }
 0x3e4   :  { %v5261_v6 = vmul.f32 0.2, %v5133_v63  ;;  %v5388_v23 = vmul.f32 %v14473_v27, %v5320_v9  ;;  %v5131_v35 = vadd.f32 %v14464_v39, %v5062_v46  ;;  %v5134_v41 = vadd.f32 %v14464_v39, %v5065_v4  ;;  %v10241_v9 = vpop.f32.mrf.mxu1 }
 0x3e5   :  { %5621 = vst.msk [vmem:[#allocation3 + $0x208] sm:$0xff] %vm5475_vm2, %v5455_v34  ;;  %v5063_v53 = vadd.f32 %v4954_v3, %v14882_v25  ;;  %v5458_v37 = vadd.f32 %v14476_v5, %v5390_v59  ;;  %v10298_v42 = vpop.f32.mrf.mxu0  ;;  %v15000_v1 = vpack.c.bf16 %v5698_v19, %v5696_v51  ;;  %v5722_v11 = vpack.c.bf16 %v14991_v29, %v14989_v61 }
 0x3e6   :  { %v5325_v15 = vsel %vm5197_vm6, %v5133_v63, %v5261_v6  ;;  %v5456_v62 = vadd.f32 %v14476_v5, %v5388_v23  ;;  %vm5195_vm7 = vcmp.ge.f32.partialorder %v5131_v35, 0.0  ;;  %v5259_v25 = vmul.f32 0.2, %v5131_v35 }
 0x3e7   :  { %v5393_v57 = vmul.f32 %v14473_v27, %v5325_v15  ;;  %5624 = vst.msk [vmem:[#allocation3 + $0x220] sm:$0xff] %vm5475_vm2, %v5458_v37  ;;  %vm5198_vm8 = vcmp.ge.f32.partialorder %v5134_v41, 0.0  ;;  %v5262_v24 = vmul.f32 0.2, %v5134_v41  ;;  %v5132_v44 = vadd.f32 %v14464_v39, %v5063_v53  ;;  %10322 = vmatprep.mubr.msk.bf16.mxu1 %vm5475_vm2, %v15000_v1  ;;  %v4967_v60 = vpop.f32.mrf.mxu0 }
 0x3e8   :  { %v5068_v14 = vadd.f32 %v10298_v42, %v14895_v8  ;;  %5622 = vst.msk [vmem:[#allocation3 + $0x210] sm:$0xff] %vm5475_vm2, %v5456_v62  ;;  %v5323_v28 = vsel %vm5195_vm7, %v5131_v35, %v5259_v25  ;;  %v5066_v50 = vadd.f32 %v4967_v60, %v14919_v56  ;;  %v5723_v40 = vpack.c.bf16 %v15006_v26, %v15004_v52 }
 0x3e9   :  { %v5461_v21 = vadd.f32 %v14476_v5, %v5393_v57  ;;  %v5391_v36 = vmul.f32 %v14473_v27, %v5323_v28  ;;  %v5326_v47 = vsel %vm5198_vm8, %v5134_v41, %v5262_v24  ;;  %vm5196_vm9 = vcmp.ge.f32.partialorder %v5132_v44, 0.0  ;;  %v10299_v43 = vpop.f32.mrf.mxu0  ;;  %v5702_v51 = vld [vmem:[#allocation3 + $0x218] sm:$0xff]  ;;  %v16583_v57 = vld [vmem:[#allocation20_spill] sm:$0xff] }
 0x3ea   :  { %v5260_v8 = vmul.f32 0.2, %v5132_v44  ;;  %v5394_v22 = vmul.f32 %v14473_v27, %v5326_v47  ;;  %v5137_v13 = vadd.f32 %v14464_v39, %v5068_v14  ;;  %v5135_v55 = vadd.f32 %v14464_v39, %v5066_v50  ;;  %v16584_v24 = vld [vmem:[#allocation104_spill] sm:$0xff]  ;;  %v4628_v14 = vpop.f32.mrf.mxu1 }
 0x3eb   :  { %5627 = vst.msk [vmem:[#allocation3 + $0x248] sm:$0xff] %vm5475_vm2, %v5461_v21  ;;  %v5069_v56 = vadd.f32 %v10299_v43, %v14931_v2  ;;  %v15027_v32 = vadd.f32 %v10240_v20, %v16581_v17  ;;  %v4327_v16 = vadd.f32 %v16582_v33, %v14452_v10  ;;  %v5459_v63 = vadd.f32 %v14476_v5, %v5391_v36  ;;  %v4970_v49 = vpop.f32.mrf.mxu0  ;;  %v15065_v17 = vld [vmem:[#allocation3 + $0xb0] sm:$0xff] }
 0x3ec   :  { %v5324_v46 = vsel %vm5196_vm9, %v5132_v44, %v5260_v8  ;;  %v5700_v34 = vld [vmem:[#allocation3 + $0x208] sm:$0xff]  ;;  %v5462_v18 = vadd.f32 %v14476_v5, %v5394_v22  ;;  %vm5201_vm10 = vcmp.ge.f32.partialorder %v5137_v13, 0.0  ;;  %v5265_v59 = vmul.f32 0.2, %v5137_v13 }
 0x3ed   :  { %v5392_v4 = vmul.f32 %v14473_v27, %v5324_v46  ;;  %5625 = vst.msk [vmem:[#allocation3 + $0x238] sm:$0xff] %vm5475_vm2, %v5459_v63  ;;  %vm5199_vm11 = vcmp.ge.f32.partialorder %v5135_v55, 0.0  ;;  %v5263_v2 = vmul.f32 0.2, %v5135_v55  ;;  %v5138_v6 = vadd.f32 %v14464_v39, %v5069_v56  ;;  %v10302_v3 = vpop.f32.mrf.mxu0  ;;  %v5659_v56 = vld [vmem:[#allocation3 + $0xa0] sm:$0xff] }
 0x3ee   :  { %v5067_v10 = vadd.f32 %v4970_v49, %v14933_v45  ;;  %5628 = vst.msk [vmem:[#allocation3 + $0x250] sm:$0xff] %vm5475_vm2, %v5462_v18  ;;  %v5329_v35 = vsel %vm5201_vm10, %v5137_v13, %v5265_v59  ;;  %v5072_v41 = vadd.f32 %v10302_v3, %v14952_v58  ;;  %v15040_v53 = vpack.c.bf16 %v5702_v51, %v5700_v34 }
 0x3ef   :  { %v5460_v23 = vadd.f32 %v14476_v5, %v5392_v4  ;;  %v5397_v19 = vmul.f32 %v14473_v27, %v5329_v35  ;;  %v5327_v20 = vsel %vm5199_vm11, %v5135_v55, %v5263_v2  ;;  %vm5202_vm12 = vcmp.ge.f32.partialorder %v5138_v6, 0.0  ;;  %v4983_v15 = vpop.f32.mrf.mxu0  ;;  %v15076_v4 = vld [vmem:[%s15932_s3 + $0x18] sm:$0xff]  }
 0x3f0   :  { %v5266_v37 = vmul.f32 0.2, %v5138_v6  ;;  %v5395_v45 = vmul.f32 %v14473_v27, %v5327_v20  ;;  %v5136_v42 = vadd.f32 %v14464_v39, %v5067_v10  ;;  %v5141_v62 = vadd.f32 %v14464_v39, %v5072_v41  ;;  %10323 = vmatmul.mubr.msk.bf16.gmra.mxu1 %vm5475_vm2, %v15040_v53  ;;  %v10727_v41 = vld [vmem:[%s15932_s3 + $0x10] sm:$0xff]  }
 0x3f1   :  { %5626 = vst.msk [vmem:[#allocation3 + $0x240] sm:$0xff] %vm5475_vm2, %v5460_v23  ;;  %v5070_v58 = vadd.f32 %v4983_v15, %v14955_v30  ;;  %v4700_v25 = vadd.f32 %v4625_v12, %v16583_v57  ;;  %v4703_v44 = vadd.f32 %v10241_v9, %v16584_v24  ;;  %v5465_v60 = vadd.f32 %v14476_v5, %v5397_v19  ;;  %v10303_v28 = vpop.f32.mrf.mxu0  ;;  %v5677_v24 = vld [vmem:[#allocation3 + $0x140] sm:$0xff] }
 0x3f2   :  { %v5330_v21 = vsel %vm5202_vm12, %v5138_v6, %v5266_v37  ;;  %10328 = vmatprep.mubr.msk.bf16.mxu1 %vm5475_vm2, %v5722_v11  ;;  %v5463_v50 = vadd.f32 %v14476_v5, %v5395_v45  ;;  %vm5200_vm13 = vcmp.ge.f32.partialorder %v5136_v42, 0.0  ;;  %v5264_v30 = vmul.f32 0.2, %v5136_v42  ;;  %v5707_v18 = vld [vmem:[#allocation3 + $0x248] sm:$0xff]  ;;  %v15095_v45 = vld [vmem:[#allocation3 + $0xd0] sm:$0xff] }
 0x3f3   :  { %v5398_v36 = vmul.f32 %v14473_v27, %v5330_v21  ;;  %5631 = vst.msk [vmem:[#allocation3 + $0x268] sm:$0xff] %vm5475_vm2, %v5465_v60  ;;  %vm5205_vm14 = vcmp.ge.f32.partialorder %v5141_v62, 0.0  ;;  %v5269_v12 = vmul.f32 0.2, %v5141_v62  ;;  %v5139_v47 = vadd.f32 %v14464_v39, %v5070_v58  ;;  %v4986_v43 = vpop.f32.mrf.mxu0 }
 0x3f4   :  { %v5073_v8 = vadd.f32 %v10303_v28, %v14975_v0  ;;  %v4701_v22 = vadd.f32 %v4628_v14, %v4327_v16  ;;  %5629 = vst.msk [vmem:[#allocation3 + $0x258] sm:$0xff] %vm5475_vm2, %v5463_v50  ;;  %v5328_v11 = vsel %vm5200_vm13, %v5136_v42, %v5264_v30  ;;  %v5071_v13 = vadd.f32 %v4986_v43, %v14984_v31  ;;  %v5705_v55 = vld [vmem:[#allocation3 + $0x238] sm:$0xff]  ;;  %v15104_v28 = vld [vmem:[#allocation3 + $0xc0] sm:$0xff] }
 0x3f5   :  { %v5466_v61 = vadd.f32 %v14476_v5, %v5398_v36  ;;  %v5396_v33 = vmul.f32 %v14473_v27, %v5328_v11  ;;  %v5333_v63 = vsel %vm5205_vm14, %v5141_v62, %v5269_v12  ;;  %vm5203_vm15 = vcmp.ge.f32.partialorder %v5139_v47, 0.0  ;;  %v10306_v49 = vpop.f32.mrf.mxu0  ;;  %v15106_v36 = vld [vmem:[#allocation3 + $0x150] sm:$0xff] }
 0x3f6   :  { %v5267_v46 = vmul.f32 0.2, %v5139_v47  ;;  %v5401_v0 = vmul.f32 %v14473_v27, %v5333_v63  ;;  %v5142_v16 = vadd.f32 %v14464_v39, %v5073_v8  ;;  %v5140_v34 = vadd.f32 %v14464_v39, %v5071_v13 }
 0x3f7   :  { %5632 = vst.msk [vmem:[#allocation3 + $0x270] sm:$0xff] %vm5475_vm2, %v5466_v61  ;;  %v5076_v31 = vadd.f32 %v10306_v49, %v15027_v32  ;;  %v5464_v59 = vadd.f32 %v14476_v5, %v5396_v33  ;;  %v6311_v2 = vpack.c.bf16 %v5707_v18, %v5705_v55  ;;  %v5724_v6 = vpack.c.bf16 %v15065_v17, %v5659_v56  ;;  %v4999_v10 = vpop.f32.mrf.mxu0 }
 0x3f8   :  { %v5331_v9 = vsel %vm5203_vm15, %v5139_v47, %v5267_v46  ;;  %v5469_v3 = vadd.f32 %v14476_v5, %v5401_v0  ;;  %vm5206_vm0 = vcmp.ge.f32.partialorder %v5142_v16, 0.0  ;;  %v5270_v23 = vmul.f32 0.2, %v5142_v16  ;;  %10329 = vmatmul.mubr.msk.bf16.vlgmr.msra.gmra.mxu1 %vm5475_vm2, %v5723_v40 }
 0x3f9   :  { %v5399_v51 = vmul.f32 %v14473_v27, %v5331_v9  ;;  %5630 = vst.msk [vmem:[#allocation3 + $0x260] sm:$0xff] %vm5475_vm2, %v5464_v59  ;;  %vm5204_vm1 = vcmp.ge.f32.partialorder %v5140_v34, 0.0  ;;  %v5268_v32 = vmul.f32 0.2, %v5140_v34  ;;  %v5145_v35 = vadd.f32 %v14464_v39, %v5076_v31  ;;  %10345 = vmatpush3.bf16.msra.mxu1 %v10727_v41  ;;  %10394 = vmatprep.mubr.msk.bf16.mxu0 %vm5475_vm2, %v6311_v2  ;;  %v10307_v20 = vpop.f32.mrf.mxu0  ;;  %v5695_v59 = vld [vmem:[#allocation3 + $0x1e0] sm:$0xff]  ;;  %v5697_v9 = vld [vmem:[#allocation3 + $0x1f0] sm:$0xff] }
 0x3fa   :  { %v5074_v19 = vadd.f32 %v4999_v10, %v4700_v25  ;;  %5635 = vst.msk [vmem:[#allocation3 + $0x298] sm:$0xff] %vm5475_vm2, %v5469_v3  ;;  %v5334_v40 = vsel %vm5206_vm0, %v5142_v16, %v5270_v23  ;;  %10332 = vmatprep.mubr.msk.bf16.mxu1 %vm5475_vm2, %v5724_v6  ;;  %v5077_v15 = vadd.f32 %v10307_v20, %v4703_v44  ;;  %v5711_v50 = vld [vmem:[#allocation3 + $0x268] sm:$0xff]  ;;  %v5681_v2 = vld [vmem:[#allocation3 + $0x160] sm:$0xff] }
 0x3fb   :  { %v5467_v37 = vadd.f32 %v14476_v5, %v5399_v51  ;;  %10362 = vmatprep.subr.bf16.mxu1 %v15076_v4  ;;  %v5402_v42 = vmul.f32 %v14473_v27, %v5334_v40  ;;  %v5332_v62 = vsel %vm5204_vm1, %v5140_v34, %v5268_v32  ;;  %vm5209_vm3 = vcmp.ge.f32.partialorder %v5145_v35, 0.0  ;;  %v5002_v57 = vpop.f32.mrf.mxu0  ;;  %v5709_v25 = vld [vmem:[#allocation3 + $0x258] sm:$0xff]  ;;  %v5683_v34 = vld [vmem:[#allocation3 + $0x170] sm:$0xff]  ;;  %v5699_v23 = vld [vmem:[#allocation3 + $0x200] sm:$0xff] }
 0x3fc   :  { %v5273_v58 = vmul.f32 0.2, %v5145_v35  ;;  %v5400_v14 = vmul.f32 %v14473_v27, %v5332_v62  ;;  %v5143_v60 = vadd.f32 %v14464_v39, %v5074_v19  ;;  %v5146_v44 = vadd.f32 %v14464_v39, %v5077_v15  ;;  %v5701_v51 = vld [vmem:[#allocation3 + $0x210] sm:$0xff]  ;;  %v5713_v41 = vld [vmem:[#allocation3 + $0x280] sm:$0xff]  ;;  %v10668_v40 = vld [vmem:[%s15932_s3 + $0x28] sm:$0xff]  }
 0x3fd   :  { %5633 = vst.msk [vmem:[#allocation3 + $0x288] sm:$0xff] %vm5475_vm2, %v5467_v37  ;;  %v5075_v21 = vadd.f32 %v5002_v57, %v4701_v22  ;;  %v5470_v30 = vadd.f32 %v14476_v5, %v5402_v42  ;;  %v5725_v47 = vpack.c.bf16 %v15095_v45, %v15104_v28  ;;  %v6312_v8 = vpack.c.bf16 %v5711_v50, %v5709_v25  ;;  %v5667_v15 = vld [vmem:[#allocation3 + $0xe0] sm:$0xff]  ;;  %v5654_v50 = vld [vmem:[#allocation3 + $0x70] sm:$0xff] }
 0x3fe   :  { %v5337_v12 = vsel %vm5209_vm3, %v5145_v35, %v5273_v58  ;;  %v5468_v43 = vadd.f32 %v14476_v5, %v5400_v14  ;;  %vm5207_vm4 = vcmp.ge.f32.partialorder %v5143_v60, 0.0  ;;  %v5271_v11 = vmul.f32 0.2, %v5143_v60  ;;  %v5649_v35 = vld [vmem:[#allocation3 + $0x40] sm:$0xff] }
 0x3ff   :  { %v5405_v61 = vmul.f32 %v14473_v27, %v5337_v12  ;;  %5636 = vst.msk [vmem:[#allocation3 + $0x2a0] sm:$0xff] %vm5475_vm2, %v5470_v30  ;;  %vm5210_vm5 = vcmp.ge.f32.partialorder %v5146_v44, 0.0  ;;  %v5274_v22 = vmul.f32 0.2, %v5146_v44  ;;  %v5144_v13 = vadd.f32 %v14464_v39, %v5075_v21  ;;  %10395 = vmatmul.mubr.msk.bf16.gmra.mxu0 %vm5475_vm2, %v6312_v8  ;;  %v5652_v25 = vld [vmem:[#allocation3 + $0x60] sm:$0xff]  ;;  %v5668_v21 = vld [vmem:[#allocation3 + $0xf0] sm:$0xff] }
 0x400   :  { %v5726_v55 = vpack.c.bf16 %v15106_v36, %v5677_v24  ;;  %5634 = vst.msk [vmem:[#allocation3 + $0x290] sm:$0xff] %vm5475_vm2, %v5468_v43  ;;  %v5335_v33 = vsel %vm5207_vm4, %v5143_v60, %v5271_v11  ;;  %10333 = vmatmul.mubr.msk.bf16.gmra.mxu1 %vm5475_vm2, %v5725_v47  ;;  %10418 = vmatprep.mubr.msk.bf16.mxu0 %vm5475_vm2, %v5724_v6  ;;  %v5703_v24 = vld [vmem:[#allocation3 + $0x220] sm:$0xff]  ;;  %v10669_v12 = vld [vmem:[%s15932_s3 + $0x38] sm:$0xff]  }
 0x401   :  { %v5473_v56 = vadd.f32 %v14476_v5, %v5405_v61  ;;  %v5403_v63 = vmul.f32 %v14473_v27, %v5335_v33  ;;  %v5338_v46 = vsel %vm5210_vm5, %v5146_v44, %v5274_v22  ;;  %vm5208_vm6 = vcmp.ge.f32.partialorder %v5144_v13, 0.0  ;;  %v5656_v44 = vld [vmem:[#allocation3 + $0x80] sm:$0xff]  ;;  %v5686_v61 = vld [vmem:[#allocation3 + $0x190] sm:$0xff] }
 0x402   :  { %v5272_v49 = vmul.f32 0.2, %v5144_v13  ;;  %10336 = vmatprep.mubr.msk.bf16.mxu1 %vm5475_vm2, %v5726_v55  ;;  %v5406_v39 = vmul.f32 %v14473_v27, %v5338_v46  ;;  %v5727_v10 = vpack.c.bf16 %v5683_v34, %v5681_v2  ;;  %v5728_v3 = vpack.c.bf16 %v5697_v9, %v5695_v59  ;;  %v5674_v8 = vld [vmem:[#allocation3 + $0x120] sm:$0xff]  ;;  %v5672_v22 = vld [vmem:[#allocation3 + $0x110] sm:$0xff] }
 0x403   :  { %5639 = vst.msk [vmem:[#allocation3 + $0x2b8] sm:$0xff] %vm5475_vm2, %v5473_v56  ;;  %v5471_v0 = vadd.f32 %v14476_v5, %v5403_v63  ;;  %v5729_v32 = vpack.c.bf16 %v5701_v51, %v5699_v23  ;;  %v5998_v20 = vpack.c.bf16 %v5649_v35, %v15006_v26  ;;  %v6000_v62 = vpack.c.bf16 %v5667_v15, %v15095_v45  ;;  %v5650_v45 = vld [vmem:[#allocation3 + $0x50] sm:$0xff]  ;;  %v5688_v11 = vld [vmem:[#allocation3 + $0x1a0] sm:$0xff]  ;;  %v15201_v35 = vpop.f32.mrf.mxu1 }
 0x404   :  { %v5336_v16 = vsel %vm5208_vm6, %v5144_v13, %v5272_v49  ;;  %v5474_v31 = vadd.f32 %v14476_v5, %v5406_v39  ;;  %v6001_v58 = vpack.c.bf16 %v5681_v2, %v15106_v36  ;;  %v6003_v57 = vpack.c.bf16 %v5699_v23, %v5697_v9  ;;  %v5692_v33 = vld [vmem:[#allocation3 + $0x1c0] sm:$0xff]  ;;  %v5704_v63 = vld [vmem:[#allocation3 + $0x230] sm:$0xff] }
 0x405   :  { %v5404_v18 = vmul.f32 %v14473_v27, %v5336_v16  ;;  %5637 = vst.msk [vmem:[#allocation3 + $0x2a8] sm:$0xff] %vm5475_vm2, %v5471_v0  ;;  %v10728_v27 = vld [vmem:[%s15932_s3 + $0x40] sm:$0xff]   ;;  %v6004_v14 = vpack.c.bf16 %v5703_v24, %v5701_v51  ;;  %v6151_v60 = vpack.c.bf16 %v5652_v25, %v5650_v45  ;;  %v6152_v36 = vpack.c.bf16 %v5656_v44, %v5654_v50  ;;  %v5690_v49 = vld [vmem:[#allocation3 + $0x1b0] sm:$0xff] }
 0x406   :  { %5640 = vst.msk [vmem:[#allocation3 + $0x2c0] sm:$0xff] %vm5475_vm2, %v5474_v31  ;;  %v5717_v26 = vld [vmem:[#allocation3 + $0x2a0] sm:$0xff]  ;;  %v6155_v56 = vpack.c.bf16 %v5688_v11, %v5686_v61  ;;  %v6156_v39 = vpack.c.bf16 %v5692_v33, %v5690_v49  ;;  %v5658_v59 = vld [vmem:[#allocation3 + $0x90] sm:$0xff] }
 0x407   :  { %v5472_v6 = vadd.f32 %v14476_v5, %v5404_v18  ;;  %10419 = vmatmul.mubr.msk.bf16.vlgmr.msra.gmra.mxu0 %vm5475_vm2, %v5725_v47  ;;  %v5997_v5 = vpack.c.bf16 %v15004_v52, %v14991_v29  ;;  %v5715_v19 = vld [vmem:[#allocation3 + $0x290] sm:$0xff]  ;;  %v5999_v29 = vpack.c.bf16 %v15104_v28, %v15065_v17  ;;  %v5685_v17 = vld [vmem:[#allocation3 + $0x180] sm:$0xff]  ;;  %v6459_v18 = vpack.c.bf16 %v5654_v50, %v5652_v25 }
 0x408   :  { %10337 = vmatmul.mubr.msk.bf16.gmra.mxu1 %vm5475_vm2, %v5727_v10  ;;  %10422 = vmatprep.mubr.msk.bf16.mxu0 %vm5475_vm2, %v5726_v55  ;;  %v6613_v37 = vpack.c.bf16 %v5715_v19, %v5713_v41  ;;  %v5670_v28 = vld [vmem:[#allocation3 + $0x100] sm:$0xff]  ;;  %v6873_v30 = vpack.c.bf16 %v5717_v26, %v5715_v19  ;;  %v6154_v55 = vpack.c.bf16 %v5674_v8, %v5672_v22  ;;  %v5714_v41 = vld [vmem:[#allocation3 + $0x288] sm:$0xff]  ;;  %v5716_v19 = vld [vmem:[#allocation3 + $0x298] sm:$0xff] }
 0x409   :  { %5638 = vst.msk [vmem:[#allocation3 + $0x2b0] sm:$0xff] %vm5475_vm2, %v5472_v6  ;;  %10340 = vmatprep.mubr.msk.bf16.mxu1 %vm5475_vm2, %v5728_v3  ;;  %10453 = vmatpush3.bf16.msra.mxu0 %v10728_v27  ;;  %v6153_v47 = vpack.c.bf16 %v5670_v28, %v5668_v21  ;;  %v5706_v46 = vld [vmem:[#allocation3 + $0x240] sm:$0xff]  ;;  %v6460_v9 = vpack.c.bf16 %v5658_v59, %v5656_v44  ;;  %v5676_v6 = vld [vmem:[#allocation3 + $0x130] sm:$0xff] }
 0x40a   :  { %v6157_v0 = vpack.c.bf16 %v5706_v46, %v5704_v63  ;;  %v5710_v16 = vld [vmem:[#allocation3 + $0x260] sm:$0xff]  ;;  %v6461_v2 = vpack.c.bf16 %v5672_v22, %v5670_v28  ;;  %v5694_v27 = vld [vmem:[#allocation3 + $0x1d0] sm:$0xff]  ;;  %v16585_v22 = vmov 0.0  }
 0x40b   :  { %v6464_v51 = vpack.c.bf16 %v5694_v27, %v5692_v33 }
 0x40d   :  { %v5721_v43 = vld [vmem:[#allocation3 + $0x2c0] sm:$0xff] }
 0x40f   :  { %10423 = vmatmul.mubr.msk.bf16.gmra.mxu0 %vm5475_vm2, %v5727_v10  ;;  %v6462_v10 = vpack.c.bf16 %v5676_v6, %v5674_v8 }
 0x410   :  { %10341 = vmatmul.mubr.msk.bf16.gmra.mxu1 %vm5475_vm2, %v5729_v32  ;;  %10426 = vmatprep.mubr.msk.bf16.mxu0 %vm5475_vm2, %v5728_v3  ;;  %v5719_v52 = vld [vmem:[#allocation3 + $0x2b0] sm:$0xff]  ;;  %v6463_v3 = vpack.c.bf16 %v5690_v49, %v5688_v11 }
 0x411   :  { %10346 = vmatprep.mubr.msk.bf16.mxu1 %vm5475_vm2, %v5997_v5  ;;  %v6614_v42 = vpack.c.bf16 %v5719_v52, %v5717_v26  ;;  %v6874_v13 = vpack.c.bf16 %v5721_v43, %v5719_v52  ;;  %v5712_v5 = vld [vmem:[#allocation3 + $0x270] sm:$0xff] }
 0x417   :  { %10427 = vmatmul.mubr.msk.bf16.gmra.mxu0 %vm5475_vm2, %v5729_v32  ;;  %v6466_v32 = vpack.c.bf16 %v5712_v5, %v5710_v16 }
 0x418   :  { %10347 = vmatmul.mubr.msk.bf16.vlgmr.msra.gmra.mxu1 %vm5475_vm2, %v5998_v20  ;;  %10430 = vmatprep.mubr.msk.bf16.mxu0 %vm5475_vm2, %v6613_v37  ;;  %v6743_v20 = vpack.c.bf16 %v5716_v19, %v5714_v41  ;;  %v15203_v37 = vpop.f32.mrf.mxu1 }
 0x419   :  { %10363 = vmatpush3.bf16.msra.mxu1 %v15076_v4  ;;  %10350 = vmatprep.mubr.msk.bf16.mxu1 %vm5475_vm2, %v5999_v29  ;;  %v6002_v4 = vpack.c.bf16 %v5685_v17, %v5683_v34  ;;  %v5708_v34 = vld [vmem:[#allocation3 + $0x250] sm:$0xff] }
 0x41a   :  { %10398 = vmatprep.subr.bf16.mxu1 %v10668_v40  ;;  %v6158_v31 = vpack.c.bf16 %v5710_v16, %v5708_v34  ;;  %v6465_v23 = vpack.c.bf16 %v5708_v34, %v5706_v46 }
 0x41f   :  { %10431 = vmatmul.mubr.msk.bf16.gmra.mxu0 %vm5475_vm2, %v6614_v42 }
 0x420   :  { %10351 = vmatmul.mubr.msk.bf16.gmra.mxu1 %vm5475_vm2, %v6000_v62  ;;  %10454 = vmatprep.mubr.msk.bf16.mxu0 %vm5475_vm2, %v5999_v29 }
 0x421   :  { %10354 = vmatprep.mubr.msk.bf16.mxu1 %vm5475_vm2, %v6001_v58 }
 0x427   :  { %10455 = vmatmul.mubr.msk.bf16.vlgmr.msra.gmra.mxu0 %vm5475_vm2, %v6000_v62 }
 0x428   :  { %10355 = vmatmul.mubr.msk.bf16.gmra.mxu1 %vm5475_vm2, %v6002_v4  ;;  %10458 = vmatprep.mubr.msk.bf16.mxu0 %vm5475_vm2, %v6001_v58 }
 0x429   :  { %10358 = vmatprep.mubr.msk.bf16.mxu1 %vm5475_vm2, %v6003_v57 }
 0x42f   :  { %10459 = vmatmul.mubr.msk.bf16.gmra.mxu0 %vm5475_vm2, %v6002_v4 }
 0x430   :  { %10359 = vmatmul.mubr.msk.bf16.gmra.mxu1 %vm5475_vm2, %v6004_v14  ;;  %10462 = vmatprep.mubr.msk.bf16.mxu0 %vm5475_vm2, %v6003_v57 }
 0x431   :  { %10364 = vmatprep.mubr.msk.bf16.mxu1 %vm5475_vm2, %v6151_v60 }
 0x437   :  { %10463 = vmatmul.mubr.msk.bf16.gmra.mxu0 %vm5475_vm2, %v6004_v14 }
 0x438   :  { %10365 = vmatmul.mubr.msk.bf16.vlgmr.msra.gmra.mxu1 %vm5475_vm2, %v6152_v36  ;;  %10466 = vmatprep.mubr.msk.bf16.mxu0 %vm5475_vm2, %v6873_v30 }
 0x439   :  { %10399 = vmatpush3.bf16.msra.mxu1 %v10668_v40  ;;  %10368 = vmatprep.mubr.msk.bf16.mxu1 %vm5475_vm2, %v6153_v47 }
 0x43a   :  { %10434 = vmatprep.subr.bf16.mxu1 %v10669_v12 }
 0x43f   :  { %10467 = vmatmul.mubr.msk.bf16.gmra.mxu0 %vm5475_vm2, %v6874_v13 }
 0x440   :  { %10369 = vmatmul.mubr.msk.bf16.gmra.mxu1 %vm5475_vm2, %v6154_v55 }
 0x441   :  { %10372 = vmatprep.mubr.msk.bf16.mxu1 %vm5475_vm2, %v6155_v56  ;;  %v10670_v56 = vld [vmem:[%s15934_s5 + $0x18] sm:$0xff]  }
 0x448   :  { %10373 = vmatmul.mubr.msk.bf16.gmra.mxu1 %vm5475_vm2, %v6156_v39 }
 0x449   :  { %10376 = vmatprep.mubr.msk.bf16.mxu1 %vm5475_vm2, %v6157_v0 }
 0x450   :  { %10377 = vmatmul.mubr.msk.bf16.gmra.mxu1 %vm5475_vm2, %v6158_v31 }
 0x451   :  { %10400 = vmatprep.mubr.msk.bf16.mxu1 %vm5475_vm2, %v6459_v18 }
 0x458   :  { %10401 = vmatmul.mubr.msk.bf16.vlgmr.msra.gmra.mxu1 %vm5475_vm2, %v6460_v9 }
 0x459   :  { %10435 = vmatpush3.bf16.msra.mxu1 %v10669_v12  ;;  %10404 = vmatprep.mubr.msk.bf16.mxu1 %vm5475_vm2, %v6461_v2 }
 0x45a   :  { %10470 = vmatprep.subr.bf16.mxu1 %v10670_v56 }
 0x45f   :  { %v15221_v15 = vpop.f32.mrf.mxu0 }
 0x460   :  { %10405 = vmatmul.mubr.msk.bf16.gmra.mxu1 %vm5475_vm2, %v6462_v10 }
 0x461   :  { %10408 = vmatprep.mubr.msk.bf16.mxu1 %vm5475_vm2, %v6463_v3  ;;  %v15223_v62 = vpop.f32.mrf.mxu0 }
 0x463   :  { %v15225_v17 = vpop.f32.mrf.mxu0 }
 0x465   :  { %v15229_v57 = vpop.f32.mrf.mxu0 }
 0x468   :  { %10409 = vmatmul.mubr.msk.bf16.gmra.mxu1 %vm5475_vm2, %v6464_v51 }
 0x469   :  { %10412 = vmatprep.mubr.msk.bf16.mxu1 %vm5475_vm2, %v6465_v23 }
 0x470   :  { %10413 = vmatmul.mubr.msk.bf16.gmra.mxu1 %vm5475_vm2, %v6466_v32 }
 0x471   :  { %10436 = vmatprep.mubr.msk.bf16.mxu1 %vm5475_vm2, %v14748_v7  ;;  %v5718_v7 = vld [vmem:[#allocation3 + $0x2a8] sm:$0xff] }
 0x478   :  { %10437 = vmatmul.mubr.msk.bf16.vlgmr.msra.gmra.mxu1 %vm5475_vm2, %v14793_v48  ;;  %v15208_v48 = vpop.f32.mrf.mxu1 }
 0x479   :  { %10440 = vmatprep.mubr.msk.bf16.mxu1 %vm5475_vm2, %v14885_v38  ;;  %v5720_v38 = vld [vmem:[#allocation3 + $0x2b8] sm:$0xff]  ;;  %10471 = vmatpush3.bf16.msra.mxu1 %v10670_v56 }
 0x47a   :  { %v15210_v40 = vpop.f32.mrf.mxu1 }
 0x480   :  { %10441 = vmatmul.mubr.msk.bf16.gmra.mxu1 %vm5475_vm2, %v14909_v54  ;;  %v6744_v54 = vpack.c.bf16 %v5720_v38, %v5718_v7  ;;  %v15231_v25 = vpop.f32.mrf.mxu0 }
 0x481   :  { %10444 = vmatprep.mubr.msk.bf16.mxu1 %vm5475_vm2, %v15000_v1  ;;  %v15213_v1 = vpop.f32.mrf.mxu1 }
 0x482   :  { %v15233_v60 = vpop.f32.mrf.mxu0 }
 0x483   :  { %v15215_v29 = vpop.f32.mrf.mxu1 }
 0x484   :  { %v15237_v28 = vpop.f32.mrf.mxu0 }
 0x485   :  { %v15217_v52 = vpop.f32.mrf.mxu1 }
 0x486   :  { %v15241_v30 = vpop.f32.mrf.mxu0 }
 0x487   :  { %v15219_v26 = vpop.f32.mrf.mxu1 }
 0x488   :  { %10445 = vmatmul.mubr.msk.bf16.gmra.mxu1 %vm5475_vm2, %v15040_v53 }
 0x489   :  { %10448 = vmatprep.mubr.msk.bf16.mxu1 %vm5475_vm2, %v6743_v20  ;;  %v10671_v20 = vld [vmem:[%s15934_s5 + $0x10] sm:$0xff]  }
 0x48a   :  { %10472 = vmatprep.subr.bf16.mxu1 %v10671_v20 }
 0x48b   :  { %10473 = vmatpush3.bf16.msra.mxu1 %v10671_v20 }
 0x48f   :  { %v10320_v53 = vpop.f32.mrf.mxu1 }
 0x490   :  { %10449 = vmatmul.mubr.msk.bf16.gmra.mxu1 %vm5475_vm2, %v6744_v54  ;;  %vm7112_vm2 = vcmask 261120  }
 0x491   :  { %v5839_v42 = vpop.f32.mrf.mxu1  ;;  %7122 = vst.msk [vmem:[#allocation4 + $0x48] sm:$0xff] %vm7112_vm2, %v16585_v22  ;;  %7113 = vst.msk [vmem:[#allocation4] sm:$0xff] %vm7112_vm2, %v16585_v22 }
 0x492   :  { %7114 = vst.msk [vmem:[#allocation4 + $0x8] sm:$0xff] %vm7112_vm2, %v16585_v22  ;;  %7115 = vst.msk [vmem:[#allocation4 + $0x10] sm:$0xff] %vm7112_vm2, %v16585_v22 }
 0x493   :  { %v10321_v58 = vpop.f32.mrf.mxu1  ;;  %7116 = vst.msk [vmem:[#allocation4 + $0x18] sm:$0xff] %vm7112_vm2, %v16585_v22  ;;  %7117 = vst.msk [vmem:[#allocation4 + $0x20] sm:$0xff] %vm7112_vm2, %v16585_v22 }
 0x494   :  { %7119 = vst.msk [vmem:[#allocation4 + $0x30] sm:$0xff] %vm7112_vm2, %v16585_v22  ;;  %7120 = vst.msk [vmem:[#allocation4 + $0x38] sm:$0xff] %vm7112_vm2, %v16585_v22 }
 0x495   :  { %v15227_v4 = vpop.f32.mrf.mxu1  ;;  %7121 = vst.msk [vmem:[#allocation4 + $0x40] sm:$0xff] %vm7112_vm2, %v16585_v22  ;;  %7123 = vst.msk [vmem:[#allocation4 + $0x50] sm:$0xff] %vm7112_vm2, %v16585_v22 }
 0x496   :  { %7125 = vst.msk [vmem:[#allocation4 + $0x60] sm:$0xff] %vm7112_vm2, %v16585_v22  ;;  %7126 = vst.msk [vmem:[#allocation4 + $0x68] sm:$0xff] %vm7112_vm2, %v16585_v22 }
 0x497   :  { %7127 = vst.msk [vmem:[#allocation4 + $0x70] sm:$0xff] %vm7112_vm2, %v16585_v22  ;;  %7128 = vst.msk [vmem:[#allocation4 + $0x78] sm:$0xff] %vm7112_vm2, %v16585_v22 }
 0x498   :  { %7129 = vst.msk [vmem:[#allocation4 + $0x80] sm:$0xff] %vm7112_vm2, %v16585_v22  ;;  %7131 = vst.msk [vmem:[#allocation4 + $0x90] sm:$0xff] %vm7112_vm2, %v16585_v22 }
 0x499   :  { %7132 = vst.msk [vmem:[#allocation4 + $0x98] sm:$0xff] %vm7112_vm2, %v16585_v22  ;;  %7133 = vst.msk [vmem:[#allocation4 + $0xa0] sm:$0xff] %vm7112_vm2, %v16585_v22 }
 0x49a   :  { %7134 = vst.msk [vmem:[#allocation4 + $0xa8] sm:$0xff] %vm7112_vm2, %v16585_v22  ;;  %7135 = vst.msk [vmem:[#allocation4 + $0xb0] sm:$0xff] %vm7112_vm2, %v16585_v22 }
 0x49b   :  { %7137 = vst.msk [vmem:[#allocation4 + $0xc0] sm:$0xff] %vm7112_vm2, %v16585_v22  ;;  %7138 = vst.msk [vmem:[#allocation4 + $0xc8] sm:$0xff] %vm7112_vm2, %v16585_v22 }
 0x49c   :  { %7139 = vst.msk [vmem:[#allocation4 + $0xd0] sm:$0xff] %vm7112_vm2, %v16585_v22  ;;  %7140 = vst.msk [vmem:[#allocation4 + $0xd8] sm:$0xff] %vm7112_vm2, %v16585_v22 }
 0x49d   :  { %7141 = vst.msk [vmem:[#allocation4 + $0xe0] sm:$0xff] %vm7112_vm2, %v16585_v22 }
 0x4a1   :  { %v15245_v47 = vpop.f32.mrf.mxu0 }
 0x4a3   :  { %v15251_v61 = vpop.f32.mrf.mxu0 }
 0x4a5   :  { %v15307_v55 = vpop.f32.mrf.mxu0 }
 0x4a7   :  { %v15312_v49 = vpop.f32.mrf.mxu0 }
 0x4a8   :  { %16586 = vst [vmem:[#allocation26_spill] sm:$0xff] %v15312_v49 }
 0x4b0   :  { %v10324_v45 = vpop.f32.mrf.mxu1 }
 0x4b2   :  { %v5855_v24 = vpop.f32.mrf.mxu1 }
 0x4b4   :  { %v10325_v14 = vpop.f32.mrf.mxu1 }
 0x4b6   :  { %v15235_v44 = vpop.f32.mrf.mxu1 }
 0x4b8   :  { %v10330_v21 = vpop.f32.mrf.mxu1 }
 0x4b9   :  { %v5943_v23 = vadd.f32 %v10330_v21, %v15201_v35  ;;  %v7169_v35 = vld [vmem:[#allocation4 + $0x18] sm:$0xff] }
 0x4ba   :  { %v5934_v50 = vpop.f32.mrf.mxu1 }
 0x4bb   :  { %v5935_v32 = vadd.f32 %v5934_v50, %v15203_v37 }
 0x4bc   :  { %v15239_v36 = vpop.f32.mrf.mxu1 }
 0x4bd   :  { %v5946_v38 = vadd.f32 %v15239_v36, %v15208_v48  ;;  %v15345_v48 = vld [vmem:[%s15934_s5 + $0x8] sm:$0xff]  }
 0x4be   :  { %v15243_v12 = vpop.f32.mrf.mxu1  ;;  %16592 = vst [vmem:[#allocation80_spill] sm:$0xff] %v15345_v48  ;;  %10478 = vmatprep.subr.bf16.mxu1 %v15345_v48 }
 0x4bf   :  { %v15314_v16 = vpop.f32.mrf.mxu0 }
 0x4c0   :  { %v15247_v8 = vpop.f32.mrf.mxu1  ;;  %16587 = vst [vmem:[#allocation93_spill] sm:$0xff] %v15314_v16 }
 0x4c1   :  { %v15318_v59 = vpop.f32.mrf.mxu0  ;;  %v5959_v21 = vadd.f32 %v15247_v8, %v15213_v1 }
 0x4c2   :  { %v15249_v43 = vpop.f32.mrf.mxu1  ;;  %16588 = vst [vmem:[#allocation31_spill] sm:$0xff] %v15318_v59 }
 0x4c3   :  { %v15320_v3 = vpop.f32.mrf.mxu0  ;;  %v5951_v36 = vadd.f32 %v15249_v43, %v15215_v29 }
 0x4c4   :  { %v15253_v11 = vpop.f32.mrf.mxu1  ;;  %16589 = vst [vmem:[#allocation81_spill] sm:$0xff] %v15320_v3 }
 0x4c5   :  { %v15324_v41 = vpop.f32.mrf.mxu0  ;;  %v5962_v1 = vadd.f32 %v15253_v11, %v15217_v52  ;;  %v15379_v52 = vld [vmem:[%s15934_s5 + $0x68] sm:$0xff]  }
 0x4c6   :  { %v15305_v13 = vpop.f32.mrf.mxu1  ;;  %16590 = vst [vmem:[#allocation32_spill] sm:$0xff] %v15324_v41  ;;  %16596 = vst [vmem:[#allocation43_spill] sm:$0xff] %v15379_v52 }
 0x4c8   :  { %v10338_v33 = vpop.f32.mrf.mxu1 }
 0x4c9   :  { %v5975_v63 = vadd.f32 %v10338_v33, %v10320_v53  ;;  %v7167_v53 = vld [vmem:[#allocation4 + $0x8] sm:$0xff] }
 0x4ca   :  { %v5966_v46 = vpop.f32.mrf.mxu1  ;;  %v7197_v37 = vpack.c.bf16 %v7169_v35, %v7167_v53 }
 0x4cb   :  { %v5967_v39 = vadd.f32 %v5966_v46, %v5839_v42  ;;  %v10675_v46 = vld [vmem:[%s15934_s5 + $0x40] sm:$0xff]  }
 0x4cc   :  { %v10339_v0 = vpop.f32.mrf.mxu1  ;;  %10474 = vmatprep.mubr.msk.bf16.mxu1 %vm7112_vm2, %v7197_v37 }
 0x4cd   :  { %v5978_v34 = vadd.f32 %v10339_v0, %v10321_v58  ;;  %v15335_v58 = vpop.f32.mrf.mxu0 }
 0x4ce   :  { %v15316_v31 = vpop.f32.mrf.mxu1  ;;  %16591 = vst [vmem:[#allocation37_spill] sm:$0xff] %v15335_v58 }
 0x4cf   :  { %v15355_v56 = vpop.f32.mrf.mxu0 }
 0x4d0   :  { %v10342_v18 = vpop.f32.mrf.mxu1  ;;  %16593 = vst [vmem:[#allocation105_spill] sm:$0xff] %v15355_v56 }
 0x4d1   :  { %v5991_v9 = vadd.f32 %v10342_v18, %v10324_v45 }
 0x4d2   :  { %v5982_v2 = vpop.f32.mrf.mxu1 }
 0x4d3   :  { %v5983_v6 = vadd.f32 %v5982_v2, %v5855_v24  ;;  %v10672_v24 = vld [vmem:[%s15934_s5 + $0x48] sm:$0xff]   ;;  %v15366_v2 = vpop.f32.mrf.mxu0 }
 0x4d4   :  { %v10343_v10 = vpop.f32.mrf.mxu1  ;;  %10502 = vmatprep.subr.bf16.mxu0 %v10672_v24  ;;  %16594 = vst [vmem:[#allocation94_spill] sm:$0xff] %v15366_v2 }
 0x4d5   :  { %v5994_v27 = vadd.f32 %v10343_v10, %v10325_v14  ;;  %10503 = vmatpush3.bf16.msra.mxu0 %v10672_v24 }
 0x4d6   :  { %v5985_v51 = vpop.f32.mrf.mxu1  ;;  %10504 = vmatprep.subr.bf16.mxu0 %v10675_v46 }
 0x4d8   :  { %v10348_v5 = vpop.f32.mrf.mxu1 }
 0x4d9   :  { %v15326_v19 = vadd.f32 %v10348_v5, %v5943_v23  ;;  %10505 = vmatpush3.bf16.msra.mxu0 %v10675_v46  ;;  %v15372_v23 = vpop.f32.mrf.mxu0 }
 0x4da   :  { %v6072_v7 = vpop.f32.mrf.mxu1  ;;  %16595 = vst [vmem:[#allocation106_spill] sm:$0xff] %v15372_v23  ;;  %10518 = vmatprep.subr.bf16.mxu0 %v15379_v52 }
 0x4db   :  { %v15333_v54 = vadd.f32 %v6072_v7, %v5935_v32  ;;  %v15384_v7 = vpop.f32.mrf.mxu0 }
 0x4dc   :  { %v10349_v42 = vpop.f32.mrf.mxu1  ;;  %16597 = vst [vmem:[#allocation107_spill] sm:$0xff] %v15384_v7 }
 0x4dd   :  { %v15337_v45 = vadd.f32 %v10349_v42, %v5946_v38 }
 0x4de   :  { %v15347_v14 = vpop.f32.mrf.mxu1 }
 0x4e0   :  { %v10352_v50 = vpop.f32.mrf.mxu1 }
 0x4e1   :  { %v15357_v33 = vadd.f32 %v10352_v50, %v5959_v21  ;;  %v5986_v50 = vadd.f32 %v5985_v51, %v15235_v44 }
 0x4e2   :  { %v6088_v0 = vpop.f32.mrf.mxu1 }
 0x4e3   :  { %v15364_v8 = vadd.f32 %v6088_v0, %v5951_v36 }
 0x4e4   :  { %v10353_v18 = vpop.f32.mrf.mxu1 }
 0x4e5   :  { %v15368_v29 = vadd.f32 %v10353_v18, %v5962_v1 }
 0x4e6   :  { %v15370_v43 = vpop.f32.mrf.mxu1 }
 0x4e8   :  { %v10356_v10 = vpop.f32.mrf.mxu1 }
 0x4e9   :  { %v15374_v5 = vadd.f32 %v10356_v10, %v5975_v63  ;;  %v15390_v63 = vpop.f32.mrf.mxu0 }
 0x4ea   :  { %v6104_v11 = vpop.f32.mrf.mxu1  ;;  %16598 = vst [vmem:[#allocation109_spill] sm:$0xff] %v15390_v63 }
 0x4eb   :  { %v15381_v32 = vadd.f32 %v6104_v11, %v5967_v39  ;;  %v15396_v39 = vpop.f32.mrf.mxu0 }
 0x4ec   :  { %v10357_v20 = vpop.f32.mrf.mxu1  ;;  %16599 = vst [vmem:[#allocation111_spill] sm:$0xff] %v15396_v39 }
 0x4ed   :  { %v15386_v38 = vadd.f32 %v10357_v20, %v5978_v34  ;;  %v15403_v1 = vpop.f32.mrf.mxu0 }
 0x4ee   :  { %v15388_v53 = vpop.f32.mrf.mxu1  ;;  %16600 = vst [vmem:[#allocation48_spill] sm:$0xff] %v15403_v1 }
 0x4f0   :  { %v10360_v35 = vpop.f32.mrf.mxu1 }
 0x4f1   :  { %v15392_v42 = vadd.f32 %v10360_v35, %v5991_v9  ;;  %v15405_v9 = vpop.f32.mrf.mxu0 }
 0x4f2   :  { %v6120_v37 = vpop.f32.mrf.mxu1  ;;  %16601 = vst [vmem:[#allocation110_spill] sm:$0xff] %v15405_v9 }
 0x4f3   :  { %v15394_v24 = vadd.f32 %v6120_v37, %v5983_v6  ;;  %v15407_v20 = vpop.f32.mrf.mxu0 }
 0x4f4   :  { %v10361_v21 = vpop.f32.mrf.mxu1  ;;  %16602 = vst [vmem:[#allocation54_spill] sm:$0xff] %v15407_v20 }
 0x4f5   :  { %v15399_v36 = vadd.f32 %v10361_v21, %v5994_v27  ;;  %v15409_v22 = vpop.f32.mrf.mxu0 }
 0x4f6   :  { %v6123_v46 = vpop.f32.mrf.mxu1  ;;  %16603 = vst [vmem:[#allocation112_spill] sm:$0xff] %v15409_v22 }
 0x4f7   :  { %v15401_v34 = vadd.f32 %v6123_v46, %v5986_v50  ;;  %v15411_v51 = vpop.f32.mrf.mxu0 }
 0x4f8   :  { %v10366_v0 = vpop.f32.mrf.mxu1  ;;  %16604 = vst [vmem:[#allocation86_spill] sm:$0xff] %v15411_v51 }
 0x4f9   :  { %v15413_v46 = vpop.f32.mrf.mxu0 }
 0x4fa   :  { %v6226_v18 = vpop.f32.mrf.mxu1  ;;  %16605 = vst [vmem:[#allocation85_spill] sm:$0xff] %v15413_v46 }
 0x4fb   :  { %v15415_v1 = vpop.f32.mrf.mxu0 }
 0x4fc   :  { %v10367_v10 = vpop.f32.mrf.mxu1  ;;  %16606 = vst [vmem:[#allocation100_spill] sm:$0xff] %v15415_v1 }
 0x4fd   :  { %v15417_v63 = vpop.f32.mrf.mxu0 }
 0x4fe   :  { %v6229_v11 = vpop.f32.mrf.mxu1  ;;  %16607 = vst [vmem:[#allocation59_spill] sm:$0xff] %v15417_v63 }
 0x4ff   :  { %v15421_v22 = vpop.f32.mrf.mxu0 }
 0x500   :  { %v10370_v6 = vpop.f32.mrf.mxu1  ;;  %16608 = vst [vmem:[#allocation60_spill] sm:$0xff] %v15421_v22 }
 0x501   :  { %v15425_v51 = vpop.f32.mrf.mxu0 }
 0x502   :  { %v6242_v35 = vpop.f32.mrf.mxu1  ;;  %16610 = vst [vmem:[#allocation113_spill] sm:$0xff] %v15425_v51  ;;  %v7003_v51 = vld [vmem:[%s15935_s4] sm:$0x7] }
 0x503   :  { %v15431_v56 = vpop.f32.mrf.mxu0 }
 0x504   :  { %v10371_v37 = vpop.f32.mrf.mxu1  ;;  %16613 = vst [vmem:[#allocation70_spill] sm:$0xff] %v15431_v56  ;;  %v5938_v56 = vadd.f32 %v15243_v12, %v15210_v40  ;;  %v16624_v40 = vld [vmem:[#allocation15_spill] sm:$0xff] }
 0x505   :  { %v15437_v63 = vpop.f32.mrf.mxu0  ;;  %v15470_v12 = vrot.slane %v7003_v51, %v16624_v40 }
 0x506   :  { %v6245_v44 = vpop.f32.mrf.mxu1  ;;  %16616 = vst [vmem:[#allocation117_spill] sm:$0xff] %v15437_v63  ;;  %v6291_v63 = vadd.f32 %v10366_v0, %v15326_v19  ;;  %v5970_v19 = vadd.f32 %v15316_v31, %v15227_v4  ;;  %v6289_v0 = vadd.f32 %v6226_v18, %v15333_v54  ;;  %v6293_v31 = vadd.f32 %v6242_v35, %v15364_v8 }
 0x507   :  { %v15443_v16 = vpop.f32.mrf.mxu0  ;;  %v6296_v54 = vadd.f32 %v10371_v37, %v15368_v29 }
 0x508   :  { %v10374_v27 = vpop.f32.mrf.mxu1  ;;  %16619 = vst [vmem:[#allocation115_spill] sm:$0xff] %v15443_v16  ;;  %v5954_v16 = vadd.f32 %v15305_v13, %v15219_v26 }
 0x50a   :  { %v6258_v21 = vpop.f32.mrf.mxu1  ;;  %v6140_v26 = vadd.f32 %v15370_v43, %v5954_v16  ;;  %v6299_v16 = vadd.f32 %v10374_v27, %v15374_v5 }
 0x50c   :  { %v10375_v50 = vpop.f32.mrf.mxu1  ;;  %v6294_v18 = vadd.f32 %v6245_v44, %v6140_v26 }
 0x50e   :  { %v6261_v52 = vpop.f32.mrf.mxu1 }
 0x510   :  { %v10378_v48 = vpop.f32.mrf.mxu1 }
 0x511   :  { %v6303_v8 = vadd.f32 %v10378_v48, %v15392_v42 }
 0x512   :  { %v6274_v9 = vpop.f32.mrf.mxu1 }
 0x513   :  { %v6301_v29 = vadd.f32 %v6274_v9, %v15394_v24 }
 0x514   :  { %v10379_v39 = vpop.f32.mrf.mxu1 }
 0x516   :  { %v15419_v20 = vpop.f32.mrf.mxu1 }
 0x518   :  { %v10402_v7 = vpop.f32.mrf.mxu1 }
 0x51a   :  { %v6534_v23 = vpop.f32.mrf.mxu1 }
 0x51c   :  { %v15423_v2 = vpop.f32.mrf.mxu1 }
 0x51d   :  { %16609 = vst [vmem:[#allocation65_spill] sm:$0xff] %v15423_v2 }
 0x51e   :  { %v15427_v41 = vpop.f32.mrf.mxu1 }
 0x51f   :  { %16611 = vst [vmem:[#allocation114_spill] sm:$0xff] %v15427_v41  ;;  %v16623_v41 = vld [vmem:[#allocation102_spill] sm:$0xff] }
 0x520   :  { %v15429_v46 = vpop.f32.mrf.mxu1  ;;  %v15467_v49 = vrot.slane %v7003_v51, %v16623_v41  ;;  %v6144_v41 = vadd.f32 %v15388_v53, %v5970_v19  ;;  %v6443_v53 = vadd.f32 %v15223_v62, %v6289_v0  ;;  %v6450_v62 = vadd.f32 %v15237_v28, %v6296_v54  ;;  %v16635_v19 = vld [vmem:[#allocation105_spill] sm:$0xff] }
 0x521   :  { %16612 = vst [vmem:[#allocation108_spill] sm:$0xff] %v15429_v46 }
 0x522   :  { %v15433_v1 = vpop.f32.mrf.mxu1 }
 0x523   :  { %16614 = vst [vmem:[#allocation42_spill] sm:$0xff] %v15433_v1 }
 0x524   :  { %v15435_v3 = vpop.f32.mrf.mxu1  ;;  %v16626_v42 = vld [vmem:[#allocation65_spill] sm:$0xff] }
 0x525   :  { %16615 = vst [vmem:[#allocation77_spill] sm:$0xff] %v15435_v3  ;;  %v15454_v3 = vpop.f32.mrf.mxu0 }
 0x526   :  { %v15439_v59 = vpop.f32.mrf.mxu1  ;;  %16622 = vst [vmem:[#allocation51_spill] sm:$0xff] %v15454_v3  ;;  %v6292_v3 = vadd.f32 %v10367_v10, %v15337_v45  ;;  %v6445_v45 = vadd.f32 %v15221_v15, %v6291_v63  ;;  %v6298_v10 = vadd.f32 %v6261_v52, %v6144_v41  ;;  %v6597_v41 = vadd.f32 %v6534_v23, %v6443_v53  ;;  %v16627_v23 = vld [vmem:[#allocation26_spill] sm:$0xff] }
 0x527   :  { %16617 = vst [vmem:[#allocation116_spill] sm:$0xff] %v15439_v59  ;;  %v15457_v59 = vld [vmem:[#allocation4] sm:$0xff]  ;;  %v15486_v4 = vpop.f32.mrf.mxu0  ;;  %v6447_v52 = vadd.f32 %v15233_v60, %v6293_v31  ;;  %v16628_v60 = vld [vmem:[#allocation37_spill] sm:$0xff] }
 0x528   :  { %v15441_v22 = vpop.f32.mrf.mxu1  ;;  %v16629_v28 = vld [vmem:[#allocation114_spill] sm:$0xff]  ;;  %v6727_v0 = vadd.f32 %v16635_v19, %v6597_v41 }
 0x529   :  { %16618 = vst [vmem:[#allocation84_spill] sm:$0xff] %v15441_v22  ;;  %v15459_v22 = vld [vmem:[#allocation4 + $0x10] sm:$0xff] }
 0x52a   :  { %v15445_v58 = vpop.f32.mrf.mxu1  ;;  %v7191_v40 = vpack.c.bf16 %v15459_v22, %v15457_v59 }
 0x52b   :  { %16620 = vst [vmem:[#allocation120_spill] sm:$0xff] %v15445_v58  ;;  %v6136_v58 = vadd.f32 %v15347_v14, %v5938_v56  ;;  %v6295_v14 = vadd.f32 %v10370_v6, %v15357_v33  ;;  %v6300_v33 = vadd.f32 %v10375_v50, %v15386_v38  ;;  %v6446_v6 = vadd.f32 %v15225_v17, %v6292_v3 }
 0x52c   :  { %v15452_v1 = vpop.f32.mrf.mxu1  ;;  %v6304_v38 = vadd.f32 %v10379_v39, %v15399_v36  ;;  %v6448_v17 = vadd.f32 %v15241_v30, %v6294_v18  ;;  %v6453_v3 = vadd.f32 %v15245_v47, %v6299_v16  ;;  %v6452_v39 = vadd.f32 %v16627_v23, %v6298_v10  ;;  %v16630_v30 = vld [vmem:[#allocation108_spill] sm:$0xff]  ;;  %v16631_v47 = vld [vmem:[#allocation93_spill] sm:$0xff] }
 0x52d   :  { %16621 = vst [vmem:[#allocation118_spill] sm:$0xff] %v15452_v1  ;;  %v16625_v1 = vld [vmem:[#allocation92_spill] sm:$0xff]  ;;  %v6290_v13 = vadd.f32 %v6229_v11, %v6136_v58  ;;  %v6297_v58 = vadd.f32 %v6258_v21, %v15381_v32  ;;  %v6599_v11 = vadd.f32 %v10402_v7, %v6445_v45  ;;  %v6449_v5 = vadd.f32 %v15231_v25, %v6295_v14  ;;  %v15504_v32 = vpop.f32.mrf.mxu0  ;;  %v16636_v26 = vld [vmem:[#allocation77_spill] sm:$0xff] }
 0x52e   :  { %v15464_v46 = vpop.f32.mrf.mxu1  ;;  %v15477_v2 = vrot.slane %v7003_v51, %v16625_v1  ;;  %v6302_v7 = vadd.f32 %v15419_v20, %v15401_v34  ;;  %v6600_v24 = vadd.f32 %v16626_v42, %v6446_v6  ;;  %v6457_v37 = vadd.f32 %v16631_v47, %v6303_v8  ;;  %v16633_v51 = vld [vmem:[#allocation42_spill] sm:$0xff]  ;;  %v16634_v34 = vld [vmem:[#allocation81_spill] sm:$0xff]  ;;  %v16637_v14 = vld [vmem:[#allocation116_spill] sm:$0xff] }
 0x52f   :  { %v6444_v15 = vadd.f32 %v15229_v57, %v6290_v13  ;;  %v6451_v48 = vadd.f32 %v15251_v61, %v6297_v58  ;;  %v6454_v57 = vadd.f32 %v15307_v55, %v6300_v33  ;;  %v6729_v36 = vadd.f32 %v16628_v60, %v6599_v11  ;;  %v16632_v61 = vld [vmem:[#allocation31_spill] sm:$0xff]  ;;  %v15524_v27 = vpop.f32.mrf.mxu0  ;;  %v16640_v33 = vld [vmem:[#allocation32_spill] sm:$0xff]  ;;  %v16641_v11 = vld [vmem:[#allocation113_spill] sm:$0xff] }
 0x530   :  { %v15481_v56 = vpop.f32.mrf.mxu1  ;;  %v6603_v35 = vadd.f32 %v16630_v30, %v6449_v5  ;;  %v6455_v44 = vadd.f32 %v16632_v61, %v6301_v29  ;;  %v6601_v21 = vadd.f32 %v16633_v51, %v6447_v52  ;;  %v15528_v20 = vadd.f32 %v16634_v34, %v6304_v38  ;;  %v16638_v54 = vld [vmem:[#allocation84_spill] sm:$0xff]  ;;  %v16642_v8 = vld [vmem:[#allocation94_spill] sm:$0xff]  ;;  %v16652_v34 = vld [vmem:[#allocation117_spill] sm:$0xff] }
 0x531   :  { %v6598_v9 = vadd.f32 %v16629_v28, %v6444_v15  ;;  %v6604_v13 = vadd.f32 %v16636_v26, %v6450_v62  ;;  %v6602_v31 = vadd.f32 %v16637_v14, %v6448_v17  ;;  %v6607_v45 = vadd.f32 %v16638_v54, %v6453_v3  ;;  %v16644_v52 = vld [vmem:[#allocation106_spill] sm:$0xff]  ;;  %v16645_v17 = vld [vmem:[#allocation107_spill] sm:$0xff]  ;;  %v15544_v42 = vpop.f32.mrf.mxu0  ;;  %v16653_v26 = vld [vmem:[#allocation112_spill] sm:$0xff] }
 0x532   :  { %v15494_v43 = vpop.f32.mrf.mxu1  ;;  %v16639_v18 = vld [vmem:[#allocation120_spill] sm:$0xff]  ;;  %v15536_v10 = vadd.f32 %v16640_v33, %v6302_v7  ;;  %v6730_v29 = vadd.f32 %v16642_v8, %v6600_v24  ;;  %v6606_v38 = vadd.f32 %v15464_v46, %v6452_v39  ;;  %v6733_v3 = vadd.f32 %v16645_v17, %v6603_v35  ;;  %v16646_v7 = vld [vmem:[#allocation70_spill] sm:$0xff]  ;;  %v16648_v24 = vld [vmem:[#allocation111_spill] sm:$0xff] }
 0x533   :  { %v6605_v16 = vadd.f32 %v16639_v18, %v6451_v48  ;;  %v6728_v62 = vadd.f32 %v16644_v52, %v6598_v9  ;;  %v6734_v47 = vadd.f32 %v16648_v24, %v6604_v13  ;;  %v16650_v46 = vld [vmem:[#allocation110_spill] sm:$0xff]  ;;  %v6611_v19 = vadd.f32 %v15481_v56, %v6457_v37  ;;  %v15564_v54 = vpop.f32.mrf.mxu0  ;;  %v16655_v56 = vld [vmem:[#allocation115_spill] sm:$0xff] }
 0x534   :  { %v15502_v63 = vpop.f32.mrf.mxu1  ;;  %v16643_v15 = vld [vmem:[#allocation118_spill] sm:$0xff]  ;;  %v6737_v39 = vadd.f32 %v16650_v46, %v6607_v45 }
 0x535   :  { %v6608_v5 = vadd.f32 %v16643_v15, %v6454_v57  ;;  %v16649_v57 = vld [vmem:[#allocation48_spill] sm:$0xff]  ;;  %v16654_v13 = vld [vmem:[#allocation86_spill] sm:$0xff] }
 0x536   :  { %v15513_v25 = vpop.f32.mrf.mxu1  ;;  %v6732_v61 = vadd.f32 %v16649_v57, %v6602_v31  ;;  %v15562_v31 = vadd.f32 %v16654_v13, %v6606_v38 }
 0x537   :  { %v15559_v14 = vadd.f32 %v16653_v26, %v6608_v5  ;;  %v6610_v26 = vadd.f32 %v15513_v25, %v15536_v10 }
 0x538   :  { %v10438_v55 = vpop.f32.mrf.mxu1 }
 0x539   :  { %v6859_v50 = vadd.f32 %v10438_v55, %v6729_v36  ;;  %v16647_v36 = vld [vmem:[#allocation109_spill] sm:$0xff]  ;;  %v16651_v55 = vld [vmem:[#allocation54_spill] sm:$0xff] }
 0x53a   :  { %v6794_v58 = vpop.f32.mrf.mxu1  ;;  %v6731_v28 = vadd.f32 %v16647_v36, %v6601_v21  ;;  %v15553_v9 = vadd.f32 %v16651_v55, %v6605_v16 }
 0x53b   :  { %v6989_v53 = vadd.f32 %v16641_v11, %v6859_v50  ;;  %v6857_v6 = vadd.f32 %v6794_v58, %v6727_v0  ;;  %v6609_v58 = vadd.f32 %v15494_v43, %v6455_v44  ;;  %v10465_v43 = vpop.f32.mrf.mxu0 }
 0x53c   :  { %v10439_v41 = vpop.f32.mrf.mxu1 }
 0x53d   :  { %v7010_v48 = vadd.f32 %v15467_v49, %v6989_v53  ;;  %v6987_v23 = vadd.f32 %v16646_v7, %v6857_v6  ;;  %v6860_v60 = vadd.f32 %v10439_v41, %v6730_v29  ;;  %v16656_v41 = vld [vmem:[#allocation51_spill] sm:$0xff] }
 0x53e   :  { %v6797_v30 = vpop.f32.mrf.mxu1 }
 0x53f   :  { %vm7026_vm7 = vcmp.ge.f32.partialorder %v7010_v48, 0.0  ;;  %v7042_v35 = vmul.f32 0.2, %v7010_v48  ;;  %v7008_v51 = vadd.f32 %v15467_v49, %v6987_v23  ;;  %v6990_v50 = vadd.f32 %v16652_v34, %v6860_v60 }
 0x540   :  { %v6858_v0 = vadd.f32 %v6797_v30, %v6728_v62  ;;  %v10442_v21 = vpop.f32.mrf.mxu1 }
 0x541   :  { %v7058_v45 = vsel %vm7026_vm7, %v7010_v48, %v7042_v35  ;;  %vm7024_vm8 = vcmp.ge.f32.partialorder %v7008_v51, 0.0  ;;  %v7040_v18 = vmul.f32 0.2, %v7008_v51  ;;  %v7011_v16 = vadd.f32 %v15467_v49, %v6990_v50  ;;  %v6959_v50 = vpop.f32.mrf.mxu0 }
 0x542   :  { %v7078_v33 = vmul.f32 %v15470_v12, %v7058_v45  ;;  %v6988_v37 = vadd.f32 %v16655_v56, %v6858_v0  ;;  %v6863_v11 = vadd.f32 %v10442_v21, %v6733_v3  ;;  %v6810_v53 = vpop.f32.mrf.mxu1  ;;  %v16657_v3 = vld [vmem:[#allocation85_spill] sm:$0xff] }
 0x543   :  { %v7056_v6 = vsel %vm7024_vm8, %v7008_v51, %v7040_v18  ;;  %vm7027_vm9 = vcmp.ge.f32.partialorder %v7011_v16, 0.0  ;;  %v7043_v8 = vmul.f32 0.2, %v7011_v16  ;;  %v6861_v29 = vadd.f32 %v6810_v53, %v6731_v28  ;;  %v16658_v51 = vld [vmem:[#allocation100_spill] sm:$0xff] }
 0x544   :  { %v7098_v15 = vadd.f32 %v15477_v2, %v7078_v33  ;;  %v7076_v5 = vmul.f32 %v15470_v12, %v7056_v6  ;;  %v7009_v38 = vadd.f32 %v15467_v49, %v6988_v37  ;;  %v6993_v52 = vadd.f32 %v16656_v41, %v6863_v11  ;;  %v10443_v62 = vpop.f32.mrf.mxu1  ;;  %v10468_v37 = vpop.f32.mrf.mxu0 }
 0x545   :  { %v7059_v44 = vsel %vm7027_vm9, %v7011_v16, %v7043_v8  ;;  %v6991_v17 = vadd.f32 %v15486_v4, %v6861_v29  ;;  %v6864_v48 = vadd.f32 %v10443_v62, %v6734_v47  ;;  %v15576_v7 = vadd.f32 %v16657_v3, %v6611_v19  ;;  %v16659_v8 = vld [vmem:[#allocation59_spill] sm:$0xff] }
 0x546   :  { %7152 = vst.msk [vmem:[#allocation4 + $0x48] sm:$0xff] %vm7112_vm2, %v7098_v15  ;;  %v7096_v23 = vadd.f32 %v15477_v2, %v7076_v5  ;;  %v7079_v60 = vmul.f32 %v15470_v12, %v7059_v44  ;;  %vm7025_vm10 = vcmp.ge.f32.partialorder %v7009_v38, 0.0  ;;  %v7041_v36 = vmul.f32 0.2, %v7009_v38  ;;  %v6813_v28 = vpop.f32.mrf.mxu1 }
 0x547   :  { %v7014_v30 = vadd.f32 %v15467_v49, %v6993_v52  ;;  %v7012_v24 = vadd.f32 %v15467_v49, %v6991_v17  ;;  %v6994_v57 = vadd.f32 %v15504_v32, %v6864_v48  ;;  %v6862_v4 = vadd.f32 %v6813_v28, %v6732_v61  ;;  %v6972_v17 = vpop.f32.mrf.mxu0 }
 0x548   :  { %v6612_v47 = vadd.f32 %v15502_v63, %v15528_v20  ;;  %7150 = vst.msk [vmem:[#allocation4 + $0x38] sm:$0xff] %vm7112_vm2, %v7096_v23  ;;  %v7099_v46 = vadd.f32 %v15477_v2, %v7079_v60  ;;  %v7057_v55 = vsel %vm7025_vm10, %v7009_v38, %v7041_v36  ;;  %v10446_v35 = vpop.f32.mrf.mxu1  ;;  %v15589_v34 = vadd.f32 %v16658_v51, %v6609_v58 }
 0x549   :  { %v7077_v19 = vmul.f32 %v15470_v12, %v7057_v55  ;;  %vm7030_vm11 = vcmp.ge.f32.partialorder %v7014_v30, 0.0  ;;  %v7046_v0 = vmul.f32 0.2, %v7014_v30  ;;  %vm7028_vm12 = vcmp.ge.f32.partialorder %v7012_v24, 0.0  ;;  %v16660_v55 = vld [vmem:[#allocation60_spill] sm:$0xff]  ;;  %v10469_v51 = vpop.f32.mrf.mxu0 }
 0x54a   :  { %7153 = vst.msk [vmem:[#allocation4 + $0x50] sm:$0xff] %vm7112_vm2, %v7099_v46  ;;  %v7044_v32 = vmul.f32 0.2, %v7012_v24  ;;  %v7015_v63 = vadd.f32 %v15467_v49, %v6994_v57  ;;  %v6992_v20 = vadd.f32 %v15524_v27, %v6862_v4  ;;  %v6867_v61 = vadd.f32 %v10446_v35, %v6737_v39  ;;  %v6826_v21 = vpop.f32.mrf.mxu1 }
 0x54b   :  { %v7097_v13 = vadd.f32 %v15477_v2, %v7077_v19  ;;  %v7062_v45 = vsel %vm7030_vm11, %v7014_v30, %v7046_v0  ;;  %v6865_v18 = vadd.f32 %v6826_v21, %v15553_v9  ;;  %v6742_v29 = vadd.f32 %v16659_v8, %v6612_v47 }
 0x54c   :  { %v7082_v16 = vmul.f32 %v15470_v12, %v7062_v45  ;;  %v7060_v58 = vsel %vm7028_vm12, %v7012_v24, %v7044_v32  ;;  %vm7031_vm13 = vcmp.ge.f32.partialorder %v7015_v63, 0.0  ;;  %v7047_v33 = vmul.f32 0.2, %v7015_v63  ;;  %v10447_v56 = vpop.f32.mrf.mxu1 }
 0x54d   :  { %7151 = vst.msk [vmem:[#allocation4 + $0x40] sm:$0xff] %vm7112_vm2, %v7097_v13  ;;  %v7080_v27 = vmul.f32 %v15470_v12, %v7060_v58  ;;  %v7013_v39 = vadd.f32 %v15467_v49, %v6992_v20  ;;  %v6997_v25 = vadd.f32 %v15544_v42, %v6867_v61  ;;  %v6995_v10 = vadd.f32 %v15564_v54, %v6865_v18  ;;  %v7174_v44 = vld [vmem:[#allocation4 + $0x48] sm:$0xff] }
 0x54e   :  { %v7102_v11 = vadd.f32 %v15477_v2, %v7082_v16  ;;  %v7063_v9 = vsel %vm7031_vm13, %v7015_v63, %v7047_v33  ;;  %v6868_v53 = vadd.f32 %v10447_v56, %v15559_v14  ;;  %v6829_v6 = vpop.f32.mrf.mxu1  ;;  %v6740_v35 = vadd.f32 %v16660_v55, %v6610_v26  ;;  %v6975_v56 = vpop.f32.mrf.mxu0  ;;  %v7171_v55 = vld [vmem:[#allocation4 + $0x30] sm:$0xff] }
 0x54f   :  { %v7100_v15 = vadd.f32 %v15477_v2, %v7080_v27  ;;  %v7083_v5 = vmul.f32 %v15470_v12, %v7063_v9  ;;  %vm7029_vm14 = vcmp.ge.f32.partialorder %v7013_v39, 0.0  ;;  %v7045_v38 = vmul.f32 0.2, %v7013_v39  ;;  %v7172_v41 = vld [vmem:[#allocation4 + $0x38] sm:$0xff] }
 0x550   :  { %7156 = vst.msk [vmem:[#allocation4 + $0x78] sm:$0xff] %vm7112_vm2, %v7102_v11  ;;  %v7018_v42 = vadd.f32 %v15467_v49, %v6997_v25  ;;  %v7016_v54 = vadd.f32 %v15467_v49, %v6995_v10  ;;  %v6998_v52 = vadd.f32 %v10465_v43, %v6868_v53  ;;  %v6866_v62 = vadd.f32 %v6829_v6, %v15562_v31  ;;  %v10450_v14 = vpop.f32.mrf.mxu1  ;;  %v10674_v6 = vld [vmem:[%s15934_s5] sm:$0xff]  }
 0x551   :  { %7154 = vst.msk [vmem:[#allocation4 + $0x68] sm:$0xff] %vm7112_vm2, %v7100_v15  ;;  %v7103_v48 = vadd.f32 %v15477_v2, %v7083_v5  ;;  %v7061_v3 = vsel %vm7029_vm14, %v7013_v39, %v7045_v38  ;;  %v6871_v23 = vadd.f32 %v10450_v14, %v15576_v7  ;;  %v7494_v60 = vpack.c.bf16 %v7174_v44, %v7172_v41 }
 0x552   :  { %v7081_v36 = vmul.f32 %v15470_v12, %v7061_v3  ;;  %vm7034_vm15 = vcmp.ge.f32.partialorder %v7018_v42, 0.0  ;;  %v7050_v28 = vmul.f32 0.2, %v7018_v42  ;;  %vm7032_vm0 = vcmp.ge.f32.partialorder %v7016_v54, 0.0  ;;  %v6842_v30 = vpop.f32.mrf.mxu1 }
 0x553   :  { %7157 = vst.msk [vmem:[#allocation4 + $0x80] sm:$0xff] %vm7112_vm2, %v7103_v48  ;;  %v7048_v31 = vmul.f32 0.2, %v7016_v54  ;;  %v7019_v43 = vadd.f32 %v15467_v49, %v6998_v52  ;;  %v6996_v24 = vadd.f32 %v6959_v50, %v6866_v62  ;;  %v7001_v57 = vadd.f32 %v10468_v37, %v6871_v23  ;;  %10506 = vmatprep.mubr.msk.bf16.mxu0 %vm7112_vm2, %v7494_v60  ;;  %v16661_v52 = vld [vmem:[#allocation80_spill] sm:$0xff]  ;;  %v7176_v48 = vld [vmem:[#allocation4 + $0x60] sm:$0xff] }
 0x554   :  { %v7101_v4 = vadd.f32 %v15477_v2, %v7081_v36  ;;  %v7066_v47 = vsel %vm7034_vm15, %v7018_v42, %v7050_v28  ;;  %v6869_v7 = vadd.f32 %v6842_v30, %v15589_v34  ;;  %v10451_v46 = vpop.f32.mrf.mxu1  ;;  %v7170_v23 = vld [vmem:[#allocation4 + $0x20] sm:$0xff]  ;;  %vm10730_vm8 = vmmov 0  }
 0x555   :  { %v7086_v19 = vmul.f32 %v15470_v12, %v7066_v47  ;;  %v7064_v0 = vsel %vm7032_vm0, %v7016_v54, %v7048_v31  ;;  %vm7035_vm1 = vcmp.ge.f32.partialorder %v7019_v43, 0.0  ;;  %v7051_v32 = vmul.f32 0.2, %v7019_v43 }
 0x556   :  { %7155 = vst.msk [vmem:[#allocation4 + $0x70] sm:$0xff] %vm7112_vm2, %v7101_v4  ;;  %v7084_v50 = vmul.f32 %v15470_v12, %v7064_v0  ;;  %v7017_v63 = vadd.f32 %v15467_v49, %v6996_v24  ;;  %v7022_v20 = vadd.f32 %v15467_v49, %v7001_v57  ;;  %v6999_v61 = vadd.f32 %v6972_v17, %v6869_v7  ;;  %v6845_v21 = vpop.f32.mrf.mxu1  ;;  %v10677_v57 = vld [vmem:[%s15934_s5 + $0x20] sm:$0xff]   ;;  %v10681_v0 = vld [vmem:[%s15934_s5 + $0x30] sm:$0xff]  }
 0x557   :  { %v7106_v34 = vadd.f32 %v15477_v2, %v7086_v19  ;;  %v7067_v13 = vsel %vm7035_vm1, %v7019_v43, %v7051_v32  ;;  %v6872_v26 = vadd.f32 %v10451_v46, %v6742_v29  ;;  %v6870_v45 = vadd.f32 %v6845_v21, %v6740_v35  ;;  %v7179_v25 = vld [vmem:[#allocation4 + $0x78] sm:$0xff]  ;;  %v10680_v7 = vld [vmem:[%s15934_s5 + $0x60] sm:$0xff]   ;;  %v7181_v21 = vld [vmem:[#allocation4 + $0x90] sm:$0xff] }
 0x558   :  { %v7104_v18 = vadd.f32 %v15477_v2, %v7084_v50  ;;  %v7087_v16 = vmul.f32 %v15470_v12, %v7067_v13  ;;  %vm7033_vm3 = vcmp.ge.f32.partialorder %v7017_v63, 0.0  ;;  %v7049_v58 = vmul.f32 0.2, %v7017_v63  ;;  %v7177_v33 = vld [vmem:[#allocation4 + $0x68] sm:$0xff]  ;;  %v7173_v35 = vld [vmem:[#allocation4 + $0x40] sm:$0xff] }
 0x559   :  { %7160 = vst.msk [vmem:[#allocation4 + $0xa8] sm:$0xff] %vm7112_vm2, %v7106_v34  ;;  %vm7038_vm4 = vcmp.ge.f32.partialorder %v7022_v20, 0.0  ;;  %v7054_v37 = vmul.f32 0.2, %v7022_v20  ;;  %v7020_v27 = vadd.f32 %v15467_v49, %v6999_v61  ;;  %v7002_v39 = vadd.f32 %v10469_v51, %v6872_v26  ;;  %v7186_v50 = vld [vmem:[#allocation4 + $0xc0] sm:$0xff]  ;;  %v10683_v61 = vld [vmem:[%s15934_s5 + $0x58] sm:$0xff]  }
 0x55a   :  { %7158 = vst.msk [vmem:[#allocation4 + $0x98] sm:$0xff] %vm7112_vm2, %v7104_v18  ;;  %v7107_v10 = vadd.f32 %v15477_v2, %v7087_v16  ;;  %v7065_v11 = vsel %vm7033_vm3, %v7017_v63, %v7049_v58  ;;  %v7000_v9 = vadd.f32 %v6975_v56, %v6870_v45  ;;  %v15636_v53 = vpack.c.bf16 %v7179_v25, %v7177_v33  ;;  %v7180_v51 = vld [vmem:[#allocation4 + $0x80] sm:$0xff]  ;;  %v7175_v45 = vld [vmem:[#allocation4 + $0x50] sm:$0xff]  ;;  %v10686_v33 = vld [vmem:[%s15934_s5 + $0x78] sm:$0xff]  }
 0x55b   :  { %v7085_v8 = vmul.f32 %v15470_v12, %v7065_v11  ;;  %v7070_v29 = vsel %vm7038_vm4, %v7022_v20, %v7054_v37  ;;  %vm7036_vm5 = vcmp.ge.f32.partialorder %v7020_v27, 0.0  ;;  %v7052_v15 = vmul.f32 0.2, %v7020_v27  ;;  %v10684_v13 = vld [vmem:[%s15934_s5 + $0x80] sm:$0xff]   ;;  %v10685_v18 = vld [vmem:[%s15934_s5 + $0x50] sm:$0xff]  }
 0x55c   :  { %7161 = vst.msk [vmem:[#allocation4 + $0xb0] sm:$0xff] %vm7112_vm2, %v7107_v10  ;;  %v7090_v5 = vmul.f32 %v15470_v12, %v7070_v29  ;;  %v7023_v38 = vadd.f32 %v15467_v49, %v7002_v39  ;;  %v7021_v41 = vadd.f32 %v15467_v49, %v7000_v9  ;;  %10475 = vmatmul.mubr.msk.bf16.vlgmr.msra.gmra.mxu1 %vm7112_vm2, %v15636_v53  ;;  %v10676_v49 = vld [vmem:[%s15934_s5 + $0x28] sm:$0xff]   ;;  %v16663_v37 = vmov 0.0   ;;  %v10687_v25 = vld [vmem:[%s15934_s5 + $0x70] sm:$0xff]  }
 0x55d   :  { %v7105_v42 = vadd.f32 %v15477_v2, %v7085_v8  ;;  %v7068_v54 = vsel %vm7036_vm5, %v7020_v27, %v7052_v15  ;;  %10479 = vmatpush3.bf16.msra.mxu1 %v16661_v52  ;;  %10482 = vmatprep.mubr.msk.bf16.mxu1 %vm7112_vm2, %v7191_v40  ;;  %v7178_v3 = vld [vmem:[#allocation4 + $0x70] sm:$0xff]  ;;  %v7338_v47 = vpack.c.bf16 %v7170_v23, %v15459_v22  ;;  %v10679_v22 = vld [vmem:[%s15934_s5 + $0x38] sm:$0xff]   ;;  %v10692_v15 = vld [vmem:[%s15936_s7 + $0x28] sm:$0xff]   ;;  %vm8677_vm14 = vcmask 7168  }
 0x55e   :  { %v7110_v62 = vadd.f32 %v15477_v2, %v7090_v5  ;;  %v7088_v14 = vmul.f32 %v15470_v12, %v7068_v54  ;;  %vm7039_vm6 = vcmp.ge.f32.partialorder %v7023_v38, 0.0  ;;  %v7055_v44 = vmul.f32 0.2, %v7023_v38  ;;  %10480 = vmatprep.subr.bf16.mxu1 %v10674_v6  ;;  %v10689_v8 = vld [vmem:[%s15936_s7 + $0x18] sm:$0xff]   ;;  %v10691_v29 = vld [vmem:[%s15936_s7 + $0x10] sm:$0xff]   ;;  %v10693_v5 = vld [vmem:[%s15936_s7 + $0x8] sm:$0xff]  }
 0x55f   :  { %7159 = vst.msk [vmem:[#allocation4 + $0xa0] sm:$0xff] %vm7112_vm2, %v7105_v42  ;;  %vm7037_vm7 = vcmp.ge.f32.partialorder %v7021_v41, 0.0  ;;  %v7053_v17 = vmul.f32 0.2, %v7021_v41  ;;  %v7192_v43 = vpack.c.bf16 %v7178_v3, %v7176_v48  ;;  %v7339_v19 = vpack.c.bf16 %v7180_v51, %v7178_v3  ;;  %v10696_v42 = vld [vmem:[%s15936_s7 + $0x58] sm:$0xff]   ;;  %v10700_v48 = vld [vmem:[%s15936_s7 + $0x48] sm:$0xff]  }
 0x560   :  { %7164 = vst.msk [vmem:[#allocation4 + $0xd8] sm:$0xff] %vm7112_vm2, %v7110_v62  ;;  %v7108_v59 = vadd.f32 %v15477_v2, %v7088_v14  ;;  %v7071_v40 = vsel %vm7039_vm6, %v7023_v38, %v7055_v44  ;;  %v7184_v30 = vld [vmem:[#allocation4 + $0xa8] sm:$0xff]  ;;  %v7416_v32 = vpack.c.bf16 %v7173_v35, %v7171_v55  ;;  %v7572_v16 = vpack.c.bf16 %v7175_v45, %v7173_v35  ;;  %v10694_v38 = vld [vmem:[%s15936_s7 + $0x20] sm:$0xff]   ;;  %v10697_v62 = vld [vmem:[%s15936_s7 + $0x78] sm:$0xff]  }
 0x561   :  { %v7091_v60 = vmul.f32 %v15470_v12, %v7071_v40  ;;  %v7069_v36 = vsel %vm7037_vm7, %v7021_v41, %v7053_v17  ;;  %10481 = vmatpush3.bf16.msra.mxu1 %v10674_v6  ;;  %v7182_v28 = vld [vmem:[#allocation4 + $0x98] sm:$0xff]  ;;  %v10695_v41 = vld [vmem:[%s15936_s7] sm:$0xff]   ;;  %v10699_v17 = vld [vmem:[%s15936_s7 + $0x70] sm:$0xff]  }
 0x562   :  { %7162 = vst.msk [vmem:[#allocation4 + $0xc8] sm:$0xff] %vm7112_vm2, %v7108_v59  ;;  %v7089_v31 = vmul.f32 %v15470_v12, %v7069_v36  ;;  %10486 = vmatprep.subr.bf16.mxu1 %v10676_v49  ;;  %v7495_v24 = vpack.c.bf16 %v7184_v30, %v7182_v28  ;;  %v16662_v12 = vld [vmem:[#allocation43_spill] sm:$0xff]  ;;  %v10688_v6 = vld [vmem:[%s15936_s7 + $0x38] sm:$0xff]  }
 0x563   :  { %v7111_v4 = vadd.f32 %v15477_v2, %v7091_v60  ;;  %v7185_v27 = vld [vmem:[#allocation4 + $0xb0] sm:$0xff]  ;;  %v10701_v3 = vld [vmem:[%s15936_s7 + $0x68] sm:$0xff]   ;;  %v10702_v59 = vld [vmem:[%s15936_s7 + $0x40] sm:$0xff]  }
 0x564   :  { %v7109_v46 = vadd.f32 %v15477_v2, %v7089_v31  ;;  %10483 = vmatmul.mubr.msk.bf16.vlgmr.msra.gmra.mxu1 %vm7112_vm2, %v7192_v43  ;;  %10507 = vmatmul.mubr.msk.bf16.vlgmr.msra.gmra.mxu0 %vm7112_vm2, %v7495_v24  ;;  %v10682_v2 = vld [vmem:[%s15934_s5 + $0x88] sm:$0xff]   ;;  %v10703_v40 = vld [vmem:[%s15936_s7 + $0x60] sm:$0xff]   ;;  %v10704_v30 = vld [vmem:[%s15936_s7 + $0x98] sm:$0xff]  }
 0x565   :  { %7165 = vst.msk [vmem:[#allocation4 + $0xe0] sm:$0xff] %vm7112_vm2, %v7111_v4  ;;  %10487 = vmatpush3.bf16.msra.mxu1 %v10676_v49  ;;  %10522 = vmatprep.mubr.msk.bf16.mxu0 %vm7112_vm2, %v7192_v43  ;;  %v10698_v49 = vld [vmem:[%s15936_s7 + $0x50] sm:$0xff]   ;;  %v10706_v43 = vld [vmem:[%s15936_s7 + $0xb8] sm:$0xff]   ;;  %v10707_v24 = vld [vmem:[%s15936_s7 + $0x88] sm:$0xff]  }
 0x566   :  { %7163 = vst.msk [vmem:[#allocation4 + $0xd0] sm:$0xff] %vm7112_vm2, %v7109_v46  ;;  %10488 = vmatprep.subr.bf16.mxu1 %v10677_v57  ;;  %10519 = vmatpush3.bf16.msra.mxu0 %v16662_v12  ;;  %v7183_v34 = vld [vmem:[#allocation4 + $0xa0] sm:$0xff]  ;;  %v10705_v31 = vld [vmem:[%s15936_s7 + $0x90] sm:$0xff]  }
 0x567   :  { %10490 = vmatprep.mubr.msk.bf16.mxu1 %vm7112_vm2, %v7338_v47  ;;  %10520 = vmatprep.subr.bf16.mxu0 %v10680_v7  ;;  %v7417_v26 = vpack.c.bf16 %v7183_v34, %v7181_v21  ;;  %v7573_v39 = vpack.c.bf16 %v7185_v27, %v7183_v34  ;;  %v7189_v11 = vld [vmem:[#allocation4 + $0xd8] sm:$0xff]  ;;  %v10709_v4 = vld [vmem:[%s15936_s7 + $0x80] sm:$0xff]   ;;  %v10710_v47 = vld [vmem:[%s15936_s7 + $0xa8] sm:$0xff]  }
 0x569   :  { %10489 = vmatpush3.bf16.msra.mxu1 %v10677_v57  ;;  %v7187_v10 = vld [vmem:[#allocation4 + $0xc8] sm:$0xff]  ;;  %v10708_v57 = vld [vmem:[%s15936_s7 + $0xb0] sm:$0xff]  }
 0x56a   :  { %10494 = vmatprep.subr.bf16.mxu1 %v10679_v22  ;;  %10521 = vmatpush3.bf16.msra.mxu0 %v10680_v7  ;;  %v7724_v9 = vpack.c.bf16 %v7189_v11, %v7187_v10  ;;  %v10711_v7 = vld [vmem:[%s15936_s7 + $0xa0] sm:$0xff]  }
 0x56b   :  { %10534 = vmatprep.subr.bf16.mxu0 %v10682_v2 }
 0x56c   :  { %10491 = vmatmul.mubr.msk.bf16.vlgmr.msra.gmra.mxu1 %vm7112_vm2, %v7339_v19  ;;  %v7190_v58 = vld [vmem:[#allocation4 + $0xe0] sm:$0xff] }
 0x56d   :  { %10495 = vmatpush3.bf16.msra.mxu1 %v10679_v22  ;;  %10498 = vmatprep.mubr.msk.bf16.mxu1 %vm7112_vm2, %v7416_v32  ;;  %v7188_v63 = vld [vmem:[#allocation4 + $0xd0] sm:$0xff] }
 0x56e   :  { %10496 = vmatprep.subr.bf16.mxu1 %v10681_v0  ;;  %v7650_v20 = vpack.c.bf16 %v7188_v63, %v7186_v50  ;;  %v7798_v56 = vpack.c.bf16 %v7190_v58, %v7188_v63 }
 0x570   :  { %10523 = vmatmul.mubr.msk.bf16.vlgmr.msra.gmra.mxu0 %vm7112_vm2, %v7650_v20 }
 0x571   :  { %10497 = vmatpush3.bf16.msra.mxu1 %v10681_v0  ;;  %10535 = vmatpush3.bf16.msra.mxu0 %v10682_v2 }
 0x572   :  { %10538 = vmatprep.mubr.msk.bf16.mxu0 %vm7112_vm2, %v7339_v19  ;;  %10510 = vmatprep.subr.bf16.mxu1 %v10683_v61 }
 0x573   :  { %10536 = vmatprep.subr.bf16.mxu0 %v10684_v13 }
 0x574   :  { %10499 = vmatmul.mubr.msk.bf16.vlgmr.msra.gmra.mxu1 %vm7112_vm2, %v7417_v26 }
 0x575   :  { %10511 = vmatpush3.bf16.msra.mxu1 %v10683_v61  ;;  %10514 = vmatprep.mubr.msk.bf16.mxu1 %vm7112_vm2, %v7572_v16 }
 0x576   :  { %10537 = vmatpush3.bf16.msra.mxu0 %v10684_v13  ;;  %10512 = vmatprep.subr.bf16.mxu1 %v10685_v18 }
 0x577   :  { %10554 = vmatprep.subr.bf16.mxu0 %v16663_v37 }
 0x579   :  { %10513 = vmatpush3.bf16.msra.mxu1 %v10685_v18  ;;  %10539 = vmatmul.mubr.msk.bf16.vlgmr.msra.gmra.mxu0 %vm7112_vm2, %v7798_v56 }
 0x57a   :  { %10526 = vmatprep.subr.bf16.mxu1 %v10686_v33  ;;  %10555 = vmatpush3.bf16.msra.mxu0 %v10689_v8 }
 0x57b   :  { %10556 = vmatprep.subr.bf16.mxu0 %v16663_v37  ;;  %10562 = vmatprep.mubr.msk.bf16.mxu0 %vm10730_vm8, %v16663_v37 }
 0x57c   :  { %10515 = vmatmul.mubr.msk.bf16.vlgmr.msra.gmra.mxu1 %vm7112_vm2, %v7573_v39 }
 0x57d   :  { %10527 = vmatpush3.bf16.msra.mxu1 %v10686_v33  ;;  %10530 = vmatprep.mubr.msk.bf16.mxu1 %vm7112_vm2, %v15636_v53  ;;  %v10690_v53 = vld [vmem:[%s15936_s7 + $0x30] sm:$0xff]  }
 0x57e   :  { %10528 = vmatprep.subr.bf16.mxu1 %v10687_v25  ;;  %10557 = vmatpush3.bf16.msra.mxu0 %v10691_v29 }
 0x57f   :  { %10558 = vmatprep.subr.bf16.mxu0 %v16663_v37 }
 0x581   :  { %10529 = vmatpush3.bf16.msra.mxu1 %v10687_v25 }
 0x582   :  { %10542 = vmatprep.subr.bf16.mxu1 %v16663_v37  ;;  %10559 = vmatpush3.bf16.msra.mxu0 %v10693_v5 }
 0x583   :  { %10560 = vmatprep.subr.bf16.mxu0 %v16663_v37 }
 0x584   :  { %10531 = vmatmul.mubr.msk.bf16.vlgmr.msra.gmra.mxu1 %vm7112_vm2, %v7724_v9  ;;  %vm7909_vm2 = vcmask 523264  }
 0x585   :  { %10543 = vmatpush3.bf16.msra.mxu1 %v10688_v6  ;;  %7911 = vst.msk [vmem:[#allocation5 + $0x8] sm:$0xff] %vm7909_vm2, %v16663_v37  ;;  %7910 = vst.msk [vmem:[#allocation5] sm:$0xff] %vm7909_vm2, %v16663_v37  ;;  %10550 = vmatprep.mubr.msk.bf16.mxu1 %vm10730_vm8, %v16663_v37 }
 0x586   :  { %10544 = vmatprep.subr.bf16.mxu1 %v16663_v37  ;;  %7912 = vst.msk [vmem:[#allocation5 + $0x10] sm:$0xff] %vm7909_vm2, %v16663_v37  ;;  %7914 = vst.msk [vmem:[#allocation5 + $0x20] sm:$0xff] %vm7909_vm2, %v16663_v37  ;;  %10561 = vmatpush3.bf16.msra.mxu0 %v10695_v41 }
 0x587   :  { %7915 = vst.msk [vmem:[#allocation5 + $0x28] sm:$0xff] %vm7909_vm2, %v16663_v37  ;;  %7916 = vst.msk [vmem:[#allocation5 + $0x30] sm:$0xff] %vm7909_vm2, %v16663_v37  ;;  %10578 = vmatprep.subr.bf16.mxu0 %v16663_v37 }
 0x588   :  { %7918 = vst.msk [vmem:[#allocation5 + $0x40] sm:$0xff] %vm7909_vm2, %v16663_v37  ;;  %7919 = vst.msk [vmem:[#allocation5 + $0x48] sm:$0xff] %vm7909_vm2, %v16663_v37 }
 0x589   :  { %10545 = vmatpush3.bf16.msra.mxu1 %v10690_v53  ;;  %7920 = vst.msk [vmem:[#allocation5 + $0x50] sm:$0xff] %vm7909_vm2, %v16663_v37 }
 0x58a   :  { %10546 = vmatprep.subr.bf16.mxu1 %v16663_v37 }
 0x58c   :  { %v7932_v54 = vld [vmem:[#allocation5 + $0x8] sm:$0xff]  ;;  %v7931_v52 = vld [vmem:[#allocation5] sm:$0xff] }
 0x58d   :  { %10547 = vmatpush3.bf16.msra.mxu1 %v10692_v15  ;;  %v7949_v14 = vpack.c.bf16 %v7932_v54, %v7932_v54  ;;  %v7940_v44 = vpack.c.bf16 %v7931_v52, %v7931_v52  ;;  %v7933_v23 = vld [vmem:[#allocation5 + $0x10] sm:$0xff]  ;;  %v7934_v60 = vld [vmem:[#allocation5 + $0x20] sm:$0xff] }
 0x58e   :  { %10548 = vmatprep.subr.bf16.mxu1 %v16663_v37  ;;  %v8093_v36 = vpack.c.bf16 %v7933_v23, %v7933_v23  ;;  %v8171_v28 = vpack.c.bf16 %v7934_v60, %v7934_v60 }
 0x58f   :  { %10563 = vmatmul.mubr.msk.bf16.vlgmr.msra.gmra.mxu0 %vm7909_vm2, %v7940_v44 }
 0x590   :  { %10579 = vmatpush3.bf16.msra.mxu0 %v10697_v62  ;;  %10586 = vmatprep.mubr.msk.bf16.mxu0 %vm10730_vm8, %v16663_v37 }
 0x591   :  { %10549 = vmatpush3.bf16.msra.mxu1 %v10694_v38  ;;  %10580 = vmatprep.subr.bf16.mxu0 %v16663_v37 }
 0x592   :  { %10566 = vmatprep.subr.bf16.mxu1 %v16663_v37 }
 0x594   :  { %10551 = vmatmul.mubr.msk.bf16.vlgmr.msra.gmra.mxu1 %vm7909_vm2, %v7949_v14  ;;  %10581 = vmatpush3.bf16.msra.mxu0 %v10699_v17 }
 0x595   :  { %10567 = vmatpush3.bf16.msra.mxu1 %v10696_v42  ;;  %10574 = vmatprep.mubr.msk.bf16.mxu1 %vm10730_vm8, %v16663_v37 }
 0x596   :  { %10568 = vmatprep.subr.bf16.mxu1 %v16663_v37  ;;  %10582 = vmatprep.subr.bf16.mxu0 %v16663_v37 }
 0x598   :  { %10583 = vmatpush3.bf16.msra.mxu0 %v10701_v3 }
 0x599   :  { %10569 = vmatpush3.bf16.msra.mxu1 %v10698_v49  ;;  %10584 = vmatprep.subr.bf16.mxu0 %v16663_v37 }
 0x59a   :  { %10570 = vmatprep.subr.bf16.mxu1 %v16663_v37 }
 0x59c   :  { %10585 = vmatpush3.bf16.msra.mxu0 %v10703_v40 }
 0x59d   :  { %10571 = vmatpush3.bf16.msra.mxu1 %v10700_v48  ;;  %10602 = vmatprep.subr.bf16.mxu0 %v16663_v37  ;;  %v7872_v48 = vld [vmem:[%s15937_s6] sm:$0x7] }
 0x59e   :  { %10572 = vmatprep.subr.bf16.mxu1 %v16663_v37 }
 0x59f   :  { %10587 = vmatmul.mubr.msk.bf16.vlgmr.msra.gmra.mxu0 %vm7909_vm2, %v8171_v28  ;;  %v16664_v28 = vld [vmem:[#allocation102_spill] sm:$0xff] }
 0x5a0   :  { %10610 = vmatprep.mubr.msk.bf16.mxu0 %vm10730_vm8, %v16663_v37  ;;  %10603 = vmatpush3.bf16.msra.mxu0 %v10706_v43 }
 0x5a1   :  { %10573 = vmatpush3.bf16.msra.mxu1 %v10702_v59  ;;  %10604 = vmatprep.subr.bf16.mxu0 %v16663_v37 }
 0x5a2   :  { %10590 = vmatprep.subr.bf16.mxu1 %v16663_v37 }
 0x5a4   :  { %10575 = vmatmul.mubr.msk.bf16.vlgmr.msra.gmra.mxu1 %vm7909_vm2, %v8093_v36  ;;  %10605 = vmatpush3.bf16.msra.mxu0 %v10708_v57 }
 0x5a5   :  { %10598 = vmatprep.mubr.msk.bf16.mxu1 %vm10730_vm8, %v16663_v37  ;;  %10591 = vmatpush3.bf16.msra.mxu1 %v10704_v30  ;;  %v7876_v30 = vrot.slane %v7872_v48, %v16664_v28 }
 0x5a6   :  { %10592 = vmatprep.subr.bf16.mxu1 %v16663_v37  ;;  %10606 = vmatprep.subr.bf16.mxu0 %v16663_v37 }
 0x5a8   :  { %10607 = vmatpush3.bf16.msra.mxu0 %v10710_v47 }
 0x5a9   :  { %10593 = vmatpush3.bf16.msra.mxu1 %v10705_v31  ;;  %10608 = vmatprep.subr.bf16.mxu0 %v16663_v37 }
 0x5aa   :  { %10594 = vmatprep.subr.bf16.mxu1 %v16663_v37 }
 0x5ac   :  { %10609 = vmatpush3.bf16.msra.mxu0 %v10711_v7 }
 0x5ad   :  { %10595 = vmatpush3.bf16.msra.mxu1 %v10707_v24  ;;  %10626 = vmatprep.subr.bf16.mxu0 %v16663_v37 }
 0x5ae   :  { %10596 = vmatprep.subr.bf16.mxu1 %v16663_v37 }
 0x5b1   :  { %10597 = vmatpush3.bf16.msra.mxu1 %v10709_v4 }
 0x5b2   :  { %10614 = vmatprep.subr.bf16.mxu1 %v16663_v37 }
 0x61c   :  { %v10476_v46 = vpop.f32.mrf.mxu1 }
 0x61e   :  { %v7256_v12 = vpop.f32.mrf.mxu1 }
 0x620   :  { %v10477_v22 = vpop.f32.mrf.mxu1 }
 0x622   :  { %v7259_v2 = vpop.f32.mrf.mxu1 }
 0x624   :  { %v10484_v55 = vpop.f32.mrf.mxu1  ;;  %v10508_v35 = vpop.f32.mrf.mxu0 }
 0x625   :  { %v7332_v45 = vadd.f32 %v10484_v55, %v10476_v46  ;;  %v16665_v55 = vld [vmem:[#allocation15_spill] sm:$0xff] }
 0x626   :  { %v7323_v51 = vpop.f32.mrf.mxu1  ;;  %v7553_v19 = vpop.f32.mrf.mxu0 }
 0x627   :  { %v7324_v58 = vadd.f32 %v7323_v51, %v7256_v12 }
 0x628   :  { %v10485_v0 = vpop.f32.mrf.mxu1  ;;  %v10509_v50 = vpop.f32.mrf.mxu0 }
 0x629   :  { %v7335_v27 = vadd.f32 %v10485_v0, %v10477_v22 }
 0x62a   :  { %v7326_v32 = vpop.f32.mrf.mxu1  ;;  %v7556_v61 = vpop.f32.mrf.mxu0 }
 0x62b   :  { %v7327_v8 = vadd.f32 %v7326_v32, %v7259_v2 }
 0x62c   :  { %v10492_v63 = vpop.f32.mrf.mxu1 }
 0x62d   :  { %v7414_v33 = vadd.f32 %v10492_v63, %v7332_v45  ;;  %v7904_v63 = vrot.slane %v7872_v48, %v16625_v1 }
 0x62e   :  { %v7397_v20 = vpop.f32.mrf.mxu1 }
 0x62f   :  { %v7412_v39 = vadd.f32 %v7397_v20, %v7324_v58 }
 0x630   :  { %v10493_v21 = vpop.f32.mrf.mxu1  ;;  %v10524_v34 = vpop.f32.mrf.mxu0 }
 0x631   :  { %v7415_v9 = vadd.f32 %v10493_v21, %v7335_v27 }
 0x632   :  { %v7400_v13 = vpop.f32.mrf.mxu1  ;;  %v7705_v18 = vpop.f32.mrf.mxu0 }
 0x633   :  { %v7413_v38 = vadd.f32 %v7400_v13, %v7327_v8 }
 0x634   :  { %v10500_v26 = vpop.f32.mrf.mxu1  ;;  %v10525_v10 = vpop.f32.mrf.mxu0 }
 0x635   :  { %v7492_v25 = vadd.f32 %v10500_v26, %v7414_v33 }
 0x636   :  { %v7475_v16 = vpop.f32.mrf.mxu1  ;;  %v7708_v29 = vpop.f32.mrf.mxu0 }
 0x637   :  { %v7490_v6 = vadd.f32 %v7475_v16, %v7412_v39  ;;  %v7570_v5 = vadd.f32 %v10508_v35, %v7492_v25  ;;  %v7896_v35 = vrot.slane %v7872_v48, %v16665_v55  ;;  %v10719_v48 = vld [vmem:[%s15936_s7 + $0xe0] sm:$0xff]  }
 0x638   :  { %v10501_v56 = vpop.f32.mrf.mxu1 }
 0x639   :  { %v7493_v15 = vadd.f32 %v10501_v56, %v7415_v9  ;;  %v7568_v54 = vadd.f32 %v7553_v19, %v7490_v6  ;;  %v10540_v14 = vpop.f32.mrf.mxu0 }
 0x63a   :  { %v7478_v11 = vpop.f32.mrf.mxu1 }
 0x63b   :  { %v7491_v52 = vadd.f32 %v7478_v11, %v7413_v38  ;;  %v7571_v49 = vadd.f32 %v10509_v50, %v7493_v15  ;;  %v7853_v60 = vpop.f32.mrf.mxu0 }
 0x63c   :  { %v10516_v53 = vpop.f32.mrf.mxu1 }
 0x63d   :  { %v7648_v42 = vadd.f32 %v10516_v53, %v7570_v5  ;;  %v7569_v40 = vadd.f32 %v7556_v61, %v7491_v52  ;;  %v10541_v46 = vpop.f32.mrf.mxu0  ;;  %v10713_v5 = vld [vmem:[%s15936_s7 + $0xd0] sm:$0xff]  }
 0x63e   :  { %v7631_v41 = vpop.f32.mrf.mxu1  ;;  %v10716_v52 = vld [vmem:[%s15936_s7 + $0xf0] sm:$0xff]  }
 0x63f   :  { %v7646_v44 = vadd.f32 %v7631_v41, %v7568_v54  ;;  %v7722_v59 = vadd.f32 %v10524_v34, %v7648_v42  ;;  %v7856_v61 = vpop.f32.mrf.mxu0  ;;  %v10714_v41 = vld [vmem:[%s15936_s7 + $0xf8] sm:$0xff]   ;;  %v10715_v54 = vld [vmem:[%s15936_s7 + $0xc8] sm:$0xff]  }
 0x640   :  { %v10517_v62 = vpop.f32.mrf.mxu1 }
 0x641   :  { %v7649_v3 = vadd.f32 %v10517_v62, %v7571_v49  ;;  %v7720_v31 = vadd.f32 %v7705_v18, %v7646_v44  ;;  %v10717_v62 = vld [vmem:[%s15936_s7 + $0xc0] sm:$0xff]   ;;  %v10718_v44 = vld [vmem:[%s15936_s7 + $0xe8] sm:$0xff]  }
 0x642   :  { %v7634_v17 = vpop.f32.mrf.mxu1 }
 0x643   :  { %v7647_v43 = vadd.f32 %v7634_v17, %v7569_v40  ;;  %v7723_v47 = vadd.f32 %v10525_v10, %v7649_v3  ;;  %v10720_v17 = vld [vmem:[%s15936_s7 + $0x118] sm:$0xff]  }
 0x644   :  { %v10532_v23 = vpop.f32.mrf.mxu1 }
 0x645   :  { %v7796_v36 = vadd.f32 %v10532_v23, %v7722_v59  ;;  %v7721_v51 = vadd.f32 %v7708_v29, %v7647_v43  ;;  %v10712_v29 = vld [vmem:[%s15936_s7 + $0xd8] sm:$0xff]   ;;  %v10721_v59 = vld [vmem:[%s15936_s7 + $0x110] sm:$0xff]   ;;  %v10722_v23 = vld [vmem:[%s15936_s7 + $0x108] sm:$0xff]  }
 0x646   :  { %v7779_v24 = vpop.f32.mrf.mxu1 }
 0x647   :  { %v7870_v57 = vadd.f32 %v10540_v14, %v7796_v36  ;;  %v7794_v4 = vadd.f32 %v7779_v24, %v7720_v31  ;;  %v7937_v14 = vld [vmem:[#allocation5 + $0x40] sm:$0xff] }
 0x648   :  { %v10533_v7 = vpop.f32.mrf.mxu1  ;;  %v8405_v49 = vpack.c.bf16 %v7937_v14, %v7937_v14 }
 0x649   :  { %v7879_v12 = vadd.f32 %v7876_v30, %v7870_v57  ;;  %v7868_v22 = vadd.f32 %v7853_v60, %v7794_v4  ;;  %v7797_v2 = vadd.f32 %v10533_v7, %v7723_v47  ;;  %v10723_v60 = vld [vmem:[%s15936_s7 + $0x100] sm:$0xff]  }
 0x64a   :  { %v7782_v19 = vpop.f32.mrf.mxu1 }
 0x64b   :  { %vm7883_vm9 = vcmp.ge.f32.partialorder %v7879_v12, 0.0  ;;  %v7887_v0 = vmul.f32 0.2, %v7879_v12  ;;  %v7877_v32 = vadd.f32 %v7876_v30, %v7868_v22  ;;  %v7871_v50 = vadd.f32 %v10541_v46, %v7797_v2 }
 0x64c   :  { %v7795_v20 = vadd.f32 %v7782_v19, %v7721_v51 }
 0x64d   :  { %v7891_v21 = vsel %vm7883_vm9, %v7879_v12, %v7887_v0  ;;  %vm7881_vm10 = vcmp.ge.f32.partialorder %v7877_v32, 0.0  ;;  %v7885_v34 = vmul.f32 0.2, %v7877_v32  ;;  %v7880_v13 = vadd.f32 %v7876_v30, %v7871_v50 }
 0x64e   :  { %v7899_v26 = vmul.f32 %v7896_v35, %v7891_v21  ;;  %v7869_v45 = vadd.f32 %v7856_v61, %v7795_v20  ;;  %v16_v20 = vstv %s15938_s10 }
 0x64f   :  { %v7889_v18 = vsel %vm7881_vm10, %v7877_v32, %v7885_v34  ;;  %vm7884_vm11 = vcmp.ge.f32.partialorder %v7880_v13, 0.0  ;;  %v7888_v16 = vmul.f32 0.2, %v7880_v13  ;;  %17 = vst [vmem:[#allocation6] sm:$0x1] %v16_v20 }
 0x650   :  { %v7907_v58 = vadd.f32 %v7904_v63, %v7899_v26  ;;  %v7897_v33 = vmul.f32 %v7896_v35, %v7889_v18  ;;  %v7878_v56 = vadd.f32 %v7876_v30, %v7869_v45  ;;  %v8087_v30 = vpop.f32.mrf.mxu0 }
 0x651   :  { %v7892_v27 = vsel %vm7884_vm11, %v7880_v13, %v7888_v16 }
 0x652   :  { %7929 = vst.msk [vmem:[#allocation5 + $0x48] sm:$0xff] %vm7909_vm2, %v7907_v58  ;;  %v7905_v39 = vadd.f32 %v7904_v63, %v7897_v33  ;;  %v7900_v25 = vmul.f32 %v7896_v35, %v7892_v27  ;;  %vm7882_vm12 = vcmp.ge.f32.partialorder %v7878_v56, 0.0  ;;  %v7886_v10 = vmul.f32 0.2, %v7878_v56  ;;  %v10564_v57 = vpop.f32.mrf.mxu0 }
 0x654   :  { %7927 = vst.msk [vmem:[#allocation5 + $0x28] sm:$0xff] %vm7909_vm2, %v7905_v39  ;;  %v7908_v11 = vadd.f32 %v7904_v63, %v7900_v25  ;;  %v7890_v9 = vsel %vm7882_vm12, %v7878_v56, %v7886_v10  ;;  %v8020_v36 = vpop.f32.mrf.mxu1  ;;  %v8090_v7 = vpop.f32.mrf.mxu0 }
 0x655   :  { %v7898_v6 = vmul.f32 %v7896_v35, %v7890_v9  ;;  %v8088_v43 = vadd.f32 %v8087_v30, %v8020_v36 }
 0x656   :  { %7930 = vst.msk [vmem:[#allocation5 + $0x50] sm:$0xff] %vm7909_vm2, %v7908_v11  ;;  %v10552_v24 = vpop.f32.mrf.mxu1  ;;  %v10565_v12 = vpop.f32.mrf.mxu0 }
 0x657   :  { %v7906_v8 = vadd.f32 %v7904_v63, %v7898_v6 }
 0x658   :  { %v8023_v47 = vpop.f32.mrf.mxu1 }
 0x659   :  { %7928 = vst.msk [vmem:[#allocation5 + $0x30] sm:$0xff] %vm7909_vm2, %v7906_v8  ;;  %v7938_v3 = vld [vmem:[#allocation5 + $0x48] sm:$0xff]  ;;  %v8639_v8 = vld [vmem:[%s15939_s8] sm:$0x7] }
 0x65a   :  { %v8483_v40 = vpack.c.bf16 %v7938_v3, %v7938_v3  ;;  %v10553_v46 = vpop.f32.mrf.mxu1 }
 0x65b   :  { %v7935_v53 = vld [vmem:[#allocation5 + $0x28] sm:$0xff] }
 0x65c   :  { %v8249_v15 = vpack.c.bf16 %v7935_v53, %v7935_v53 }
 0x65d   :  { %v7939_v31 = vld [vmem:[#allocation5 + $0x50] sm:$0xff] }
 0x65e   :  { %10599 = vmatmul.mubr.msk.bf16.vlgmr.msra.gmra.mxu1 %vm7909_vm2, %v8249_v15  ;;  %v8561_v4 = vpack.c.bf16 %v7939_v31, %v7939_v31  ;;  %v8643_v15 = vrot.slane %v8639_v8, %v16664_v28 }
 0x65f   :  { %10615 = vmatpush3.bf16.msra.mxu1 %v10712_v29  ;;  %10622 = vmatprep.mubr.msk.bf16.mxu1 %vm10730_vm8, %v16663_v37  ;;  %v8242_v2 = vpop.f32.mrf.mxu0 }
 0x660   :  { %10616 = vmatprep.subr.bf16.mxu1 %v16663_v37  ;;  %v7936_v38 = vld [vmem:[#allocation5 + $0x30] sm:$0xff] }
 0x661   :  { %v8327_v42 = vpack.c.bf16 %v7936_v38, %v7936_v38  ;;  %v10588_v19 = vpop.f32.mrf.mxu0 }
 0x663   :  { %10611 = vmatmul.mubr.msk.bf16.vlgmr.msra.gmra.mxu0 %vm7909_vm2, %v8327_v42  ;;  %10617 = vmatpush3.bf16.msra.mxu1 %v10713_v5  ;;  %v8245_v32 = vpop.f32.mrf.mxu0 }
 0x664   :  { %10627 = vmatpush3.bf16.msra.mxu0 %v10714_v41  ;;  %10618 = vmatprep.subr.bf16.mxu1 %v16663_v37  ;;  %v8164_v22 = vpop.f32.mrf.mxu1 }
 0x665   :  { %10628 = vmatprep.subr.bf16.mxu0 %v16663_v37  ;;  %10634 = vmatprep.mubr.msk.bf16.mxu0 %vm10730_vm8, %v16663_v37  ;;  %v8170_v35 = vadd.f32 %v8164_v22, %v8088_v43  ;;  %v10589_v63 = vpop.f32.mrf.mxu0 }
 0x666   :  { %v10576_v51 = vpop.f32.mrf.mxu1 }
 0x667   :  { %10619 = vmatpush3.bf16.msra.mxu1 %v10715_v54 }
 0x668   :  { %10629 = vmatpush3.bf16.msra.mxu0 %v10716_v52  ;;  %10620 = vmatprep.subr.bf16.mxu1 %v16663_v37  ;;  %v8167_v0 = vpop.f32.mrf.mxu1  ;;  %v8651_v52 = vrot.slane %v8639_v8, %v16665_v55 }
 0x669   :  { %10630 = vmatprep.subr.bf16.mxu0 %v16663_v37 }
 0x66a   :  { %v10577_v50 = vpop.f32.mrf.mxu1 }
 0x66b   :  { %10621 = vmatpush3.bf16.msra.mxu1 %v10717_v62 }
 0x66c   :  { %10631 = vmatpush3.bf16.msra.mxu0 %v10718_v44  ;;  %10638 = vmatprep.subr.bf16.mxu1 %v16663_v37  ;;  %v8656_v44 = vrot.slane %v8639_v8, %v16625_v1 }
 0x66d   :  { %10632 = vmatprep.subr.bf16.mxu0 %v16663_v37 }
 0x66e   :  { %10623 = vmatmul.mubr.msk.bf16.vlgmr.msra.gmra.mxu1 %vm7909_vm2, %v8405_v49 }
 0x66f   :  { %10639 = vmatpush3.bf16.msra.mxu1 %v10720_v17  ;;  %10646 = vmatprep.mubr.msk.bf16.mxu1 %vm10730_vm8, %v16663_v37 }
 0x670   :  { %10633 = vmatpush3.bf16.msra.mxu0 %v10719_v48  ;;  %10640 = vmatprep.subr.bf16.mxu1 %v16663_v37  ;;  %v9253_v48 = vld [vmem:[%s15940_s9] ss:$0 sm:$0xff] }
 0x673   :  { %10635 = vmatmul.mubr.msk.bf16.vlgmr.msra.gmra.mxu0 %vm7909_vm2, %v8483_v40  ;;  %10641 = vmatpush3.bf16.msra.mxu1 %v10721_v59  ;;  %v9254_v59 = vld [vmem:[#allocation6] ss:$0 sm:$0xff] }
 0x674   :  { %10642 = vmatprep.subr.bf16.mxu1 %v16663_v37 }
 0x677   :  { %10643 = vmatpush3.bf16.msra.mxu1 %v10722_v23 }
 0x678   :  { %10644 = vmatprep.subr.bf16.mxu1 %v16663_v37  ;;  %v8248_v37 = vadd.f32 %v8242_v2, %v8170_v35 }
 0x67b   :  { %10645 = vmatpush3.bf16.msra.mxu1 %v10723_v60 }
 0x67e   :  { %10647 = vmatmul.mubr.msk.bf16.vlgmr.msra.gmra.mxu1 %vm7909_vm2, %v8561_v4 }
 0x71e   :  { %v8320_v61 = vpop.f32.mrf.mxu1 }
 0x71f   :  { %v8326_v10 = vadd.f32 %v8320_v61, %v8248_v37 }
 0x720   :  { %v10600_v21 = vpop.f32.mrf.mxu1 }
 0x722   :  { %v8323_v34 = vpop.f32.mrf.mxu1 }
 0x723   :  { %v8398_v13 = vpop.f32.mrf.mxu0 }
 0x724   :  { %v10601_v26 = vpop.f32.mrf.mxu1  ;;  %v8404_v9 = vadd.f32 %v8398_v13, %v8326_v10 }
 0x725   :  { %v10612_v45 = vpop.f32.mrf.mxu0 }
 0x727   :  { %v8401_v18 = vpop.f32.mrf.mxu0 }
 0x729   :  { %v10613_v16 = vpop.f32.mrf.mxu0 }
 0x72e   :  { %v8476_v58 = vpop.f32.mrf.mxu1 }
 0x72f   :  { %v8482_v53 = vadd.f32 %v8476_v58, %v8404_v9 }
 0x730   :  { %v10624_v33 = vpop.f32.mrf.mxu1 }
 0x732   :  { %v8479_v56 = vpop.f32.mrf.mxu1 }
 0x733   :  { %v8554_v27 = vpop.f32.mrf.mxu0 }
 0x734   :  { %v10625_v39 = vpop.f32.mrf.mxu1  ;;  %v8560_v29 = vadd.f32 %v8554_v27, %v8482_v53 }
 0x735   :  { %v10636_v25 = vpop.f32.mrf.mxu0 }
 0x737   :  { %v8557_v11 = vpop.f32.mrf.mxu0 }
 0x739   :  { %v10637_v6 = vpop.f32.mrf.mxu0 }
 0x73e   :  { %v8632_v5 = vpop.f32.mrf.mxu1 }
 0x73f   :  { %v8638_v38 = vadd.f32 %v8632_v5, %v8560_v29 }
 0x740   :  { %v10648_v41 = vpop.f32.mrf.mxu1 }
 0x741   :  { %v8644_v42 = vadd.f32 %v8643_v15, %v8638_v38 }
 0x742   :  { %v8635_v54 = vpop.f32.mrf.mxu1 }
 0x743   :  { %vm8645_vm13 = vcmp.ge.f32.partialorder %v8644_v42, 0.0  ;;  %v8646_v62 = vmul.f32 0.2, %v8644_v42 }
 0x744   :  { %v10649_v14 = vpop.f32.mrf.mxu1 }
 0x745   :  { %v8647_v49 = vsel %vm8645_vm13, %v8644_v42, %v8646_v62 }
 0x746   :  { %v8652_v17 = vmul.f32 %v8651_v52, %v8647_v49 }
 0x748   :  { %v8657_v3 = vadd.f32 %v8656_v44, %v8652_v17 }
 0x74a   :  { %v8665_v28 = vmul.f32 %v9253_v48, %v8657_v3 }
 0x74c   :  { %8667 = vadd.xlane.f32.xlu0 %v8665_v28 }
 0x7d5   :  { %v8668_v40 = vpop.xlane.xlu0 %8667 }
 0x7d6   :  { %v8676_v23 = vadd.f32 %v9254_v59, %v8668_v40 }
 0x7d8   :  { %8678 = vst.msk [vmem:[%s15941_s11] sm:$0xff] %vm8677_vm14, %v8676_v23 }

</bundles_post_ra>
